<compile_context>
chip_gen: v7x
topology: tpu7x:2x2x1
jax: 0.10.0
libtpu: 0.0.40
codegen_flags: <defaults>
</compile_context>

<pallas_src>
import functools

import numpy as np
import jax
import jax.numpy as jnp
from jax.experimental import pallas as pl
from jax.experimental.pallas import tpu as pltpu

MID = 256                 # mid_channel in the PyTorch module
DILS = (1, 2, 4, 8)       # dilations
PAD = max(DILS)           # halo = max dilation (8)
LANE = 128                # TPU lane width
EPS = 1e-5                # BatchNorm eps
PER_TAP_MIN_CIN = 128     # switch to per-tap K=Cin matmuls at backbone widths


# ----------------------------------------------------------------------------------
# Pallas kernel: one grid step == one batch element.
# ----------------------------------------------------------------------------------
def _aspp_kernel(H, W, Cin, CoutP, per_tap, io_dtype,
                 x_ref, w1_ref, w2_ref, w3_ref, w4_ref, w5_ref, wc_ref,
                 s_ref, b_ref, sc_ref, bc_ref,
                 o_ref, xpad_ref, acc_ref, *mid_scratch):
    HW = H * W
    Hp = H + 2 * PAD
    Wp = W + 2 * PAD

    x = x_ref[0]                                   # (H, W, Cin), io_dtype
    x_flat = x.reshape(HW, Cin)

    # Zero only the PAD-wide halo ring; the interior is fully overwritten below.
    # Done every grid step (not under pl.when(program_id == 0)) so it stays correct
    # if the "parallel" batch axis is split across TensorCores; the ring is a small
    # fraction of the old full-buffer fill (which hurt on v5e's single vst slot).
    zrow = jnp.zeros((PAD, Wp, Cin), io_dtype)
    zcol = jnp.zeros((H, PAD, Cin), io_dtype)
    xpad_ref[0:PAD, :, :] = zrow
    xpad_ref[PAD + H:Hp, :, :] = zrow
    xpad_ref[PAD:PAD + H, 0:PAD, :] = zcol
    xpad_ref[PAD:PAD + H, PAD + W:Wp, :] = zcol
    xpad_ref[PAD:PAD + H, PAD:PAD + W, :] = x

    def dot32(a, b):
        # MXU matmul, f32 accumulation (inputs are bf16 in the production mode).
        return jnp.dot(a, b, preferred_element_type=jnp.float32)

    def bn_relu(y, i):
        # fused eval-mode BatchNorm + ReLU in f32: max(y * scale + bias, 0)
        return jnp.maximum(y * s_ref[i] + b_ref[i], 0.0)

    def wc_slice(i):
        # (MID, CoutP) slice of the conv2 weight; start is a multiple of 256.
        return wc_ref[i * MID:(i + 1) * MID, :]

    # ---- branch 1 (1x1 conv -> BN -> ReLU): initializes the fused-concat accumulator
    y = bn_relu(dot32(x_flat, w1_ref[...]), 0)
    acc_ref[...] = dot32(y.astype(io_dtype), wc_slice(0))           # (HW, CoutP)

    # ---- branches 2-4: dilated 3x3 convs --------------------------------------------
    for i, dil, w_ref in ((1, DILS[1], w2_ref),
                          (2, DILS[2], w3_ref),
                          (3, DILS[3], w4_ref)):
        if per_tap:
            # Production path (Cin >= 128): 9 accumulating K=Cin matmuls into a
            # pinned (HW, MID) f32 scratch -> no (HW, 9*Cin) im2col buffer and no
            # 9x tap-copy passes; K=Cin already saturates the MXU contraction dim.
            mid_ref = mid_scratch[0]
            for t in range(9):
                ky, kx = t // 3, t % 3
                oy = PAD + dil * (ky - 1)
                ox = PAD + dil * (kx - 1)
                # TODO(synk): for production, replace this unaligned-W read with
                # pltpu.roll(xpad, -dil*(kx-1), axis=1) + the 8-aligned window
                # [:, PAD:PAD+W, :], moving the shift onto the idle XLU slot
                # instead of a sublane re-layout copy.
                tap = xpad_ref[oy:oy + H, ox:ox + W, :].reshape(HW, Cin)
                p = dot32(tap, w_ref[t])
                if t == 0:
                    mid_ref[...] = p
                else:
                    mid_ref[...] += p
            y = bn_relu(mid_ref[...], i)
        else:
            # Tiny-Cin path (test shape): one im2col matmul (K = 9*Cin) so the MXU
            # contraction dim is not starved when Cin is far below 128.
            taps = []
            for ky in range(3):
                for kx in range(3):
                    oy = PAD + dil * (ky - 1)
                    ox = PAD + dil * (kx - 1)
                    taps.append(xpad_ref[oy:oy + H, ox:ox + W, :].reshape(HW, Cin))
            patch = jnp.concatenate(taps, axis=-1)                  # (HW, 9*Cin)
            y = bn_relu(dot32(patch, w_ref[...]), i)
        # fused concat: contract against this branch's conv2 slice immediately.
        acc_ref[...] += dot32(y.astype(io_dtype), wc_slice(i))

    # ---- branch 5: global avg pool -> 1x1 conv -> BN -> ReLU (rank-1 contribution) --
    gx = jnp.mean(x_flat.astype(jnp.float32), axis=0, keepdims=True)    # (1, Cin)
    y5 = bn_relu(dot32(gx.astype(io_dtype), w5_ref[...]), 4)            # (1, MID)
    acc_ref[...] += dot32(y5.astype(io_dtype), wc_slice(4))             # broadcast add

    # ---- bn2 + ReLU; lane-dense (CoutP % 128 == 0) 2-D store, no (H,W) reshape ------
    o_ref[0] = jnp.maximum(acc_ref[...] * sc_ref[...] + bc_ref[...], 0.0
                           ).astype(o_ref.dtype)


# ----------------------------------------------------------------------------------
# Wrapper: NCHW -> NHWC, launch pallas_call over the batch, undo lane padding, NCHW.
# ----------------------------------------------------------------------------------
def aspp_forward_pallas(x_nchw, kp, *, io_dtype=jnp.bfloat16, force_per_tap=None):
    N, Cin, H, W = x_nchw.shape
    Cout = int(kp["cout"])
    CoutP = kp["wc"].shape[-1]
    HW = H * W
    Hp, Wp = H + 2 * PAD, W + 2 * PAD

    per_tap = (Cin >= PER_TAP_MIN_CIN) if force_per_tap is None else bool(force_per_tap)

    # NHWC so channels ride the 128-lane axis; bf16 storage with f32 accumulation is
    # the production default (halves VMEM, ~2x MXU rate on v5e/v6e/v7x).
    x = jnp.transpose(x_nchw, (0, 2, 3, 1)).astype(io_dtype)

    w1 = kp["w1"].astype(io_dtype)
    w5 = kp["w5"].astype(io_dtype)
    wc = kp["wc"].astype(io_dtype)

    def prep3x3(w):                                  # (9, Cin, MID), tap-major
        w = w.astype(io_dtype)
        return w if per_tap else w.reshape(9 * Cin, MID)   # wrapper-side reshape: free
    w2, w3, w4 = prep3x3(kp["w2"]), prep3x3(kp["w3"]), prep3x3(kp["w4"])

    kernel = functools.partial(_aspp_kernel, H, W, Cin, CoutP, per_tap, io_dtype)

    # Weights / folded-BN params: whole array resident in VMEM, single-buffered
    # (their block never changes across the batch grid; default double-buffering
    # would only waste VMEM -- decisive at backbone Cin on v7x's 64 MiB).
    resident = pl.BlockSpec(memory_space=pltpu.MemorySpace.VMEM)

    scratch_shapes = [
        pltpu.VMEM((Hp, Wp, Cin), io_dtype),         # zero-halo input image
        pltpu.VMEM((HW, CoutP), jnp.float32),        # pinned fused-concat accumulator
    ]
    if per_tap:
        scratch_shapes.append(pltpu.VMEM((HW, MID), jnp.float32))   # per-branch mid acc

    grid_spec = pltpu.PrefetchScalarGridSpec(
        num_scalar_prefetch=0,
        grid=(N,),
        in_specs=[
            pl.BlockSpec((1, H, W, Cin), lambda n: (n, 0, 0, 0)),   # pipelined input
            resident, resident, resident, resident, resident, resident,   # w1..w5, wc
            resident, resident, resident, resident,                       # s, b, sc, bc
        ],
        out_specs=pl.BlockSpec((1, HW, CoutP), lambda n: (n, 0, 0)),
        scratch_shapes=scratch_shapes,
    )

    # Scoped-VMEM budget sized from the actual buffers (+50% headroom) instead of a
    # flat constant.  x/out blocks are double-buffered by the pipeline; weights are
    # resident (one copy).  TODO(synk): production H,W,Cin on v7x (64 MiB VMEM)
    # additionally needs a row-tiled second "parallel" grid axis with halo DMA.
    isz = np.dtype(io_dtype).itemsize
    weight_bytes = int(sum(a.size for a in (w1, w2, w3, w4, w5, wc)) * isz
                       + sum(kp[k].size for k in ("s", "b", "sc", "bc")) * 4)
    block_bytes = 2 * H * W * Cin * isz + 2 * HW * CoutP * 4
    scratch_bytes = (Hp * Wp * Cin * isz + HW * CoutP * 4
                     + (HW * MID * 4 if per_tap else 0))
    vmem_bytes = int(1.5 * (weight_bytes + block_bytes + scratch_bytes)) + (4 << 20)
    vmem_bytes = min(max(vmem_bytes, 16 << 20), 96 << 20)

    flops = N * (2 * HW * Cin * MID                  # 1x1 branch
                 + 3 * 2 * HW * 9 * Cin * MID        # dilated 3x3 branches
                 + 2 * Cin * MID                     # pooled 1x1 conv
                 + 4 * 2 * HW * MID * CoutP          # fused concat-conv2 (4 branches)
                 + 2 * MID * CoutP)                  # rank-1 pooled contribution
    bytes_accessed = N * (H * W * Cin * isz + HW * CoutP * 4) + weight_bytes

    out = pl.pallas_call(
        kernel,
        out_shape=jax.ShapeDtypeStruct((N, HW, CoutP), jnp.float32),
        grid_spec=grid_spec,
        compiler_params=pltpu.CompilerParams(
            dimension_semantics=("parallel",),       # batch images are independent
            vmem_limit_bytes=vmem_bytes,
        ),
        cost_estimate=pl.CostEstimate(flops=flops, transcendentals=0,
                                      bytes_accessed=bytes_accessed),
    )(x, w1, w2, w3, w4, w5, wc, kp["s"], kp["b"], kp["sc"], kp["bc"])

    # Lane-padding slice + (HW) -> (H, W) reshape + NHWC -> NCHW: free wrapper plumbing.
    out = out.reshape(N, H, W, CoutP)[..., :Cout]
    return jnp.transpose(out, (0, 3, 1, 2))


# ----------------------------------------------------------------------------------
# Deterministic parameter initialization (synthetic weights, no checkpoint).
# Returns (torch_style_params_for_reference, kernel_style_params).
# ----------------------------------------------------------------------------------
def init_params(key, in_ch, out_ch):
    ks = jax.random.split(key, 12)

    def w(k, shape, scale=0.1):
        return scale * jax.random.normal(k, shape, jnp.float32)

    # PyTorch-shaped conv weights (O, I, kH, kW), all bias=False
    w1_t = w(ks[0], (MID, in_ch, 1, 1))
    w2_t = w(ks[1], (MID, in_ch, 3, 3))
    w3_t = w(ks[2], (MID, in_ch, 3, 3))
    w4_t = w(ks[3], (MID, in_ch, 3, 3))
    w5_t = w(ks[4], (MID, in_ch, 1, 1))
    wc_t = w(ks[5], (out_ch, 5 * MID, 1, 1))

    def bn(k, c):
        k1, k2, k3, k4 = jax.random.split(k, 4)
        gamma = 1.0 + 0.1 * jax.random.normal(k1, (c,), jnp.float32)
        beta = 0.05 * jax.random.normal(k2, (c,), jnp.float32)
        mean = 0.1 * jax.random.normal(k3, (c,), jnp.float32)
        var = jax.random.uniform(k4, (c,), jnp.float32, minval=0.5, maxval=1.5)
        s = gamma / jnp.sqrt(var + EPS)
        b = beta - mean * s
        return s, b

    sbs = [bn(ks[6 + i], MID) for i in range(5)]
    sc, bc = bn(ks[11], out_ch)

    torch_params = {"w1": w1_t, "w2": w2_t, "w3": w3_t, "w4": w4_t, "w5": w5_t,
                    "wc": wc_t, "sb": sbs, "sbc": (sc, bc)}

    # Lane-dense output: pad the conv2 output channels up to a multiple of 128.
    cout_pad = ((out_ch + LANE - 1) // LANE) * LANE
    wc_k = jnp.transpose(wc_t[:, :, 0, 0])                               # (5*MID, Cout)
    wc_k = jnp.pad(wc_k, ((0, 0), (0, cout_pad - out_ch)))               # (5*MID, CoutP)
    sc_k = jnp.pad(sc.reshape(1, out_ch), ((0, 0), (0, cout_pad - out_ch)))
    bc_k = jnp.pad(bc.reshape(1, out_ch), ((0, 0), (0, cout_pad - out_ch)))

    def w3x3(wt):
        # (O, I, 3, 3) -> (kH, kW, I, O) -> (9, Cin, MID); tap order t = ky*3 + kx
        # matches both the per-tap loop and the fused im2col column order.
        return jnp.transpose(wt, (2, 3, 1, 0)).reshape(9, in_ch, MID)

    kernel_params = {
        "w1": jnp.transpose(w1_t[:, :, 0, 0]),                           # (Cin, MID)
        "w2": w3x3(w2_t), "w3": w3x3(w3_t), "w4": w3x3(w4_t),            # (9, Cin, MID)
        "w5": jnp.transpose(w5_t[:, :, 0, 0]),                           # (Cin, MID)
        "wc": wc_k,                                                      # (5*MID, CoutP)
        "s": jnp.stack([s for s, _ in sbs]).reshape(5, 1, MID),
        "b": jnp.stack([b for _, b in sbs]).reshape(5, 1, MID),
        "sc": sc_k, "bc": bc_k,                                          # (1, CoutP)
        "cout": out_ch,
    }
    return torch_params, kernel_params


# ----------------------------------------------------------------------------------
# Pure-JAX reference (mirrors the PyTorch forward with eval-mode BN).
# ----------------------------------------------------------------------------------
def aspp_reference(x, tp):
    def conv(x, w, dil=1, pad=0):
        return jax.lax.conv_general_dilated(
            x, w, (1, 1), [(pad, pad), (pad, pad)], rhs_dilation=(dil, dil),
            dimension_numbers=("NCHW", "OIHW", "NCHW"))

    def bnr(y, sb):
        s, b = sb
        return jnp.maximum(y * s[None, :, None, None] + b[None, :, None, None], 0.0)

    x1 = bnr(conv(x, tp["w1"]), tp["sb"][0])
    x2 = bnr(conv(x, tp["w2"], DILS[1], DILS[1]), tp["sb"][1])
    x3 = bnr(conv(x, tp["w3"], DILS[2], DILS[2]), tp["sb"][2])
    x4 = bnr(conv(x, tp["w4"], DILS[3], DILS[3]), tp["sb"][3])
    gp = jnp.mean(x, axis=(2, 3), keepdims=True)
    x5 = bnr(conv(gp, tp["w5"]), tp["sb"][4])
    x5 = jnp.broadcast_to(x5, (x.shape[0], MID, x.shape[2], x.shape[3]))
    cat = jnp.concatenate([x1, x2, x3, x4, x5], axis=1)
    return bnr(conv(cat, tp["wc"]), tp["sbc"])


if __name__ == "__main__":
    key = jax.random.PRNGKey(0)
    kx, kparams = jax.random.split(key)

    N, Cin, H, W, Cout = 2, 4, 16, 16, 16
    x = jax.random.normal(kx, (N, Cin, H, W), jnp.float32)     # NCHW, like PyTorch

    torch_params, kernel_params = init_params(kparams, Cin, Cout)
    ref = aspp_reference(x, torch_params)

    # f32 path (fused im2col branch structure used at tiny Cin): tight check.
    out_f32 = jax.block_until_ready(
        aspp_forward_pallas(x, kernel_params, io_dtype=jnp.float32))
    np.testing.assert_allclose(np.asarray(out_f32), np.asarray(ref),
                               rtol=2e-4, atol=2e-4)

    # f32 path with per-tap matmuls forced: exercises the production (Cin >= 128)
    # branch structure at the small test shape.
    out_pt = jax.block_until_ready(
        aspp_forward_pallas(x, kernel_params, io_dtype=jnp.float32,
                            force_per_tap=True))
    np.testing.assert_allclose(np.asarray(out_pt), np.asarray(ref),
                               rtol=2e-4, atol=2e-4)

    # bf16 storage / f32 accumulation (production default): loose check
    # (bf16 rounding of inputs, weights and branch activations).
    out_bf16 = jax.block_until_ready(
        aspp_forward_pallas(x, kernel_params, io_dtype=jnp.bfloat16))
    np.testing.assert_allclose(np.asarray(out_bf16), np.asarray(ref),
                               rtol=1e-1, atol=1e-1)

    print("KERNEL_OK")
</pallas_src>

<mosaic_0001>
module attributes {stable_mosaic.version = 11 : i64} {
  func.func @_aspp_kernel(%arg0: i32, %arg1: memref<1x16x16x4xf32, #tpu.memory_space<vmem>>, %arg2: memref<4x256xf32, #tpu.memory_space<vmem>>, %arg3: memref<36x256xf32, #tpu.memory_space<vmem>>, %arg4: memref<36x256xf32, #tpu.memory_space<vmem>>, %arg5: memref<36x256xf32, #tpu.memory_space<vmem>>, %arg6: memref<4x256xf32, #tpu.memory_space<vmem>>, %arg7: memref<1280x128xf32, #tpu.memory_space<vmem>>, %arg8: memref<5x1x256xf32, #tpu.memory_space<vmem>>, %arg9: memref<5x1x256xf32, #tpu.memory_space<vmem>>, %arg10: memref<1x128xf32, #tpu.memory_space<vmem>>, %arg11: memref<1x128xf32, #tpu.memory_space<vmem>>, %arg12: memref<1x256x128xf32, #tpu.memory_space<vmem>>, %arg13: memref<32x32x4xf32, #tpu.memory_space<vmem>>, %arg14: memref<256x128xf32, #tpu.memory_space<vmem>>) attributes {dimension_semantics = [#tpu.dimension_semantics<parallel>], iteration_bounds = array<i64: 2>, scalar_prefetch = 0 : i64, scratch_operands = 2 : i64, tpu.core_type = #tpu.core_type<tc>, window_params = [{transform_indices = @transform_0, window_bounds = array<i64: 1, 16, 16, 4>}, {pipeline_mode = #tpu.pipeline_mode<synchronous>, transform_indices = @transform_1, window_bounds = array<i64: 4, 256>}, {pipeline_mode = #tpu.pipeline_mode<synchronous>, transform_indices = @transform_2, window_bounds = array<i64: 36, 256>}, {pipeline_mode = #tpu.pipeline_mode<synchronous>, transform_indices = @transform_3, window_bounds = array<i64: 36, 256>}, {pipeline_mode = #tpu.pipeline_mode<synchronous>, transform_indices = @transform_4, window_bounds = array<i64: 36, 256>}, {pipeline_mode = #tpu.pipeline_mode<synchronous>, transform_indices = @transform_5, window_bounds = array<i64: 4, 256>}, {pipeline_mode = #tpu.pipeline_mode<synchronous>, transform_indices = @transform_6, window_bounds = array<i64: 1280, 128>}, {pipeline_mode = #tpu.pipeline_mode<synchronous>, transform_indices = @transform_7, window_bounds = array<i64: 5, 1, 256>}, {pipeline_mode = #tpu.pipeline_mode<synchronous>, transform_indices = @transform_8, window_bounds = array<i64: 5, 1, 256>}, {pipeline_mode = #tpu.pipeline_mode<synchronous>, transform_indices = @transform_9, window_bounds = array<i64: 1, 128>}, {pipeline_mode = #tpu.pipeline_mode<synchronous>, transform_indices = @transform_10, window_bounds = array<i64: 1, 128>}, {transform_indices = @transform_11, window_bounds = array<i64: 1, 256, 128>}]} {
    %c0 = arith.constant 0 : index
    %c0_0 = arith.constant 0 : index
    %c0_1 = arith.constant 0 : index
    %c0_2 = arith.constant 0 : index
    %0 = vector.load %arg1[%c0, %c0_0, %c0_1, %c0_2] : memref<1x16x16x4xf32, #tpu.memory_space<vmem>>, vector<1x16x16x4xf32>
    %1 = vector.shape_cast %0 : vector<1x16x16x4xf32> to vector<16x16x4xf32>
    %2 = vector.shape_cast %1 : vector<16x16x4xf32> to vector<256x4xf32>
    %cst = arith.constant 0.000000e+00 : f32
    %3 = vector.broadcast %cst : f32 to vector<8x32x4xf32>
    %cst_3 = arith.constant 0.000000e+00 : f32
    %4 = vector.broadcast %cst_3 : f32 to vector<16x8x4xf32>
    %c0_4 = arith.constant 0 : index
    %c0_5 = arith.constant 0 : index
    %c0_6 = arith.constant 0 : index
    %5 = vector.load %arg13[%c0_4, %c0_5, %c0_6] : memref<32x32x4xf32, #tpu.memory_space<vmem>>, vector<8x32x4xf32>
    tpu.vector_store %arg13[%c0_4, %c0_5, %c0_6], %3 {strides = array<i32>} : memref<32x32x4xf32, #tpu.memory_space<vmem>>, vector<8x32x4xf32>,
    %c24 = arith.constant 24 : index
    %c0_7 = arith.constant 0 : index
    %c0_8 = arith.constant 0 : index
    %6 = vector.load %arg13[%c24, %c0_7, %c0_8] : memref<32x32x4xf32, #tpu.memory_space<vmem>>, vector<8x32x4xf32>
    tpu.vector_store %arg13[%c24, %c0_7, %c0_8], %3 {strides = array<i32>} : memref<32x32x4xf32, #tpu.memory_space<vmem>>, vector<8x32x4xf32>,
    %c8 = arith.constant 8 : index
    %c0_9 = arith.constant 0 : index
    %c0_10 = arith.constant 0 : index
    %7 = vector.load %arg13[%c8, %c0_9, %c0_10] : memref<32x32x4xf32, #tpu.memory_space<vmem>>, vector<16x8x4xf32>
    tpu.vector_store %arg13[%c8, %c0_9, %c0_10], %4 {strides = array<i32>} : memref<32x32x4xf32, #tpu.memory_space<vmem>>, vector<16x8x4xf32>,
    %c8_11 = arith.constant 8 : index
    %c24_12 = arith.constant 24 : index
    %c0_13 = arith.constant 0 : index
    %8 = vector.load %arg13[%c8_11, %c24_12, %c0_13] : memref<32x32x4xf32, #tpu.memory_space<vmem>>, vector<16x8x4xf32>
    tpu.vector_store %arg13[%c8_11, %c24_12, %c0_13], %4 {strides = array<i32>} : memref<32x32x4xf32, #tpu.memory_space<vmem>>, vector<16x8x4xf32>,
    %c8_14 = arith.constant 8 : index
    %c8_15 = arith.constant 8 : index
    %c0_16 = arith.constant 0 : index
    %9 = vector.load %arg13[%c8_14, %c8_15, %c0_16] : memref<32x32x4xf32, #tpu.memory_space<vmem>>, vector<16x16x4xf32>
    tpu.vector_store %arg13[%c8_14, %c8_15, %c0_16], %1 {strides = array<i32>} : memref<32x32x4xf32, #tpu.memory_space<vmem>>, vector<16x16x4xf32>,
    %c0_17 = arith.constant 0 : index
    %c0_18 = arith.constant 0 : index
    %10 = vector.load %arg2[%c0_17, %c0_18] : memref<4x256xf32, #tpu.memory_space<vmem>>, vector<4x256xf32>
    %cst_19 = arith.constant dense<0.000000e+00> : vector<256x256xf32>
    %11 = tpu.matmul %2, %10, %cst_19 {dimension_numbers = #tpu.dot_dimension_numbers<[1], [0], [0], [1], [0, 0, 1, 1], [], []>} : vector<256x4xf32>, vector<4x256xf32>, vector<256x256xf32> -> vector<256x256xf32>
    %c0_20 = arith.constant 0 : index
    %c0_21 = arith.constant 0 : index
    %c0_22 = arith.constant 0 : index
    %12 = vector.load %arg8[%c0_20, %c0_21, %c0_22] : memref<5x1x256xf32, #tpu.memory_space<vmem>>, vector<1x1x256xf32>
    %13 = vector.shape_cast %12 : vector<1x1x256xf32> to vector<1x256xf32>
    %14 = vector.broadcast %13 : vector<1x256xf32> to vector<256x256xf32>
    %15 = arith.mulf %11, %14 : vector<256x256xf32>
    %c0_23 = arith.constant 0 : index
    %c0_24 = arith.constant 0 : index
    %c0_25 = arith.constant 0 : index
    %16 = vector.load %arg9[%c0_23, %c0_24, %c0_25] : memref<5x1x256xf32, #tpu.memory_space<vmem>>, vector<1x1x256xf32>
    %17 = vector.shape_cast %16 : vector<1x1x256xf32> to vector<1x256xf32>
    %18 = vector.broadcast %17 : vector<1x256xf32> to vector<256x256xf32>
    %19 = arith.addf %15, %18 : vector<256x256xf32>
    %cst_26 = arith.constant 0.000000e+00 : f32
    %20 = vector.broadcast %cst_26 : f32 to vector<256x256xf32>
    %21 = arith.maximumf %19, %20 : vector<256x256xf32>
    %c0_27 = arith.constant 0 : index
    %c0_28 = arith.constant 0 : index
    %22 = vector.load %arg7[%c0_27, %c0_28] : memref<1280x128xf32, #tpu.memory_space<vmem>>, vector<256x128xf32>
    %cst_29 = arith.constant dense<0.000000e+00> : vector<256x128xf32>
    %23 = tpu.matmul %21, %22, %cst_29 {dimension_numbers = #tpu.dot_dimension_numbers<[1], [0], [0], [1], [0, 0, 1, 1], [], []>} : vector<256x256xf32>, vector<256x128xf32>, vector<256x128xf32> -> vector<256x128xf32>
    %c0_30 = arith.constant 0 : index
    %c0_31 = arith.constant 0 : index
    %24 = vector.load %arg14[%c0_30, %c0_31] : memref<256x128xf32, #tpu.memory_space<vmem>>, vector<256x128xf32>
    tpu.vector_store %arg14[%c0_30, %c0_31], %23 {strides = array<i32>} : memref<256x128xf32, #tpu.memory_space<vmem>>, vector<256x128xf32>,
    %c6 = arith.constant 6 : index
    %c6_32 = arith.constant 6 : index
    %c0_33 = arith.constant 0 : index
    %25 = vector.load %arg13[%c6, %c6_32, %c0_33] : memref<32x32x4xf32, #tpu.memory_space<vmem>>, vector<16x16x4xf32>
    %26 = vector.shape_cast %25 : vector<16x16x4xf32> to vector<256x4xf32>
    %c6_34 = arith.constant 6 : index
    %c8_35 = arith.constant 8 : index
    %c0_36 = arith.constant 0 : index
    %27 = vector.load %arg13[%c6_34, %c8_35, %c0_36] : memref<32x32x4xf32, #tpu.memory_space<vmem>>, vector<16x16x4xf32>
    %28 = vector.shape_cast %27 : vector<16x16x4xf32> to vector<256x4xf32>
    %c6_37 = arith.constant 6 : index
    %c10 = arith.constant 10 : index
    %c0_38 = arith.constant 0 : index
    %29 = vector.load %arg13[%c6_37, %c10, %c0_38] : memref<32x32x4xf32, #tpu.memory_space<vmem>>, vector<16x16x4xf32>
    %30 = vector.shape_cast %29 : vector<16x16x4xf32> to vector<256x4xf32>
    %c8_39 = arith.constant 8 : index
    %c6_40 = arith.constant 6 : index
    %c0_41 = arith.constant 0 : index
    %31 = vector.load %arg13[%c8_39, %c6_40, %c0_41] : memref<32x32x4xf32, #tpu.memory_space<vmem>>, vector<16x16x4xf32>
    %32 = vector.shape_cast %31 : vector<16x16x4xf32> to vector<256x4xf32>
    %c8_42 = arith.constant 8 : index
    %c8_43 = arith.constant 8 : index
    %c0_44 = arith.constant 0 : index
    %33 = vector.load %arg13[%c8_42, %c8_43, %c0_44] : memref<32x32x4xf32, #tpu.memory_space<vmem>>, vector<16x16x4xf32>
    %34 = vector.shape_cast %33 : vector<16x16x4xf32> to vector<256x4xf32>
    %c8_45 = arith.constant 8 : index
    %c10_46 = arith.constant 10 : index
    %c0_47 = arith.constant 0 : index
    %35 = vector.load %arg13[%c8_45, %c10_46, %c0_47] : memref<32x32x4xf32, #tpu.memory_space<vmem>>, vector<16x16x4xf32>
    %36 = vector.shape_cast %35 : vector<16x16x4xf32> to vector<256x4xf32>
    %c10_48 = arith.constant 10 : index
    %c6_49 = arith.constant 6 : index
    %c0_50 = arith.constant 0 : index
    %37 = vector.load %arg13[%c10_48, %c6_49, %c0_50] : memref<32x32x4xf32, #tpu.memory_space<vmem>>, vector<16x16x4xf32>
    %38 = vector.shape_cast %37 : vector<16x16x4xf32> to vector<256x4xf32>
    %c10_51 = arith.constant 10 : index
    %c8_52 = arith.constant 8 : index
    %c0_53 = arith.constant 0 : index
    %39 = vector.load %arg13[%c10_51, %c8_52, %c0_53] : memref<32x32x4xf32, #tpu.memory_space<vmem>>, vector<16x16x4xf32>
    %40 = vector.shape_cast %39 : vector<16x16x4xf32> to vector<256x4xf32>
    %c10_54 = arith.constant 10 : index
    %c10_55 = arith.constant 10 : index
    %c0_56 = arith.constant 0 : index
    %41 = vector.load %arg13[%c10_54, %c10_55, %c0_56] : memref<32x32x4xf32, #tpu.memory_space<vmem>>, vector<16x16x4xf32>
    %42 = vector.shape_cast %41 : vector<16x16x4xf32> to vector<256x4xf32>
    %43 = tpu.concatenate %26, %28, %30, %32, %34, %36, %38, %40, %42 in 1 : vector<256x4xf32>, vector<256x4xf32>, vector<256x4xf32>, vector<256x4xf32>, vector<256x4xf32>, vector<256x4xf32>, vector<256x4xf32>, vector<256x4xf32>, vector<256x4xf32> -> vector<256x36xf32>
    %c0_57 = arith.constant 0 : index
    %c0_58 = arith.constant 0 : index
    %44 = vector.load %arg3[%c0_57, %c0_58] : memref<36x256xf32, #tpu.memory_space<vmem>>, vector<36x256xf32>
    %cst_59 = arith.constant dense<0.000000e+00> : vector<256x256xf32>
    %45 = tpu.matmul %43, %44, %cst_59 {dimension_numbers = #tpu.dot_dimension_numbers<[1], [0], [0], [1], [0, 0, 1, 1], [], []>} : vector<256x36xf32>, vector<36x256xf32>, vector<256x256xf32> -> vector<256x256xf32>
    %c1 = arith.constant 1 : index
    %c0_60 = arith.constant 0 : index
    %c0_61 = arith.constant 0 : index
    %46 = vector.load %arg8[%c1, %c0_60, %c0_61] : memref<5x1x256xf32, #tpu.memory_space<vmem>>, vector<1x1x256xf32>
    %47 = vector.shape_cast %46 : vector<1x1x256xf32> to vector<1x256xf32>
    %48 = vector.broadcast %47 : vector<1x256xf32> to vector<256x256xf32>
    %49 = arith.mulf %45, %48 : vector<256x256xf32>
    %c1_62 = arith.constant 1 : index
    %c0_63 = arith.constant 0 : index
    %c0_64 = arith.constant 0 : index
    %50 = vector.load %arg9[%c1_62, %c0_63, %c0_64] : memref<5x1x256xf32, #tpu.memory_space<vmem>>, vector<1x1x256xf32>
    %51 = vector.shape_cast %50 : vector<1x1x256xf32> to vector<1x256xf32>
    %52 = vector.broadcast %51 : vector<1x256xf32> to vector<256x256xf32>
    %53 = arith.addf %49, %52 : vector<256x256xf32>
    %cst_65 = arith.constant 0.000000e+00 : f32
    %54 = vector.broadcast %cst_65 : f32 to vector<256x256xf32>
    %55 = arith.maximumf %53, %54 : vector<256x256xf32>
    %c0_66 = arith.constant 0 : index
    %c0_67 = arith.constant 0 : index
    %56 = vector.load %arg14[%c0_66, %c0_67] : memref<256x128xf32, #tpu.memory_space<vmem>>, vector<256x128xf32>
    %c256 = arith.constant 256 : index
    %c0_68 = arith.constant 0 : index
    %57 = vector.load %arg7[%c256, %c0_68] : memref<1280x128xf32, #tpu.memory_space<vmem>>, vector<256x128xf32>
    %cst_69 = arith.constant dense<0.000000e+00> : vector<256x128xf32>
    %58 = tpu.matmul %55, %57, %cst_69 {dimension_numbers = #tpu.dot_dimension_numbers<[1], [0], [0], [1], [0, 0, 1, 1], [], []>} : vector<256x256xf32>, vector<256x128xf32>, vector<256x128xf32> -> vector<256x128xf32>
    %59 = arith.addf %56, %58 : vector<256x128xf32>
    %c0_70 = arith.constant 0 : index
    %c0_71 = arith.constant 0 : index
    %60 = vector.load %arg14[%c0_70, %c0_71] : memref<256x128xf32, #tpu.memory_space<vmem>>, vector<256x128xf32>
    tpu.vector_store %arg14[%c0_70, %c0_71], %59 {strides = array<i32>} : memref<256x128xf32, #tpu.memory_space<vmem>>, vector<256x128xf32>,
    %c4 = arith.constant 4 : index
    %c4_72 = arith.constant 4 : index
    %c0_73 = arith.constant 0 : index
    %61 = vector.load %arg13[%c4, %c4_72, %c0_73] : memref<32x32x4xf32, #tpu.memory_space<vmem>>, vector<16x16x4xf32>
    %62 = vector.shape_cast %61 : vector<16x16x4xf32> to vector<256x4xf32>
    %c4_74 = arith.constant 4 : index
    %c8_75 = arith.constant 8 : index
    %c0_76 = arith.constant 0 : index
    %63 = vector.load %arg13[%c4_74, %c8_75, %c0_76] : memref<32x32x4xf32, #tpu.memory_space<vmem>>, vector<16x16x4xf32>
    %64 = vector.shape_cast %63 : vector<16x16x4xf32> to vector<256x4xf32>
    %c4_77 = arith.constant 4 : index
    %c12 = arith.constant 12 : index
    %c0_78 = arith.constant 0 : index
    %65 = vector.load %arg13[%c4_77, %c12, %c0_78] : memref<32x32x4xf32, #tpu.memory_space<vmem>>, vector<16x16x4xf32>
    %66 = vector.shape_cast %65 : vector<16x16x4xf32> to vector<256x4xf32>
    %c8_79 = arith.constant 8 : index
    %c4_80 = arith.constant 4 : index
    %c0_81 = arith.constant 0 : index
    %67 = vector.load %arg13[%c8_79, %c4_80, %c0_81] : memref<32x32x4xf32, #tpu.memory_space<vmem>>, vector<16x16x4xf32>
    %68 = vector.shape_cast %67 : vector<16x16x4xf32> to vector<256x4xf32>
    %c8_82 = arith.constant 8 : index
    %c8_83 = arith.constant 8 : index
    %c0_84 = arith.constant 0 : index
    %69 = vector.load %arg13[%c8_82, %c8_83, %c0_84] : memref<32x32x4xf32, #tpu.memory_space<vmem>>, vector<16x16x4xf32>
    %70 = vector.shape_cast %69 : vector<16x16x4xf32> to vector<256x4xf32>
    %c8_85 = arith.constant 8 : index
    %c12_86 = arith.constant 12 : index
    %c0_87 = arith.constant 0 : index
    %71 = vector.load %arg13[%c8_85, %c12_86, %c0_87] : memref<32x32x4xf32, #tpu.memory_space<vmem>>, vector<16x16x4xf32>
    %72 = vector.shape_cast %71 : vector<16x16x4xf32> to vector<256x4xf32>
    %c12_88 = arith.constant 12 : index
    %c4_89 = arith.constant 4 : index
    %c0_90 = arith.constant 0 : index
    %73 = vector.load %arg13[%c12_88, %c4_89, %c0_90] : memref<32x32x4xf32, #tpu.memory_space<vmem>>, vector<16x16x4xf32>
    %74 = vector.shape_cast %73 : vector<16x16x4xf32> to vector<256x4xf32>
    %c12_91 = arith.constant 12 : index
    %c8_92 = arith.constant 8 : index
    %c0_93 = arith.constant 0 : index
    %75 = vector.load %arg13[%c12_91, %c8_92, %c0_93] : memref<32x32x4xf32, #tpu.memory_space<vmem>>, vector<16x16x4xf32>
    %76 = vector.shape_cast %75 : vector<16x16x4xf32> to vector<256x4xf32>
    %c12_94 = arith.constant 12 : index
    %c12_95 = arith.constant 12 : index
    %c0_96 = arith.constant 0 : index
    %77 = vector.load %arg13[%c12_94, %c12_95, %c0_96] : memref<32x32x4xf32, #tpu.memory_space<vmem>>, vector<16x16x4xf32>
    %78 = vector.shape_cast %77 : vector<16x16x4xf32> to vector<256x4xf32>
    %79 = tpu.concatenate %62, %64, %66, %68, %70, %72, %74, %76, %78 in 1 : vector<256x4xf32>, vector<256x4xf32>, vector<256x4xf32>, vector<256x4xf32>, vector<256x4xf32>, vector<256x4xf32>, vector<256x4xf32>, vector<256x4xf32>, vector<256x4xf32> -> vector<256x36xf32>
    %c0_97 = arith.constant 0 : index
    %c0_98 = arith.constant 0 : index
    %80 = vector.load %arg4[%c0_97, %c0_98] : memref<36x256xf32, #tpu.memory_space<vmem>>, vector<36x256xf32>
    %cst_99 = arith.constant dense<0.000000e+00> : vector<256x256xf32>
    %81 = tpu.matmul %79, %80, %cst_99 {dimension_numbers = #tpu.dot_dimension_numbers<[1], [0], [0], [1], [0, 0, 1, 1], [], []>} : vector<256x36xf32>, vector<36x256xf32>, vector<256x256xf32> -> vector<256x256xf32>
    %c2 = arith.constant 2 : index
    %c0_100 = arith.constant 0 : index
    %c0_101 = arith.constant 0 : index
    %82 = vector.load %arg8[%c2, %c0_100, %c0_101] : memref<5x1x256xf32, #tpu.memory_space<vmem>>, vector<1x1x256xf32>
    %83 = vector.shape_cast %82 : vector<1x1x256xf32> to vector<1x256xf32>
    %84 = vector.broadcast %83 : vector<1x256xf32> to vector<256x256xf32>
    %85 = arith.mulf %81, %84 : vector<256x256xf32>
    %c2_102 = arith.constant 2 : index
    %c0_103 = arith.constant 0 : index
    %c0_104 = arith.constant 0 : index
    %86 = vector.load %arg9[%c2_102, %c0_103, %c0_104] : memref<5x1x256xf32, #tpu.memory_space<vmem>>, vector<1x1x256xf32>
    %87 = vector.shape_cast %86 : vector<1x1x256xf32> to vector<1x256xf32>
    %88 = vector.broadcast %87 : vector<1x256xf32> to vector<256x256xf32>
    %89 = arith.addf %85, %88 : vector<256x256xf32>
    %cst_105 = arith.constant 0.000000e+00 : f32
    %90 = vector.broadcast %cst_105 : f32 to vector<256x256xf32>
    %91 = arith.maximumf %89, %90 : vector<256x256xf32>
    %c0_106 = arith.constant 0 : index
    %c0_107 = arith.constant 0 : index
    %92 = vector.load %arg14[%c0_106, %c0_107] : memref<256x128xf32, #tpu.memory_space<vmem>>, vector<256x128xf32>
    %c512 = arith.constant 512 : index
    %c0_108 = arith.constant 0 : index
    %93 = vector.load %arg7[%c512, %c0_108] : memref<1280x128xf32, #tpu.memory_space<vmem>>, vector<256x128xf32>
    %cst_109 = arith.constant dense<0.000000e+00> : vector<256x128xf32>
    %94 = tpu.matmul %91, %93, %cst_109 {dimension_numbers = #tpu.dot_dimension_numbers<[1], [0], [0], [1], [0, 0, 1, 1], [], []>} : vector<256x256xf32>, vector<256x128xf32>, vector<256x128xf32> -> vector<256x128xf32>
    %95 = arith.addf %92, %94 : vector<256x128xf32>
    %c0_110 = arith.constant 0 : index
    %c0_111 = arith.constant 0 : index
    %96 = vector.load %arg14[%c0_110, %c0_111] : memref<256x128xf32, #tpu.memory_space<vmem>>, vector<256x128xf32>
    tpu.vector_store %arg14[%c0_110, %c0_111], %95 {strides = array<i32>} : memref<256x128xf32, #tpu.memory_space<vmem>>, vector<256x128xf32>,
    %c0_112 = arith.constant 0 : index
    %c0_113 = arith.constant 0 : index
    %c0_114 = arith.constant 0 : index
    %97 = vector.load %arg13[%c0_112, %c0_113, %c0_114] : memref<32x32x4xf32, #tpu.memory_space<vmem>>, vector<16x16x4xf32>
    %98 = vector.shape_cast %97 : vector<16x16x4xf32> to vector<256x4xf32>
    %c0_115 = arith.constant 0 : index
    %c8_116 = arith.constant 8 : index
    %c0_117 = arith.constant 0 : index
    %99 = vector.load %arg13[%c0_115, %c8_116, %c0_117] : memref<32x32x4xf32, #tpu.memory_space<vmem>>, vector<16x16x4xf32>
    %100 = vector.shape_cast %99 : vector<16x16x4xf32> to vector<256x4xf32>
    %c0_118 = arith.constant 0 : index
    %c16 = arith.constant 16 : index
    %c0_119 = arith.constant 0 : index
    %101 = vector.load %arg13[%c0_118, %c16, %c0_119] : memref<32x32x4xf32, #tpu.memory_space<vmem>>, vector<16x16x4xf32>
    %102 = vector.shape_cast %101 : vector<16x16x4xf32> to vector<256x4xf32>
    %c8_120 = arith.constant 8 : index
    %c0_121 = arith.constant 0 : index
    %c0_122 = arith.constant 0 : index
    %103 = vector.load %arg13[%c8_120, %c0_121, %c0_122] : memref<32x32x4xf32, #tpu.memory_space<vmem>>, vector<16x16x4xf32>
    %104 = vector.shape_cast %103 : vector<16x16x4xf32> to vector<256x4xf32>
    %c8_123 = arith.constant 8 : index
    %c8_124 = arith.constant 8 : index
    %c0_125 = arith.constant 0 : index
    %105 = vector.load %arg13[%c8_123, %c8_124, %c0_125] : memref<32x32x4xf32, #tpu.memory_space<vmem>>, vector<16x16x4xf32>
    %106 = vector.shape_cast %105 : vector<16x16x4xf32> to vector<256x4xf32>
    %c8_126 = arith.constant 8 : index
    %c16_127 = arith.constant 16 : index
    %c0_128 = arith.constant 0 : index
    %107 = vector.load %arg13[%c8_126, %c16_127, %c0_128] : memref<32x32x4xf32, #tpu.memory_space<vmem>>, vector<16x16x4xf32>
    %108 = vector.shape_cast %107 : vector<16x16x4xf32> to vector<256x4xf32>
    %c16_129 = arith.constant 16 : index
    %c0_130 = arith.constant 0 : index
    %c0_131 = arith.constant 0 : index
    %109 = vector.load %arg13[%c16_129, %c0_130, %c0_131] : memref<32x32x4xf32, #tpu.memory_space<vmem>>, vector<16x16x4xf32>
    %110 = vector.shape_cast %109 : vector<16x16x4xf32> to vector<256x4xf32>
    %c16_132 = arith.constant 16 : index
    %c8_133 = arith.constant 8 : index
    %c0_134 = arith.constant 0 : index
    %111 = vector.load %arg13[%c16_132, %c8_133, %c0_134] : memref<32x32x4xf32, #tpu.memory_space<vmem>>, vector<16x16x4xf32>
    %112 = vector.shape_cast %111 : vector<16x16x4xf32> to vector<256x4xf32>
    %c16_135 = arith.constant 16 : index
    %c16_136 = arith.constant 16 : index
    %c0_137 = arith.constant 0 : index
    %113 = vector.load %arg13[%c16_135, %c16_136, %c0_137] : memref<32x32x4xf32, #tpu.memory_space<vmem>>, vector<16x16x4xf32>
    %114 = vector.shape_cast %113 : vector<16x16x4xf32> to vector<256x4xf32>
    %115 = tpu.concatenate %98, %100, %102, %104, %106, %108, %110, %112, %114 in 1 : vector<256x4xf32>, vector<256x4xf32>, vector<256x4xf32>, vector<256x4xf32>, vector<256x4xf32>, vector<256x4xf32>, vector<256x4xf32>, vector<256x4xf32>, vector<256x4xf32> -> vector<256x36xf32>
    %c0_138 = arith.constant 0 : index
    %c0_139 = arith.constant 0 : index
    %116 = vector.load %arg5[%c0_138, %c0_139] : memref<36x256xf32, #tpu.memory_space<vmem>>, vector<36x256xf32>
    %cst_140 = arith.constant dense<0.000000e+00> : vector<256x256xf32>
    %117 = tpu.matmul %115, %116, %cst_140 {dimension_numbers = #tpu.dot_dimension_numbers<[1], [0], [0], [1], [0, 0, 1, 1], [], []>} : vector<256x36xf32>, vector<36x256xf32>, vector<256x256xf32> -> vector<256x256xf32>
    %c3 = arith.constant 3 : index
    %c0_141 = arith.constant 0 : index
    %c0_142 = arith.constant 0 : index
    %118 = vector.load %arg8[%c3, %c0_141, %c0_142] : memref<5x1x256xf32, #tpu.memory_space<vmem>>, vector<1x1x256xf32>
    %119 = vector.shape_cast %118 : vector<1x1x256xf32> to vector<1x256xf32>
    %120 = vector.broadcast %119 : vector<1x256xf32> to vector<256x256xf32>
    %121 = arith.mulf %117, %120 : vector<256x256xf32>
    %c3_143 = arith.constant 3 : index
    %c0_144 = arith.constant 0 : index
    %c0_145 = arith.constant 0 : index
    %122 = vector.load %arg9[%c3_143, %c0_144, %c0_145] : memref<5x1x256xf32, #tpu.memory_space<vmem>>, vector<1x1x256xf32>
    %123 = vector.shape_cast %122 : vector<1x1x256xf32> to vector<1x256xf32>
    %124 = vector.broadcast %123 : vector<1x256xf32> to vector<256x256xf32>
    %125 = arith.addf %121, %124 : vector<256x256xf32>
    %cst_146 = arith.constant 0.000000e+00 : f32
    %126 = vector.broadcast %cst_146 : f32 to vector<256x256xf32>
    %127 = arith.maximumf %125, %126 : vector<256x256xf32>
    %c0_147 = arith.constant 0 : index
    %c0_148 = arith.constant 0 : index
    %128 = vector.load %arg14[%c0_147, %c0_148] : memref<256x128xf32, #tpu.memory_space<vmem>>, vector<256x128xf32>
    %c768 = arith.constant 768 : index
    %c0_149 = arith.constant 0 : index
    %129 = vector.load %arg7[%c768, %c0_149] : memref<1280x128xf32, #tpu.memory_space<vmem>>, vector<256x128xf32>
    %cst_150 = arith.constant dense<0.000000e+00> : vector<256x128xf32>
    %130 = tpu.matmul %127, %129, %cst_150 {dimension_numbers = #tpu.dot_dimension_numbers<[1], [0], [0], [1], [0, 0, 1, 1], [], []>} : vector<256x256xf32>, vector<256x128xf32>, vector<256x128xf32> -> vector<256x128xf32>
    %131 = arith.addf %128, %130 : vector<256x128xf32>
    %c0_151 = arith.constant 0 : index
    %c0_152 = arith.constant 0 : index
    %132 = vector.load %arg14[%c0_151, %c0_152] : memref<256x128xf32, #tpu.memory_space<vmem>>, vector<256x128xf32>
    tpu.vector_store %arg14[%c0_151, %c0_152], %131 {strides = array<i32>} : memref<256x128xf32, #tpu.memory_space<vmem>>, vector<256x128xf32>,
    %cst_153 = arith.constant dense<0.000000e+00> : vector<4xf32>
    %133 = vector.multi_reduction <add>, %2, %cst_153 [0] : vector<256x4xf32> to vector<4xf32>
    %134 = vector.shape_cast %133 : vector<4xf32> to vector<1x4xf32>
    %cst_154 = arith.constant 2.560000e+02 : f32
    %135 = vector.broadcast %cst_154 : f32 to vector<1x4xf32>
    %136 = arith.divf %134, %135 : vector<1x4xf32>
    %c0_155 = arith.constant 0 : index
    %c0_156 = arith.constant 0 : index
    %137 = vector.load %arg6[%c0_155, %c0_156] : memref<4x256xf32, #tpu.memory_space<vmem>>, vector<4x256xf32>
    %cst_157 = arith.constant dense<0.000000e+00> : vector<1x256xf32>
    %138 = tpu.matmul %136, %137, %cst_157 {dimension_numbers = #tpu.dot_dimension_numbers<[1], [0], [0], [1], [0, 0, 1, 1], [], []>} : vector<1x4xf32>, vector<4x256xf32>, vector<1x256xf32> -> vector<1x256xf32>
    %c4_158 = arith.constant 4 : index
    %c0_159 = arith.constant 0 : index
    %c0_160 = arith.constant 0 : index
    %139 = vector.load %arg8[%c4_158, %c0_159, %c0_160] : memref<5x1x256xf32, #tpu.memory_space<vmem>>, vector<1x1x256xf32>
    %140 = vector.shape_cast %139 : vector<1x1x256xf32> to vector<1x256xf32>
    %141 = arith.mulf %138, %140 : vector<1x256xf32>
    %c4_161 = arith.constant 4 : index
    %c0_162 = arith.constant 0 : index
    %c0_163 = arith.constant 0 : index
    %142 = vector.load %arg9[%c4_161, %c0_162, %c0_163] : memref<5x1x256xf32, #tpu.memory_space<vmem>>, vector<1x1x256xf32>
    %143 = vector.shape_cast %142 : vector<1x1x256xf32> to vector<1x256xf32>
    %144 = arith.addf %141, %143 : vector<1x256xf32>
    %cst_164 = arith.constant 0.000000e+00 : f32
    %145 = vector.broadcast %cst_164 : f32 to vector<1x256xf32>
    %146 = arith.maximumf %144, %145 : vector<1x256xf32>
    %c0_165 = arith.constant 0 : index
    %c0_166 = arith.constant 0 : index
    %147 = vector.load %arg14[%c0_165, %c0_166] : memref<256x128xf32, #tpu.memory_space<vmem>>, vector<256x128xf32>
    %c1024 = arith.constant 1024 : index
    %c0_167 = arith.constant 0 : index
    %148 = vector.load %arg7[%c1024, %c0_167] : memref<1280x128xf32, #tpu.memory_space<vmem>>, vector<256x128xf32>
    %cst_168 = arith.constant dense<0.000000e+00> : vector<1x128xf32>
    %149 = tpu.matmul %146, %148, %cst_168 {dimension_numbers = #tpu.dot_dimension_numbers<[1], [0], [0], [1], [0, 0, 1, 1], [], []>} : vector<1x256xf32>, vector<256x128xf32>, vector<1x128xf32> -> vector<1x128xf32>
    %150 = vector.broadcast %149 : vector<1x128xf32> to vector<256x128xf32>
    %151 = arith.addf %147, %150 : vector<256x128xf32>
    %c0_169 = arith.constant 0 : index
    %c0_170 = arith.constant 0 : index
    %152 = vector.load %arg14[%c0_169, %c0_170] : memref<256x128xf32, #tpu.memory_space<vmem>>, vector<256x128xf32>
    tpu.vector_store %arg14[%c0_169, %c0_170], %151 {strides = array<i32>} : memref<256x128xf32, #tpu.memory_space<vmem>>, vector<256x128xf32>,
    %c0_171 = arith.constant 0 : index
    %c0_172 = arith.constant 0 : index
    %153 = vector.load %arg14[%c0_171, %c0_172] : memref<256x128xf32, #tpu.memory_space<vmem>>, vector<256x128xf32>
    %c0_173 = arith.constant 0 : index
    %c0_174 = arith.constant 0 : index
    %154 = vector.load %arg10[%c0_173, %c0_174] : memref<1x128xf32, #tpu.memory_space<vmem>>, vector<1x128xf32>
    %155 = vector.broadcast %154 : vector<1x128xf32> to vector<256x128xf32>
    %156 = arith.mulf %153, %155 : vector<256x128xf32>
    %c0_175 = arith.constant 0 : index
    %c0_176 = arith.constant 0 : index
    %157 = vector.load %arg11[%c0_175, %c0_176] : memref<1x128xf32, #tpu.memory_space<vmem>>, vector<1x128xf32>
    %158 = vector.broadcast %157 : vector<1x128xf32> to vector<256x128xf32>
    %159 = arith.addf %156, %158 : vector<256x128xf32>
    %cst_177 = arith.constant 0.000000e+00 : f32
    %160 = vector.broadcast %cst_177 : f32 to vector<256x128xf32>
    %161 = arith.maximumf %159, %160 : vector<256x128xf32>
    %c0_178 = arith.constant 0 : index
    %c0_179 = arith.constant 0 : index
    %c0_180 = arith.constant 0 : index
    %162 = vector.load %arg12[%c0_178, %c0_179, %c0_180] : memref<1x256x128xf32, #tpu.memory_space<vmem>>, vector<1x256x128xf32>
    %163 = vector.shape_cast %162 : vector<1x256x128xf32> to vector<256x128xf32>
    %164 = vector.shape_cast %161 : vector<256x128xf32> to vector<1x256x128xf32>
    tpu.vector_store %arg12[%c0_178, %c0_179, %c0_180], %164 {strides = array<i32>} : memref<1x256x128xf32, #tpu.memory_space<vmem>>, vector<1x256x128xf32>,
    return
  }
  func.func @transform_0(%arg0: i32) -> (i32, i32, i32, i32) {
    %c0_i32 = arith.constant 0 : i32
    %c0_i32_0 = arith.constant 0 : i32
    %c0_i32_1 = arith.constant 0 : i32
    %c0_i32_2 = arith.constant 0 : i32
    return %arg0, %c0_i32, %c0_i32_0, %c0_i32_1 : i32, i32, i32, i32
  }
  func.func @transform_1(%arg0: i32) -> (i32, i32) {
    %c0_i32 = arith.constant 0 : i32
    %c0_i32_0 = arith.constant 0 : i32
    %c0_i32_1 = arith.constant 0 : i32
    return %c0_i32, %c0_i32_0 : i32, i32
  }
  func.func @transform_2(%arg0: i32) -> (i32, i32) {
    %c0_i32 = arith.constant 0 : i32
    %c0_i32_0 = arith.constant 0 : i32
    %c0_i32_1 = arith.constant 0 : i32
    return %c0_i32, %c0_i32_0 : i32, i32
  }
  func.func @transform_3(%arg0: i32) -> (i32, i32) {
    %c0_i32 = arith.constant 0 : i32
    %c0_i32_0 = arith.constant 0 : i32
    %c0_i32_1 = arith.constant 0 : i32
    return %c0_i32, %c0_i32_0 : i32, i32
  }
  func.func @transform_4(%arg0: i32) -> (i32, i32) {
    %c0_i32 = arith.constant 0 : i32
    %c0_i32_0 = arith.constant 0 : i32
    %c0_i32_1 = arith.constant 0 : i32
    return %c0_i32, %c0_i32_0 : i32, i32
  }
  func.func @transform_5(%arg0: i32) -> (i32, i32) {
    %c0_i32 = arith.constant 0 : i32
    %c0_i32_0 = arith.constant 0 : i32
    %c0_i32_1 = arith.constant 0 : i32
    return %c0_i32, %c0_i32_0 : i32, i32
  }
  func.func @transform_6(%arg0: i32) -> (i32, i32) {
    %c0_i32 = arith.constant 0 : i32
    %c0_i32_0 = arith.constant 0 : i32
    %c0_i32_1 = arith.constant 0 : i32
    return %c0_i32, %c0_i32_0 : i32, i32
  }
  func.func @transform_7(%arg0: i32) -> (i32, i32, i32) {
    %c0_i32 = arith.constant 0 : i32
    %c0_i32_0 = arith.constant 0 : i32
    %c0_i32_1 = arith.constant 0 : i32
    %c0_i32_2 = arith.constant 0 : i32
    return %c0_i32, %c0_i32_0, %c0_i32_1 : i32, i32, i32
  }
  func.func @transform_8(%arg0: i32) -> (i32, i32, i32) {
    %c0_i32 = arith.constant 0 : i32
    %c0_i32_0 = arith.constant 0 : i32
    %c0_i32_1 = arith.constant 0 : i32
    %c0_i32_2 = arith.constant 0 : i32
    return %c0_i32, %c0_i32_0, %c0_i32_1 : i32, i32, i32
  }
  func.func @transform_9(%arg0: i32) -> (i32, i32) {
    %c0_i32 = arith.constant 0 : i32
    %c0_i32_0 = arith.constant 0 : i32
    %c0_i32_1 = arith.constant 0 : i32
    return %c0_i32, %c0_i32_0 : i32, i32
  }
  func.func @transform_10(%arg0: i32) -> (i32, i32) {
    %c0_i32 = arith.constant 0 : i32
    %c0_i32_0 = arith.constant 0 : i32
    %c0_i32_1 = arith.constant 0 : i32
    return %c0_i32, %c0_i32_0 : i32, i32
  }
  func.func @transform_11(%arg0: i32) -> (i32, i32, i32) {
    %c0_i32 = arith.constant 0 : i32
    %c0_i32_0 = arith.constant 0 : i32
    %c0_i32_1 = arith.constant 0 : i32
    return %arg0, %c0_i32, %c0_i32_0 : i32, i32, i32
  }
}

</mosaic_0001>

<bundles_post_ra>
// kernel: tpu_custom_call.1
= control target key start
LH: loop header
LB: loop body
LE: loop exit
PB: predicated region body
PF: predicated region fallthrough
CT: control target
= control target key end

     0   :  { %s15780_s0 = inlined_call_operand.vmem [shape: f32[2,16,16,4], index: 0, kind: input, shape index: {}]   ;;  %s15781_s1 = inlined_call_operand.vmem [shape: f32[4,256], index: 1, kind: input, shape index: {}]   ;;  %s15782_s2 = inlined_call_operand.vmem [shape: f32[36,256], index: 2, kind: input, shape index: {}]   ;;  %s15783_s3 = inlined_call_operand.vmem [shape: f32[36,256], index: 3, kind: input, shape index: {}]   ;;  %s15784_s4 = inlined_call_operand.vmem [shape: f32[36,256], index: 4, kind: input, shape index: {}]   ;;  %s15785_s5 = inlined_call_operand.vmem [shape: f32[4,256], index: 5, kind: input, shape index: {}]   ;;  %s15786_s6 = inlined_call_operand.hbm [shape: f32[1280,128], index: 6, kind: input, shape index: {}]   ;;  %s15787_s7 = inlined_call_operand.vmem [shape: f32[5,1,256], index: 7, kind: input, shape index: {}]   ;;  %s15788_s8 = inlined_call_operand.vmem [shape: f32[5,1,256], index: 8, kind: input, shape index: {}]   ;;  %s15789_s9 = inlined_call_operand.vmem [shape: f32[1,128], index: 9, kind: input, shape index: {}]   ;;  %s15790_s10 = inlined_call_operand.vmem [shape: f32[1,128], index: 10, kind: input, shape index: {}]   ;;  %s15791_s11 = inlined_call_operand.hbm [shape: f32[2,256,128], index: 11, kind: output, shape index: {}]  }
   0x1   :  { %15912 = sst [smem:[#allocation236_spill]] %s15780_s0 }
   0x2   :  { %15913 = sst [smem:[#allocation237_spill]] %s15781_s1 }
   0x3   :  { %15914 = sst [smem:[#allocation238_spill]] %s15782_s2 }
   0x4   :  { %15915 = sst [smem:[#allocation239_spill]] %s15783_s3 }
   0x5   :  { %16 = vsyncpa [#allocation5], 0 }
   0x6   :  { %17 = vsyncpa [#allocation6], 0 }
   0x7   :  { %19 = vsyncpa [#allocation6 + $0x1], 0  ;;  %s10154_s17 = smov 0   ;;  %s10156_s18 = smov 0  }
   0x8   :  { %s10158_s19 = smov 0   ;;  %s10160_s20 = smov 0  }
   0x9 LB: > { %s10175_s21 = sadd.s32 4294967295, %s10077_s20   ;;  %s9358_s22 = sadd.s32 4294967294, %s10077_s20   ;;  %s10077_s20 = sphi %s10160_s20, %s16762_s20   ;;  %s10073_s19 = sphi %s10158_s19, %s16761_s19   ;;  %s10069_s18 = sphi %s10156_s18, %s16760_s18   ;;  %s10065_s17 = sphi %s10154_s17, %s16759_s17  }
   0xa   : > { %s10179_s23 = sadd.s32 1, %s10077_s20   ;;  %s268_s24 = sadd.s32 1, %s10073_s19 }
   0xb   : > { %s265_s25 = ssub.s32 %s10077_s20, %s10179_s23  ;;  %p278_p0 = scmp.ne.s32.totalorder %s10073_s19, %s10069_s18 }
   0xc   : > { %p266_p1 = scmp.eq.s32.totalorder %s265_s25, 0  ;;  %p279_p2 = scmp.eq.s32.totalorder %s10175_s21, 1 }
   0xd   : > { %p284_p3 = scmp.ne.s32.totalorder %s10069_s18, %s10065_s17  ;;  %p285_p4 = scmp.eq.s32.totalorder %s9358_s22, 1 }
   0xe   : > { %s10190_s26 = scalar_select %p266_p1, %s10073_s19, %s268_s24  }
   0xf   : > { %p10192_p5 = por %p279_p2, %p278_p0  ;;  %p10196_p6 = por %p285_p4, %p284_p3 }
  0x10   : > { %15916 = sst [smem:[#allocation10_spill]] %s10190_s26  ;;  %p9359_p7 = scmp.ge.s32.totalorder %s10077_s20, 1 }
  0x11   : > { %s15917_s27 = scalar_select %p10192_p5, 1, 0 }
  0x12   : > { %s15918_s28 = scalar_select %p10196_p6, 1, 0 }
  0x13   : > { %p292_p8 = scmp.lt.s32.totalorder %s10077_s20, 3  ;;  %p15792_p9 = scmp.eq.s32.totalorder %s10175_s21, 0 }
  0x14   : > { %s10079_s30 = smov [#allocation4]   ;;  %s9983_s16 = scalar_lea.hbm %s15786_s6, 20480 }
  0x15   : > { %p10203_p10 = pnand %p9359_p7, %p292_p8  ;;  %s319_s12 = sshll.u32 %s10079_s30, 4  ;;  %s320_s12 = int_to_ptr.vmem [resolvable:$true] %s319_s12 }
  0x16   : > { %p9984_p13 = scmp.ne.s32.totalorder %s15786_s6, %s9983_s16  ;;  %p9990_p3 = scmp.lt.u32.totalorder %s9983_s16, %s15786_s6 }
  0x17   : > { %s15919_s29 = scalar_select %p10203_p10, 1, 0 }
  0x18   : > { %p9844_p11 = pneg %p10203_p10 }
  0x1a   : > { %p10211_p12 = pnand %p15792_p9, %p9844_p11 }
  0x1c   : > { %p9985_p0 = pneg %p10211_p12 }
  0x1e   : > { %p9986_p1 = pnand %p9985_p0, %p9984_p13 }
  0x20   : > { %p9987_p2 = pneg %p9986_p1 }
  0x22   : > { %p9992_p4 = pnand %p9990_p3, %p9987_p2 }
  0x24   : > { %9995 = shalt.err (!%p9992_p4)
}
  0x25   : > { %s9996_s26 = scalar_lea.vmem %s320_s12, 20480  ;;  %p10004_p9 = scmp.lt.s32.totalorder %s320_s12, %s320_s12 }
  0x26   : > { %p9997_p7 = scmp.ne.s32.totalorder %s320_s12, %s9996_s26  ;;  %p10005_p6 = scmp.lt.s32.totalorder %s9996_s26, %s9996_s26 }
  0x28   : > { %p9999_p8 = pnand %p9997_p7, %p9985_p0  ;;  %p10006_p5 = por %p10005_p6, %p10004_p9 }
  0x2a   : > { %p10000_p11 = pneg %p9999_p8 }
  0x2c   : > { %p10007_p10 = pnand %p10006_p5, %p10000_p11 }
  0x2e   : > { %10010 = shalt.err (!%p10007_p10)
}
  0x2f   : > { %s10080_s14 = smov 128   ;;  %s10081_s15 = smov 8  }
  0x30   : > { %9847 = dma.hbm_to_vmem [thread:$0]  (!%p10211_p12), %s15786_s6, 20480, %s320_s12, [#allocation5], %s10080_s14, %s10080_s14, %s10081_s15  }
  0x31   : > { %p15921_p13 = scmp.ne.s32.totalorder %s15919_s29, 0 }
  0x33   : > { %355 = sbr.rel (%p15921_p13) target bundleno = 2260 (0x8d4), region = 64 }
  0x3a   : > { %p15922_p1 = scmp.eq.s32.totalorder %s10175_s21, 0 }
  0x3c   : > { %10056 = dma.done.wait (%p15922_p1), [#allocation5], 20480   ;;  %p15923_p0 = pmov %p15922_p1 }
  0x3d   : > { %vm432_vm0 = vcmask 31744   ;;  %p395_p5 = scmp.lt.s32.totalorder %s10175_s21, 1  ;;  %v15795_v0 = vmov 0.0   ;;  %s15924_s0 = sld [smem:[#allocation236_spill]]  ;;  %vm662_vm1 = vcmask 1043456   ;;  %vm2775_vm2 = vcmask 64512  }
  0x3e   : > { %10058 = vsyncadd (%p15923_p0), [#allocation5], 4294946816  ;;  %462 = vst.msk [vmem:[#allocation2 + $0xe8] sm:$0xff] %vm432_vm0, %v15795_v0  ;;  %731 = vmatprep.mubr.f32.mxu0 %v15795_v0  ;;  %s15902_s25 = smov 4   ;;  %s15900_s30 = smov 8   ;;  %vm2808_vm3 = vcmask 97280  }
  0x3f   : > { %433 = vst.msk [vmem:[#allocation2] sm:$0xff] %vm432_vm0, %v15795_v0  ;;  %434 = vst.msk [vmem:[#allocation2 + $0x8] sm:$0xff] %vm432_vm0, %v15795_v0  ;;  %s396_s26 = scalar_select %p395_p5, %s10175_s21, 1  ;;  %vm2841_vm4 = vcmask 130048   ;;  %vm2874_vm5 = vcmask 162816   ;;  %vm2907_vm6 = vcmask 195584  }
  0x40   : > { %435 = vst.msk [vmem:[#allocation2 + $0x10] sm:$0xff] %vm432_vm0, %v15795_v0  ;;  %436 = vst.msk [vmem:[#allocation2 + $0x18] sm:$0xff] %vm432_vm0, %v15795_v0  ;;  %s15898_s14 = smov 12   ;;  %s15896_s15 = smov 16   ;;  %vm2940_vm7 = vcmask 228352   ;;  %vm2973_vm8 = vcmask 261120  }
  0x41   : > { %437 = vst.msk [vmem:[#allocation2 + $0x20] sm:$0xff] %vm432_vm0, %v15795_v0  ;;  %438 = vst.msk [vmem:[#allocation2 + $0x28] sm:$0xff] %vm432_vm0, %v15795_v0  ;;  %s9521_s29 = sshll.u32 %s396_s26, 8  ;;  %s16042_s1 = sld [smem:[#allocation237_spill]]  ;;  %vm3016_vm9 = vcmask 293888  }
  0x42   : > { %439 = vst.msk [vmem:[#allocation2 + $0x30] sm:$0xff] %vm432_vm0, %v15795_v0  ;;  %440 = vst.msk [vmem:[#allocation2 + $0x38] sm:$0xff] %vm432_vm0, %v15795_v0  ;;  %s15893_s26 = smov 20   ;;  %s15904_s12 = smov 28  }
  0x43   : > { %441 = vst.msk [vmem:[#allocation2 + $0x40] sm:$0xff] %vm432_vm0, %v15795_v0  ;;  %442 = vst.msk [vmem:[#allocation2 + $0x48] sm:$0xff] %vm432_vm0, %v15795_v0  ;;  %s10437_s16 = scalar_lea.vmem %s15924_s0, %s9521_s29  ;;  %s15891_s29 = smov 24  }
  0x44   : > { %443 = vst.msk [vmem:[#allocation2 + $0x50] sm:$0xff] %vm432_vm0, %v15795_v0  ;;  %444 = vst.msk [vmem:[#allocation2 + $0x58] sm:$0xff] %vm432_vm0, %v15795_v0  ;;  %v10440_v1 = vld [vmem:[%s10437_s16 + $0x8] sm:$0xff]  ;;  %v10443_v2 = vld [vmem:[%s10437_s16] sm:$0xff]  ;;  %s16201_s2 = sld [smem:[#allocation238_spill]]  ;;  %s15908_s22 = smov 32  }
  0x45   : > { %445 = vst.msk [vmem:[#allocation2 + $0x60] sm:$0xff] %vm432_vm0, %v15795_v0  ;;  %446 = vst.msk [vmem:[#allocation2 + $0x68] sm:$0xff] %vm432_vm0, %v15795_v0  ;;  %v10446_v3 = vld [vmem:[%s10437_s16 + $0x18] sm:$0xff]  ;;  %v1464_v4 = vld [vmem:[#allocation2 + $0xe8] sm:$0xff]  ;;  %s16373_s24 = smov 12   ;;  %s16474_s13 = smov 16  }
  0x46   : > { %447 = vst.msk [vmem:[#allocation2 + $0x70] sm:$0xff] %vm432_vm0, %v15795_v0  ;;  %448 = vst.msk [vmem:[#allocation2 + $0x78] sm:$0xff] %vm432_vm0, %v15795_v0  ;;  %1755 = vrot.lane.b32.xlu1 %v1464_v4, %s15902_s25  ;;  %v10457_v8 = vld [vmem:[%s10437_s16 + $0x10] sm:$0xff]  ;;  %v10460_v9 = vld [vmem:[%s10437_s16 + $0x28] sm:$0xff]  ;;  %s16498_s3 = sld [smem:[#allocation239_spill]]  ;;  %s16632_s0 = smov 32  }
  0x47   : > { %449 = vst.msk [vmem:[#allocation2 + $0x80] sm:$0xff] %vm432_vm0, %v15795_v0  ;;  %450 = vst.msk [vmem:[#allocation2 + $0x88] sm:$0xff] %vm432_vm0, %v15795_v0  ;;  %v10467_v10 = vld [vmem:[%s10437_s16 + $0x20] sm:$0xff]  ;;  %v10470_v11 = vld [vmem:[%s10437_s16 + $0x38] sm:$0xff]  ;;  %p16756_p9 = scmp.ne.s32.totalorder %s15917_s27, 0 }
  0x48   : > { %451 = vst.msk [vmem:[#allocation2 + $0x90] sm:$0xff] %vm432_vm0, %v15795_v0  ;;  %452 = vst.msk [vmem:[#allocation2 + $0x98] sm:$0xff] %vm432_vm0, %v15795_v0  ;;  %v10473_v12 = vld [vmem:[%s10437_s16 + $0x30] sm:$0xff]  ;;  %v10482_v13 = vld [vmem:[%s10437_s16 + $0x48] sm:$0xff] }
  0x49   : > { %453 = vst.msk [vmem:[#allocation2 + $0xa0] sm:$0xff] %vm432_vm0, %v15795_v0  ;;  %454 = vst.msk [vmem:[#allocation2 + $0xa8] sm:$0xff] %vm432_vm0, %v15795_v0  ;;  %v10485_v14 = vld [vmem:[%s10437_s16 + $0x40] sm:$0xff]  ;;  %v10488_v15 = vld [vmem:[%s10437_s16 + $0x58] sm:$0xff] }
  0x4a   : > { %455 = vst.msk [vmem:[#allocation2 + $0xb0] sm:$0xff] %vm432_vm0, %v15795_v0  ;;  %456 = vst.msk [vmem:[#allocation2 + $0xb8] sm:$0xff] %vm432_vm0, %v15795_v0  ;;  %v10497_v16 = vld [vmem:[%s10437_s16 + $0x50] sm:$0xff]  ;;  %v10500_v17 = vld [vmem:[%s10437_s16 + $0x68] sm:$0xff] }
  0x4b   : > { %457 = vst.msk [vmem:[#allocation2 + $0xc0] sm:$0xff] %vm432_vm0, %v15795_v0  ;;  %458 = vst.msk [vmem:[#allocation2 + $0xc8] sm:$0xff] %vm432_vm0, %v15795_v0  ;;  %v10503_v18 = vld [vmem:[%s10437_s16 + $0x60] sm:$0xff]  ;;  %v10514_v19 = vld [vmem:[%s10437_s16 + $0x78] sm:$0xff] }
  0x4c   : > { %459 = vst.msk [vmem:[#allocation2 + $0xd0] sm:$0xff] %vm432_vm0, %v15795_v0  ;;  %460 = vst.msk [vmem:[#allocation2 + $0xd8] sm:$0xff] %vm432_vm0, %v15795_v0  ;;  %v10517_v20 = vld [vmem:[%s10437_s16 + $0x70] sm:$0xff]  ;;  %v10524_v21 = vld [vmem:[%s10437_s16 + $0x88] sm:$0xff] }
  0x4d   : > { %461 = vst.msk [vmem:[#allocation2 + $0xe0] sm:$0xff] %vm432_vm0, %v15795_v0  ;;  %463 = vst.msk [vmem:[#allocation2 + $0xf0] sm:$0xff] %vm432_vm0, %v15795_v0  ;;  %v10527_v22 = vld [vmem:[%s10437_s16 + $0x80] sm:$0xff]  ;;  %v10530_v23 = vld [vmem:[%s10437_s16 + $0x98] sm:$0xff] }
  0x4e   : > { %464 = vst.msk [vmem:[#allocation2 + $0xf8] sm:$0xff] %vm432_vm0, %v15795_v0  ;;  %466 = vst.msk [vmem:[#allocation2 + $0x300] sm:$0xff] %vm432_vm0, %v15795_v0  ;;  %v10543_v26 = vld [vmem:[%s10437_s16 + $0x90] sm:$0xff]  ;;  %v10546_v27 = vld [vmem:[%s10437_s16 + $0xa8] sm:$0xff] }
  0x4f   : > { %467 = vst.msk [vmem:[#allocation2 + $0x308] sm:$0xff] %vm432_vm0, %v15795_v0  ;;  %468 = vst.msk [vmem:[#allocation2 + $0x310] sm:$0xff] %vm432_vm0, %v15795_v0  ;;  %v10549_v28 = vld [vmem:[%s10437_s16 + $0xa0] sm:$0xff]  ;;  %v10562_v29 = vld [vmem:[%s10437_s16 + $0xb8] sm:$0xff] }
  0x50   : > { %469 = vst.msk [vmem:[#allocation2 + $0x318] sm:$0xff] %vm432_vm0, %v15795_v0  ;;  %470 = vst.msk [vmem:[#allocation2 + $0x320] sm:$0xff] %vm432_vm0, %v15795_v0  ;;  %v10575_v32 = vld [vmem:[%s10437_s16 + $0xb0] sm:$0xff]  ;;  %v10584_v35 = vld [vmem:[%s10437_s16 + $0xc8] sm:$0xff] }
  0x51   : > { %471 = vst.msk [vmem:[#allocation2 + $0x328] sm:$0xff] %vm432_vm0, %v15795_v0  ;;  %472 = vst.msk [vmem:[#allocation2 + $0x330] sm:$0xff] %vm432_vm0, %v15795_v0  ;;  %v10587_v36 = vld [vmem:[%s10437_s16 + $0xc0] sm:$0xff]  ;;  %v10590_v37 = vld [vmem:[%s10437_s16 + $0xd8] sm:$0xff] }
  0x52   : > { %473 = vst.msk [vmem:[#allocation2 + $0x338] sm:$0xff] %vm432_vm0, %v15795_v0  ;;  %474 = vst.msk [vmem:[#allocation2 + $0x340] sm:$0xff] %vm432_vm0, %v15795_v0  ;;  %v1462_v5 = vld [vmem:[#allocation2 + $0xc8] sm:$0xff]  ;;  %v10603_v38 = vld [vmem:[%s10437_s16 + $0xd0] sm:$0xff] }
  0x53   : > { %475 = vst.msk [vmem:[#allocation2 + $0x348] sm:$0xff] %vm432_vm0, %v15795_v0  ;;  %476 = vst.msk [vmem:[#allocation2 + $0x350] sm:$0xff] %vm432_vm0, %v15795_v0  ;;  %1751 = vrot.lane.b32.xlu0 %v1462_v5, %s15902_s25  ;;  %v1463_v7 = vld [vmem:[#allocation2 + $0xd0] sm:$0xff]  ;;  %v10668_v55 = vld [vmem:[%s10437_s16 + $0xe0] sm:$0xff] }
  0x54   : > { %477 = vst.msk [vmem:[#allocation2 + $0x358] sm:$0xff] %vm432_vm0, %v15795_v0  ;;  %478 = vst.msk [vmem:[#allocation2 + $0x360] sm:$0xff] %vm432_vm0, %v15795_v0  ;;  %v1465_v6 = vld [vmem:[#allocation2 + $0xf0] sm:$0xff]  ;;  %v10671_v56 = vld [vmem:[%s10437_s16 + $0xe8] sm:$0xff] }
  0x55   : > { %479 = vst.msk [vmem:[#allocation2 + $0x368] sm:$0xff] %vm432_vm0, %v15795_v0  ;;  %480 = vst.msk [vmem:[#allocation2 + $0x370] sm:$0xff] %vm432_vm0, %v15795_v0  ;;  %1757 = vrot.lane.b32.xlu1 %v1465_v6, %s15902_s25  ;;  %v10686_v59 = vld [vmem:[%s10437_s16 + $0xf0] sm:$0xff]  ;;  %v10689_v60 = vld [vmem:[%s10437_s16 + $0xf8] sm:$0xff] }
  0x56   : > { %481 = vst.msk [vmem:[#allocation2 + $0x378] sm:$0xff] %vm432_vm0, %v15795_v0  ;;  %482 = vst.msk [vmem:[#allocation2 + $0x380] sm:$0xff] %vm432_vm0, %v15795_v0  ;;  %v1495_v5 = vld [vmem:[#allocation2 + $0xd2] sm:$0xff]  ;;  %v1494_v6 = vld [vmem:[#allocation2 + $0xca] sm:$0xff] }
  0x57   : > { %483 = vst.msk [vmem:[#allocation2 + $0x388] sm:$0xff] %vm432_vm0, %v15795_v0  ;;  %484 = vst.msk [vmem:[#allocation2 + $0x390] sm:$0xff] %vm432_vm0, %v15795_v0  ;;  %1753 = vrot.lane.b32.xlu0 %v1463_v7, %s15902_s25  ;;  %v1497_v7 = vld [vmem:[#allocation2 + $0xf2] sm:$0xff] }
  0x58   : > { %485 = vst.msk [vmem:[#allocation2 + $0x398] sm:$0xff] %vm432_vm0, %v15795_v0  ;;  %486 = vst.msk [vmem:[#allocation2 + $0x3a0] sm:$0xff] %vm432_vm0, %v15795_v0 }
  0x59   : > { %487 = vst.msk [vmem:[#allocation2 + $0x3a8] sm:$0xff] %vm432_vm0, %v15795_v0  ;;  %488 = vst.msk [vmem:[#allocation2 + $0x3b0] sm:$0xff] %vm432_vm0, %v15795_v0 }
  0x5a   : > { %489 = vst.msk [vmem:[#allocation2 + $0x3b8] sm:$0xff] %vm432_vm0, %v15795_v0  ;;  %490 = vst.msk [vmem:[#allocation2 + $0x3c0] sm:$0xff] %vm432_vm0, %v15795_v0 }
  0x5b   : > { %491 = vst.msk [vmem:[#allocation2 + $0x3c8] sm:$0xff] %vm432_vm0, %v15795_v0  ;;  %492 = vst.msk [vmem:[#allocation2 + $0x3d0] sm:$0xff] %vm432_vm0, %v15795_v0 }
  0x5c   : > { %493 = vst.msk [vmem:[#allocation2 + $0x3d8] sm:$0xff] %vm432_vm0, %v15795_v0  ;;  %494 = vst.msk [vmem:[#allocation2 + $0x3e0] sm:$0xff] %vm432_vm0, %v15795_v0 }
  0x5d   : > { %495 = vst.msk [vmem:[#allocation2 + $0x3e8] sm:$0xff] %vm432_vm0, %v15795_v0  ;;  %496 = vst.msk [vmem:[#allocation2 + $0x3f0] sm:$0xff] %vm432_vm0, %v15795_v0 }
  0x5e   : > { %497 = vst.msk [vmem:[#allocation2 + $0x3f8] sm:$0xff] %vm432_vm0, %v15795_v0  ;;  %499 = vst.msk [vmem:[#allocation2 + $0x100] sm:$0xff] %vm432_vm0, %v15795_v0 }
  0x5f   : > { %500 = vst.msk [vmem:[#allocation2 + $0x120] sm:$0xff] %vm432_vm0, %v15795_v0  ;;  %501 = vst.msk [vmem:[#allocation2 + $0x140] sm:$0xff] %vm432_vm0, %v15795_v0 }
  0x60   : > { %502 = vst.msk [vmem:[#allocation2 + $0x160] sm:$0xff] %vm432_vm0, %v15795_v0  ;;  %503 = vst.msk [vmem:[#allocation2 + $0x180] sm:$0xff] %vm432_vm0, %v15795_v0 }
  0x61   : > { %504 = vst.msk [vmem:[#allocation2 + $0x1a0] sm:$0xff] %vm432_vm0, %v15795_v0  ;;  %505 = vst.msk [vmem:[#allocation2 + $0x1c0] sm:$0xff] %vm432_vm0, %v15795_v0 }
  0x62   : > { %506 = vst.msk [vmem:[#allocation2 + $0x1e0] sm:$0xff] %vm432_vm0, %v15795_v0  ;;  %507 = vst.msk [vmem:[#allocation2 + $0x200] sm:$0xff] %vm432_vm0, %v15795_v0 }
  0x63   : > { %508 = vst.msk [vmem:[#allocation2 + $0x220] sm:$0xff] %vm432_vm0, %v15795_v0  ;;  %509 = vst.msk [vmem:[#allocation2 + $0x240] sm:$0xff] %vm432_vm0, %v15795_v0 }
  0x64   : > { %510 = vst.msk [vmem:[#allocation2 + $0x260] sm:$0xff] %vm432_vm0, %v15795_v0  ;;  %511 = vst.msk [vmem:[#allocation2 + $0x280] sm:$0xff] %vm432_vm0, %v15795_v0 }
  0x65   : > { %512 = vst.msk [vmem:[#allocation2 + $0x2a0] sm:$0xff] %vm432_vm0, %v15795_v0  ;;  %513 = vst.msk [vmem:[#allocation2 + $0x2c0] sm:$0xff] %vm432_vm0, %v15795_v0 }
  0x66   : > { %514 = vst.msk [vmem:[#allocation2 + $0x2e0] sm:$0xff] %vm432_vm0, %v15795_v0  ;;  %515 = vst.msk [vmem:[#allocation2 + $0x118] sm:$0xff] %vm432_vm0, %v15795_v0 }
  0x67   : > { %516 = vst.msk [vmem:[#allocation2 + $0x138] sm:$0xff] %vm432_vm0, %v15795_v0  ;;  %517 = vst.msk [vmem:[#allocation2 + $0x158] sm:$0xff] %vm432_vm0, %v15795_v0 }
  0x68   : > { %518 = vst.msk [vmem:[#allocation2 + $0x178] sm:$0xff] %vm432_vm0, %v15795_v0  ;;  %519 = vst.msk [vmem:[#allocation2 + $0x198] sm:$0xff] %vm432_vm0, %v15795_v0 }
  0x69   : > { %520 = vst.msk [vmem:[#allocation2 + $0x1b8] sm:$0xff] %vm432_vm0, %v15795_v0  ;;  %521 = vst.msk [vmem:[#allocation2 + $0x1d8] sm:$0xff] %vm432_vm0, %v15795_v0 }
  0x6a   : > { %522 = vst.msk [vmem:[#allocation2 + $0x1f8] sm:$0xff] %vm432_vm0, %v15795_v0  ;;  %523 = vst.msk [vmem:[#allocation2 + $0x218] sm:$0xff] %vm432_vm0, %v15795_v0 }
  0x6b   : > { %524 = vst.msk [vmem:[#allocation2 + $0x238] sm:$0xff] %vm432_vm0, %v15795_v0  ;;  %525 = vst.msk [vmem:[#allocation2 + $0x258] sm:$0xff] %vm432_vm0, %v15795_v0 }
  0x6c   : > { %526 = vst.msk [vmem:[#allocation2 + $0x278] sm:$0xff] %vm432_vm0, %v15795_v0  ;;  %527 = vst.msk [vmem:[#allocation2 + $0x298] sm:$0xff] %vm432_vm0, %v15795_v0 }
  0x6d   : > { %528 = vst.msk [vmem:[#allocation2 + $0x2b8] sm:$0xff] %vm432_vm0, %v15795_v0  ;;  %529 = vst.msk [vmem:[#allocation2 + $0x2d8] sm:$0xff] %vm432_vm0, %v15795_v0 }
  0x6e   : > { %530 = vst.msk [vmem:[#allocation2 + $0x2f8] sm:$0xff] %vm432_vm0, %v15795_v0  ;;  %15925 = vst [vmem:[#allocation11_spill] sm:$0xff] %v10440_v1  ;;  %v1496_v0 = vld [vmem:[#allocation2 + $0xea] sm:$0xff] }
  0x6f   : > { %15926 = vst [vmem:[#allocation12_spill] sm:$0xff] %v10443_v2  ;;  %15927 = vst [vmem:[#allocation13_spill] sm:$0xff] %v10446_v3 }
  0x70   : > { %532 = vst.msk [vmem:[#allocation2 + $0x110] sm:$0xff] %vm432_vm0, %v10440_v1  ;;  %531 = vst.msk [vmem:[#allocation2 + $0x108] sm:$0xff] %vm432_vm0, %v10443_v2 }
  0x71   : > { %534 = vst.msk [vmem:[#allocation2 + $0x130] sm:$0xff] %vm432_vm0, %v10446_v3  ;;  %15928 = vst [vmem:[#allocation14_spill] sm:$0xff] %v10457_v8 }
  0x72   : > { %15929 = vst [vmem:[#allocation15_spill] sm:$0xff] %v10460_v9  ;;  %533 = vst.msk [vmem:[#allocation2 + $0x128] sm:$0xff] %vm432_vm0, %v10457_v8 }
  0x73   : > { %536 = vst.msk [vmem:[#allocation2 + $0x150] sm:$0xff] %vm432_vm0, %v10460_v9  ;;  %15930 = vst [vmem:[#allocation16_spill] sm:$0xff] %v10467_v10 }
  0x74   : > { %15931 = vst [vmem:[#allocation17_spill] sm:$0xff] %v10470_v11  ;;  %15932 = vst [vmem:[#allocation18_spill] sm:$0xff] %v10473_v12 }
  0x75   : > { %535 = vst.msk [vmem:[#allocation2 + $0x148] sm:$0xff] %vm432_vm0, %v10467_v10  ;;  %538 = vst.msk [vmem:[#allocation2 + $0x170] sm:$0xff] %vm432_vm0, %v10470_v11 }
  0x76   : > { %537 = vst.msk [vmem:[#allocation2 + $0x168] sm:$0xff] %vm432_vm0, %v10473_v12  ;;  %15933 = vst [vmem:[#allocation19_spill] sm:$0xff] %v10482_v13 }
  0x77   : > { %15934 = vst [vmem:[#allocation20_spill] sm:$0xff] %v10485_v14  ;;  %15935 = vst [vmem:[#allocation21_spill] sm:$0xff] %v10488_v15  ;;  %v10532_v24 = vld [vmem:[#allocation2 + $0x110] sm:$0xff]  ;;  %v10534_v25 = vld [vmem:[#allocation2 + $0x108] sm:$0xff] }
  0x78   : > { %540 = vst.msk [vmem:[#allocation2 + $0x190] sm:$0xff] %vm432_vm0, %v10482_v13  ;;  %539 = vst.msk [vmem:[#allocation2 + $0x188] sm:$0xff] %vm432_vm0, %v10485_v14  ;;  %1761 = vrot.lane.b32.xlu1 %v10532_v24, %s15902_s25  ;;  %1759 = vrot.lane.b32.xlu0 %v10534_v25, %s15902_s25  ;;  %v10564_v30 = vld [vmem:[#allocation2 + $0x130] sm:$0xff] }
  0x79   : > { %542 = vst.msk [vmem:[#allocation2 + $0x1b0] sm:$0xff] %vm432_vm0, %v10488_v15  ;;  %15936 = vst [vmem:[#allocation22_spill] sm:$0xff] %v10497_v16  ;;  %v10566_v31 = vld [vmem:[#allocation2 + $0x128] sm:$0xff] }
  0x7a   : > { %15937 = vst [vmem:[#allocation23_spill] sm:$0xff] %v10500_v17  ;;  %15938 = vst [vmem:[#allocation24_spill] sm:$0xff] %v10503_v18  ;;  %v10577_v33 = vld [vmem:[#allocation2 + $0x150] sm:$0xff] }
  0x7b   : > { %541 = vst.msk [vmem:[#allocation2 + $0x1a8] sm:$0xff] %vm432_vm0, %v10497_v16  ;;  %544 = vst.msk [vmem:[#allocation2 + $0x1d0] sm:$0xff] %vm432_vm0, %v10500_v17 }
  0x7c   : > { %543 = vst.msk [vmem:[#allocation2 + $0x1c8] sm:$0xff] %vm432_vm0, %v10503_v18  ;;  %15939 = vst [vmem:[#allocation25_spill] sm:$0xff] %v10514_v19  ;;  %1765 = vrot.lane.b32.xlu1 %v10564_v30, %s15902_s25  ;;  %1763 = vrot.lane.b32.xlu0 %v10566_v31, %s15902_s25  ;;  %v10579_v34 = vld [vmem:[#allocation2 + $0x148] sm:$0xff]  ;;  %v10605_v39 = vld [vmem:[#allocation2 + $0x170] sm:$0xff] }
  0x7d   : > { %15940 = vst [vmem:[#allocation26_spill] sm:$0xff] %v10517_v20  ;;  %546 = vst.msk [vmem:[#allocation2 + $0x1f0] sm:$0xff] %vm432_vm0, %v10514_v19  ;;  %v10607_v40 = vld [vmem:[#allocation2 + $0x168] sm:$0xff] }
  0x7e   : > { %545 = vst.msk [vmem:[#allocation2 + $0x1e8] sm:$0xff] %vm432_vm0, %v10517_v20  ;;  %15941 = vst [vmem:[#allocation27_spill] sm:$0xff] %v10524_v21 }
  0x7f   : > { %15942 = vst [vmem:[#allocation28_spill] sm:$0xff] %v10527_v22  ;;  %15943 = vst [vmem:[#allocation29_spill] sm:$0xff] %v10530_v23  ;;  %v10615_v41 = vld [vmem:[#allocation2 + $0x190] sm:$0xff]  ;;  %v10617_v42 = vld [vmem:[#allocation2 + $0x188] sm:$0xff] }
  0x80   : > { %548 = vst.msk [vmem:[#allocation2 + $0x210] sm:$0xff] %vm432_vm0, %v10524_v21  ;;  %547 = vst.msk [vmem:[#allocation2 + $0x208] sm:$0xff] %vm432_vm0, %v10527_v22  ;;  %1769 = vrot.lane.b32.xlu1 %v10577_v33, %s15902_s25  ;;  %1767 = vrot.lane.b32.xlu0 %v10579_v34, %s15902_s25  ;;  %v10623_v43 = vld [vmem:[#allocation2 + $0x1b0] sm:$0xff] }
  0x81   : > { %550 = vst.msk [vmem:[#allocation2 + $0x230] sm:$0xff] %vm432_vm0, %v10530_v23  ;;  %15944 = vst [vmem:[#allocation30_spill] sm:$0xff] %v10543_v26  ;;  %v1437_v21 = vld [vmem:[#allocation2 + $0x12e] sm:$0xff] }
  0x82   : > { %15945 = vst [vmem:[#allocation31_spill] sm:$0xff] %v10546_v27  ;;  %15946 = vst [vmem:[#allocation32_spill] sm:$0xff] %v10549_v28  ;;  %v10625_v44 = vld [vmem:[#allocation2 + $0x1a8] sm:$0xff]  ;;  %v10631_v45 = vld [vmem:[#allocation2 + $0x1d0] sm:$0xff] }
  0x83   : > { %549 = vst.msk [vmem:[#allocation2 + $0x228] sm:$0xff] %vm432_vm0, %v10543_v26  ;;  %552 = vst.msk [vmem:[#allocation2 + $0x250] sm:$0xff] %vm432_vm0, %v10546_v27  ;;  %v10633_v46 = vld [vmem:[#allocation2 + $0x1c8] sm:$0xff] }
  0x84   : > { %551 = vst.msk [vmem:[#allocation2 + $0x248] sm:$0xff] %vm432_vm0, %v10549_v28  ;;  %15947 = vst [vmem:[#allocation33_spill] sm:$0xff] %v10562_v29  ;;  %1773 = vrot.lane.b32.xlu1 %v10605_v39, %s15902_s25  ;;  %1771 = vrot.lane.b32.xlu0 %v10607_v40, %s15902_s25  ;;  %v10639_v47 = vld [vmem:[#allocation2 + $0x1f0] sm:$0xff] }
  0x85   : > { %554 = vst.msk [vmem:[#allocation2 + $0x270] sm:$0xff] %vm432_vm0, %v10562_v29  ;;  %15948 = vst [vmem:[#allocation34_spill] sm:$0xff] %v10575_v32  ;;  %v10641_v48 = vld [vmem:[#allocation2 + $0x1e8] sm:$0xff]  ;;  %v10767_v29 = vld [vmem:[#allocation2 + $0x1d2] sm:$0xff] }
  0x86   : > { %553 = vst.msk [vmem:[#allocation2 + $0x268] sm:$0xff] %vm432_vm0, %v10575_v32  ;;  %15949 = vst [vmem:[#allocation35_spill] sm:$0xff] %v10584_v35  ;;  %v10769_v32 = vld [vmem:[#allocation2 + $0x1ca] sm:$0xff]  ;;  %v10775_v27 = vld [vmem:[#allocation2 + $0x1f2] sm:$0xff] }
  0x87   : > { %15950 = vst [vmem:[#allocation36_spill] sm:$0xff] %v10587_v36  ;;  %15951 = vst [vmem:[#allocation37_spill] sm:$0xff] %v10590_v37  ;;  %v10647_v49 = vld [vmem:[#allocation2 + $0x210] sm:$0xff]  ;;  %v10649_v50 = vld [vmem:[#allocation2 + $0x208] sm:$0xff] }
  0x88   : > { %556 = vst.msk [vmem:[#allocation2 + $0x290] sm:$0xff] %vm432_vm0, %v10584_v35  ;;  %555 = vst.msk [vmem:[#allocation2 + $0x288] sm:$0xff] %vm432_vm0, %v10587_v36  ;;  %1777 = vrot.lane.b32.xlu1 %v10615_v41, %s15902_s25  ;;  %1775 = vrot.lane.b32.xlu0 %v10617_v42, %s15902_s25  ;;  %v10655_v51 = vld [vmem:[#allocation2 + $0x230] sm:$0xff] }
  0x89   : > { %558 = vst.msk [vmem:[#allocation2 + $0x2b0] sm:$0xff] %vm432_vm0, %v10590_v37  ;;  %15952 = vst [vmem:[#allocation38_spill] sm:$0xff] %v10603_v38  ;;  %v10751_v37 = vld [vmem:[#allocation2 + $0x192] sm:$0xff]  ;;  %v10761_v36 = vld [vmem:[#allocation2 + $0x1aa] sm:$0xff] }
  0x8a   : > { %557 = vst.msk [vmem:[#allocation2 + $0x2a8] sm:$0xff] %vm432_vm0, %v10603_v38  ;;  %v10657_v52 = vld [vmem:[#allocation2 + $0x228] sm:$0xff]  ;;  %v10663_v53 = vld [vmem:[#allocation2 + $0x250] sm:$0xff]  ;;  %15953 = vst [vmem:[#allocation39_spill] sm:$0xff] %v10668_v55 }
  0x8b   : > { %v10665_v54 = vld [vmem:[#allocation2 + $0x248] sm:$0xff]  ;;  %15954 = vst [vmem:[#allocation40_spill] sm:$0xff] %v10671_v56  ;;  %559 = vst.msk [vmem:[#allocation2 + $0x2c8] sm:$0xff] %vm432_vm0, %v10668_v55  ;;  %v10759_v35 = vld [vmem:[#allocation2 + $0x1b2] sm:$0xff] }
  0x8c   : > { %1781 = vrot.lane.b32.xlu1 %v10623_v43, %s15902_s25  ;;  %1779 = vrot.lane.b32.xlu0 %v10625_v44, %s15902_s25  ;;  %560 = vst.msk [vmem:[#allocation2 + $0x2d0] sm:$0xff] %vm432_vm0, %v10671_v56  ;;  %v10681_v57 = vld [vmem:[#allocation2 + $0x270] sm:$0xff]  ;;  %15955 = vst [vmem:[#allocation41_spill] sm:$0xff] %v10686_v59 }
  0x8d   : > { %v10683_v58 = vld [vmem:[#allocation2 + $0x268] sm:$0xff]  ;;  %15956 = vst [vmem:[#allocation42_spill] sm:$0xff] %v10689_v60  ;;  %561 = vst.msk [vmem:[#allocation2 + $0x2e8] sm:$0xff] %vm432_vm0, %v10686_v59  ;;  %v10727_v56 = vld [vmem:[#allocation2 + $0x132] sm:$0xff] }
  0x8e   : > { %562 = vst.msk [vmem:[#allocation2 + $0x2f0] sm:$0xff] %vm432_vm0, %v10689_v60  ;;  %v10719_v60 = vld [vmem:[#allocation2 + $0x112] sm:$0xff]  ;;  %v10721_v59 = vld [vmem:[#allocation2 + $0x10a] sm:$0xff]  ;;  %15958 = vst [vmem:[#allocation44_spill] sm:$0xff] %v10759_v35 }
  0x8f   : > { %v10699_v61 = vld [vmem:[#allocation2 + $0x290] sm:$0xff]  ;;  %v10701_v62 = vld [vmem:[#allocation2 + $0x288] sm:$0xff]  ;;  %15959 = vst [vmem:[#allocation45_spill] sm:$0xff] %v10761_v36  ;;  %15960 = vst [vmem:[#allocation46_spill] sm:$0xff] %v10767_v29 }
  0x90   : > { %1785 = vrot.lane.b32.xlu1 %v10631_v45, %s15902_s25  ;;  %1783 = vrot.lane.b32.xlu0 %v10633_v46, %s15902_s25  ;;  %v10707_v63 = vld [vmem:[#allocation2 + $0x2b0] sm:$0xff]  ;;  %15961 = vst [vmem:[#allocation47_spill] sm:$0xff] %v10769_v32  ;;  %15962 = vst [vmem:[#allocation48_spill] sm:$0xff] %v10775_v27 }
  0x91   : > { %v10709_v4 = vld [vmem:[#allocation2 + $0x2a8] sm:$0xff]  ;;  %v10783_v23 = vld [vmem:[#allocation2 + $0x212] sm:$0xff] }
  0x92   : > { %v10745_v55 = vld [vmem:[#allocation2 + $0x16a] sm:$0xff]  ;;  %15964 = vst [vmem:[#allocation50_spill] sm:$0xff] %v10783_v23 }
  0x93   : > { %v10753_v38 = vld [vmem:[#allocation2 + $0x18a] sm:$0xff] }
  0x94   : > { %1789 = vrot.lane.b32.xlu1 %v10639_v47, %s15902_s25  ;;  %1787 = vrot.lane.b32.xlu0 %v10641_v48, %s15902_s25  ;;  %15957 = vst [vmem:[#allocation43_spill] sm:$0xff] %v10753_v38  ;;  %v10777_v28 = vld [vmem:[#allocation2 + $0x1ea] sm:$0xff] }
  0x95   : > { %15963 = vst [vmem:[#allocation49_spill] sm:$0xff] %v10777_v28  ;;  %v10785_v26 = vld [vmem:[#allocation2 + $0x20a] sm:$0xff] }
  0x96   : > { %15965 = vst [vmem:[#allocation51_spill] sm:$0xff] %v10785_v26 }
  0x98   : > { %1793 = vrot.lane.b32.xlu1 %v10647_v49, %s15902_s25  ;;  %1791 = vrot.lane.b32.xlu0 %v10649_v50, %s15902_s25 }
  0x9c   : > { %1797 = vrot.lane.b32.xlu1 %v10655_v51, %s15902_s25  ;;  %1795 = vrot.lane.b32.xlu0 %v10657_v52, %s15902_s25 }
  0xa0   : > { %1801 = vrot.lane.b32.xlu1 %v10663_v53, %s15902_s25  ;;  %1799 = vrot.lane.b32.xlu0 %v10665_v54, %s15902_s25 }
  0xa4   : > { %1805 = vrot.lane.b32.xlu1 %v10681_v57, %s15902_s25  ;;  %1803 = vrot.lane.b32.xlu0 %v10683_v58, %s15902_s25 }
  0xa8   : > { %1809 = vrot.lane.b32.xlu1 %v10699_v61, %s15902_s25  ;;  %1807 = vrot.lane.b32.xlu0 %v10701_v62, %s15902_s25 }
  0xac   : > { %1813 = vrot.lane.b32.xlu1 %v10707_v63, %s15902_s25  ;;  %1811 = vrot.lane.b32.xlu0 %v10709_v4, %s15902_s25 }
  0xb0   : > { %1881 = vrot.lane.b32.xlu1 %v1495_v5, %s15900_s30  ;;  %1879 = vrot.lane.b32.xlu0 %v1494_v6, %s15900_s30  ;;  %v10729_v5 = vld [vmem:[#allocation2 + $0x12a] sm:$0xff] }
  0xb1   : > { %v10737_v6 = vld [vmem:[#allocation2 + $0x14a] sm:$0xff] }
  0xb4   : > { %1885 = vrot.lane.b32.xlu1 %v1497_v7, %s15900_s30  ;;  %1883 = vrot.lane.b32.xlu0 %v1496_v0, %s15900_s30  ;;  %v10735_v0 = vld [vmem:[#allocation2 + $0x152] sm:$0xff] }
  0xb5   : > { %v10743_v7 = vld [vmem:[#allocation2 + $0x172] sm:$0xff] }
  0xb8   : > { %1889 = vrot.lane.b32.xlu1 %v10719_v60, %s15900_s30  ;;  %1887 = vrot.lane.b32.xlu0 %v10721_v59, %s15900_s30 }
  0xbc   : > { %1893 = vrot.lane.b32.xlu1 %v10727_v56, %s15900_s30  ;;  %1891 = vrot.lane.b32.xlu0 %v10729_v5, %s15900_s30 }
  0xc0   : > { %1897 = vrot.lane.b32.xlu1 %v10735_v0, %s15900_s30  ;;  %1895 = vrot.lane.b32.xlu0 %v10737_v6, %s15900_s30 }
  0xc4   : > { %1901 = vrot.lane.b32.xlu1 %v10743_v7, %s15900_s30  ;;  %1899 = vrot.lane.b32.xlu0 %v10745_v55, %s15900_s30 }
  0xc8   : > { %1905 = vrot.lane.b32.xlu1 %v10751_v37, %s15900_s30  ;;  %1903 = vrot.lane.b32.xlu0 %v10753_v38, %s15900_s30  ;;  %v10861_v38 = vld [vmem:[#allocation2 + $0x146] sm:$0xff] }
  0xcc   : > { %1909 = vrot.lane.b32.xlu1 %v10759_v35, %s15900_s30  ;;  %1907 = vrot.lane.b32.xlu0 %v10761_v36, %s15900_s30  ;;  %v10811_v36 = vpop.permute.xlu1 %1755 }
  0xcd   : > { %15972 = vst [vmem:[#allocation58_spill] sm:$0xff] %v10811_v36  ;;  %v10833_v36 = vld [vmem:[#allocation2 + $0x2aa] sm:$0xff] }
  0xce   : > { %15979 = vst [vmem:[#allocation65_spill] sm:$0xff] %v10833_v36 }
  0xd0   : > { %1913 = vrot.lane.b32.xlu1 %v10767_v29, %s15900_s30  ;;  %1911 = vrot.lane.b32.xlu0 %v10769_v32, %s15900_s30  ;;  %v10791_v32 = vld [vmem:[#allocation2 + $0x232] sm:$0xff]  ;;  %v10793_v29 = vld [vmem:[#allocation2 + $0x22a] sm:$0xff]  ;;  %v10823_v35 = vpop.permute.xlu1 %1757 }
  0xd1   : > { %15966 = vst [vmem:[#allocation52_spill] sm:$0xff] %v10791_v32  ;;  %15967 = vst [vmem:[#allocation53_spill] sm:$0xff] %v10793_v29 }
  0xd2   : > { %15976 = vst [vmem:[#allocation62_spill] sm:$0xff] %v10823_v35 }
  0xd4   : > { %1917 = vrot.lane.b32.xlu1 %v10775_v27, %s15900_s30  ;;  %1915 = vrot.lane.b32.xlu0 %v10777_v28, %s15900_s30  ;;  %v10799_v28 = vld [vmem:[#allocation2 + $0x252] sm:$0xff]  ;;  %v10801_v27 = vld [vmem:[#allocation2 + $0x24a] sm:$0xff] }
  0xd5   : > { %15968 = vst [vmem:[#allocation54_spill] sm:$0xff] %v10799_v28  ;;  %15969 = vst [vmem:[#allocation55_spill] sm:$0xff] %v10801_v27 }
  0xd8   : > { %1921 = vrot.lane.b32.xlu1 %v10783_v23, %s15900_s30  ;;  %1919 = vrot.lane.b32.xlu0 %v10785_v26, %s15900_s30  ;;  %v10807_v26 = vld [vmem:[#allocation2 + $0x272] sm:$0xff]  ;;  %v10809_v23 = vld [vmem:[#allocation2 + $0x26a] sm:$0xff] }
  0xd9   : > { %15970 = vst [vmem:[#allocation56_spill] sm:$0xff] %v10807_v26  ;;  %15971 = vst [vmem:[#allocation57_spill] sm:$0xff] %v10809_v23 }
  0xdc   : > { %1925 = vrot.lane.b32.xlu1 %v10791_v32, %s15900_s30  ;;  %1923 = vrot.lane.b32.xlu0 %v10793_v29, %s15900_s30  ;;  %v10813_v32 = vpop.permute.xlu0 %1751  ;;  %v10819_v29 = vld [vmem:[#allocation2 + $0x292] sm:$0xff] }
  0xdd   : > { %15973 = vst [vmem:[#allocation59_spill] sm:$0xff] %v10813_v32  ;;  %15974 = vst [vmem:[#allocation60_spill] sm:$0xff] %v10819_v29  ;;  %v10831_v32 = vld [vmem:[#allocation2 + $0x2b2] sm:$0xff] }
  0xde   : > { %15978 = vst [vmem:[#allocation64_spill] sm:$0xff] %v10831_v32 }
  0xe0   : > { %1929 = vrot.lane.b32.xlu1 %v10799_v28, %s15900_s30  ;;  %1927 = vrot.lane.b32.xlu0 %v10801_v27, %s15900_s30  ;;  %v10821_v28 = vld [vmem:[#allocation2 + $0x28a] sm:$0xff]  ;;  %v10825_v27 = vpop.permute.xlu0 %1753 }
  0xe1   : > { %15975 = vst [vmem:[#allocation61_spill] sm:$0xff] %v10821_v28  ;;  %15977 = vst [vmem:[#allocation63_spill] sm:$0xff] %v10825_v27 }
  0xe4   : > { %1933 = vrot.lane.b32.xlu1 %v10807_v26, %s15900_s30  ;;  %1931 = vrot.lane.b32.xlu0 %v10809_v23, %s15900_s30 }
  0xe8   : > { %1937 = vrot.lane.b32.xlu1 %v10819_v29, %s15900_s30  ;;  %1935 = vrot.lane.b32.xlu0 %v10821_v28, %s15900_s30  ;;  %v1435_v29 = vld [vmem:[#allocation2 + $0x10e] sm:$0xff]  ;;  %v1434_v28 = vld [vmem:[#allocation2 + $0x106] sm:$0xff] }
  0xea   : > { %v10835_v26 = vpop.permute.xlu1 %1761  ;;  %v10837_v23 = vpop.permute.xlu0 %1759 }
  0xeb   : > { %15980 = vst [vmem:[#allocation66_spill] sm:$0xff] %v10835_v26  ;;  %15981 = vst [vmem:[#allocation67_spill] sm:$0xff] %v10837_v23 }
  0xec   : > { %1941 = vrot.lane.b32.xlu1 %v10831_v32, %s15900_s30  ;;  %1939 = vrot.lane.b32.xlu0 %v10833_v36, %s15900_s30  ;;  %v1436_v32 = vld [vmem:[#allocation2 + $0x126] sm:$0xff]  ;;  %v10859_v36 = vld [vmem:[#allocation2 + $0x14e] sm:$0xff] }
  0xee   : > { %v10843_v27 = vpop.permute.xlu1 %1765  ;;  %v10845_v35 = vpop.permute.xlu0 %1763 }
  0xef   : > { %15982 = vst [vmem:[#allocation68_spill] sm:$0xff] %v10843_v27  ;;  %15983 = vst [vmem:[#allocation69_spill] sm:$0xff] %v10845_v35 }
  0xf0   : > { %2009 = vrot.lane.b32.xlu1 %v1435_v29, %s15898_s14  ;;  %2007 = vrot.lane.b32.xlu0 %v1434_v28, %s15898_s14 }
  0xf2   : > { %v10849_v26 = vpop.permute.xlu1 %1769  ;;  %v10851_v23 = vpop.permute.xlu0 %1767 }
  0xf3   : > { %15984 = vst [vmem:[#allocation70_spill] sm:$0xff] %v10849_v26  ;;  %15985 = vst [vmem:[#allocation71_spill] sm:$0xff] %v10851_v23  ;;  %v10883_v23 = vld [vmem:[#allocation2 + $0x18e] sm:$0xff]  ;;  %v10885_v26 = vld [vmem:[#allocation2 + $0x186] sm:$0xff] }
  0xf4   : > { %2013 = vrot.lane.b32.xlu1 %v1437_v21, %s15898_s14  ;;  %2011 = vrot.lane.b32.xlu0 %v1436_v32, %s15898_s14  ;;  %v10871_v21 = vld [vmem:[#allocation2 + $0x16e] sm:$0xff]  ;;  %v10873_v32 = vld [vmem:[#allocation2 + $0x166] sm:$0xff]  ;;  %15994 = vst [vmem:[#allocation80_spill] sm:$0xff] %v10883_v23  ;;  %15995 = vst [vmem:[#allocation81_spill] sm:$0xff] %v10885_v26 }
  0xf5   : > { %15990 = vst [vmem:[#allocation76_spill] sm:$0xff] %v10871_v21  ;;  %15991 = vst [vmem:[#allocation77_spill] sm:$0xff] %v10873_v32 }
  0xf6   : > { %v10855_v27 = vpop.permute.xlu1 %1773  ;;  %v10857_v35 = vpop.permute.xlu0 %1771 }
  0xf7   : > { %15986 = vst [vmem:[#allocation72_spill] sm:$0xff] %v10855_v27  ;;  %15987 = vst [vmem:[#allocation73_spill] sm:$0xff] %v10857_v35 }
  0xf8   : > { %2017 = vrot.lane.b32.xlu1 %v10859_v36, %s15898_s14  ;;  %2015 = vrot.lane.b32.xlu0 %v10861_v38, %s15898_s14 }
  0xfa   : > { %v10867_v28 = vpop.permute.xlu1 %1777  ;;  %v10869_v29 = vpop.permute.xlu0 %1775 }
  0xfb   : > { %15988 = vst [vmem:[#allocation74_spill] sm:$0xff] %v10867_v28  ;;  %15989 = vst [vmem:[#allocation75_spill] sm:$0xff] %v10869_v29 }
  0xfc   : > { %2021 = vrot.lane.b32.xlu1 %v10871_v21, %s15898_s14  ;;  %2019 = vrot.lane.b32.xlu0 %v10873_v32, %s15898_s14  ;;  %v10895_v21 = vld [vmem:[#allocation2 + $0x1ae] sm:$0xff]  ;;  %v10897_v32 = vld [vmem:[#allocation2 + $0x1a6] sm:$0xff] }
  0xfd   : > { %15998 = vst [vmem:[#allocation84_spill] sm:$0xff] %v10895_v21  ;;  %15999 = vst [vmem:[#allocation85_spill] sm:$0xff] %v10897_v32 }
  0xfe   : > { %v10879_v35 = vpop.permute.xlu1 %1781  ;;  %v10881_v27 = vpop.permute.xlu0 %1779 }
  0xff   : > { %15992 = vst [vmem:[#allocation78_spill] sm:$0xff] %v10879_v35  ;;  %15993 = vst [vmem:[#allocation79_spill] sm:$0xff] %v10881_v27 }
 0x100   : > { %2025 = vrot.lane.b32.xlu1 %v10883_v23, %s15898_s14  ;;  %2023 = vrot.lane.b32.xlu0 %v10885_v26, %s15898_s14  ;;  %v10907_v23 = vld [vmem:[#allocation2 + $0x1ce] sm:$0xff]  ;;  %v10909_v26 = vld [vmem:[#allocation2 + $0x1c6] sm:$0xff] }
 0x101   : > { %16002 = vst [vmem:[#allocation88_spill] sm:$0xff] %v10907_v23  ;;  %16003 = vst [vmem:[#allocation89_spill] sm:$0xff] %v10909_v26 }
 0x102   : > { %v10891_v29 = vpop.permute.xlu1 %1785  ;;  %v10893_v28 = vpop.permute.xlu0 %1783 }
 0x103   : > { %15996 = vst [vmem:[#allocation82_spill] sm:$0xff] %v10891_v29  ;;  %15997 = vst [vmem:[#allocation83_spill] sm:$0xff] %v10893_v28 }
 0x104   : > { %2029 = vrot.lane.b32.xlu1 %v10895_v21, %s15898_s14  ;;  %2027 = vrot.lane.b32.xlu0 %v10897_v32, %s15898_s14  ;;  %v10919_v21 = vld [vmem:[#allocation2 + $0x1ee] sm:$0xff]  ;;  %v10921_v32 = vld [vmem:[#allocation2 + $0x1e6] sm:$0xff] }
 0x105   : > { %16006 = vst [vmem:[#allocation92_spill] sm:$0xff] %v10919_v21  ;;  %16007 = vst [vmem:[#allocation93_spill] sm:$0xff] %v10921_v32 }
 0x106   : > { %v10903_v27 = vpop.permute.xlu1 %1789  ;;  %v10905_v35 = vpop.permute.xlu0 %1787 }
 0x107   : > { %16000 = vst [vmem:[#allocation86_spill] sm:$0xff] %v10903_v27  ;;  %16001 = vst [vmem:[#allocation87_spill] sm:$0xff] %v10905_v35 }
 0x108   : > { %2033 = vrot.lane.b32.xlu1 %v10907_v23, %s15898_s14  ;;  %2031 = vrot.lane.b32.xlu0 %v10909_v26, %s15898_s14  ;;  %v10931_v23 = vld [vmem:[#allocation2 + $0x20e] sm:$0xff]  ;;  %v10933_v26 = vld [vmem:[#allocation2 + $0x206] sm:$0xff] }
 0x109   : > { %16010 = vst [vmem:[#allocation96_spill] sm:$0xff] %v10931_v23  ;;  %16011 = vst [vmem:[#allocation97_spill] sm:$0xff] %v10933_v26 }
 0x10a   : > { %v10915_v28 = vpop.permute.xlu1 %1793  ;;  %v10917_v29 = vpop.permute.xlu0 %1791 }
 0x10b   : > { %16004 = vst [vmem:[#allocation90_spill] sm:$0xff] %v10915_v28  ;;  %16005 = vst [vmem:[#allocation91_spill] sm:$0xff] %v10917_v29 }
 0x10c   : > { %2037 = vrot.lane.b32.xlu1 %v10919_v21, %s15898_s14  ;;  %2035 = vrot.lane.b32.xlu0 %v10921_v32, %s15898_s14  ;;  %v10943_v21 = vld [vmem:[#allocation2 + $0x22e] sm:$0xff]  ;;  %v10945_v32 = vld [vmem:[#allocation2 + $0x226] sm:$0xff] }
 0x10d   : > { %16014 = vst [vmem:[#allocation100_spill] sm:$0xff] %v10943_v21  ;;  %16015 = vst [vmem:[#allocation101_spill] sm:$0xff] %v10945_v32 }
 0x10e   : > { %v10927_v35 = vpop.permute.xlu1 %1797  ;;  %v10929_v27 = vpop.permute.xlu0 %1795 }
 0x10f   : > { %16008 = vst [vmem:[#allocation94_spill] sm:$0xff] %v10927_v35  ;;  %16009 = vst [vmem:[#allocation95_spill] sm:$0xff] %v10929_v27 }
 0x110   : > { %2041 = vrot.lane.b32.xlu1 %v10931_v23, %s15898_s14  ;;  %2039 = vrot.lane.b32.xlu0 %v10933_v26, %s15898_s14  ;;  %v10955_v23 = vld [vmem:[#allocation2 + $0x24e] sm:$0xff]  ;;  %v10957_v26 = vld [vmem:[#allocation2 + $0x246] sm:$0xff] }
 0x111   : > { %16018 = vst [vmem:[#allocation104_spill] sm:$0xff] %v10955_v23  ;;  %16019 = vst [vmem:[#allocation105_spill] sm:$0xff] %v10957_v26 }
 0x112   : > { %v10939_v29 = vpop.permute.xlu1 %1801  ;;  %v10941_v28 = vpop.permute.xlu0 %1799 }
 0x113   : > { %16012 = vst [vmem:[#allocation98_spill] sm:$0xff] %v10939_v29  ;;  %16013 = vst [vmem:[#allocation99_spill] sm:$0xff] %v10941_v28 }
 0x114   : > { %2045 = vrot.lane.b32.xlu1 %v10943_v21, %s15898_s14  ;;  %2043 = vrot.lane.b32.xlu0 %v10945_v32, %s15898_s14  ;;  %v10967_v21 = vld [vmem:[#allocation2 + $0x26e] sm:$0xff]  ;;  %v10969_v32 = vld [vmem:[#allocation2 + $0x266] sm:$0xff] }
 0x115   : > { %16022 = vst [vmem:[#allocation108_spill] sm:$0xff] %v10967_v21  ;;  %16023 = vst [vmem:[#allocation109_spill] sm:$0xff] %v10969_v32 }
 0x116   : > { %v10951_v35 = vpop.permute.xlu1 %1805  ;;  %v10953_v27 = vpop.permute.xlu0 %1803 }
 0x117   : > { %16016 = vst [vmem:[#allocation102_spill] sm:$0xff] %v10951_v35  ;;  %16017 = vst [vmem:[#allocation103_spill] sm:$0xff] %v10953_v27 }
 0x118   : > { %2049 = vrot.lane.b32.xlu1 %v10955_v23, %s15898_s14  ;;  %2047 = vrot.lane.b32.xlu0 %v10957_v26, %s15898_s14  ;;  %v10979_v23 = vld [vmem:[#allocation2 + $0x28e] sm:$0xff]  ;;  %v10981_v26 = vld [vmem:[#allocation2 + $0x286] sm:$0xff] }
 0x119   : > { %16026 = vst [vmem:[#allocation112_spill] sm:$0xff] %v10979_v23  ;;  %16027 = vst [vmem:[#allocation113_spill] sm:$0xff] %v10981_v26 }
 0x11a   : > { %v10963_v29 = vpop.permute.xlu1 %1809  ;;  %v10965_v28 = vpop.permute.xlu0 %1807 }
 0x11b   : > { %16020 = vst [vmem:[#allocation106_spill] sm:$0xff] %v10963_v29  ;;  %16021 = vst [vmem:[#allocation107_spill] sm:$0xff] %v10965_v28 }
 0x11c   : > { %2053 = vrot.lane.b32.xlu1 %v10967_v21, %s15898_s14  ;;  %2051 = vrot.lane.b32.xlu0 %v10969_v32, %s15898_s14  ;;  %v10991_v21 = vld [vmem:[#allocation2 + $0x2ae] sm:$0xff]  ;;  %v10993_v32 = vld [vmem:[#allocation2 + $0x2a6] sm:$0xff] }
 0x11d   : > { %16030 = vst [vmem:[#allocation116_spill] sm:$0xff] %v10991_v21  ;;  %16031 = vst [vmem:[#allocation117_spill] sm:$0xff] %v10993_v32 }
 0x11e   : > { %v10975_v35 = vpop.permute.xlu1 %1813  ;;  %v10977_v27 = vpop.permute.xlu0 %1811 }
 0x11f   : > { %16024 = vst [vmem:[#allocation110_spill] sm:$0xff] %v10975_v35  ;;  %16025 = vst [vmem:[#allocation111_spill] sm:$0xff] %v10977_v27  ;;  %v10999_v35 = vld [vmem:[#allocation2 + $0x2ce] sm:$0xff]  ;;  %v11001_v27 = vld [vmem:[#allocation2 + $0x2c6] sm:$0xff] }
 0x120   : > { %2057 = vrot.lane.b32.xlu1 %v10979_v23, %s15898_s14  ;;  %2055 = vrot.lane.b32.xlu0 %v10981_v26, %s15898_s14 }
 0x122   : > { %v10987_v29 = vpop.permute.xlu1 %1881  ;;  %v10989_v28 = vpop.permute.xlu0 %1879 }
 0x123   : > { %16028 = vst [vmem:[#allocation114_spill] sm:$0xff] %v10987_v29  ;;  %16029 = vst [vmem:[#allocation115_spill] sm:$0xff] %v10989_v28  ;;  %v11011_v29 = vld [vmem:[#allocation2 + $0x2ee] sm:$0xff]  ;;  %v11013_v28 = vld [vmem:[#allocation2 + $0x2e6] sm:$0xff] }
 0x124   : > { %2061 = vrot.lane.b32.xlu1 %v10991_v21, %s15898_s14  ;;  %2059 = vrot.lane.b32.xlu0 %v10993_v32, %s15898_s14 }
 0x126   : > { %v11003_v23 = vpop.permute.xlu1 %1885  ;;  %v11005_v26 = vpop.permute.xlu0 %1883 }
 0x127   : > { %16032 = vst [vmem:[#allocation118_spill] sm:$0xff] %v11003_v23  ;;  %16033 = vst [vmem:[#allocation119_spill] sm:$0xff] %v11005_v26 }
 0x128   : > { %2065 = vrot.lane.b32.xlu1 %v10999_v35, %s15898_s14  ;;  %2063 = vrot.lane.b32.xlu0 %v11001_v27, %s15898_s14 }
 0x12a   : > { %v11015_v21 = vpop.permute.xlu1 %1889  ;;  %v11017_v32 = vpop.permute.xlu0 %1887 }
 0x12b   : > { %16034 = vst [vmem:[#allocation120_spill] sm:$0xff] %v11015_v21  ;;  %16035 = vst [vmem:[#allocation121_spill] sm:$0xff] %v11017_v32 }
 0x12c   : > { %2069 = vrot.lane.b32.xlu1 %v11011_v29, %s15898_s14  ;;  %2067 = vrot.lane.b32.xlu0 %v11013_v28, %s15898_s14 }
 0x12e   : > { %v11023_v23 = vpop.permute.xlu1 %1893  ;;  %v11025_v26 = vpop.permute.xlu0 %1891 }
 0x12f   : > { %16036 = vst [vmem:[#allocation122_spill] sm:$0xff] %v11023_v23  ;;  %16037 = vst [vmem:[#allocation123_spill] sm:$0xff] %v11025_v26 }
 0x130   : > { %2137 = vrot.lane.b32.xlu1 %v10532_v24, %s15896_s15  ;;  %2135 = vrot.lane.b32.xlu0 %v10534_v25, %s15896_s15  ;;  %v563_v24 = vld [vmem:[%s16042_s1] sm:$0xff] }
 0x131   : > { %v565_v25 = vcombine.high %v563_v24, %v563_v24 }
 0x132   : > { %v11031_v21 = vpop.permute.xlu1 %1897  ;;  %v11033_v32 = vpop.permute.xlu0 %1895 }
 0x133   : > { %16038 = vst [vmem:[#allocation124_spill] sm:$0xff] %v11031_v21  ;;  %16039 = vst [vmem:[#allocation125_spill] sm:$0xff] %v11033_v32  ;;  %9367 = vmatprep.subr.msk.mxu0 %vm662_vm1, %v565_v25 }
 0x134   : > { %2141 = vrot.lane.b32.xlu1 %v10564_v30, %s15896_s15  ;;  %2139 = vrot.lane.b32.xlu0 %v10566_v31, %s15896_s15 }
 0x135   : > { %9368 = vmatpush1.msk.msra.mxu0 %vm662_vm1, %v563_v24  ;;  %v11170_v24 = vld [vmem:[#allocation2 + $0x2d0] sm:$0xff] }
 0x136   : > { %v11039_v23 = vpop.permute.xlu1 %1901  ;;  %v11041_v26 = vpop.permute.xlu0 %1899  ;;  %9369 = vmatmul.mubr.msk.f32.vlgmr.msra.gmra.mrb[0].mxu0 %vm432_vm0, %v10443_v2  ;;  %v16095_v2 = vld [vmem:[#allocation51_spill] sm:$0xff] }
 0x137   : > { %16040 = vst [vmem:[#allocation126_spill] sm:$0xff] %v11039_v23  ;;  %16041 = vst [vmem:[#allocation127_spill] sm:$0xff] %v11041_v26  ;;  %v1000_v26 = vld [vmem:[%s15788_s8] sm:$0x3]  ;;  %v1674_v23 = vld [vmem:[#allocation2 + $0x270] sm:$0xff] }
 0x138   : > { %2145 = vrot.lane.b32.xlu1 %v10577_v33, %s15896_s15  ;;  %2143 = vrot.lane.b32.xlu0 %v10579_v34, %s15896_s15  ;;  %v16047_v34 = vmov 0.0  }
 0x139   : > { %737 = vmatprep.mubr.f32.mxu0 %v16047_v34 }
 0x13a   : > { %v11050_v30 = vpop.permute.xlu1 %1905  ;;  %v11052_v32 = vpop.permute.xlu0 %1903  ;;  %9370 = vmatmul.mubr.msk.f32.gmra.mrb[2].mxu0 %vm432_vm0, %v10440_v1  ;;  %v16096_v1 = vld [vmem:[#allocation31_spill] sm:$0xff] }
 0x13b   : > { %16043 = vst [vmem:[#allocation128_spill] sm:$0xff] %v11050_v30  ;;  %16044 = vst [vmem:[#allocation129_spill] sm:$0xff] %v11052_v32  ;;  %743 = vmatprep.mubr.f32.mxu0 %v16047_v34  ;;  %v1165_v32 = vld [vmem:[#allocation4 + $0xc8] sm:$0xff]  ;;  %v11643_v30 = vld [vmem:[#allocation2 + $0x250] sm:$0xff] }
 0x13c   : > { %2149 = vrot.lane.b32.xlu1 %v10605_v39, %s15896_s15  ;;  %2147 = vrot.lane.b32.xlu0 %v10607_v40, %s15896_s15 }
 0x13e   : > { %v11062_v31 = vpop.permute.xlu1 %1909  ;;  %v11064_v33 = vpop.permute.xlu0 %1907  ;;  %9371 = vmatmul.mubr.msk.f32.gmra.mrb[4].mxu0 %vm432_vm0, %v10457_v8  ;;  %v16091_v8 = vld [vmem:[#allocation32_spill] sm:$0xff] }
 0x13f   : > { %16045 = vst [vmem:[#allocation130_spill] sm:$0xff] %v11062_v31  ;;  %16046 = vst [vmem:[#allocation131_spill] sm:$0xff] %v11064_v33  ;;  %749 = vmatprep.mubr.f32.mxu0 %v16047_v34  ;;  %v1161_v31 = vld [vmem:[#allocation4 + $0xa8] sm:$0xff] }
 0x140   : > { %2153 = vrot.lane.b32.xlu1 %v10615_v41, %s15896_s15  ;;  %2151 = vrot.lane.b32.xlu0 %v10617_v42, %s15896_s15 }
 0x142   : > { %v11073_v39 = vpop.permute.xlu1 %1913  ;;  %v11075_v40 = vpop.permute.xlu0 %1911  ;;  %9372 = vmatmul.mubr.msk.f32.gmra.mrb[6].mxu0 %vm432_vm0, %v10446_v3  ;;  %v16090_v3 = vld [vmem:[#allocation49_spill] sm:$0xff] }
 0x143   : > { %16048 = vst [vmem:[#allocation132_spill] sm:$0xff] %v11073_v39  ;;  %16049 = vst [vmem:[#allocation133_spill] sm:$0xff] %v11075_v40  ;;  %755 = vmatprep.mubr.f32.mxu0 %v16047_v34 }
 0x144   : > { %2157 = vrot.lane.b32.xlu1 %v10623_v43, %s15896_s15  ;;  %2155 = vrot.lane.b32.xlu0 %v10625_v44, %s15896_s15 }
 0x146   : > { %v11084_v41 = vpop.permute.xlu1 %1917  ;;  %v11086_v42 = vpop.permute.xlu0 %1915  ;;  %9373 = vmatmul.mubr.msk.f32.gmra.mrb[8].mxu0 %vm432_vm0, %v10467_v10  ;;  %v16086_v10 = vld [vmem:[#allocation29_spill] sm:$0xff] }
 0x147   : > { %16050 = vst [vmem:[#allocation134_spill] sm:$0xff] %v11084_v41  ;;  %16051 = vst [vmem:[#allocation135_spill] sm:$0xff] %v11086_v42  ;;  %761 = vmatprep.mubr.f32.mxu0 %v16047_v34  ;;  %v16150_v42 = vld [vmem:[#allocation96_spill] sm:$0xff]  ;;  %v1150_v41 = vld [vmem:[#allocation4 + $0x50] sm:$0xff] }
 0x148   : > { %2161 = vrot.lane.b32.xlu1 %v10631_v45, %s15896_s15  ;;  %2159 = vrot.lane.b32.xlu0 %v10633_v46, %s15896_s15 }
 0x14a   : > { %v11095_v43 = vpop.permute.xlu1 %1921  ;;  %v11097_v44 = vpop.permute.xlu0 %1919  ;;  %9374 = vmatmul.mubr.msk.f32.gmra.mrb[10].mxu0 %vm432_vm0, %v10460_v9  ;;  %v16085_v9 = vld [vmem:[#allocation47_spill] sm:$0xff] }
 0x14b   : > { %16052 = vst [vmem:[#allocation136_spill] sm:$0xff] %v11095_v43  ;;  %16053 = vst [vmem:[#allocation137_spill] sm:$0xff] %v11097_v44  ;;  %767 = vmatprep.mubr.f32.mxu0 %v16047_v34  ;;  %v16146_v43 = vld [vmem:[#allocation92_spill] sm:$0xff] }
 0x14c   : > { %2165 = vrot.lane.b32.xlu1 %v10639_v47, %s15896_s15  ;;  %2163 = vrot.lane.b32.xlu0 %v10641_v48, %s15896_s15 }
 0x14e   : > { %v11106_v45 = vpop.permute.xlu1 %1925  ;;  %v11108_v46 = vpop.permute.xlu0 %1923  ;;  %9375 = vmatmul.mubr.msk.f32.gmra.mrb[12].mxu0 %vm432_vm0, %v10473_v12 }
 0x14f   : > { %16054 = vst [vmem:[#allocation138_spill] sm:$0xff] %v11106_v45  ;;  %16055 = vst [vmem:[#allocation139_spill] sm:$0xff] %v11108_v46  ;;  %773 = vmatprep.mubr.f32.mxu0 %v16047_v34  ;;  %v16130_v46 = vld [vmem:[#allocation41_spill] sm:$0xff] }
 0x150   : > { %2169 = vrot.lane.b32.xlu1 %v10647_v49, %s15896_s15  ;;  %2167 = vrot.lane.b32.xlu0 %v10649_v50, %s15896_s15 }
 0x152   : > { %v11117_v47 = vpop.permute.xlu1 %1929  ;;  %v11119_v48 = vpop.permute.xlu0 %1927  ;;  %9376 = vmatmul.mubr.msk.f32.gmra.mrb[14].mxu0 %vm432_vm0, %v10470_v11 }
 0x153   : > { %16056 = vst [vmem:[#allocation140_spill] sm:$0xff] %v11117_v47  ;;  %16057 = vst [vmem:[#allocation141_spill] sm:$0xff] %v11119_v48  ;;  %779 = vmatprep.mubr.f32.mxu0 %v16047_v34  ;;  %v16122_v47 = vld [vmem:[#allocation39_spill] sm:$0xff] }
 0x154   : > { %2173 = vrot.lane.b32.xlu1 %v10655_v51, %s15896_s15  ;;  %2171 = vrot.lane.b32.xlu0 %v10657_v52, %s15896_s15 }
 0x156   : > { %v11128_v49 = vpop.permute.xlu1 %1933  ;;  %v11130_v50 = vpop.permute.xlu0 %1931  ;;  %9377 = vmatmul.mubr.msk.f32.gmra.mrb[16].mxu0 %vm432_vm0, %v10485_v14 }
 0x157   : > { %16058 = vst [vmem:[#allocation142_spill] sm:$0xff] %v11128_v49  ;;  %16059 = vst [vmem:[#allocation143_spill] sm:$0xff] %v11130_v50  ;;  %785 = vmatprep.mubr.f32.mxu0 %v16047_v34  ;;  %v16111_v49 = vld [vmem:[#allocation36_spill] sm:$0xff]  ;;  %v16120_v50 = vld [vmem:[#allocation37_spill] sm:$0xff] }
 0x158   : > { %2177 = vrot.lane.b32.xlu1 %v10663_v53, %s15896_s15  ;;  %2175 = vrot.lane.b32.xlu0 %v10665_v54, %s15896_s15 }
 0x15a   : > { %v11139_v51 = vpop.permute.xlu1 %1937  ;;  %v11141_v52 = vpop.permute.xlu0 %1935  ;;  %9378 = vmatmul.mubr.msk.f32.gmra.mrb[18].mxu0 %vm432_vm0, %v10482_v13 }
 0x15b   : > { %16060 = vst [vmem:[#allocation144_spill] sm:$0xff] %v11139_v51  ;;  %16061 = vst [vmem:[#allocation145_spill] sm:$0xff] %v11141_v52  ;;  %791 = vmatprep.mubr.f32.mxu0 %v16047_v34  ;;  %v16105_v51 = vld [vmem:[#allocation55_spill] sm:$0xff]  ;;  %v16106_v52 = vld [vmem:[#allocation33_spill] sm:$0xff] }
 0x15c   : > { %2181 = vrot.lane.b32.xlu1 %v10681_v57, %s15896_s15  ;;  %2179 = vrot.lane.b32.xlu0 %v10683_v58, %s15896_s15 }
 0x15e   : > { %v11150_v53 = vpop.permute.xlu1 %1941  ;;  %v11152_v54 = vpop.permute.xlu0 %1939  ;;  %9379 = vmatmul.mubr.msk.f32.gmra.mrb[20].mxu0 %vm432_vm0, %v10497_v16 }
 0x15f   : > { %16062 = vst [vmem:[#allocation146_spill] sm:$0xff] %v11150_v53  ;;  %16063 = vst [vmem:[#allocation147_spill] sm:$0xff] %v11152_v54  ;;  %797 = vmatprep.mubr.f32.mxu0 %v16047_v34  ;;  %v16100_v53 = vld [vmem:[#allocation53_spill] sm:$0xff]  ;;  %v16101_v54 = vld [vmem:[#allocation34_spill] sm:$0xff] }
 0x160   : > { %2185 = vrot.lane.b32.xlu1 %v10699_v61, %s15896_s15  ;;  %2183 = vrot.lane.b32.xlu0 %v10701_v62, %s15896_s15  ;;  %v11172_v61 = vld [vmem:[#allocation2 + $0x2c8] sm:$0xff] }
 0x162   : > { %v11161_v57 = vpop.permute.xlu1 %2009  ;;  %v11163_v58 = vpop.permute.xlu0 %2007  ;;  %9380 = vmatmul.mubr.msk.f32.gmra.mrb[22].mxu0 %vm432_vm0, %v10488_v15 }
 0x163   : > { %803 = vmatprep.mubr.f32.mxu0 %v16047_v34 }
 0x164   : > { %2189 = vrot.lane.b32.xlu1 %v10707_v63, %s15896_s15  ;;  %2187 = vrot.lane.b32.xlu0 %v10709_v4, %s15896_s15  ;;  %v11185_v63 = vld [vmem:[#allocation2 + $0x2f0] sm:$0xff]  ;;  %v11187_v4 = vld [vmem:[#allocation2 + $0x2e8] sm:$0xff] }
 0x166   : > { %v11176_v62 = vpop.permute.xlu1 %2013  ;;  %v11178_v25 = vpop.permute.xlu0 %2011  ;;  %9381 = vmatmul.mubr.msk.f32.gmra.mrb[24].mxu0 %vm432_vm0, %v10503_v18  ;;  %v16081_v18 = vld [vmem:[#allocation30_spill] sm:$0xff] }
 0x167   : > { %809 = vmatprep.mubr.f32.mxu0 %v16047_v34 }
 0x168   : > { %2193 = vrot.lane.b32.xlu1 %v11170_v24, %s15896_s15  ;;  %2191 = vrot.lane.b32.xlu0 %v11172_v61, %s15896_s15 }
 0x16a   : > { %v11191_v16 = vpop.permute.xlu1 %2017  ;;  %v11193_v13 = vpop.permute.xlu0 %2015  ;;  %9382 = vmatmul.mubr.msk.f32.gmra.mrb[26].mxu0 %vm432_vm0, %v10500_v17  ;;  %v16080_v17 = vld [vmem:[#allocation45_spill] sm:$0xff] }
 0x16b   : > { %16064 = vst [vmem:[#allocation148_spill] sm:$0xff] %v11191_v16  ;;  %815 = vmatprep.mubr.f32.mxu0 %v16047_v34 }
 0x16c   : > { %2197 = vrot.lane.b32.xlu1 %v11185_v63, %s15896_s15  ;;  %2195 = vrot.lane.b32.xlu0 %v11187_v4, %s15896_s15  ;;  %s16506_s15 = smov 28  }
 0x16e   : > { %v11202_v14 = vpop.permute.xlu1 %2021  ;;  %v11204_v11 = vpop.permute.xlu0 %2019  ;;  %9383 = vmatmul.mubr.msk.f32.gmra.mrb[28].mxu0 %vm432_vm0, %v10517_v20  ;;  %v16076_v20 = vld [vmem:[#allocation27_spill] sm:$0xff] }
 0x16f   : > { %16065 = vst [vmem:[#allocation149_spill] sm:$0xff] %v11202_v14  ;;  %16066 = vst [vmem:[#allocation150_spill] sm:$0xff] %v11204_v11  ;;  %821 = vmatprep.mubr.f32.mxu0 %v16047_v34 }
 0x170   : > { %2265 = vrot.lane.b32.xlu1 %v10719_v60, %s15893_s26  ;;  %2263 = vrot.lane.b32.xlu0 %v10721_v59, %s15893_s26 }
 0x172   : > { %v11213_v15 = vpop.permute.xlu1 %2025  ;;  %v11215_v12 = vpop.permute.xlu0 %2023  ;;  %9384 = vmatmul.mubr.msk.f32.gmra.mrb[30].mxu0 %vm432_vm0, %v10514_v19  ;;  %v16075_v19 = vld [vmem:[#allocation43_spill] sm:$0xff] }
 0x173   : > { %16067 = vst [vmem:[#allocation151_spill] sm:$0xff] %v11213_v15  ;;  %16068 = vst [vmem:[#allocation152_spill] sm:$0xff] %v11215_v12  ;;  %827 = vmatprep.mubr.f32.mxu0 %v16047_v34 }
 0x174   : > { %2269 = vrot.lane.b32.xlu1 %v10727_v56, %s15893_s26  ;;  %2267 = vrot.lane.b32.xlu0 %v10729_v5, %s15893_s26 }
 0x176   : > { %v11224_v60 = vpop.permute.xlu1 %2029  ;;  %v11226_v59 = vpop.permute.xlu0 %2027  ;;  %9385 = vmatmul.mubr.msk.f32.gmra.mrb[32].mxu0 %vm432_vm0, %v10527_v22  ;;  %v16079_v22 = vld [vmem:[#allocation44_spill] sm:$0xff] }
 0x177   : > { %16069 = vst [vmem:[#allocation153_spill] sm:$0xff] %v11224_v60  ;;  %16070 = vst [vmem:[#allocation154_spill] sm:$0xff] %v11226_v59  ;;  %833 = vmatprep.mubr.f32.mxu0 %v16047_v34  ;;  %v1159_v60 = vld [vmem:[#allocation4 + $0x98] sm:$0xff] }
 0x178   : > { %2273 = vrot.lane.b32.xlu1 %v10735_v0, %s15893_s26  ;;  %2271 = vrot.lane.b32.xlu0 %v10737_v6, %s15893_s26  ;;  %v1163_v59 = vld [vmem:[#allocation4 + $0xb8] sm:$0xff] }
 0x17a   : > { %v11235_v56 = vpop.permute.xlu1 %2033  ;;  %v11237_v5 = vpop.permute.xlu0 %2031  ;;  %9386 = vmatmul.mubr.msk.f32.gmra.mrb[34].mxu0 %vm432_vm0, %v16076_v20  ;;  %v16084_v20 = vld [vmem:[#allocation46_spill] sm:$0xff] }
 0x17b   : > { %16071 = vst [vmem:[#allocation155_spill] sm:$0xff] %v11235_v56  ;;  %16072 = vst [vmem:[#allocation156_spill] sm:$0xff] %v11237_v5  ;;  %839 = vmatprep.mubr.f32.mxu0 %v16047_v34  ;;  %v11561_v56 = vld [vmem:[#allocation2 + $0x188] sm:$0xff] }
 0x17c   : > { %2277 = vrot.lane.b32.xlu1 %v10743_v7, %s15893_s26  ;;  %2275 = vrot.lane.b32.xlu0 %v10745_v55, %s15893_s26  ;;  %v1157_v5 = vld [vmem:[#allocation4 + $0x88] sm:$0xff] }
 0x17e   : > { %v11246_v0 = vpop.permute.xlu1 %2037  ;;  %v11248_v6 = vpop.permute.xlu0 %2035  ;;  %9387 = vmatmul.mubr.msk.f32.gmra.mrb[36].mxu0 %vm432_vm0, %v16081_v18  ;;  %v16089_v18 = vld [vmem:[#allocation48_spill] sm:$0xff] }
 0x17f   : > { %16073 = vst [vmem:[#allocation157_spill] sm:$0xff] %v11246_v0  ;;  %16074 = vst [vmem:[#allocation158_spill] sm:$0xff] %v11248_v6  ;;  %845 = vmatprep.mubr.f32.mxu0 %v16047_v34  ;;  %v16166_v0 = vld [vmem:[#allocation112_spill] sm:$0xff]  ;;  %v1152_v6 = vld [vmem:[#allocation4 + $0x60] sm:$0xff] }
 0x180   : > { %2281 = vrot.lane.b32.xlu1 %v10751_v37, %s15893_s26  ;;  %2279 = vrot.lane.b32.xlu0 %v16075_v19, %s15893_s26 }
 0x182   : > { %v11257_v7 = vpop.permute.xlu1 %2041  ;;  %v11259_v55 = vpop.permute.xlu0 %2039  ;;  %9388 = vmatmul.mubr.msk.f32.gmra.mrb[38].mxu0 %vm432_vm0, %v16086_v10  ;;  %v16094_v10 = vld [vmem:[#allocation50_spill] sm:$0xff] }
 0x183   : > { %16077 = vst [vmem:[#allocation43_spill] sm:$0xff] %v11257_v7  ;;  %16078 = vst [vmem:[#allocation159_spill] sm:$0xff] %v11259_v55  ;;  %851 = vmatprep.mubr.f32.mxu0 %v16047_v34 }
 0x184   : > { %2285 = vrot.lane.b32.xlu1 %v16079_v22, %s15893_s26  ;;  %2283 = vrot.lane.b32.xlu0 %v16080_v17, %s15893_s26 }
 0x186   : > { %v11268_v37 = vpop.permute.xlu1 %2045  ;;  %v11270_v19 = vpop.permute.xlu0 %2043  ;;  %9389 = vmatmul.mubr.msk.f32.gmra.mrb[40].mxu0 %vm432_vm0, %v16091_v8  ;;  %v16099_v8 = vld [vmem:[#allocation52_spill] sm:$0xff] }
 0x187   : > { %16082 = vst [vmem:[#allocation44_spill] sm:$0xff] %v11268_v37  ;;  %16083 = vst [vmem:[#allocation45_spill] sm:$0xff] %v11270_v19  ;;  %857 = vmatprep.mubr.f32.mxu0 %v16047_v34  ;;  %v16139_v37 = vld [vmem:[#allocation85_spill] sm:$0xff] }
 0x188   : > { %2289 = vrot.lane.b32.xlu1 %v16084_v20, %s15893_s26  ;;  %2287 = vrot.lane.b32.xlu0 %v16085_v9, %s15893_s26 }
 0x18a   : > { %v11279_v22 = vpop.permute.xlu1 %2049  ;;  %v11281_v17 = vpop.permute.xlu0 %2047  ;;  %9390 = vmatmul.mubr.msk.f32.gmra.mrb[42].mxu0 %vm432_vm0, %v16096_v1  ;;  %v16104_v1 = vld [vmem:[#allocation54_spill] sm:$0xff] }
 0x18b   : > { %16087 = vst [vmem:[#allocation46_spill] sm:$0xff] %v11279_v22  ;;  %16088 = vst [vmem:[#allocation47_spill] sm:$0xff] %v11281_v17  ;;  %863 = vmatprep.mubr.f32.mxu0 %v16047_v34  ;;  %v16134_v22 = vld [vmem:[#allocation81_spill] sm:$0xff]  ;;  %v16135_v17 = vld [vmem:[#allocation42_spill] sm:$0xff] }
 0x18c   : > { %2293 = vrot.lane.b32.xlu1 %v16089_v18, %s15893_s26  ;;  %2291 = vrot.lane.b32.xlu0 %v16090_v3, %s15893_s26 }
 0x18e   : > { %v11290_v20 = vpop.permute.xlu1 %2053  ;;  %v11292_v9 = vpop.permute.xlu0 %2051  ;;  %9391 = vmatmul.mubr.msk.f32.gmra.mrb[44].mxu0 %vm432_vm0, %v16101_v54  ;;  %v16109_v54 = vld [vmem:[#allocation56_spill] sm:$0xff] }
 0x18f   : > { %16092 = vst [vmem:[#allocation48_spill] sm:$0xff] %v11290_v20  ;;  %16093 = vst [vmem:[#allocation49_spill] sm:$0xff] %v11292_v9  ;;  %869 = vmatprep.mubr.f32.mxu0 %v16047_v34  ;;  %v16129_v9 = vld [vmem:[#allocation77_spill] sm:$0xff] }
 0x190   : > { %2297 = vrot.lane.b32.xlu1 %v16094_v10, %s15893_s26  ;;  %2295 = vrot.lane.b32.xlu0 %v16095_v2, %s15893_s26 }
 0x192   : > { %v11301_v18 = vpop.permute.xlu1 %2057  ;;  %v11303_v3 = vpop.permute.xlu0 %2055  ;;  %9392 = vmatmul.mubr.msk.f32.gmra.mrb[46].mxu0 %vm432_vm0, %v16106_v52  ;;  %v16114_v52 = vld [vmem:[#allocation60_spill] sm:$0xff] }
 0x193   : > { %16097 = vst [vmem:[#allocation50_spill] sm:$0xff] %v11301_v18  ;;  %16098 = vst [vmem:[#allocation51_spill] sm:$0xff] %v11303_v3  ;;  %875 = vmatprep.mubr.f32.mxu0 %v16047_v34 }
 0x194   : > { %2301 = vrot.lane.b32.xlu1 %v16099_v8, %s15893_s26  ;;  %2299 = vrot.lane.b32.xlu0 %v16100_v53, %s15893_s26 }
 0x196   : > { %v11312_v10 = vpop.permute.xlu1 %2061  ;;  %v11314_v2 = vpop.permute.xlu0 %2059  ;;  %9393 = vmatmul.mubr.msk.f32.gmra.mrb[48].mxu0 %vm432_vm0, %v16111_v49  ;;  %v16117_v49 = vld [vmem:[#allocation64_spill] sm:$0xff] }
 0x197   : > { %16102 = vst [vmem:[#allocation52_spill] sm:$0xff] %v11312_v10  ;;  %16103 = vst [vmem:[#allocation53_spill] sm:$0xff] %v11314_v2  ;;  %v16110_v10 = vld [vmem:[#allocation57_spill] sm:$0xff]  ;;  %881 = vmatprep.mubr.f32.mxu0 %v16047_v34 }
 0x198   : > { %2305 = vrot.lane.b32.xlu1 %v16104_v1, %s15893_s26  ;;  %2303 = vrot.lane.b32.xlu0 %v16105_v51, %s15893_s26 }
 0x19a   : > { %v11323_v8 = vpop.permute.xlu1 %2065  ;;  %v11325_v53 = vpop.permute.xlu0 %2063 }
 0x19b   : > { %16107 = vst [vmem:[#allocation54_spill] sm:$0xff] %v11323_v8  ;;  %16108 = vst [vmem:[#allocation55_spill] sm:$0xff] %v11325_v53  ;;  %v16115_v8 = vld [vmem:[#allocation61_spill] sm:$0xff]  ;;  %v16116_v53 = vld [vmem:[#allocation35_spill] sm:$0xff] }
 0x19c   : > { %2309 = vrot.lane.b32.xlu1 %v16109_v54, %s15893_s26  ;;  %2307 = vrot.lane.b32.xlu0 %v16110_v10, %s15893_s26 }
 0x19d   : > { %9394 = vmatmul.mubr.msk.f32.gmra.mrb[50].mxu0 %vm432_vm0, %v16116_v53 }
 0x19e   : > { %v11334_v1 = vpop.permute.xlu1 %2069  ;;  %v11336_v51 = vpop.permute.xlu0 %2067  ;;  %887 = vmatprep.mubr.f32.mxu0 %v16047_v34 }
 0x19f   : > { %16112 = vst [vmem:[#allocation56_spill] sm:$0xff] %v11334_v1  ;;  %16113 = vst [vmem:[#allocation57_spill] sm:$0xff] %v11336_v51  ;;  %v16118_v1 = vld [vmem:[#allocation65_spill] sm:$0xff] }
 0x1a0   : > { %2313 = vrot.lane.b32.xlu1 %v16114_v52, %s15893_s26  ;;  %2311 = vrot.lane.b32.xlu0 %v16115_v8, %s15893_s26  ;;  %v11354_v51 = vld [vmem:[#allocation2 + $0x2d2] sm:$0xff]  ;;  %v11356_v52 = vld [vmem:[#allocation2 + $0x2ca] sm:$0xff] }
 0x1a1   : > { %v16119_v8 = vld [vmem:[#allocation38_spill] sm:$0xff] }
 0x1a2   : > { %v11345_v54 = vpop.permute.xlu1 %2137  ;;  %v11347_v10 = vpop.permute.xlu0 %2135  ;;  %9395 = vmatmul.mubr.msk.f32.gmra.mrb[52].mxu0 %vm432_vm0, %v16119_v8 }
 0x1a3   : > { %893 = vmatprep.mubr.f32.mxu0 %v16047_v34 }
 0x1a4   : > { %2317 = vrot.lane.b32.xlu1 %v16117_v49, %s15893_s26  ;;  %2315 = vrot.lane.b32.xlu0 %v16118_v1, %s15893_s26  ;;  %v11369_v49 = vld [vmem:[#allocation2 + $0x2f2] sm:$0xff]  ;;  %v11371_v1 = vld [vmem:[#allocation2 + $0x2ea] sm:$0xff] }
 0x1a6   : > { %v11360_v53 = vpop.permute.xlu1 %2141  ;;  %v11362_v2 = vpop.permute.xlu0 %2139  ;;  %9396 = vmatmul.mubr.msk.f32.gmra.mrb[54].mxu0 %vm432_vm0, %v16120_v50  ;;  %v16125_v50 = vld [vmem:[#allocation40_spill] sm:$0xff] }
 0x1a7   : > { %899 = vmatprep.mubr.f32.mxu0 %v16047_v34 }
 0x1a8   : > { %2321 = vrot.lane.b32.xlu1 %v11354_v51, %s15893_s26  ;;  %2319 = vrot.lane.b32.xlu0 %v11356_v52, %s15893_s26 }
 0x1aa   : > { %v11375_v8 = vpop.permute.xlu1 %2145  ;;  %v11377_v18 = vpop.permute.xlu0 %2143  ;;  %9397 = vmatmul.mubr.msk.f32.gmra.mrb[56].mxu0 %vm432_vm0, %v16122_v47  ;;  %v16128_v47 = vld [vmem:[#allocation76_spill] sm:$0xff] }
 0x1ab   : > { %16121 = vst [vmem:[#allocation60_spill] sm:$0xff] %v11375_v8  ;;  %905 = vmatprep.mubr.f32.mxu0 %v16047_v34 }
 0x1ac   : > { %2325 = vrot.lane.b32.xlu1 %v11369_v49, %s15893_s26  ;;  %2323 = vrot.lane.b32.xlu0 %v11371_v1, %s15893_s26  ;;  %s16619_s26 = smov 4  }
 0x1ae   : > { %v11386_v3 = vpop.permute.xlu1 %2149  ;;  %v11388_v48 = vpop.permute.xlu0 %2147  ;;  %9398 = vmatmul.mubr.msk.f32.gmra.mrb[58].mxu0 %vm432_vm0, %v16125_v50  ;;  %v16133_v50 = vld [vmem:[#allocation80_spill] sm:$0xff] }
 0x1af   : > { %16123 = vst [vmem:[#allocation61_spill] sm:$0xff] %v11386_v3  ;;  %16124 = vst [vmem:[#allocation64_spill] sm:$0xff] %v11388_v48  ;;  %911 = vmatprep.mubr.f32.mxu0 %v16047_v34  ;;  %v1673_v3 = vld [vmem:[#allocation2 + $0x268] sm:$0xff]  ;;  %v1170_v48 = vld [vmem:[#allocation4 + $0xf0] sm:$0xff] }
 0x1b0   : > { %2393 = vrot.lane.b32.xlu1 %v10859_v36, %s15891_s29  ;;  %2391 = vrot.lane.b32.xlu0 %v10861_v38, %s15891_s29 }
 0x1b2   : > { %v11397_v20 = vpop.permute.xlu1 %2153  ;;  %v11399_v45 = vpop.permute.xlu0 %2151  ;;  %9399 = vmatmul.mubr.msk.f32.gmra.mrb[60].mxu0 %vm432_vm0, %v16130_v46  ;;  %v16138_v46 = vld [vmem:[#allocation84_spill] sm:$0xff] }
 0x1b3   : > { %16126 = vst [vmem:[#allocation65_spill] sm:$0xff] %v11397_v20  ;;  %16127 = vst [vmem:[#allocation160_spill] sm:$0xff] %v11399_v45  ;;  %917 = vmatprep.mubr.f32.mxu0 %v16047_v34 }
 0x1b4   : > { %2397 = vrot.lane.b32.xlu1 %v16128_v47, %s15891_s29  ;;  %2395 = vrot.lane.b32.xlu0 %v16129_v9, %s15891_s29 }
 0x1b6   : > { %v11408_v36 = vpop.permute.xlu1 %2157  ;;  %v11410_v38 = vpop.permute.xlu0 %2155  ;;  %9400 = vmatmul.mubr.msk.f32.gmra.mrb[62].mxu0 %vm432_vm0, %v16135_v17 }
 0x1b7   : > { %16131 = vst [vmem:[#allocation76_spill] sm:$0xff] %v11408_v36  ;;  %16132 = vst [vmem:[#allocation77_spill] sm:$0xff] %v11410_v38 }
 0x1b8   : > { %2401 = vrot.lane.b32.xlu1 %v16133_v50, %s15891_s29  ;;  %2399 = vrot.lane.b32.xlu0 %v16134_v22, %s15891_s29  ;;  %v16142_v50 = vld [vmem:[#allocation88_spill] sm:$0xff]  ;;  %v16143_v22 = vld [vmem:[#allocation89_spill] sm:$0xff] }
 0x1ba   : > { %v11419_v47 = vpop.permute.xlu1 %2161  ;;  %v11421_v9 = vpop.permute.xlu0 %2159 }
 0x1bb   : > { %16136 = vst [vmem:[#allocation80_spill] sm:$0xff] %v11419_v47  ;;  %16137 = vst [vmem:[#allocation81_spill] sm:$0xff] %v11421_v9  ;;  %v11559_v47 = vld [vmem:[#allocation2 + $0x190] sm:$0xff] }
 0x1bc   : > { %2405 = vrot.lane.b32.xlu1 %v16138_v46, %s15891_s29  ;;  %2403 = vrot.lane.b32.xlu0 %v16139_v37, %s15891_s29  ;;  %v16147_v46 = vld [vmem:[#allocation93_spill] sm:$0xff] }
 0x1be   : > { %v11427_v19 = vpop.permute.xlu1 %2165  ;;  %v11429_v44 = vpop.permute.xlu0 %2163 }
 0x1bf   : > { %16140 = vst [vmem:[#allocation84_spill] sm:$0xff] %v11427_v19  ;;  %16141 = vst [vmem:[#allocation85_spill] sm:$0xff] %v11429_v44  ;;  %v1141_v19 = vld [vmem:[#allocation4 + $0x8] sm:$0xff]  ;;  %v1151_v44 = vld [vmem:[#allocation4 + $0x58] sm:$0xff] }
 0x1c0   : > { %2409 = vrot.lane.b32.xlu1 %v16142_v50, %s15891_s29  ;;  %2407 = vrot.lane.b32.xlu0 %v16143_v22, %s15891_s29  ;;  %v16151_v50 = vld [vmem:[#allocation97_spill] sm:$0xff] }
 0x1c2   : > { %v11435_v17 = vpop.permute.xlu1 %2169  ;;  %v11437_v7 = vpop.permute.xlu0 %2167 }
 0x1c3   : > { %16144 = vst [vmem:[#allocation88_spill] sm:$0xff] %v11435_v17  ;;  %16145 = vst [vmem:[#allocation89_spill] sm:$0xff] %v11437_v7  ;;  %v16154_v7 = vld [vmem:[#allocation100_spill] sm:$0xff] }
 0x1c4   : > { %2413 = vrot.lane.b32.xlu1 %v16146_v43, %s15891_s29  ;;  %2411 = vrot.lane.b32.xlu0 %v16147_v46, %s15891_s29  ;;  %v16155_v43 = vld [vmem:[#allocation101_spill] sm:$0xff] }
 0x1c6   : > { %v11443_v37 = vpop.permute.xlu1 %2173  ;;  %v11445_v55 = vpop.permute.xlu0 %2171 }
 0x1c7   : > { %16148 = vst [vmem:[#allocation92_spill] sm:$0xff] %v11443_v37  ;;  %16149 = vst [vmem:[#allocation93_spill] sm:$0xff] %v11445_v55  ;;  %v16158_v55 = vld [vmem:[#allocation104_spill] sm:$0xff] }
 0x1c8   : > { %2417 = vrot.lane.b32.xlu1 %v16150_v42, %s15891_s29  ;;  %2415 = vrot.lane.b32.xlu0 %v16151_v50, %s15891_s29  ;;  %v16159_v42 = vld [vmem:[#allocation105_spill] sm:$0xff] }
 0x1ca   : > { %v11451_v22 = vpop.permute.xlu1 %2177  ;;  %v11453_v17 = vpop.permute.xlu0 %2175 }
 0x1cb   : > { %16152 = vst [vmem:[#allocation96_spill] sm:$0xff] %v11451_v22  ;;  %16153 = vst [vmem:[#allocation97_spill] sm:$0xff] %v11453_v17  ;;  %v16162_v17 = vld [vmem:[#allocation108_spill] sm:$0xff] }
 0x1cc   : > { %2421 = vrot.lane.b32.xlu1 %v16154_v7, %s15891_s29  ;;  %2419 = vrot.lane.b32.xlu0 %v16155_v43, %s15891_s29  ;;  %v16163_v7 = vld [vmem:[#allocation109_spill] sm:$0xff] }
 0x1ce   : > { %v11459_v46 = vpop.permute.xlu1 %2181  ;;  %v11461_v37 = vpop.permute.xlu0 %2179 }
 0x1cf   : > { %16156 = vst [vmem:[#allocation100_spill] sm:$0xff] %v11459_v46  ;;  %16157 = vst [vmem:[#allocation101_spill] sm:$0xff] %v11461_v37  ;;  %v1140_v37 = vld [vmem:[#allocation4] sm:$0xff] }
 0x1d0   : > { %2425 = vrot.lane.b32.xlu1 %v16158_v55, %s15891_s29  ;;  %2423 = vrot.lane.b32.xlu0 %v16159_v42, %s15891_s29  ;;  %v9559_v55 = vpack.c.bf16 %v1141_v19, %v1140_v37  ;;  %v16167_v42 = vld [vmem:[#allocation113_spill] sm:$0xff] }
 0x1d1   : > { %v16171_v37 = vld [vmem:[#allocation117_spill] sm:$0xff] }
 0x1d2   : > { %v11467_v50 = vpop.permute.xlu1 %2185  ;;  %v11469_v22 = vpop.permute.xlu0 %2183 }
 0x1d3   : > { %16160 = vst [vmem:[#allocation104_spill] sm:$0xff] %v11467_v50  ;;  %16161 = vst [vmem:[#allocation105_spill] sm:$0xff] %v11469_v22  ;;  %v15885_v50 = vmov 0.0|0.0   ;;  %v1145_v22 = vld [vmem:[#allocation4 + $0x28] sm:$0xff] }
 0x1d4   : > { %2429 = vrot.lane.b32.xlu1 %v16162_v17, %s15891_s29  ;;  %2427 = vrot.lane.b32.xlu0 %v16163_v7, %s15891_s29 }
 0x1d5   : > { %9558 = vmatprep.subr.bf16.mxu0 %v15885_v50  ;;  %9806 = vmatprep.subr.bf16.mxu1 %v15885_v50 }
 0x1d6   : > { %v11475_v43 = vpop.permute.xlu1 %2189  ;;  %v11477_v46 = vpop.permute.xlu0 %2187  ;;  %9560 = vmatpush1.bf16.msra.mxu0 %v9559_v55  ;;  %9822 = vmatpush1.bf16.msra.mxu1 %v9559_v55 }
 0x1d7   : > { %16164 = vst [vmem:[#allocation108_spill] sm:$0xff] %v11475_v43  ;;  %16165 = vst [vmem:[#allocation109_spill] sm:$0xff] %v11477_v46  ;;  %v1142_v43 = vld [vmem:[#allocation4 + $0x10] sm:$0xff]  ;;  %v1143_v46 = vld [vmem:[#allocation4 + $0x18] sm:$0xff]  ;;  %9561 = vmatprep.subr.bf16.mxu0 %v15885_v50  ;;  %9807 = vmatprep.subr.bf16.mxu1 %v15885_v50 }
 0x1d8   : > { %2433 = vrot.lane.b32.xlu1 %v16166_v0, %s15891_s29  ;;  %2431 = vrot.lane.b32.xlu0 %v16167_v42, %s15891_s29  ;;  %v9562_v19 = vpack.c.bf16 %v1143_v46, %v1142_v43  ;;  %v16170_v0 = vld [vmem:[#allocation116_spill] sm:$0xff] }
 0x1da   : > { %v11485_v17 = vpop.permute.xlu1 %2193  ;;  %v11487_v7 = vpop.permute.xlu0 %2191  ;;  %9563 = vmatpush1.bf16.msra.mxu0 %v9562_v19  ;;  %9823 = vmatpush1.bf16.msra.mxu1 %v9562_v19 }
 0x1db   : > { %16168 = vst [vmem:[#allocation112_spill] sm:$0xff] %v11485_v17  ;;  %16169 = vst [vmem:[#allocation113_spill] sm:$0xff] %v11487_v7  ;;  %v1144_v7 = vld [vmem:[#allocation4 + $0x20] sm:$0xff]  ;;  %9564 = vmatprep.subr.bf16.mxu0 %v15885_v50  ;;  %9808 = vmatprep.subr.bf16.mxu1 %v15885_v50 }
 0x1dc   : > { %2437 = vrot.lane.b32.xlu1 %v16170_v0, %s15891_s29  ;;  %2435 = vrot.lane.b32.xlu0 %v16171_v37, %s15891_s29  ;;  %v9565_v55 = vpack.c.bf16 %v1145_v22, %v1144_v7  ;;  %v1146_v0 = vld [vmem:[#allocation4 + $0x30] sm:$0xff]  ;;  %v1147_v37 = vld [vmem:[#allocation4 + $0x38] sm:$0xff] }
 0x1dd   : > { %v9568_v19 = vpack.c.bf16 %v1147_v37, %v1146_v0 }
 0x1de   : > { %v11495_v42 = vpop.permute.xlu1 %2197  ;;  %v11497_v17 = vpop.permute.xlu0 %2195  ;;  %9566 = vmatpush1.bf16.msra.mxu0 %v9565_v55  ;;  %9824 = vmatpush1.bf16.msra.mxu1 %v9565_v55  ;;  %v1149_v55 = vld [vmem:[#allocation4 + $0x48] sm:$0xff] }
 0x1df   : > { %16172 = vst [vmem:[#allocation116_spill] sm:$0xff] %v11495_v42  ;;  %16173 = vst [vmem:[#allocation117_spill] sm:$0xff] %v11497_v17  ;;  %9567 = vmatprep.subr.bf16.mxu0 %v15885_v50  ;;  %9809 = vmatprep.subr.bf16.mxu1 %v15885_v50  ;;  %v1148_v42 = vld [vmem:[#allocation4 + $0x40] sm:$0xff] }
 0x1e0   : > { %2441 = vrot.lane.b32.xlu1 %v10999_v35, %s15891_s29  ;;  %2439 = vrot.lane.b32.xlu0 %v11001_v27, %s15891_s29  ;;  %v1652_v27 = vld [vmem:[#allocation2 + $0x30e] sm:$0xff]  ;;  %v1651_v35 = vld [vmem:[#allocation2 + $0x306] sm:$0xff]  ;;  %v9571_v0 = vpack.c.bf16 %v1149_v55, %v1148_v42 }
 0x1e1   : > { %v11531_v42 = vld [vmem:[#allocation2 + $0x150] sm:$0xff] }
 0x1e2   : > { %v11505_v46 = vpop.permute.xlu1 %2265  ;;  %v11507_v43 = vpop.permute.xlu0 %2263  ;;  %9569 = vmatpush1.bf16.msra.mxu0 %v9568_v19  ;;  %9825 = vmatpush1.bf16.msra.mxu1 %v9568_v19  ;;  %v9574_v19 = vpack.c.bf16 %v1151_v44, %v1150_v41  ;;  %v11545_v44 = vld [vmem:[#allocation2 + $0x170] sm:$0xff] }
 0x1e3   : > { %9570 = vmatprep.subr.bf16.mxu0 %v15885_v50  ;;  %9810 = vmatprep.subr.bf16.mxu1 %v15885_v50 }
 0x1e4   : > { %2445 = vrot.lane.b32.xlu1 %v11011_v29, %s15891_s29  ;;  %2443 = vrot.lane.b32.xlu0 %v11013_v28, %s15891_s29  ;;  %v1654_v28 = vld [vmem:[#allocation2 + $0x32e] sm:$0xff]  ;;  %v1653_v29 = vld [vmem:[#allocation2 + $0x326] sm:$0xff] }
 0x1e6   : > { %v11515_v22 = vpop.permute.xlu1 %2269  ;;  %v11517_v7 = vpop.permute.xlu0 %2267  ;;  %9572 = vmatpush1.bf16.msra.mxu0 %v9571_v0  ;;  %9826 = vmatpush1.bf16.msra.mxu1 %v9571_v0  ;;  %v1153_v0 = vld [vmem:[#allocation4 + $0x68] sm:$0xff] }
 0x1e7   : > { %9573 = vmatprep.subr.bf16.mxu0 %v15885_v50  ;;  %9811 = vmatprep.subr.bf16.mxu1 %v15885_v50  ;;  %v9577_v41 = vpack.c.bf16 %v1153_v0, %v1152_v6  ;;  %v1155_v6 = vld [vmem:[#allocation4 + $0x78] sm:$0xff] }
 0x1e8   : > { %2449 = vrot.lane.b32.xlu1 %v1652_v27, %s15891_s29  ;;  %2447 = vrot.lane.b32.xlu0 %v1651_v35, %s15891_s29  ;;  %v11533_v27 = vld [vmem:[#allocation2 + $0x148] sm:$0xff] }
 0x1ea   : > { %v11523_v37 = vpop.permute.xlu1 %2273  ;;  %v11525_v17 = vpop.permute.xlu0 %2271  ;;  %9575 = vmatpush1.bf16.msra.mxu0 %v9574_v19  ;;  %9827 = vmatpush1.bf16.msra.mxu1 %v9574_v19  ;;  %v1154_v19 = vld [vmem:[#allocation4 + $0x70] sm:$0xff] }
 0x1eb   : > { %16174 = vst [vmem:[#allocation161_spill] sm:$0xff] %v11523_v37  ;;  %16175 = vst [vmem:[#allocation162_spill] sm:$0xff] %v11525_v17  ;;  %9576 = vmatprep.subr.bf16.mxu0 %v15885_v50  ;;  %9812 = vmatprep.subr.bf16.mxu1 %v15885_v50  ;;  %v9580_v0 = vpack.c.bf16 %v1155_v6, %v1154_v19  ;;  %v11573_v6 = vld [vmem:[#allocation2 + $0x1b0] sm:$0xff] }
 0x1ec   : > { %2453 = vrot.lane.b32.xlu1 %v1654_v28, %s15891_s29  ;;  %2451 = vrot.lane.b32.xlu0 %v1653_v29, %s15891_s29  ;;  %v11547_v28 = vld [vmem:[#allocation2 + $0x168] sm:$0xff]  ;;  %s16501_s29 = smov 24  }
 0x1ee   : > { %v11535_v35 = vpop.permute.xlu1 %2277  ;;  %v11537_v55 = vpop.permute.xlu0 %2275  ;;  %9578 = vmatpush1.bf16.msra.mxu0 %v9577_v41  ;;  %9828 = vmatpush1.bf16.msra.mxu1 %v9577_v41  ;;  %v1156_v41 = vld [vmem:[#allocation4 + $0x80] sm:$0xff] }
 0x1ef   : > { %16176 = vst [vmem:[#allocation163_spill] sm:$0xff] %v11535_v35  ;;  %16177 = vst [vmem:[#allocation164_spill] sm:$0xff] %v11537_v55  ;;  %9579 = vmatprep.subr.bf16.mxu0 %v15885_v50  ;;  %9813 = vmatprep.subr.bf16.mxu1 %v15885_v50  ;;  %v9583_v19 = vpack.c.bf16 %v1157_v5, %v1156_v41  ;;  %v11587_v41 = vld [vmem:[#allocation2 + $0x1d0] sm:$0xff] }
 0x1f0   : > { %2521 = vrot.lane.b32.xlu1 %v11531_v42, %s15904_s12  ;;  %2519 = vrot.lane.b32.xlu0 %v11533_v27, %s15904_s12 }
 0x1f2   : > { %v11549_v29 = vpop.permute.xlu1 %2281  ;;  %v11551_v40 = vpop.permute.xlu0 %2279  ;;  %9581 = vmatpush1.bf16.msra.mxu0 %v9580_v0  ;;  %9829 = vmatpush1.bf16.msra.mxu1 %v9580_v0  ;;  %v1158_v0 = vld [vmem:[#allocation4 + $0x90] sm:$0xff] }
 0x1f3   : > { %16178 = vst [vmem:[#allocation165_spill] sm:$0xff] %v11549_v29  ;;  %16179 = vst [vmem:[#allocation166_spill] sm:$0xff] %v11551_v40  ;;  %9582 = vmatprep.subr.bf16.mxu0 %v15885_v50  ;;  %9814 = vmatprep.subr.bf16.mxu1 %v15885_v50  ;;  %v9586_v5 = vpack.c.bf16 %v1159_v60, %v1158_v0  ;;  %v11601_v0 = vld [vmem:[#allocation2 + $0x1f0] sm:$0xff] }
 0x1f4   : > { %2525 = vrot.lane.b32.xlu1 %v11545_v44, %s15904_s12  ;;  %2523 = vrot.lane.b32.xlu0 %v11547_v28, %s15904_s12 }
 0x1f6   : > { %v11563_v39 = vpop.permute.xlu1 %2285  ;;  %v11565_v9 = vpop.permute.xlu0 %2283  ;;  %9584 = vmatpush1.bf16.msra.mxu0 %v9583_v19  ;;  %9830 = vmatpush1.bf16.msra.mxu1 %v9583_v19  ;;  %v1160_v19 = vld [vmem:[#allocation4 + $0xa0] sm:$0xff] }
 0x1f7   : > { %16180 = vst [vmem:[#allocation167_spill] sm:$0xff] %v11563_v39  ;;  %16181 = vst [vmem:[#allocation168_spill] sm:$0xff] %v11565_v9  ;;  %v11575_v39 = vld [vmem:[#allocation2 + $0x1a8] sm:$0xff]  ;;  %9585 = vmatprep.subr.bf16.mxu0 %v15885_v50  ;;  %9815 = vmatprep.subr.bf16.mxu1 %v15885_v50  ;;  %v9589_v60 = vpack.c.bf16 %v1161_v31, %v1160_v19  ;;  %v11615_v19 = vld [vmem:[#allocation2 + $0x210] sm:$0xff] }
 0x1f8   : > { %2529 = vrot.lane.b32.xlu1 %v11559_v47, %s15904_s12  ;;  %2527 = vrot.lane.b32.xlu0 %v11561_v56, %s15904_s12 }
 0x1fa   : > { %v11577_v33 = vpop.permute.xlu1 %2289  ;;  %v11579_v36 = vpop.permute.xlu0 %2287  ;;  %9587 = vmatpush1.bf16.msra.mxu0 %v9586_v5  ;;  %9831 = vmatpush1.bf16.msra.mxu1 %v9586_v5  ;;  %v1162_v5 = vld [vmem:[#allocation4 + $0xb0] sm:$0xff] }
 0x1fb   : > { %16182 = vst [vmem:[#allocation169_spill] sm:$0xff] %v11577_v33  ;;  %16183 = vst [vmem:[#allocation170_spill] sm:$0xff] %v11579_v36  ;;  %v11589_v33 = vld [vmem:[#allocation2 + $0x1c8] sm:$0xff]  ;;  %9588 = vmatprep.subr.bf16.mxu0 %v15885_v50  ;;  %9816 = vmatprep.subr.bf16.mxu1 %v15885_v50  ;;  %v9592_v31 = vpack.c.bf16 %v1163_v59, %v1162_v5  ;;  %v11629_v5 = vld [vmem:[#allocation2 + $0x230] sm:$0xff] }
 0x1fc   : > { %2533 = vrot.lane.b32.xlu1 %v11573_v6, %s15904_s12  ;;  %2531 = vrot.lane.b32.xlu0 %v11575_v39, %s15904_s12 }
 0x1fe   : > { %v11591_v36 = vpop.permute.xlu1 %2293  ;;  %v11593_v9 = vpop.permute.xlu0 %2291  ;;  %9590 = vmatpush1.bf16.msra.mxu0 %v9589_v60  ;;  %9832 = vmatpush1.bf16.msra.mxu1 %v9589_v60  ;;  %v1164_v60 = vld [vmem:[#allocation4 + $0xc0] sm:$0xff] }
 0x1ff   : > { %16184 = vst [vmem:[#allocation171_spill] sm:$0xff] %v11591_v36  ;;  %16185 = vst [vmem:[#allocation172_spill] sm:$0xff] %v11593_v9  ;;  %v11603_v36 = vld [vmem:[#allocation2 + $0x1e8] sm:$0xff]  ;;  %9591 = vmatprep.subr.bf16.mxu0 %v15885_v50  ;;  %9817 = vmatprep.subr.bf16.mxu1 %v15885_v50  ;;  %v9595_v59 = vpack.c.bf16 %v1165_v32, %v1164_v60  ;;  %v1167_v32 = vld [vmem:[#allocation4 + $0xd8] sm:$0xff] }
 0x200   : > { %2537 = vrot.lane.b32.xlu1 %v11587_v41, %s15904_s12  ;;  %2535 = vrot.lane.b32.xlu0 %v11589_v33, %s15904_s12 }
 0x202   : > { %v11605_v9 = vpop.permute.xlu1 %2297  ;;  %v11607_v38 = vpop.permute.xlu0 %2295  ;;  %9593 = vmatpush1.bf16.msra.mxu0 %v9592_v31  ;;  %9833 = vmatpush1.bf16.msra.mxu1 %v9592_v31  ;;  %v1166_v31 = vld [vmem:[#allocation4 + $0xd0] sm:$0xff] }
 0x203   : > { %16186 = vst [vmem:[#allocation173_spill] sm:$0xff] %v11605_v9  ;;  %16187 = vst [vmem:[#allocation174_spill] sm:$0xff] %v11607_v38  ;;  %v11617_v9 = vld [vmem:[#allocation2 + $0x208] sm:$0xff]  ;;  %9594 = vmatprep.subr.bf16.mxu0 %v15885_v50  ;;  %9818 = vmatprep.subr.bf16.mxu1 %v15885_v50  ;;  %v9598_v60 = vpack.c.bf16 %v1167_v32, %v1166_v31  ;;  %v1168_v32 = vld [vmem:[#allocation4 + $0xe0] sm:$0xff] }
 0x204   : > { %2541 = vrot.lane.b32.xlu1 %v11601_v0, %s15904_s12  ;;  %2539 = vrot.lane.b32.xlu0 %v11603_v36, %s15904_s12 }
 0x206   : > { %v11619_v38 = vpop.permute.xlu1 %2301  ;;  %v11621_v29 = vpop.permute.xlu0 %2299  ;;  %9596 = vmatpush1.bf16.msra.mxu0 %v9595_v59  ;;  %9834 = vmatpush1.bf16.msra.mxu1 %v9595_v59 }
 0x207   : > { %16188 = vst [vmem:[#allocation175_spill] sm:$0xff] %v11619_v38  ;;  %16189 = vst [vmem:[#allocation176_spill] sm:$0xff] %v11621_v29  ;;  %v11631_v38 = vld [vmem:[#allocation2 + $0x228] sm:$0xff]  ;;  %v926_v29 = vlaneseq  ;;  %9597 = vmatprep.subr.bf16.mxu0 %v15885_v50  ;;  %9819 = vmatprep.subr.bf16.mxu1 %v15885_v50 }
 0x208   : > { %2545 = vrot.lane.b32.xlu1 %v11615_v19, %s15904_s12  ;;  %2543 = vrot.lane.b32.xlu0 %v11617_v9, %s15904_s12  ;;  %v1169_v50 = vld [vmem:[#allocation4 + $0xe8] sm:$0xff] }
 0x209   : > { %v927_v40 = vshrl.u32 %v926_v29, 7  ;;  %v924_v29 = vld [vmem:[%s15787_s7] sm:$0x3] }
 0x20a   : > { %v11633_v20 = vpop.permute.xlu1 %2305  ;;  %v11635_v15 = vpop.permute.xlu0 %2303  ;;  %9599 = vmatpush1.bf16.msra.mxu0 %v9598_v60  ;;  %9835 = vmatpush1.bf16.msra.mxu1 %v9598_v60 }
 0x20b   : > { %16190 = vst [vmem:[#allocation177_spill] sm:$0xff] %v11633_v20  ;;  %16191 = vst [vmem:[#allocation178_spill] sm:$0xff] %v11635_v15  ;;  %v11645_v20 = vld [vmem:[#allocation2 + $0x248] sm:$0xff]  ;;  %v11647_v15 = vsub.s32 1, %v927_v40  ;;  %v11656_v31 = vsub.s32 0, %v927_v40  ;;  %v733_v40 = vpop.f32.mrb[0].mxu0 }
 0x20c   : > { %2549 = vrot.lane.b32.xlu1 %v11629_v5, %s15904_s12  ;;  %2547 = vrot.lane.b32.xlu0 %v11631_v38, %s15904_s12  ;;  %v735_v14 = vpop.f32.mrb[1].mxu0 }
 0x20d   : > { %16192 = vst [vmem:[#allocation179_spill] sm:$0xff] %v11647_v15  ;;  %16195 = vst [vmem:[#allocation182_spill] sm:$0xff] %v11656_v31  ;;  %v11662_v12 = vrot.slane %v924_v29, %v11647_v15  ;;  %v11670_v35 = vrot.slane %v924_v29, %v11656_v31  ;;  %v11673_v60 = vrot.slane %v1000_v26, %v11656_v31  ;;  %v1171_v31 = vld [vmem:[#allocation4 + $0xf8] sm:$0xff] }
 0x20e   : > { %v11649_v45 = vpop.permute.xlu1 %2309  ;;  %v11651_v59 = vpop.permute.xlu0 %2307  ;;  %v11676_v21 = vrot.slane %v1000_v26, %v11647_v15  ;;  %v9604_v11 = vpack.c.bf16 %v1171_v31, %v1170_v48 }
 0x20f   : > { %16193 = vst [vmem:[#allocation180_spill] sm:$0xff] %v11649_v45  ;;  %16194 = vst [vmem:[#allocation181_spill] sm:$0xff] %v11651_v59  ;;  %v16196_v45 = vmov 0.0|0.0   ;;  %v9601_v59 = vpack.c.bf16 %v1169_v50, %v1168_v32  ;;  %v936_v55 = vmul.f32 %v11670_v35, %v733_v40  ;;  %v937_v29 = vmul.f32 %v11662_v12, %v735_v14  ;;  %v739_v15 = vpop.f32.mrb[2].mxu0  ;;  %v1675_v14 = vld [vmem:[#allocation2 + $0x288] sm:$0xff] }
 0x210   : > { %9600 = vmatprep.subr.bf16.mxu0 %v16196_v45  ;;  %2553 = vrot.lane.b32.xlu1 %v11643_v30, %s15904_s12  ;;  %v741_v37 = vpop.f32.mrb[3].mxu0 }
 0x211   : > { %2551 = vrot.lane.b32.xlu0 %v11645_v20, %s15904_s12  ;;  %9820 = vmatprep.subr.bf16.mxu1 %v16196_v45  ;;  %v1012_v26 = vadd.f32 %v11673_v60, %v936_v55  ;;  %v1013_v40 = vadd.f32 %v11676_v21, %v937_v29  ;;  %v939_v31 = vmul.f32 %v11662_v12, %v741_v37  ;;  %v3009_v55 = vld [vmem:[%s16201_s2 + $0x18] sm:$0xff] }
 0x212   : > { %v11679_v50 = vpop.permute.xlu1 %2313  ;;  %v11681_v32 = vpop.permute.xlu0 %2311  ;;  %9602 = vmatpush1.bf16.msra.mxu0 %v9601_v59  ;;  %9836 = vmatpush1.bf16.msra.mxu1 %v9601_v59 }
 0x213   : > { %16197 = vst [vmem:[#allocation183_spill] sm:$0xff] %v11679_v50  ;;  %16198 = vst [vmem:[#allocation184_spill] sm:$0xff] %v11681_v32  ;;  %9603 = vmatprep.subr.bf16.mxu0 %v16196_v45  ;;  %9821 = vmatprep.subr.bf16.mxu1 %v16196_v45  ;;  %v1676_v50 = vld [vmem:[#allocation2 + $0x290] sm:$0xff]  ;;  %v938_v32 = vmul.f32 %v11670_v35, %v739_v15  ;;  %v1076_v48 = vmax.f32 %v1012_v26, 0.0  ;;  %v745_v15 = vpop.f32.mrb[4].mxu0  ;;  %v1015_v37 = vadd.f32 %v11676_v21, %v939_v31 }
 0x214   : > { %2557 = vrot.lane.b32.xlu1 %v1674_v23, %s15904_s12  ;;  %v1077_v23 = vmax.f32 %v1013_v40, 0.0  ;;  %v3008_v26 = vld [vmem:[%s16201_s2 + $0x10] sm:$0xff] }
 0x215   : > { %2555 = vrot.lane.b32.xlu0 %v1673_v3, %s15904_s12  ;;  %v3007_v3 = vld [vmem:[%s16201_s2 + $0x8] sm:$0xff]  ;;  %v1014_v40 = vadd.f32 %v11673_v60, %v938_v32  ;;  %v1079_v16 = vmax.f32 %v1015_v37, 0.0 }
 0x216   : > { %v11692_v59 = vpop.permute.xlu1 %2317  ;;  %v11694_v8 = vpop.permute.xlu0 %2315  ;;  %9605 = vmatpush1.bf16.msra.mxu0 %v9604_v11  ;;  %9837 = vmatpush1.bf16.msra.mxu1 %v9604_v11  ;;  %v9606_v29 = vpack.c.bf16 %v3009_v55, %v3007_v3  ;;  %v3006_v11 = vld [vmem:[%s16201_s2] sm:$0xff]  ;;  %v3011_v32 = vld [vmem:[%s16201_s2 + $0x28] sm:$0xff] }
 0x217   : > { %16199 = vst [vmem:[#allocation185_spill] sm:$0xff] %v11692_v59  ;;  %16200 = vst [vmem:[#allocation186_spill] sm:$0xff] %v11694_v8  ;;  %9614 = vmatprep.subr.bf16.mxu1 %v16196_v45  ;;  %v1678_v59 = vld [vmem:[#allocation2 + $0x2b0] sm:$0xff]  ;;  %v1677_v8 = vld [vmem:[#allocation2 + $0x2a8] sm:$0xff]  ;;  %1236 = vmatprep.mubr.f32.mxu0 %v1077_v23  ;;  %v9608_v45 = vpack.c.bf16 %v3008_v26, %v3006_v11  ;;  %v1078_v17 = vmax.f32 %v1014_v40, 0.0 }
 0x218   : > { %2561 = vrot.lane.b32.xlu1 %v1676_v50, %s15904_s12  ;;  %v940_v50 = vmul.f32 %v11670_v35, %v745_v15  ;;  %9607 = vmatprep.subr.bf16.mxu0 %v9606_v29  ;;  %v3013_v23 = vld [vmem:[%s16201_s2 + $0x38] sm:$0xff] }
 0x219   : > { %2559 = vrot.lane.b32.xlu0 %v1675_v14, %s15904_s12  ;;  %v747_v14 = vpop.f32.mrb[5].mxu0  ;;  %1237 = vmatmul.mubr.f32.vlgmr.msra.gmra.mrb[64].mxu0 %v1076_v48  ;;  %v9610_v15 = vpack.c.bf16 %v3013_v23, %v3011_v32  ;;  %v3010_v48 = vld [vmem:[%s16201_s2 + $0x20] sm:$0xff]  ;;  %v1686_v23 = vld [vmem:[#allocation2 + $0x330] sm:$0xff] }
 0x21a   : > { %v11715_v3 = vpop.permute.xlu1 %2321  ;;  %v11717_v31 = vpop.permute.xlu0 %2319  ;;  %v941_v55 = vmul.f32 %v11662_v12, %v747_v14  ;;  %9609 = vmatpush1.bf16.msra.mxu0 %v9608_v45  ;;  %v3012_v45 = vld [vmem:[%s16201_s2 + $0x30] sm:$0xff]  ;;  %v1016_v29 = vadd.f32 %v11673_v60, %v940_v50  ;;  %1241 = vmatprep.mubr.f32.mxu0 %v1079_v16  ;;  %v3015_v16 = vld [vmem:[%s16201_s2 + $0x48] sm:$0xf]  ;;  %v3014_v14 = vld [vmem:[%s16201_s2 + $0x40] sm:$0xf]  ;;  %s392_s2 = sand.u32 1, %s10069_s18  }
 0x21b   : > { %16202 = vst [vmem:[#allocation187_spill] sm:$0xff] %v11715_v3  ;;  %16203 = vst [vmem:[#allocation188_spill] sm:$0xff] %v11717_v31  ;;  %v9612_v37 = vpack.c.bf16 %v3012_v45, %v3010_v48  ;;  %9611 = vmatprep.subr.bf16.mxu0 %v9610_v15  ;;  %v1685_v15 = vld [vmem:[#allocation2 + $0x328] sm:$0xff] }
 0x21c   : > { %2565 = vrot.lane.b32.xlu1 %v1678_v59, %s15904_s12  ;;  %v1017_v11 = vadd.f32 %v11676_v21, %v941_v55  ;;  %v1080_v40 = vmax.f32 %v1016_v29, 0.0 }
 0x21d   : > { %2563 = vrot.lane.b32.xlu0 %v1677_v8, %s15904_s12  ;;  %1242 = vmatmul.mubr.f32.gmra.mrb[66].mxu0 %v1078_v17 }
 0x21e   : > { %v11736_v26 = vpop.permute.xlu1 %2325  ;;  %v11738_v59 = vpop.permute.xlu0 %2323  ;;  %v1081_v8 = vmax.f32 %v1017_v11, 0.0  ;;  %9613 = vmatpush1.bf16.msra.mxu0 %v9612_v37  ;;  %v1690_v37 = vld [vmem:[#allocation2 + $0x172] sm:$0xff] }
 0x21f   : > { %16204 = vst [vmem:[#allocation189_spill] sm:$0xff] %v11736_v26  ;;  %16205 = vst [vmem:[#allocation190_spill] sm:$0xff] %v11738_v59  ;;  %9401 = vmatprep.subr.msk.mxu0 %vm662_vm1, %v3015_v16 }
 0x220   : > { %2569 = vrot.lane.b32.xlu1 %v11170_v24, %s15904_s12  ;;  %1246 = vmatprep.mubr.f32.mxu0 %v1081_v8  ;;  %v1684_v24 = vld [vmem:[#allocation2 + $0x310] sm:$0xff] }
 0x221   : > { %2567 = vrot.lane.b32.xlu0 %v11172_v61, %s15904_s12  ;;  %1247 = vmatmul.mubr.f32.gmra.mrb[68].mxu0 %v1080_v40  ;;  %v1683_v61 = vld [vmem:[#allocation2 + $0x308] sm:$0xff] }
 0x222   : > { %v11748_v50 = vpop.permute.xlu1 %2393  ;;  %v11750_v17 = vpop.permute.xlu0 %2391  ;;  %9402 = vmatpush1.msk.msra.mxu0 %vm662_vm1, %v3014_v14  ;;  %3183 = vmatprep.mubr.f32.mxu0 %v16047_v34  ;;  %v1689_v8 = vld [vmem:[#allocation2 + $0x16a] sm:$0xff]  ;;  %v1692_v14 = vld [vmem:[#allocation2 + $0x192] sm:$0xff] }
 0x224   : > { %2573 = vrot.lane.b32.xlu1 %v11185_v63, %s15904_s12  ;;  %v1688_v63 = vld [vmem:[#allocation2 + $0x152] sm:$0xff] }
 0x225   : > { %2571 = vrot.lane.b32.xlu0 %v11187_v4, %s15904_s12  ;;  %v1687_v4 = vld [vmem:[#allocation2 + $0x14a] sm:$0xff] }
 0x226   : > { %v11761_v55 = vpop.permute.xlu1 %2397  ;;  %v11763_v32 = vpop.permute.xlu0 %2395 }
 0x228   : > { %2577 = vrot.lane.b32.xlu1 %v1684_v24, %s15904_s12  ;;  %v1691_v24 = vld [vmem:[#allocation2 + $0x18a] sm:$0xff] }
 0x229   : > { %2575 = vrot.lane.b32.xlu0 %v1683_v61, %s15904_s12 }
 0x22a   : > { %v11767_v11 = vpop.permute.xlu1 %2401  ;;  %v11769_v48 = vpop.permute.xlu0 %2399 }
 0x22c   : > { %2581 = vrot.lane.b32.xlu1 %v1686_v23, %s15904_s12 }
 0x22d   : > { %2579 = vrot.lane.b32.xlu0 %v1685_v15, %s15904_s12  ;;  %v1694_v15 = vld [vmem:[#allocation2 + $0x1b2] sm:$0xff]  ;;  %s9522_s12 = sshll.u32 %s10175_s21, 12 }
 0x22e   : > { %v11773_v45 = vpop.permute.xlu1 %2405  ;;  %v11775_v29 = vpop.permute.xlu0 %2403 }
 0x22f   : > { %16206 = vst [vmem:[#allocation191_spill] sm:$0xff] %v11773_v45 }
 0x230   : > { %2649 = vrot.lane.b32.xlu1 %v1688_v63, %s15908_s22  ;;  %v1693_v63 = vld [vmem:[#allocation2 + $0x1aa] sm:$0xff] }
 0x231   : > { %2647 = vrot.lane.b32.xlu0 %v1687_v4, %s15908_s22 }
 0x232   : > { %v11779_v40 = vpop.permute.xlu1 %2409  ;;  %v11781_v16 = vpop.permute.xlu0 %2407 }
 0x233   : > { %16207 = vst [vmem:[#allocation192_spill] sm:$0xff] %v11779_v40  ;;  %16208 = vst [vmem:[#allocation193_spill] sm:$0xff] %v11781_v16 }
 0x234   : > { %2653 = vrot.lane.b32.xlu1 %v1690_v37, %s15908_s22  ;;  %v1696_v37 = vld [vmem:[#allocation2 + $0x1d2] sm:$0xff] }
 0x235   : > { %2651 = vrot.lane.b32.xlu0 %v1689_v8, %s15908_s22  ;;  %v1695_v8 = vld [vmem:[#allocation2 + $0x1ca] sm:$0xff] }
 0x236   : > { %v11785_v61 = vpop.permute.xlu1 %2413  ;;  %v11787_v23 = vpop.permute.xlu0 %2411 }
 0x237   : > { %16209 = vst [vmem:[#allocation194_spill] sm:$0xff] %v11785_v61  ;;  %16210 = vst [vmem:[#allocation195_spill] sm:$0xff] %v11787_v23 }
 0x238   : > { %2657 = vrot.lane.b32.xlu1 %v1692_v14, %s15908_s22  ;;  %v1698_v14 = vld [vmem:[#allocation2 + $0x1f2] sm:$0xff] }
 0x239   : > { %2655 = vrot.lane.b32.xlu0 %v1691_v24, %s15908_s22  ;;  %v1697_v24 = vld [vmem:[#allocation2 + $0x1ea] sm:$0xff] }
 0x23a   : > { %v11791_v4 = vpop.permute.xlu1 %2417  ;;  %v11793_v26 = vpop.permute.xlu0 %2415 }
 0x23b   : > { %16211 = vst [vmem:[#allocation196_spill] sm:$0xff] %v11791_v4  ;;  %16212 = vst [vmem:[#allocation197_spill] sm:$0xff] %v11793_v26 }
 0x23c   : > { %2661 = vrot.lane.b32.xlu1 %v1694_v15, %s15908_s22  ;;  %v1700_v15 = vld [vmem:[#allocation2 + $0x212] sm:$0xff] }
 0x23d   : > { %2659 = vrot.lane.b32.xlu0 %v1693_v63, %s15908_s22  ;;  %v1699_v63 = vld [vmem:[#allocation2 + $0x20a] sm:$0xff] }
 0x23e   : > { %v11797_v59 = vpop.permute.xlu1 %2421  ;;  %v11799_v3 = vpop.permute.xlu0 %2419 }
 0x23f   : > { %16213 = vst [vmem:[#allocation198_spill] sm:$0xff] %v11797_v59  ;;  %16214 = vst [vmem:[#allocation199_spill] sm:$0xff] %v11799_v3 }
 0x240   : > { %2665 = vrot.lane.b32.xlu1 %v1696_v37, %s15908_s22  ;;  %v1702_v37 = vld [vmem:[#allocation2 + $0x232] sm:$0xff] }
 0x241   : > { %2663 = vrot.lane.b32.xlu0 %v1695_v8, %s15908_s22  ;;  %v1701_v8 = vld [vmem:[#allocation2 + $0x22a] sm:$0xff] }
 0x242   : > { %v11803_v31 = vpop.permute.xlu1 %2425  ;;  %v11805_v4 = vpop.permute.xlu0 %2423 }
 0x243   : > { %16215 = vst [vmem:[#allocation200_spill] sm:$0xff] %v11803_v31  ;;  %16216 = vst [vmem:[#allocation201_spill] sm:$0xff] %v11805_v4 }
 0x244   : > { %2669 = vrot.lane.b32.xlu1 %v1698_v14, %s15908_s22  ;;  %v1704_v14 = vld [vmem:[#allocation2 + $0x252] sm:$0xff] }
 0x245   : > { %2667 = vrot.lane.b32.xlu0 %v1697_v24, %s15908_s22  ;;  %v1703_v24 = vld [vmem:[#allocation2 + $0x24a] sm:$0xff] }
 0x246   : > { %v11809_v26 = vpop.permute.xlu1 %2429  ;;  %v11811_v59 = vpop.permute.xlu0 %2427 }
 0x247   : > { %16217 = vst [vmem:[#allocation202_spill] sm:$0xff] %v11809_v26  ;;  %16218 = vst [vmem:[#allocation203_spill] sm:$0xff] %v11811_v59 }
 0x248   : > { %2673 = vrot.lane.b32.xlu1 %v1700_v15, %s15908_s22  ;;  %v1706_v15 = vld [vmem:[#allocation2 + $0x272] sm:$0xff] }
 0x249   : > { %2671 = vrot.lane.b32.xlu0 %v1699_v63, %s15908_s22  ;;  %v1705_v63 = vld [vmem:[#allocation2 + $0x26a] sm:$0xff] }
 0x24a   : > { %v11815_v3 = vpop.permute.xlu1 %2433  ;;  %v11817_v31 = vpop.permute.xlu0 %2431 }
 0x24b   : > { %16219 = vst [vmem:[#allocation204_spill] sm:$0xff] %v11815_v3  ;;  %16220 = vst [vmem:[#allocation205_spill] sm:$0xff] %v11817_v31 }
 0x24c   : > { %2677 = vrot.lane.b32.xlu1 %v1702_v37, %s15908_s22  ;;  %v1708_v37 = vld [vmem:[#allocation2 + $0x292] sm:$0xff] }
 0x24d   : > { %2675 = vrot.lane.b32.xlu0 %v1701_v8, %s15908_s22  ;;  %v1707_v8 = vld [vmem:[#allocation2 + $0x28a] sm:$0xff] }
 0x24e   : > { %v11821_v4 = vpop.permute.xlu1 %2437  ;;  %v11823_v26 = vpop.permute.xlu0 %2435 }
 0x24f   : > { %16221 = vst [vmem:[#allocation206_spill] sm:$0xff] %v11821_v4  ;;  %16222 = vst [vmem:[#allocation207_spill] sm:$0xff] %v11823_v26 }
 0x250   : > { %2681 = vrot.lane.b32.xlu1 %v1704_v14, %s15908_s22  ;;  %v1710_v14 = vld [vmem:[#allocation2 + $0x2b2] sm:$0xff] }
 0x251   : > { %2679 = vrot.lane.b32.xlu0 %v1703_v24, %s15908_s22  ;;  %v1709_v24 = vld [vmem:[#allocation2 + $0x2aa] sm:$0xff] }
 0x252   : > { %v11827_v59 = vpop.permute.xlu1 %2441  ;;  %v11829_v3 = vpop.permute.xlu0 %2439 }
 0x253   : > { %16223 = vst [vmem:[#allocation208_spill] sm:$0xff] %v11827_v59  ;;  %16224 = vst [vmem:[#allocation209_spill] sm:$0xff] %v11829_v3 }
 0x254   : > { %2685 = vrot.lane.b32.xlu1 %v1706_v15, %s15908_s22 }
 0x255   : > { %2683 = vrot.lane.b32.xlu0 %v1705_v63, %s15908_s22 }
 0x256   : > { %v11833_v31 = vpop.permute.xlu1 %2445  ;;  %v11835_v4 = vpop.permute.xlu0 %2443 }
 0x257   : > { %16225 = vst [vmem:[#allocation210_spill] sm:$0xff] %v11833_v31  ;;  %16226 = vst [vmem:[#allocation211_spill] sm:$0xff] %v11835_v4 }
 0x258   : > { %2689 = vrot.lane.b32.xlu1 %v1708_v37, %s15908_s22 }
 0x259   : > { %2687 = vrot.lane.b32.xlu0 %v1707_v8, %s15908_s22 }
 0x25a   : > { %v11839_v26 = vpop.permute.xlu1 %2449  ;;  %v11841_v59 = vpop.permute.xlu0 %2447 }
 0x25b   : > { %16227 = vst [vmem:[#allocation212_spill] sm:$0xff] %v11839_v26  ;;  %16228 = vst [vmem:[#allocation213_spill] sm:$0xff] %v11841_v59 }
 0x25c   : > { %2693 = vrot.lane.b32.xlu1 %v1710_v14, %s15908_s22  ;;  %v1716_v14 = vld [vmem:[#allocation2 + $0x312] sm:$0xff] }
 0x25d   : > { %2691 = vrot.lane.b32.xlu0 %v1709_v24, %s15908_s22  ;;  %v1715_v24 = vld [vmem:[#allocation2 + $0x30a] sm:$0xff] }
 0x25e   : > { %v11845_v15 = vpop.permute.xlu1 %2453  ;;  %v11847_v63 = vpop.permute.xlu0 %2451 }
 0x25f   : > { %16229 = vst [vmem:[#allocation214_spill] sm:$0xff] %v11845_v15  ;;  %16230 = vst [vmem:[#allocation215_spill] sm:$0xff] %v11847_v63 }
 0x260   : > { %2697 = vrot.lane.b32.xlu1 %v11354_v51, %s15908_s22  ;;  %v1718_v51 = vld [vmem:[#allocation2 + $0x332] sm:$0xff] }
 0x261   : > { %2695 = vrot.lane.b32.xlu0 %v11356_v52, %s15908_s22  ;;  %v1717_v52 = vld [vmem:[#allocation2 + $0x32a] sm:$0xff] }
 0x262   : > { %v11853_v37 = vpop.permute.xlu1 %2521  ;;  %v11855_v8 = vpop.permute.xlu0 %2519 }
 0x264   : > { %2701 = vrot.lane.b32.xlu1 %v11369_v49, %s15908_s22  ;;  %v3981_v49 = vld [vmem:[#allocation2 + $0x90] sm:$0xff] }
 0x265   : > { %2699 = vrot.lane.b32.xlu0 %v11371_v1, %s15908_s22  ;;  %v3980_v1 = vld [vmem:[#allocation2 + $0x88] sm:$0xff] }
 0x266   : > { %v11861_v15 = vpop.permute.xlu1 %2525  ;;  %v11863_v63 = vpop.permute.xlu0 %2523 }
 0x268   : > { %2705 = vrot.lane.b32.xlu1 %v1716_v14, %s15908_s22  ;;  %v3983_v14 = vld [vmem:[#allocation2 + $0xb0] sm:$0xff] }
 0x269   : > { %2703 = vrot.lane.b32.xlu0 %v1715_v24, %s15908_s22  ;;  %v3982_v24 = vld [vmem:[#allocation2 + $0xa8] sm:$0xff] }
 0x26a   : > { %v11867_v26 = vpop.permute.xlu1 %2529  ;;  %v11869_v59 = vpop.permute.xlu0 %2527 }
 0x26c   : > { %2709 = vrot.lane.b32.xlu1 %v1718_v51, %s15908_s22  ;;  %v3985_v51 = vld [vmem:[#allocation2 + $0xd0] sm:$0xff] }
 0x26d   : > { %2707 = vrot.lane.b32.xlu0 %v1717_v52, %s15908_s22  ;;  %v3984_v52 = vld [vmem:[#allocation2 + $0xc8] sm:$0xff] }
 0x26e   : > { %v11873_v31 = vpop.permute.xlu1 %2533  ;;  %v11875_v4 = vpop.permute.xlu0 %2531 }
 0x26f   : > { %16231 = vst [vmem:[#allocation216_spill] sm:$0xff] %v11873_v31 }
 0x270   : > { %4223 = vrot.lane.b32.xlu1 %v3981_v49, %s15902_s25  ;;  %v3987_v49 = vld [vmem:[#allocation2 + $0xf0] sm:$0xff] }
 0x271   : > { %4221 = vrot.lane.b32.xlu0 %v3980_v1, %s15902_s25  ;;  %v3986_v1 = vld [vmem:[#allocation2 + $0xe8] sm:$0xff] }
 0x272   : > { %v11879_v3 = vpop.permute.xlu1 %2537  ;;  %v11881_v61 = vpop.permute.xlu0 %2535 }
 0x273   : > { %16232 = vst [vmem:[#allocation217_spill] sm:$0xff] %v11879_v3  ;;  %16233 = vst [vmem:[#allocation218_spill] sm:$0xff] %v11881_v61 }
 0x274   : > { %4227 = vrot.lane.b32.xlu1 %v3983_v14, %s15902_s25  ;;  %v3989_v14 = vld [vmem:[#allocation2 + $0x110] sm:$0xff] }
 0x275   : > { %4225 = vrot.lane.b32.xlu0 %v3982_v24, %s15902_s25  ;;  %v3988_v24 = vld [vmem:[#allocation2 + $0x108] sm:$0xff] }
 0x276   : > { %v11885_v23 = vpop.permute.xlu1 %2541  ;;  %v11887_v40 = vpop.permute.xlu0 %2539 }
 0x277   : > { %16234 = vst [vmem:[#allocation219_spill] sm:$0xff] %v11885_v23  ;;  %16235 = vst [vmem:[#allocation220_spill] sm:$0xff] %v11887_v40 }
 0x278   : > { %4231 = vrot.lane.b32.xlu1 %v3985_v51, %s15902_s25  ;;  %v3991_v51 = vld [vmem:[#allocation2 + $0x130] sm:$0xff] }
 0x279   : > { %4229 = vrot.lane.b32.xlu0 %v3984_v52, %s15902_s25  ;;  %v3990_v52 = vld [vmem:[#allocation2 + $0x128] sm:$0xff] }
 0x27a   : > { %v11891_v16 = vpop.permute.xlu1 %2545  ;;  %v11893_v3 = vpop.permute.xlu0 %2543 }
 0x27b   : > { %16236 = vst [vmem:[#allocation221_spill] sm:$0xff] %v11891_v16  ;;  %16237 = vst [vmem:[#allocation222_spill] sm:$0xff] %v11893_v3  ;;  %v751_v3 = vpop.f32.mrb[6].mxu0 }
 0x27c   : > { %4235 = vrot.lane.b32.xlu1 %v3987_v49, %s15902_s25  ;;  %v753_v49 = vpop.f32.mrb[7].mxu0 }
 0x27d   : > { %4233 = vrot.lane.b32.xlu0 %v3986_v1, %s15902_s25  ;;  %v942_v1 = vmul.f32 %v11670_v35, %v751_v3 }
 0x27e   : > { %v11897_v61 = vpop.permute.xlu1 %2549  ;;  %v11899_v23 = vpop.permute.xlu0 %2547 }
 0x27f   : > { %16238 = vst [vmem:[#allocation223_spill] sm:$0xff] %v11897_v61  ;;  %16239 = vst [vmem:[#allocation224_spill] sm:$0xff] %v11899_v23 }
 0x280   : > { %4239 = vrot.lane.b32.xlu1 %v3989_v14, %s15902_s25  ;;  %v943_v14 = vmul.f32 %v11662_v12, %v753_v49 }
 0x281   : > { %4237 = vrot.lane.b32.xlu0 %v3988_v24, %s15902_s25  ;;  %v757_v24 = vpop.f32.mrb[8].mxu0 }
 0x282   : > { %v11903_v40 = vpop.permute.xlu1 %2553 }
 0x283   : > { %16240 = vst [vmem:[#allocation225_spill] sm:$0xff] %v11903_v40  ;;  %v11905_v16 = vpop.permute.xlu0 %2551  ;;  %v759_v40 = vpop.f32.mrb[9].mxu0 }
 0x284   : > { %16241 = vst [vmem:[#allocation226_spill] sm:$0xff] %v11905_v16  ;;  %4243 = vrot.lane.b32.xlu1 %v3991_v51, %s15902_s25  ;;  %v1019_v51 = vadd.f32 %v11676_v21, %v943_v14  ;;  %v945_v3 = vmul.f32 %v11662_v12, %v759_v40  ;;  %v763_v31 = vpop.f32.mrb[10].mxu0 }
 0x285   : > { %4241 = vrot.lane.b32.xlu0 %v3990_v52, %s15902_s25  ;;  %v944_v52 = vmul.f32 %v11670_v35, %v757_v24 }
 0x286   : > { %v11910_v61 = vpop.permute.xlu1 %2557  ;;  %v1083_v49 = vmax.f32 %v1019_v51, 0.0  ;;  %v1021_v40 = vadd.f32 %v11676_v21, %v945_v3 }
 0x287   : > { %16242 = vst [vmem:[#allocation227_spill] sm:$0xff] %v11910_v61  ;;  %v11912_v23 = vpop.permute.xlu0 %2555  ;;  %v1018_v61 = vadd.f32 %v11673_v60, %v942_v1  ;;  %v1020_v14 = vadd.f32 %v11673_v60, %v944_v52 }
 0x288   : > { %16243 = vst [vmem:[#allocation228_spill] sm:$0xff] %v11912_v23  ;;  %4247 = vrot.lane.b32.xlu1 %v11531_v42, %s15902_s25  ;;  %v946_v42 = vmul.f32 %v11670_v35, %v763_v31  ;;  %1251 = vmatprep.mubr.f32.mxu1 %v1083_v49 }
 0x289   : > { %4245 = vrot.lane.b32.xlu0 %v11533_v27, %s15902_s25  ;;  %v1082_v45 = vmax.f32 %v1018_v61, 0.0  ;;  %v765_v27 = vpop.f32.mrb[11].mxu0  ;;  %v1084_v31 = vmax.f32 %v1020_v14, 0.0 }
 0x28a   : > { %v11923_v16 = vpop.permute.xlu1 %2561  ;;  %v947_v1 = vmul.f32 %v11662_v12, %v765_v27  ;;  %v1022_v61 = vadd.f32 %v11673_v60, %v946_v42 }
 0x28b   : > { %16244 = vst [vmem:[#allocation229_spill] sm:$0xff] %v11923_v16  ;;  %v11925_v23 = vpop.permute.xlu0 %2559  ;;  %1252 = vmatmul.mubr.f32.vlgmr.msra.gmra.mrb[0].mxu1 %v1082_v45  ;;  %v769_v16 = vpop.f32.mrb[12].mxu0 }
 0x28c   : > { %4251 = vrot.lane.b32.xlu1 %v11545_v44, %s15902_s25  ;;  %v1085_v44 = vmax.f32 %v1021_v40, 0.0  ;;  %v948_v52 = vmul.f32 %v11670_v35, %v769_v16  ;;  %v771_v3 = vpop.f32.mrb[13].mxu0  ;;  %v1086_v40 = vmax.f32 %v1022_v61, 0.0  ;;  %v1432_v61 = vld [vmem:[#allocation2 + $0xe6] sm:$0xff] }
 0x28d   : > { %4249 = vrot.lane.b32.xlu0 %v11547_v28, %s15902_s25  ;;  %v1023_v28 = vadd.f32 %v11676_v21, %v947_v1  ;;  %v949_v27 = vmul.f32 %v11662_v12, %v771_v3  ;;  %v775_v14 = vpop.f32.mrb[14].mxu0 }
 0x28e   : > { %v11935_v24 = vpop.permute.xlu1 %2565  ;;  %1256 = vmatprep.mubr.f32.mxu1 %v1085_v44  ;;  %v1024_v1 = vadd.f32 %v11673_v60, %v948_v52  ;;  %v777_v16 = vpop.f32.mrb[15].mxu0 }
 0x28f   : > { %16245 = vst [vmem:[#allocation230_spill] sm:$0xff] %v11935_v24  ;;  %v11937_v51 = vpop.permute.xlu0 %2563  ;;  %v1087_v49 = vmax.f32 %v1023_v28, 0.0  ;;  %1257 = vmatmul.mubr.f32.gmra.mrb[2].mxu1 %v1084_v31  ;;  %v951_v28 = vmul.f32 %v11662_v12, %v777_v16  ;;  %v16251_v16 = vld [vmem:[#allocation58_spill] sm:$0xff] }
 0x290   : > { %16246 = vst [vmem:[#allocation231_spill] sm:$0xff] %v11937_v51  ;;  %4255 = vrot.lane.b32.xlu1 %v11559_v47, %s15902_s25  ;;  %v1025_v47 = vadd.f32 %v11676_v21, %v949_v27  ;;  %v1088_v52 = vmax.f32 %v1024_v1, 0.0  ;;  %v1430_v27 = vld [vmem:[#allocation2 + $0xc6] sm:$0xff] }
 0x291   : > { %4253 = vrot.lane.b32.xlu0 %v11561_v56, %s15902_s25  ;;  %1261 = vmatprep.mubr.f32.mxu1 %v1087_v49  ;;  %v950_v56 = vmul.f32 %v11670_v35, %v775_v14  ;;  %v1431_v14 = vld [vmem:[#allocation2 + $0xce] sm:$0xff] }
 0x292   : > { %v11947_v42 = vpop.permute.xlu1 %2569  ;;  %v1089_v44 = vmax.f32 %v1025_v47, 0.0 }
 0x293   : > { %16247 = vst [vmem:[#allocation232_spill] sm:$0xff] %v11947_v42  ;;  %v11949_v45 = vpop.permute.xlu0 %2567  ;;  %v1026_v49 = vadd.f32 %v11673_v60, %v950_v56  ;;  %1262 = vmatmul.mubr.f32.gmra.mrb[4].mxu1 %v1086_v40  ;;  %v1027_v42 = vadd.f32 %v11676_v21, %v951_v28  ;;  %v11972_v40 = vsel %vm432_vm0, %v1432_v61, %v16251_v16  ;;  %v16256_v61 = vld [vmem:[#allocation63_spill] sm:$0xff]  ;;  %v9903_v16 = vld [vmem:[#allocation2 + $0x10e] sm:$0xff] }
 0x294   : > { %16248 = vst [vmem:[#allocation233_spill] sm:$0xff] %v11949_v45  ;;  %4259 = vrot.lane.b32.xlu1 %v11573_v6, %s15902_s25  ;;  %v1433_v6 = vld [vmem:[#allocation2 + $0xee] sm:$0xff]  ;;  %1266 = vmatprep.mubr.f32.mxu1 %v1089_v44  ;;  %v16252_v44 = vld [vmem:[#allocation59_spill] sm:$0xff] }
 0x295   : > { %4257 = vrot.lane.b32.xlu0 %v11575_v39, %s15902_s25  ;;  %v781_v39 = vpop.f32.mrb[16].mxu0  ;;  %v1091_v56 = vmax.f32 %v1027_v42, 0.0  ;;  %v2744_v42 = vsel %vm432_vm0, %v1431_v14, %v16256_v61  ;;  %v9906_v14 = vld [vmem:[#allocation2 + $0x126] sm:$0xff]  ;;  %v16260_v61 = vld [vmem:[#allocation69_spill] sm:$0xff] }
 0x296   : > { %v11959_v3 = vpop.permute.xlu1 %2573  ;;  %v952_v47 = vmul.f32 %v11670_v35, %v781_v39  ;;  %v783_v1 = vpop.f32.mrb[17].mxu0  ;;  %v1090_v39 = vmax.f32 %v1026_v49, 0.0  ;;  %v9905_v49 = vld [vmem:[#allocation2 + $0x12e] sm:$0xff] }
 0x297   : > { %16249 = vst [vmem:[#allocation234_spill] sm:$0xff] %v11959_v3  ;;  %v11961_v31 = vpop.permute.xlu0 %2571  ;;  %v953_v28 = vmul.f32 %v11662_v12, %v783_v1  ;;  %v2743_v3 = vsel %vm432_vm0, %v1430_v27, %v16252_v44  ;;  %1267 = vmatmul.mubr.f32.gmra.mrb[6].mxu1 %v1088_v52  ;;  %v16257_v1 = vld [vmem:[#allocation66_spill] sm:$0xff]  ;;  %v9904_v27 = vld [vmem:[#allocation2 + $0x106] sm:$0xff] }
 0x298   : > { %16250 = vst [vmem:[#allocation235_spill] sm:$0xff] %v11961_v31  ;;  %4263 = vrot.lane.b32.xlu1 %v11587_v41, %s15902_s25  ;;  %v16253_v31 = vld [vmem:[#allocation62_spill] sm:$0xff]  ;;  %v1028_v24 = vadd.f32 %v11673_v60, %v952_v47  ;;  %v11990_v51 = vsel %vm432_vm0, %v9903_v16, %v16257_v1  ;;  %v16258_v44 = vld [vmem:[#allocation67_spill] sm:$0xff]  ;;  %1271 = vmatprep.mubr.f32.mxu1 %v1091_v56  ;;  %v16259_v47 = vld [vmem:[#allocation68_spill] sm:$0xff] }
 0x299   : > { %4261 = vrot.lane.b32.xlu0 %v11589_v33, %s15902_s25  ;;  %v11979_v41 = vsel %vm432_vm0, %v1433_v6, %v16253_v31  ;;  %v11994_v31 = vsel %vm432_vm0, %v9904_v27, %v16258_v44  ;;  %v1029_v6 = vadd.f32 %v11676_v21, %v953_v28  ;;  %v11999_v52 = vsel %vm432_vm0, %v9905_v49, %v16259_v47  ;;  %v16261_v16 = vld [vmem:[#allocation115_spill] sm:$0xff] }
 0x29a   : > { %v11981_v45 = vpop.permute.xlu1 %2577  ;;  %v2776_v1 = vsel %vm2775_vm2, %v2743_v3, %v16261_v16  ;;  %v9908_v16 = vld [vmem:[#allocation2 + $0x146] sm:$0xff] }
 0x29b   : > { %16254 = vst [vmem:[#allocation58_spill] sm:$0xff] %v11981_v45  ;;  %v11983_v33 = vpop.permute.xlu0 %2575  ;;  %v787_v45 = vpop.f32.mrb[18].mxu0  ;;  %v1093_v27 = vmax.f32 %v1029_v6, 0.0  ;;  %v2809_v49 = vsel %vm2808_vm3, %v2776_v1, %v11163_v58  ;;  %1272 = vmatmul.mubr.f32.gmra.mrb[8].mxu1 %v1090_v39  ;;  %v16263_v1 = vld [vmem:[#allocation71_spill] sm:$0xff] }
 0x29c   : > { %16255 = vst [vmem:[#allocation59_spill] sm:$0xff] %v11983_v33  ;;  %v12003_v33 = vsel %vm432_vm0, %v9906_v14, %v16260_v61  ;;  %4267 = vrot.lane.b32.xlu1 %v11601_v0, %s15902_s25  ;;  %v954_v28 = vmul.f32 %v11670_v35, %v787_v45  ;;  %v789_v56 = vpop.f32.mrb[19].mxu0  ;;  %v1092_v14 = vmax.f32 %v1028_v24, 0.0  ;;  %v9907_v45 = vld [vmem:[#allocation2 + $0x14e] sm:$0xff]  ;;  %v16262_v61 = vld [vmem:[#allocation70_spill] sm:$0xff]  ;;  %v2842_v6 = vsel %vm2841_vm4, %v2809_v49, %v11347_v10 }
 0x29d   : > { %4265 = vrot.lane.b32.xlu0 %v11603_v36, %s15902_s25  ;;  %v955_v44 = vmul.f32 %v11662_v12, %v789_v56  ;;  %v12022_v3 = vsel %vm432_vm0, %v9907_v45, %v16262_v61  ;;  %v793_v56 = vpop.f32.mrb[20].mxu0  ;;  %1276 = vmatprep.mubr.f32.mxu1 %v1093_v27  ;;  %v12029_v24 = vsel %vm432_vm0, %v9908_v16, %v16263_v1  ;;  %v16265_v1 = vld [vmem:[#allocation72_spill] sm:$0xff] }
 0x29e   : > { %v12015_v47 = vpop.permute.xlu1 %2581  ;;  %v1030_v36 = vadd.f32 %v11673_v60, %v954_v28  ;;  %v2875_v39 = vsel %vm2874_vm5, %v2842_v6, %v11507_v43  ;;  %v956_v10 = vmul.f32 %v11670_v35, %v793_v56  ;;  %v795_v28 = vpop.f32.mrb[21].mxu0  ;;  %v9909_v56 = vld [vmem:[#allocation2 + $0x16e] sm:$0xff] }
 0x29f   : > { %v12017_v0 = vpop.permute.xlu0 %2579  ;;  %v1031_v58 = vadd.f32 %v11676_v21, %v955_v44  ;;  %v16264_v44 = vld [vmem:[#allocation114_spill] sm:$0xff]  ;;  %v2908_v49 = vsel %vm2907_vm6, %v2875_v39, %v11750_v17  ;;  %v957_v61 = vmul.f32 %v11662_v12, %v795_v28  ;;  %1277 = vmatmul.mubr.f32.gmra.mrb[10].mxu1 %v1092_v14  ;;  %v9910_v28 = vld [vmem:[#allocation2 + $0x166] sm:$0xff] }
 0x2a0   : > { %4271 = vrot.lane.b32.xlu1 %v11615_v19, %s15902_s25  ;;  %v2777_v27 = vsel %vm2775_vm2, %v2744_v42, %v16264_v44  ;;  %v2941_v43 = vsel %vm2940_vm7, %v2908_v49, %v11855_v8  ;;  %v1032_v16 = vadd.f32 %v11673_v60, %v956_v10  ;;  %v12048_v42 = vsel %vm432_vm0, %v9909_v56, %v16265_v1  ;;  %v799_v8 = vpop.f32.mrb[22].mxu0  ;;  %v16266_v44 = vld [vmem:[#allocation73_spill] sm:$0xff]  ;;  %v16267_v49 = vld [vmem:[#allocation74_spill] sm:$0xff] }
 0x2a1   : > { %4269 = vrot.lane.b32.xlu0 %v11617_v9, %s15902_s25  ;;  %v1095_v45 = vmax.f32 %v1031_v58, 0.0  ;;  %v1094_v9 = vmax.f32 %v1030_v36, 0.0  ;;  %v2810_v17 = vsel %vm2808_vm3, %v2777_v27, %v11161_v57  ;;  %v1033_v39 = vadd.f32 %v11676_v21, %v957_v61  ;;  %v801_v10 = vpop.f32.mrb[23].mxu0  ;;  %v9911_v27 = vld [vmem:[#allocation2 + $0x18e] sm:$0xff] }
 0x2a2   : > { %v2650_v19 = vpop.permute.xlu1 %2649  ;;  %v12056_v36 = vsel %vm432_vm0, %v9910_v28, %v16266_v44  ;;  %v2843_v14 = vsel %vm2841_vm4, %v2810_v17, %v11345_v54  ;;  %v958_v57 = vmul.f32 %v11670_v35, %v799_v8  ;;  %v1096_v17 = vmax.f32 %v1032_v16, 0.0  ;;  %v805_v44 = vpop.f32.mrb[24].mxu0 }
 0x2a3   : > { %v2648_v6 = vpop.permute.xlu0 %2647  ;;  %1281 = vmatprep.mubr.f32.mxu1 %v1095_v45  ;;  %v12067_v45 = vsel %vm432_vm0, %v9911_v27, %v16267_v49  ;;  %v2876_v61 = vsel %vm2874_vm5, %v2843_v14, %v11505_v46  ;;  %v1097_v54 = vmax.f32 %v1033_v39, 0.0  ;;  %v16269_v39 = vld [vmem:[#allocation75_spill] sm:$0xff]  ;;  %v807_v14 = vpop.f32.mrb[25].mxu0 }
 0x2a4   : > { %v2974_v58 = vsel %vm2973_vm8, %v2941_v43, %v2648_v6  ;;  %4275 = vrot.lane.b32.xlu1 %v11629_v5, %s15902_s25  ;;  %v959_v43 = vmul.f32 %v11662_v12, %v801_v10  ;;  %v16268_v5 = vld [vmem:[#allocation119_spill] sm:$0xff]  ;;  %v2909_v6 = vsel %vm2907_vm6, %v2876_v61, %v11748_v50  ;;  %v1034_v46 = vadd.f32 %v11673_v60, %v958_v57  ;;  %v9913_v57 = vld [vmem:[#allocation2 + $0x1ae] sm:$0xff]  ;;  %v16271_v61 = vld [vmem:[#allocation118_spill] sm:$0xff] }
 0x2a5   : > { %4273 = vrot.lane.b32.xlu0 %v11631_v38, %s15902_s25  ;;  %9403 = vmatmul.mubr.msk.f32.vlgmr.msra.gmra.mrb[70].mxu0 %vm3016_vm9, %v2974_v58  ;;  %v2778_v38 = vsel %vm2775_vm2, %v11972_v40, %v16268_v5  ;;  %v9912_v58 = vld [vmem:[#allocation2 + $0x186] sm:$0xff]  ;;  %v2942_v50 = vsel %vm2940_vm7, %v2909_v6, %v11853_v37  ;;  %v16270_v37 = vld [vmem:[#allocation78_spill] sm:$0xff] }
 0x2a6   : > { %v12078_v56 = vpop.permute.xlu1 %2653  ;;  %3189 = vmatprep.mubr.f32.mxu0 %v16047_v34  ;;  %1282 = vmatmul.mubr.f32.gmra.mrb[12].mxu1 %v1094_v9  ;;  %v12084_v8 = vsel %vm432_vm0, %v9912_v58, %v16269_v39  ;;  %v2811_v40 = vsel %vm2808_vm3, %v2778_v38, %v11178_v25  ;;  %v1035_v28 = vadd.f32 %v11676_v21, %v959_v43  ;;  %v9914_v6 = vld [vmem:[#allocation2 + $0x1a6] sm:$0xff] }
 0x2a7   : > { %v2652_v1 = vpop.permute.xlu0 %2651  ;;  %1286 = vmatprep.mubr.f32.mxu1 %v1097_v54  ;;  %v2844_v16 = vsel %vm2841_vm4, %v2811_v40, %v11362_v2  ;;  %v2975_v9 = vsel %vm2973_vm8, %v2942_v50, %v2650_v19  ;;  %v960_v25 = vmul.f32 %v11670_v35, %v805_v44  ;;  %v12101_v10 = vsel %vm432_vm0, %v9913_v57, %v16270_v37  ;;  %v4011_v2 = vld [vmem:[#allocation2 + $0x270] sm:$0xff]  ;;  %v4010_v19 = vld [vmem:[#allocation2 + $0x268] sm:$0xff]  ;;  %v16272_v58 = vld [vmem:[#allocation79_spill] sm:$0xff]  ;;  %v811_v50 = vpop.f32.mrb[26].mxu0 }
 0x2a8   : > { %4279 = vrot.lane.b32.xlu1 %v11643_v30, %s15902_s25  ;;  %v2877_v27 = vsel %vm2874_vm5, %v2844_v16, %v11517_v7  ;;  %v1099_v49 = vmax.f32 %v1035_v28, 0.0  ;;  %v961_v30 = vmul.f32 %v11662_v12, %v807_v14  ;;  %v1098_v7 = vmax.f32 %v1034_v46, 0.0  ;;  %v813_v44 = vpop.f32.mrb[27].mxu0  ;;  %v16273_v16 = vld [vmem:[#allocation82_spill] sm:$0xff]  ;;  %v16274_v57 = vld [vmem:[#allocation121_spill] sm:$0xff] }
 0x2a9   : > { %4277 = vrot.lane.b32.xlu0 %v11645_v20, %s15902_s25  ;;  %9404 = vmatmul.mubr.msk.f32.gmra.mrb[72].mxu0 %vm3016_vm9, %v2975_v9  ;;  %v2779_v20 = vsel %vm2775_vm2, %v11979_v41, %v16271_v61  ;;  %v2910_v54 = vsel %vm2907_vm6, %v2877_v27, %v11763_v32  ;;  %v1036_v38 = vadd.f32 %v11673_v60, %v960_v25  ;;  %v3949_v25 = vld [vmem:[#allocation2 + $0x8c] sm:$0xff]  ;;  %v16275_v61 = vld [vmem:[#allocation83_spill] sm:$0xff] }
 0x2aa   : > { %v12112_v43 = vpop.permute.xlu1 %2657  ;;  %3195 = vmatprep.mubr.f32.mxu0 %v16047_v34  ;;  %1287 = vmatmul.mubr.f32.gmra.mrb[14].mxu1 %v1096_v17  ;;  %v12120_v39 = vsel %vm432_vm0, %v9914_v6, %v16272_v58  ;;  %v2812_v41 = vsel %vm2808_vm3, %v2779_v20, %v11176_v62  ;;  %v2943_v32 = vsel %vm2940_vm7, %v2910_v54, %v11863_v63  ;;  %v9915_v62 = vld [vmem:[#allocation2 + $0x1ce] sm:$0xff]  ;;  %v817_v6 = vpop.f32.mrb[28].mxu0 }
 0x2ab   : > { %v12114_v5 = vpop.permute.xlu0 %2655  ;;  %v1037_v40 = vadd.f32 %v11676_v21, %v961_v30  ;;  %1291 = vmatprep.mubr.f32.mxu1 %v1099_v49  ;;  %v2845_v46 = vsel %vm2841_vm4, %v2812_v41, %v11360_v53  ;;  %v2976_v17 = vsel %vm2973_vm8, %v2943_v32, %v2652_v1  ;;  %v962_v28 = vmul.f32 %v11670_v35, %v811_v50  ;;  %v4012_v53 = vld [vmem:[#allocation2 + $0x94] sm:$0xff]  ;;  %v9916_v30 = vld [vmem:[#allocation2 + $0x1c6] sm:$0xff] }
 0x2ac   : > { %4283 = vrot.lane.b32.xlu1 %v4011_v2, %s15902_s25  ;;  %v12135_v63 = vsel %vm432_vm0, %v9915_v62, %v16273_v16  ;;  %v2878_v9 = vsel %vm2874_vm5, %v2845_v46, %v11515_v22  ;;  %v963_v14 = vmul.f32 %v11662_v12, %v813_v44  ;;  %v2780_v37 = vsel %vm2775_vm2, %v11994_v31, %v16274_v57  ;;  %v9917_v41 = vld [vmem:[#allocation2 + $0x1ee] sm:$0xff]  ;;  %v16276_v32 = vld [vmem:[#allocation86_spill] sm:$0xff] }
 0x2ad   : > { %4281 = vrot.lane.b32.xlu0 %v4010_v19, %s15902_s25  ;;  %9405 = vmatmul.mubr.msk.f32.gmra.mrb[74].mxu0 %vm3016_vm9, %v2976_v17  ;;  %v1101_v1 = vmax.f32 %v1037_v40, 0.0  ;;  %v2911_v27 = vsel %vm2907_vm6, %v2878_v9, %v11761_v55  ;;  %v1100_v22 = vmax.f32 %v1036_v38, 0.0  ;;  %v1038_v49 = vadd.f32 %v11673_v60, %v962_v28  ;;  %v16277_v40 = vld [vmem:[#allocation162_spill] sm:$0xff]  ;;  %v3951_v46 = vld [vmem:[#allocation2 + $0xac] sm:$0xff]  ;;  %s16499_s25 = smov 20  }
 0x2ae   : > { %v12146_v2 = vpop.permute.xlu1 %2661  ;;  %3201 = vmatprep.mubr.f32.mxu0 %v16047_v34  ;;  %1292 = vmatmul.mubr.f32.gmra.mrb[16].mxu1 %v1098_v7  ;;  %v12154_v20 = vsel %vm432_vm0, %v9916_v30, %v16275_v61  ;;  %v2813_v31 = vsel %vm2808_vm3, %v2780_v37, %v11193_v13  ;;  %v2944_v55 = vsel %vm2940_vm7, %v2911_v27, %v11861_v15  ;;  %v819_v13 = vpop.f32.mrb[29].mxu0  ;;  %v16278_v28 = vld [vmem:[#allocation120_spill] sm:$0xff] }
 0x2af   : > { %v12148_v19 = vpop.permute.xlu0 %2659  ;;  %v1039_v54 = vadd.f32 %v11676_v21, %v963_v14  ;;  %1296 = vmatprep.mubr.f32.mxu1 %v1101_v1  ;;  %v2846_v38 = vsel %vm2841_vm4, %v2813_v31, %v11377_v18  ;;  %v2977_v7 = vsel %vm2973_vm8, %v2944_v55, %v12078_v56  ;;  %v964_v58 = vmul.f32 %v11670_v35, %v817_v6  ;;  %v4013_v18 = vld [vmem:[#allocation2 + $0xb4] sm:$0xff]  ;;  %v9918_v1 = vld [vmem:[#allocation2 + $0x1e6] sm:$0xff]  ;;  %v823_v30 = vpop.f32.mrb[30].mxu0 }
 0x2b0   : > { %4351 = vrot.lane.b32.xlu1 %v4012_v53, %s15900_s30  ;;  %v12170_v15 = vsel %vm432_vm0, %v9917_v41, %v16276_v32  ;;  %v2879_v50 = vsel %vm2874_vm5, %v2846_v38, %v16277_v40  ;;  %v965_v17 = vmul.f32 %v11662_v12, %v819_v13  ;;  %v2781_v44 = vsel %vm2775_vm2, %v11990_v51, %v16278_v28  ;;  %v16279_v14 = vld [vmem:[#allocation87_spill] sm:$0xff]  ;;  %v16280_v37 = vld [vmem:[#allocation148_spill] sm:$0xff]  ;;  %v825_v55 = vpop.f32.mrb[31].mxu0  ;;  %v16282_v6 = vld [vmem:[#allocation90_spill] sm:$0xff] }
 0x2b1   : > { %4349 = vrot.lane.b32.xlu0 %v3949_v25, %s15900_s30  ;;  %9406 = vmatmul.mubr.msk.f32.gmra.mrb[76].mxu0 %vm3016_vm9, %v2977_v7  ;;  %v1103_v56 = vmax.f32 %v1039_v54, 0.0  ;;  %v2912_v62 = vsel %vm2907_vm6, %v2879_v50, %v11769_v48  ;;  %v1102_v53 = vmax.f32 %v1038_v49, 0.0  ;;  %v1040_v25 = vadd.f32 %v11673_v60, %v964_v58  ;;  %v16281_v61 = vld [vmem:[#allocation60_spill] sm:$0xff]  ;;  %v16283_v38 = vld [vmem:[#allocation161_spill] sm:$0xff]  ;;  %v16284_v32 = vld [vmem:[#allocation123_spill] sm:$0xff] }
 0x2b2   : > { %v12181_v16 = vpop.permute.xlu1 %2665  ;;  %3207 = vmatprep.mubr.f32.mxu0 %v16047_v34  ;;  %1297 = vmatmul.mubr.f32.gmra.mrb[18].mxu1 %v1100_v22  ;;  %v12189_v57 = vsel %vm432_vm0, %v9918_v1, %v16279_v14  ;;  %v2814_v51 = vsel %vm2808_vm3, %v2781_v44, %v16280_v37  ;;  %v2945_v48 = vsel %vm2940_vm7, %v2912_v62, %v11869_v59  ;;  %v9919_v54 = vld [vmem:[#allocation2 + $0x20e] sm:$0xff]  ;;  %v9920_v28 = vld [vmem:[#allocation2 + $0x206] sm:$0xff]  ;;  %v16286_v1 = vld [vmem:[#allocation150_spill] sm:$0xff]  ;;  %v829_v37 = vpop.f32.mrb[32].mxu0 }
 0x2b3   : > { %v12183_v9 = vpop.permute.xlu0 %2663  ;;  %v1041_v27 = vadd.f32 %v11676_v21, %v965_v17  ;;  %1301 = vmatprep.mubr.f32.mxu1 %v1103_v56  ;;  %v2847_v49 = vsel %vm2841_vm4, %v2814_v51, %v16281_v61  ;;  %v2978_v22 = vsel %vm2973_vm8, %v2945_v48, %v12114_v5  ;;  %v966_v31 = vmul.f32 %v11670_v35, %v823_v30  ;;  %v4014_v58 = vld [vmem:[#allocation2 + $0xd4] sm:$0xff]  ;;  %v3953_v13 = vld [vmem:[#allocation2 + $0xcc] sm:$0xff]  ;;  %v16285_v44 = vld [vmem:[#allocation91_spill] sm:$0xff] }
 0x2b4   : > { %4355 = vrot.lane.b32.xlu1 %v4013_v18, %s15900_s30  ;;  %v12205_v59 = vsel %vm432_vm0, %v9919_v54, %v16282_v6  ;;  %v2880_v7 = vsel %vm2874_vm5, %v2847_v49, %v16283_v38  ;;  %v967_v41 = vmul.f32 %v11662_v12, %v825_v55  ;;  %v2782_v40 = vsel %vm2775_vm2, %v12003_v33, %v16284_v32  ;;  %v16287_v51 = vld [vmem:[#allocation64_spill] sm:$0xff]  ;;  %v16288_v30 = vld [vmem:[#allocation122_spill] sm:$0xff]  ;;  %v16292_v32 = vld [vmem:[#allocation149_spill] sm:$0xff] }
 0x2b5   : > { %4353 = vrot.lane.b32.xlu0 %v3951_v46, %s15900_s30  ;;  %9407 = vmatmul.mubr.msk.f32.gmra.mrb[78].mxu0 %vm3016_vm9, %v2978_v22  ;;  %v1105_v5 = vmax.f32 %v1041_v27, 0.0  ;;  %v2913_v50 = vsel %vm2907_vm6, %v2880_v7, %v11767_v11  ;;  %v1104_v56 = vmax.f32 %v1040_v25, 0.0  ;;  %v1042_v17 = vadd.f32 %v11673_v60, %v966_v31  ;;  %v831_v27 = vpop.f32.mrb[33].mxu0  ;;  %v16289_v61 = vld [vmem:[#allocation164_spill] sm:$0xff]  ;;  %v4015_v22 = vld [vmem:[#allocation2 + $0xf4] sm:$0xff] }
 0x2b6   : > { %v12216_v18 = vpop.permute.xlu1 %2669  ;;  %3213 = vmatprep.mubr.f32.mxu0 %v16047_v34  ;;  %1302 = vmatmul.mubr.f32.gmra.mrb[20].mxu1 %v1102_v53  ;;  %v12224_v62 = vsel %vm432_vm0, %v9920_v28, %v16285_v44  ;;  %v2815_v33 = vsel %vm2808_vm3, %v2782_v40, %v16286_v1  ;;  %v2946_v11 = vsel %vm2940_vm7, %v2913_v50, %v11867_v26  ;;  %v3955_v31 = vld [vmem:[#allocation2 + $0xec] sm:$0xff]  ;;  %v835_v50 = vpop.f32.mrb[34].mxu0  ;;  %v16294_v1 = vld [vmem:[#allocation126_spill] sm:$0xff] }
 0x2b7   : > { %v12218_v46 = vpop.permute.xlu0 %2667  ;;  %v1043_v14 = vadd.f32 %v11676_v21, %v967_v41  ;;  %1306 = vmatprep.mubr.f32.mxu1 %v1105_v5  ;;  %v2848_v25 = vsel %vm2841_vm4, %v2815_v33, %v16287_v51  ;;  %v2979_v53 = vsel %vm2973_vm8, %v2946_v11, %v12112_v43  ;;  %v968_v48 = vmul.f32 %v11670_v35, %v829_v37  ;;  %v16290_v54 = vld [vmem:[#allocation124_spill] sm:$0xff]  ;;  %v16291_v5 = vld [vmem:[#allocation125_spill] sm:$0xff]  ;;  %v837_v44 = vpop.f32.mrb[35].mxu0  ;;  %v16295_v33 = vld [vmem:[#allocation163_spill] sm:$0xff] }
 0x2b8   : > { %4359 = vrot.lane.b32.xlu1 %v4014_v58, %s15900_s30  ;;  %v2783_v26 = vsel %vm2775_vm2, %v11999_v52, %v16288_v30  ;;  %v2881_v49 = vsel %vm2874_vm5, %v2848_v25, %v16289_v61  ;;  %v969_v43 = vmul.f32 %v11662_v12, %v831_v27  ;;  %v2785_v6 = vsel %vm2775_vm2, %v12022_v3, %v16290_v54  ;;  %v16293_v28 = vld [vmem:[#allocation61_spill] sm:$0xff]  ;;  %v16296_v25 = vld [vmem:[#allocation152_spill] sm:$0xff] }
 0x2b9   : > { %4357 = vrot.lane.b32.xlu0 %v3953_v13, %s15900_s30  ;;  %9408 = vmatmul.mubr.msk.f32.gmra.mrb[80].mxu0 %vm3016_vm9, %v2979_v53  ;;  %v1107_v55 = vmax.f32 %v1043_v14, 0.0  ;;  %v2914_v38 = vsel %vm2907_vm6, %v2881_v49, %v11775_v29  ;;  %v1106_v58 = vmax.f32 %v1042_v17, 0.0  ;;  %v1044_v13 = vadd.f32 %v11673_v60, %v968_v48  ;;  %v4016_v14 = vld [vmem:[#allocation2 + $0x114] sm:$0xff]  ;;  %v12279_v37 = vld [vmem:[#allocation2 + $0x10c] sm:$0xff]  ;;  %v16297_v48 = vld [vmem:[#allocation191_spill] sm:$0xff] }
 0x2ba   : > { %v12250_v7 = vpop.permute.xlu1 %2673  ;;  %3219 = vmatprep.mubr.f32.mxu0 %v16047_v34  ;;  %1307 = vmatmul.mubr.f32.gmra.mrb[22].mxu1 %v1104_v56  ;;  %v2784_v41 = vsel %vm2775_vm2, %v12029_v24, %v16291_v5  ;;  %v2816_v3 = vsel %vm2808_vm3, %v2783_v26, %v16292_v32  ;;  %v2947_v29 = vsel %vm2940_vm7, %v2914_v38, %v11875_v4  ;;  %v16298_v49 = vld [vmem:[#allocation127_spill] sm:$0xff]  ;;  %v841_v5 = vpop.f32.mrb[36].mxu0  ;;  %v3627_v32 = vld [vmem:[#allocation4 + $0x108] sm:$0xff] }
 0x2bb   : > { %v12252_v52 = vpop.permute.xlu0 %2671  ;;  %v1045_v40 = vadd.f32 %v11676_v21, %v969_v43  ;;  %1311 = vmatprep.mubr.f32.mxu1 %v1107_v55  ;;  %v2849_v17 = vsel %vm2841_vm4, %v2816_v3, %v16293_v28  ;;  %v2980_v56 = vsel %vm2973_vm8, %v2947_v29, %v12148_v19  ;;  %v970_v24 = vmul.f32 %v11670_v35, %v835_v50  ;;  %v16300_v43 = vld [vmem:[#allocation216_spill] sm:$0xff]  ;;  %v16302_v50 = vld [vmem:[#allocation166_spill] sm:$0xff] }
 0x2bc   : > { %4363 = vrot.lane.b32.xlu1 %v4015_v22, %s15900_s30  ;;  %v12274_v4 = vsel %vm2775_vm2, %v12048_v42, %v16294_v1  ;;  %v2882_v11 = vsel %vm2874_vm5, %v2849_v17, %v16295_v33  ;;  %v971_v51 = vmul.f32 %v11662_v12, %v837_v44  ;;  %v2817_v53 = vsel %vm2808_vm3, %v2784_v41, %v16296_v25  ;;  %v3626_v41 = vld [vmem:[#allocation4 + $0x100] sm:$0xff]  ;;  %v16301_v29 = vld [vmem:[#allocation128_spill] sm:$0xff]  ;;  %v16304_v33 = vld [vmem:[#allocation193_spill] sm:$0xff] }
 0x2bd   : > { %4361 = vrot.lane.b32.xlu0 %v3955_v31, %s15900_s30  ;;  %9409 = vmatmul.mubr.msk.f32.gmra.mrb[82].mxu0 %vm3016_vm9, %v2980_v56  ;;  %v1109_v19 = vmax.f32 %v1045_v40, 0.0  ;;  %v2915_v27 = vsel %vm2907_vm6, %v2882_v11, %v16297_v48  ;;  %v1108_v26 = vmax.f32 %v1044_v13, 0.0  ;;  %v1046_v61 = vadd.f32 %v11673_v60, %v970_v24  ;;  %v16299_v31 = vld [vmem:[#allocation160_spill] sm:$0xff]  ;;  %v16303_v44 = vld [vmem:[#allocation151_spill] sm:$0xff]  ;;  %v16305_v25 = vld [vmem:[#allocation65_spill] sm:$0xff] }
 0x2be   : > { %v12286_v30 = vpop.permute.xlu1 %2677  ;;  %3225 = vmatprep.mubr.f32.mxu0 %v16047_v34  ;;  %1312 = vmatmul.mubr.f32.gmra.mrb[24].mxu1 %v1106_v58  ;;  %v2786_v22 = vsel %vm2775_vm2, %v12056_v36, %v16298_v49  ;;  %v2850_v55 = vsel %vm2841_vm4, %v2817_v53, %v16299_v31  ;;  %v2948_v54 = vsel %vm2940_vm7, %v2915_v27, %v16300_v43  ;;  %v843_v58 = vpop.f32.mrb[37].mxu0  ;;  %v12314_v17 = vld [vmem:[#allocation2 + $0x12c] sm:$0xff]  ;;  %v16306_v48 = vld [vmem:[#allocation218_spill] sm:$0xff] }
 0x2bf   : > { %v12288_v42 = vpop.permute.xlu0 %2675  ;;  %v1047_v38 = vadd.f32 %v11676_v21, %v971_v51  ;;  %1316 = vmatprep.mubr.f32.mxu1 %v1109_v19  ;;  %v2981_v13 = vsel %vm2973_vm8, %v2948_v54, %v12146_v2  ;;  %v972_v36 = vmul.f32 %v11670_v35, %v841_v5  ;;  %v9615_v3 = vpack.c.bf16 %v3627_v32, %v3626_v41  ;;  %v4017_v2 = vld [vmem:[#allocation2 + $0x134] sm:$0xff]  ;;  %v847_v49 = vpop.f32.mrb[38].mxu0 }
 0x2c0   : > { %4367 = vrot.lane.b32.xlu1 %v4016_v14, %s15900_s30  ;;  %v12309_v40 = vsel %vm2775_vm2, %v12067_v45, %v16301_v29  ;;  %v2883_v28 = vsel %vm2874_vm5, %v2850_v55, %v16302_v50  ;;  %v973_v24 = vmul.f32 %v11662_v12, %v843_v58  ;;  %v2818_v1 = vsel %vm2808_vm3, %v2785_v6, %v16303_v44  ;;  %v3628_v31 = vld [vmem:[#allocation4 + $0x110] sm:$0xff]  ;;  %v3629_v55 = vld [vmem:[#allocation4 + $0x118] sm:$0xff] }
 0x2c1   : > { %4365 = vrot.lane.b32.xlu0 %v12279_v37, %s15900_s30  ;;  %9410 = vmatmul.mubr.msk.f32.gmra.mrb[84].mxu0 %vm3016_vm9, %v2981_v13  ;;  %v1111_v56 = vmax.f32 %v1047_v38, 0.0  ;;  %v2916_v11 = vsel %vm2907_vm6, %v2883_v28, %v16304_v33  ;;  %v1110_v19 = vmax.f32 %v1046_v61, 0.0  ;;  %v1048_v51 = vadd.f32 %v11673_v60, %v972_v36  ;;  %v849_v61 = vpop.f32.mrb[39].mxu0  ;;  %v16307_v38 = vld [vmem:[#allocation129_spill] sm:$0xff]  ;;  %v16310_v29 = vld [vmem:[#allocation154_spill] sm:$0xff]  ;;  %v16311_v28 = vld [vmem:[#allocation192_spill] sm:$0xff] }
 0x2c2   : > { %v12321_v14 = vpop.permute.xlu1 %2681  ;;  %3231 = vmatprep.mubr.f32.mxu0 %v16047_v34  ;;  %1317 = vmatmul.mubr.f32.gmra.mrb[26].mxu1 %v1108_v26  ;;  %v2851_v53 = vsel %vm2841_vm4, %v2818_v1, %v16305_v25  ;;  %v2949_v27 = vsel %vm2940_vm7, %v2916_v11, %v16306_v48  ;;  %v1049_v6 = vadd.f32 %v11676_v21, %v973_v24  ;;  %v16308_v41 = vld [vmem:[#allocation165_spill] sm:$0xff]  ;;  %v3630_v48 = vld [vmem:[#allocation4 + $0x120] sm:$0xff] }
 0x2c3   : > { %v12323_v45 = vpop.permute.xlu0 %2679  ;;  %9616 = vmatpush1.bf16.msra.mxu1 %v9615_v3  ;;  %1321 = vmatprep.mubr.f32.mxu1 %v1111_v56  ;;  %v2982_v43 = vsel %vm2973_vm8, %v2949_v27, %v12183_v9  ;;  %v974_v26 = vmul.f32 %v11670_v35, %v847_v49  ;;  %v9618_v54 = vpack.c.bf16 %v3629_v55, %v3628_v31  ;;  %v4018_v9 = vld [vmem:[#allocation2 + $0x154] sm:$0xff]  ;;  %v12346_v13 = vld [vmem:[#allocation2 + $0x14c] sm:$0xff]  ;;  %v16309_v3 = vmov 0.0|0.0  }
 0x2c4   : > { %4371 = vrot.lane.b32.xlu1 %v4017_v2, %s15900_s30  ;;  %v12341_v5 = vsel %vm2775_vm2, %v12084_v8, %v16307_v38  ;;  %v2884_v32 = vsel %vm2874_vm5, %v2851_v53, %v16308_v41  ;;  %v1113_v36 = vmax.f32 %v1049_v6, 0.0  ;;  %v975_v58 = vmul.f32 %v11662_v12, %v849_v61  ;;  %9617 = vmatprep.subr.bf16.mxu1 %v16309_v3  ;;  %v16312_v1 = vld [vmem:[#allocation77_spill] sm:$0xff]  ;;  %v853_v53 = vpop.f32.mrb[40].mxu0  ;;  %v3631_v27 = vld [vmem:[#allocation4 + $0x128] sm:$0xff]  ;;  %v16314_v31 = vld [vmem:[#allocation130_spill] sm:$0xff] }
 0x2c5   : > { %4369 = vrot.lane.b32.xlu0 %v12314_v17, %s15900_s30  ;;  %9411 = vmatmul.mubr.msk.f32.gmra.mrb[86].mxu0 %vm3016_vm9, %v2982_v43  ;;  %v2819_v50 = vsel %vm2808_vm3, %v2786_v22, %v16310_v29  ;;  %v2917_v8 = vsel %vm2907_vm6, %v2884_v32, %v16311_v28  ;;  %v1112_v24 = vmax.f32 %v1048_v51, 0.0  ;;  %v1050_v44 = vadd.f32 %v11673_v60, %v974_v26  ;;  %v16313_v11 = vld [vmem:[#allocation217_spill] sm:$0xff]  ;;  %v855_v51 = vpop.f32.mrb[41].mxu0  ;;  %v16315_v43 = vld [vmem:[#allocation168_spill] sm:$0xff] }
 0x2c6   : > { %v12354_v2 = vpop.permute.xlu1 %2685  ;;  %3237 = vmatprep.mubr.f32.mxu0 %v16047_v34  ;;  %1322 = vmatmul.mubr.f32.gmra.mrb[28].mxu1 %v1110_v19  ;;  %v2852_v33 = vsel %vm2841_vm4, %v2819_v50, %v16312_v1  ;;  %v2950_v25 = vsel %vm2940_vm7, %v2917_v8, %v16313_v11  ;;  %v1051_v22 = vadd.f32 %v11676_v21, %v975_v58  ;;  %v12379_v61 = vld [vmem:[#allocation2 + $0x16c] sm:$0xff]  ;;  %v859_v11 = vpop.f32.mrb[42].mxu0 }
 0x2c7   : > { %v12356_v56 = vpop.permute.xlu0 %2683  ;;  %9619 = vmatpush1.bf16.msra.mxu1 %v9618_v54  ;;  %1326 = vmatprep.mubr.f32.mxu1 %v1113_v36  ;;  %v2983_v6 = vsel %vm2973_vm8, %v2950_v25, %v12181_v16  ;;  %v976_v19 = vmul.f32 %v11670_v35, %v853_v53  ;;  %v9621_v49 = vpack.c.bf16 %v3631_v27, %v3630_v48  ;;  %v4019_v16 = vld [vmem:[#allocation2 + $0x174] sm:$0xff]  ;;  %v1114_v29 = vmax.f32 %v1050_v44, 0.0  ;;  %v16318_v28 = vld [vmem:[#allocation76_spill] sm:$0xff]  ;;  %v861_v44 = vpop.f32.mrb[43].mxu0  ;;  %v16320_v27 = vld [vmem:[#allocation131_spill] sm:$0xff] }
 0x2c8   : > { %4375 = vrot.lane.b32.xlu1 %v4018_v9, %s15900_s30  ;;  %v12374_v55 = vsel %vm2775_vm2, %v12101_v10, %v16314_v31  ;;  %v2885_v26 = vsel %vm2874_vm5, %v2852_v33, %v16315_v43  ;;  %v1115_v54 = vmax.f32 %v1051_v22, 0.0  ;;  %v977_v38 = vmul.f32 %v11662_v12, %v855_v51  ;;  %9620 = vmatprep.subr.bf16.mxu1 %v16309_v3  ;;  %v16316_v41 = vld [vmem:[#allocation153_spill] sm:$0xff]  ;;  %v16317_v9 = vld [vmem:[#allocation195_spill] sm:$0xff]  ;;  %v16319_v1 = vld [vmem:[#allocation220_spill] sm:$0xff] }
 0x2c9   : > { %4373 = vrot.lane.b32.xlu0 %v12346_v13, %s15900_s30  ;;  %9412 = vmatmul.mubr.msk.f32.gmra.mrb[88].mxu0 %vm3016_vm9, %v2983_v6  ;;  %v2820_v32 = vsel %vm2808_vm3, %v12274_v4, %v16316_v41  ;;  %v2918_v10 = vsel %vm2907_vm6, %v2885_v26, %v16317_v9  ;;  %v1052_v50 = vadd.f32 %v11673_v60, %v976_v19  ;;  %v3632_v25 = vld [vmem:[#allocation4 + $0x130] sm:$0xff]  ;;  %v3633_v22 = vld [vmem:[#allocation4 + $0x138] sm:$0xff]  ;;  %v16321_v19 = vld [vmem:[#allocation167_spill] sm:$0xff] }
 0x2ca   : > { %v12388_v36 = vpop.permute.xlu1 %2689  ;;  %3243 = vmatprep.mubr.f32.mxu0 %v16047_v34  ;;  %1327 = vmatmul.mubr.f32.gmra.mrb[30].mxu1 %v1112_v24  ;;  %v2853_v8 = vsel %vm2841_vm4, %v2820_v32, %v16318_v28  ;;  %v2951_v33 = vsel %vm2940_vm7, %v2918_v10, %v16319_v1  ;;  %v1053_v4 = vadd.f32 %v11676_v21, %v977_v38  ;;  %v16322_v26 = vld [vmem:[#allocation156_spill] sm:$0xff]  ;;  %v16324_v10 = vld [vmem:[#allocation81_spill] sm:$0xff] }
 0x2cb   : > { %v12390_v58 = vpop.permute.xlu0 %2687  ;;  %9622 = vmatpush1.bf16.msra.mxu1 %v9621_v49  ;;  %1331 = vmatprep.mubr.f32.mxu1 %v1115_v54  ;;  %v2984_v53 = vsel %vm2973_vm8, %v2951_v33, %v12218_v46  ;;  %v978_v24 = vmul.f32 %v11670_v35, %v859_v11  ;;  %v9624_v48 = vpack.c.bf16 %v3633_v22, %v3632_v25  ;;  %v4020_v46 = vld [vmem:[#allocation2 + $0x194] sm:$0xff]  ;;  %v12413_v49 = vld [vmem:[#allocation2 + $0x18c] sm:$0xff]  ;;  %v1116_v32 = vmax.f32 %v1052_v50, 0.0  ;;  %v865_v33 = vpop.f32.mrb[44].mxu0 }
 0x2cc   : > { %4379 = vrot.lane.b32.xlu1 %v4019_v16, %s15900_s30  ;;  %v12408_v6 = vsel %vm2775_vm2, %v12120_v39, %v16320_v27  ;;  %v2886_v51 = vsel %vm2874_vm5, %v2853_v8, %v16321_v19  ;;  %v1117_v31 = vmax.f32 %v1053_v4, 0.0  ;;  %v979_v43 = vmul.f32 %v11662_v12, %v861_v44  ;;  %9623 = vmatprep.subr.bf16.mxu1 %v16309_v3  ;;  %v16323_v54 = vld [vmem:[#allocation194_spill] sm:$0xff]  ;;  %v16325_v8 = vld [vmem:[#allocation219_spill] sm:$0xff]  ;;  %v3635_v11 = vld [vmem:[#allocation4 + $0x148] sm:$0xff]  ;;  %v867_v50 = vpop.f32.mrb[45].mxu0 }
 0x2cd   : > { %4377 = vrot.lane.b32.xlu0 %v12379_v61, %s15900_s30  ;;  %9413 = vmatmul.mubr.msk.f32.gmra.mrb[90].mxu0 %vm3016_vm9, %v2984_v53  ;;  %v2821_v16 = vsel %vm2808_vm3, %v12341_v5, %v16322_v26  ;;  %v2919_v39 = vsel %vm2907_vm6, %v2886_v51, %v16323_v54  ;;  %v1054_v9 = vadd.f32 %v11673_v60, %v978_v24  ;;  %v3634_v4 = vld [vmem:[#allocation4 + $0x140] sm:$0xff]  ;;  %v16326_v53 = vld [vmem:[#allocation132_spill] sm:$0xff]  ;;  %v16327_v44 = vld [vmem:[#allocation170_spill] sm:$0xff] }
 0x2ce   : > { %v12422_v38 = vpop.permute.xlu1 %2693  ;;  %3249 = vmatprep.mubr.f32.mxu0 %v16047_v34  ;;  %1332 = vmatmul.mubr.f32.gmra.mrb[32].mxu1 %v1114_v29  ;;  %v2854_v28 = vsel %vm2841_vm4, %v2821_v16, %v16324_v10  ;;  %v2952_v1 = vsel %vm2940_vm7, %v2919_v39, %v16325_v8  ;;  %v1055_v5 = vadd.f32 %v11676_v21, %v979_v43  ;;  %v12447_v27 = vld [vmem:[#allocation2 + $0x1ac] sm:$0xff]  ;;  %v16331_v8 = vld [vmem:[#allocation222_spill] sm:$0xff] }
 0x2cf   : > { %v12424_v41 = vpop.permute.xlu0 %2691  ;;  %9625 = vmatpush1.bf16.msra.mxu1 %v9624_v48  ;;  %1336 = vmatprep.mubr.f32.mxu1 %v1117_v31  ;;  %v2985_v25 = vsel %vm2973_vm8, %v2952_v1, %v12216_v18  ;;  %v980_v29 = vmul.f32 %v11670_v35, %v865_v33  ;;  %v9627_v22 = vpack.c.bf16 %v3635_v11, %v3634_v4  ;;  %v4021_v18 = vld [vmem:[#allocation2 + $0x1b4] sm:$0xff]  ;;  %v1118_v54 = vmax.f32 %v1054_v9, 0.0  ;;  %v16330_v10 = vld [vmem:[#allocation80_spill] sm:$0xff] }
 0x2d0   : > { %4383 = vrot.lane.b32.xlu1 %v4020_v46, %s15900_s30  ;;  %v12442_v24 = vsel %vm2775_vm2, %v12135_v63, %v16326_v53  ;;  %v2887_v48 = vsel %vm2874_vm5, %v2854_v28, %v16327_v44  ;;  %v1119_v19 = vmax.f32 %v1055_v5, 0.0  ;;  %v981_v51 = vmul.f32 %v11662_v12, %v867_v50  ;;  %9626 = vmatprep.subr.bf16.mxu1 %v16309_v3  ;;  %v16328_v46 = vld [vmem:[#allocation155_spill] sm:$0xff]  ;;  %v16329_v43 = vld [vmem:[#allocation197_spill] sm:$0xff]  ;;  %v871_v5 = vpop.f32.mrb[46].mxu0  ;;  %v3637_v4 = vld [vmem:[#allocation4 + $0x158] sm:$0xff] }
 0x2d1   : > { %4381 = vrot.lane.b32.xlu0 %v12413_v49, %s15900_s30  ;;  %9414 = vmatmul.mubr.msk.f32.gmra.mrb[92].mxu0 %vm3016_vm9, %v2985_v25  ;;  %v2822_v31 = vsel %vm2808_vm3, %v12309_v40, %v16328_v46  ;;  %v2920_v63 = vsel %vm2907_vm6, %v2887_v48, %v16329_v43  ;;  %v1056_v39 = vadd.f32 %v11673_v60, %v980_v29  ;;  %v3636_v33 = vld [vmem:[#allocation4 + $0x150] sm:$0xff]  ;;  %v873_v9 = vpop.f32.mrb[47].mxu0  ;;  %v16335_v46 = vld [vmem:[#allocation196_spill] sm:$0xff] }
 0x2d2   : > { %v12456_v26 = vpop.permute.xlu1 %2697  ;;  %3255 = vmatprep.mubr.f32.mxu0 %v16047_v34  ;;  %1337 = vmatmul.mubr.f32.gmra.mrb[34].mxu1 %v1116_v32  ;;  %v2855_v28 = vsel %vm2841_vm4, %v2822_v31, %v16330_v10  ;;  %v2953_v1 = vsel %vm2940_vm7, %v2920_v63, %v16331_v8  ;;  %v1057_v40 = vadd.f32 %v11676_v21, %v981_v51  ;;  %v16332_v29 = vld [vmem:[#allocation133_spill] sm:$0xff] }
 0x2d3   : > { %v12458_v16 = vpop.permute.xlu0 %2695  ;;  %9628 = vmatpush1.bf16.msra.mxu1 %v9627_v22  ;;  %1341 = vmatprep.mubr.f32.mxu1 %v1119_v19  ;;  %v2986_v11 = vsel %vm2973_vm8, %v2953_v1, %v12252_v52  ;;  %v982_v32 = vmul.f32 %v11670_v35, %v871_v5  ;;  %v9630_v25 = vpack.c.bf16 %v3637_v4, %v3636_v33  ;;  %v16333_v22 = vld [vmem:[#allocation169_spill] sm:$0xff]  ;;  %v16334_v19 = vld [vmem:[#allocation158_spill] sm:$0xff]  ;;  %v1120_v63 = vmax.f32 %v1056_v39, 0.0  ;;  %v877_v5 = vpop.f32.mrb[48].mxu0  ;;  %v3638_v33 = vld [vmem:[#allocation4 + $0x160] sm:$0xff] }
 0x2d4   : > { %4387 = vrot.lane.b32.xlu1 %v4021_v18, %s15900_s30  ;;  %v12476_v50 = vsel %vm2775_vm2, %v12154_v20, %v16332_v29  ;;  %v2888_v53 = vsel %vm2874_vm5, %v2855_v28, %v16333_v22  ;;  %v4022_v52 = vld [vmem:[#allocation2 + $0x1d4] sm:$0xff]  ;;  %v12481_v44 = vld [vmem:[#allocation2 + $0x1cc] sm:$0xff]  ;;  %v1121_v48 = vmax.f32 %v1057_v40, 0.0  ;;  %v983_v18 = vmul.f32 %v11662_v12, %v873_v9  ;;  %9629 = vmatprep.subr.bf16.mxu1 %v16309_v3  ;;  %v879_v39 = vpop.f32.mrb[49].mxu0 }
 0x2d5   : > { %4385 = vrot.lane.b32.xlu0 %v12447_v27, %s15900_s30  ;;  %9415 = vmatmul.mubr.msk.f32.gmra.mrb[94].mxu0 %vm3016_vm9, %v2986_v11  ;;  %v2823_v51 = vsel %vm2808_vm3, %v12408_v6, %v16334_v19  ;;  %v2921_v20 = vsel %vm2907_vm6, %v2888_v53, %v16335_v46  ;;  %v1058_v10 = vadd.f32 %v11673_v60, %v982_v32  ;;  %v16336_v28 = vld [vmem:[#allocation85_spill] sm:$0xff]  ;;  %v3639_v4 = vld [vmem:[#allocation4 + $0x168] sm:$0xff]  ;;  %v16338_v9 = vld [vmem:[#allocation134_spill] sm:$0xff] }
 0x2d6   : > { %v12490_v31 = vpop.permute.xlu1 %2701  ;;  %3261 = vmatprep.mubr.f32.mxu0 %v16047_v34  ;;  %1342 = vmatmul.mubr.f32.gmra.mrb[36].mxu1 %v1118_v54  ;;  %v2856_v8 = vsel %vm2841_vm4, %v2823_v51, %v16336_v28  ;;  %v16337_v1 = vld [vmem:[#allocation221_spill] sm:$0xff]  ;;  %v1059_v6 = vadd.f32 %v11676_v21, %v983_v18  ;;  %v984_v54 = vmul.f32 %v11670_v35, %v877_v5  ;;  %v16339_v29 = vld [vmem:[#allocation172_spill] sm:$0xff]  ;;  %v16341_v51 = vld [vmem:[#allocation199_spill] sm:$0xff] }
 0x2d7   : > { %v12492_v43 = vpop.permute.xlu0 %2699  ;;  %v2954_v40 = vsel %vm2940_vm7, %v2921_v20, %v16337_v1  ;;  %9631 = vmatpush1.bf16.msra.mxu1 %v9630_v25  ;;  %1346 = vmatprep.mubr.f32.mxu1 %v1121_v48  ;;  %v9633_v32 = vpack.c.bf16 %v3639_v4, %v3638_v33  ;;  %v12510_v25 = vsel %vm2775_vm2, %v12170_v15, %v16338_v9  ;;  %v12515_v53 = vld [vmem:[#allocation2 + $0x1ec] sm:$0xff]  ;;  %v1122_v28 = vmax.f32 %v1058_v10, 0.0  ;;  %v883_v33 = vpop.f32.mrb[50].mxu0  ;;  %v16344_v9 = vld [vmem:[#allocation135_spill] sm:$0xff] }
 0x2d8   : > { %v2987_v11 = vsel %vm2973_vm8, %v2954_v40, %v12250_v7  ;;  %4391 = vrot.lane.b32.xlu1 %v4022_v52, %s15900_s30  ;;  %v2889_v22 = vsel %vm2874_vm5, %v2856_v8, %v16339_v29  ;;  %v4023_v7 = vld [vmem:[#allocation2 + $0x1f4] sm:$0xff]  ;;  %v1123_v52 = vmax.f32 %v1059_v6, 0.0  ;;  %v985_v48 = vmul.f32 %v11662_v12, %v879_v39  ;;  %9632 = vmatprep.subr.bf16.mxu1 %v16309_v3  ;;  %v16342_v1 = vld [vmem:[#allocation84_spill] sm:$0xff]  ;;  %v885_v10 = vpop.f32.mrb[51].mxu0  ;;  %v16345_v29 = vld [vmem:[#allocation171_spill] sm:$0xff] }
 0x2d9   : > { %4389 = vrot.lane.b32.xlu0 %v12481_v44, %s15900_s30  ;;  %9416 = vmatmul.mubr.msk.f32.gmra.mrb[96].mxu0 %vm3016_vm9, %v2987_v11  ;;  %v16340_v18 = vld [vmem:[#allocation157_spill] sm:$0xff]  ;;  %v2922_v15 = vsel %vm2907_vm6, %v2889_v22, %v16341_v51  ;;  %v1060_v8 = vadd.f32 %v11673_v60, %v984_v54  ;;  %v16343_v6 = vld [vmem:[#allocation224_spill] sm:$0xff]  ;;  %v3641_v11 = vld [vmem:[#allocation4 + $0x178] sm:$0xff] }
 0x2da   : > { %v2824_v19 = vsel %vm2808_vm3, %v12374_v55, %v16340_v18  ;;  %v12524_v46 = vpop.permute.xlu1 %2705  ;;  %3267 = vmatprep.mubr.f32.mxu0 %v16047_v34  ;;  %1347 = vmatmul.mubr.f32.gmra.mrb[38].mxu1 %v1120_v63  ;;  %v2955_v5 = vsel %vm2940_vm7, %v2922_v15, %v16343_v6  ;;  %v1061_v55 = vadd.f32 %v11676_v21, %v985_v48  ;;  %v3640_v4 = vld [vmem:[#allocation4 + $0x170] sm:$0xff]  ;;  %v16346_v18 = vld [vmem:[#allocation159_spill] sm:$0xff]  ;;  %v16347_v51 = vld [vmem:[#allocation198_spill] sm:$0xff] }
 0x2db   : > { %v12526_v20 = vpop.permute.xlu0 %2703  ;;  %v2857_v40 = vsel %vm2841_vm4, %v2824_v19, %v16342_v1  ;;  %9634 = vmatpush1.bf16.msra.mxu1 %v9633_v32  ;;  %1351 = vmatprep.mubr.f32.mxu1 %v1123_v52  ;;  %v2988_v39 = vsel %vm2973_vm8, %v2955_v5, %v12288_v42  ;;  %v986_v63 = vmul.f32 %v11670_v35, %v883_v33  ;;  %v4024_v42 = vld [vmem:[#allocation2 + $0x214] sm:$0xff]  ;;  %v12549_v52 = vld [vmem:[#allocation2 + $0x20c] sm:$0xff]  ;;  %v16349_v33 = vld [vmem:[#allocation223_spill] sm:$0xff] }
 0x2dc   : > { %4395 = vrot.lane.b32.xlu1 %v4023_v7, %s15900_s30  ;;  %v9636_v54 = vpack.c.bf16 %v3641_v11, %v3640_v4  ;;  %v12544_v32 = vsel %vm2775_vm2, %v12189_v57, %v16344_v9  ;;  %v2890_v22 = vsel %vm2874_vm5, %v2857_v40, %v16345_v29  ;;  %v1125_v7 = vmax.f32 %v1061_v55, 0.0  ;;  %9635 = vmatprep.subr.bf16.mxu1 %v16309_v3  ;;  %v16348_v5 = vld [vmem:[#allocation89_spill] sm:$0xff]  ;;  %v889_v11 = vpop.f32.mrb[52].mxu0  ;;  %v16350_v29 = vld [vmem:[#allocation136_spill] sm:$0xff] }
 0x2dd   : > { %4393 = vrot.lane.b32.xlu0 %v12515_v53, %s15900_s30  ;;  %9417 = vmatmul.mubr.msk.f32.gmra.mrb[98].mxu0 %vm3016_vm9, %v2988_v39  ;;  %v987_v48 = vmul.f32 %v11662_v12, %v885_v10  ;;  %v2825_v19 = vsel %vm2808_vm3, %v12476_v50, %v16346_v18  ;;  %v2923_v57 = vsel %vm2907_vm6, %v2890_v22, %v16347_v51  ;;  %v1124_v40 = vmax.f32 %v1060_v8, 0.0  ;;  %v3642_v39 = vld [vmem:[#allocation4 + $0x180] sm:$0xff]  ;;  %v3643_v10 = vld [vmem:[#allocation4 + $0x188] sm:$0xff]  ;;  %v891_v8 = vpop.f32.mrb[53].mxu0  ;;  %v16351_v22 = vld [vmem:[#allocation174_spill] sm:$0xff] }
 0x2de   : > { %v12558_v15 = vpop.permute.xlu1 %2709  ;;  %3273 = vmatprep.mubr.f32.mxu0 %v16047_v34  ;;  %v1062_v6 = vadd.f32 %v11673_v60, %v986_v63  ;;  %1352 = vmatmul.mubr.f32.gmra.mrb[40].mxu1 %v1122_v28  ;;  %v2858_v55 = vsel %vm2841_vm4, %v2825_v19, %v16348_v5  ;;  %v2956_v4 = vsel %vm2940_vm7, %v2923_v57, %v16349_v33  ;;  %v16352_v19 = vld [vmem:[#allocation43_spill] sm:$0xff]  ;;  %v16353_v57 = vld [vmem:[#allocation201_spill] sm:$0xff] }
 0x2df   : > { %v12560_v1 = vpop.permute.xlu0 %2707  ;;  %v1063_v50 = vadd.f32 %v11676_v21, %v987_v48  ;;  %9637 = vmatpush1.bf16.msra.mxu1 %v9636_v54  ;;  %1356 = vmatprep.mubr.f32.mxu1 %v1125_v7  ;;  %v2989_v9 = vsel %vm2973_vm8, %v2956_v4, %v12286_v30  ;;  %v988_v28 = vmul.f32 %v11670_v35, %v889_v11  ;;  %v4025_v30 = vld [vmem:[#allocation2 + $0x234] sm:$0xff]  ;;  %v12583_v48 = vld [vmem:[#allocation2 + $0x22c] sm:$0xff] }
 0x2e0   : > { %4399 = vrot.lane.b32.xlu1 %v4024_v42, %s15900_s30  ;;  %v9639_v63 = vpack.c.bf16 %v3643_v10, %v3642_v39  ;;  %v12578_v54 = vsel %vm2775_vm2, %v12205_v59, %v16350_v29  ;;  %v2891_v7 = vsel %vm2874_vm5, %v2858_v55, %v16351_v22  ;;  %v989_v18 = vmul.f32 %v11662_v12, %v891_v8  ;;  %v16355_v39 = vld [vmem:[#allocation226_spill] sm:$0xff]  ;;  %v3644_v8 = vld [vmem:[#allocation4 + $0x190] sm:$0xff] }
 0x2e1   : > { %4397 = vrot.lane.b32.xlu0 %v12549_v52, %s15900_s30  ;;  %9418 = vmatmul.mubr.msk.f32.gmra.mrb[100].mxu0 %vm3016_vm9, %v2989_v9  ;;  %v1127_v42 = vmax.f32 %v1063_v50, 0.0  ;;  %v2826_v51 = vsel %vm2808_vm3, %v12442_v24, %v16352_v19  ;;  %v2924_v59 = vsel %vm2907_vm6, %v2891_v7, %v16353_v57  ;;  %v1126_v33 = vmax.f32 %v1062_v6, 0.0  ;;  %v16354_v50 = vld [vmem:[#allocation88_spill] sm:$0xff]  ;;  %v895_v9 = vpop.f32.mrb[54].mxu0  ;;  %v3645_v29 = vld [vmem:[#allocation4 + $0x198] sm:$0xff]  ;;  %v16356_v7 = vld [vmem:[#allocation137_spill] sm:$0xff] }
 0x2e2   : > { %9638 = vmatprep.subr.bf16.mxu1 %v16309_v3  ;;  %v12592_v5 = vpop.permute.xlu1 %4223  ;;  %3279 = vmatprep.mubr.f32.mxu0 %v16047_v34  ;;  %v1064_v4 = vadd.f32 %v11673_v60, %v988_v28  ;;  %v2859_v11 = vsel %vm2841_vm4, %v2826_v51, %v16354_v50  ;;  %v2957_v10 = vsel %vm2940_vm7, %v2924_v59, %v16355_v39  ;;  %v897_v6 = vpop.f32.mrb[55].mxu0  ;;  %v4026_v19 = vld [vmem:[#allocation2 + $0x254] sm:$0xff]  ;;  %v16359_v50 = vld [vmem:[#allocation200_spill] sm:$0xff] }
 0x2e3   : > { %v12594_v55 = vpop.permute.xlu0 %4221  ;;  %1357 = vmatmul.mubr.f32.gmra.mrb[42].mxu1 %v1124_v40  ;;  %v1065_v24 = vadd.f32 %v11676_v21, %v989_v18  ;;  %v2990_v22 = vsel %vm2973_vm8, %v2957_v10, %v12323_v45  ;;  %v990_v40 = vmul.f32 %v11670_v35, %v895_v9  ;;  %v9642_v28 = vpack.c.bf16 %v3645_v29, %v3644_v8  ;;  %v16357_v18 = vld [vmem:[#allocation173_spill] sm:$0xff] }
 0x2e4   : > { %9640 = vmatpush1.bf16.msra.mxu1 %v9639_v63  ;;  %1361 = vmatprep.mubr.f32.mxu1 %v1127_v42  ;;  %v2796_v63 = vsel %vm2775_vm2, %v12224_v62, %v16356_v7  ;;  %v2892_v42 = vsel %vm2874_vm5, %v2859_v11, %v16357_v18  ;;  %v12615_v45 = vld [vmem:[#allocation2 + $0x24c] sm:$0xff]  ;;  %v991_v51 = vmul.f32 %v11662_v12, %v897_v6  ;;  %v1128_v10 = vmax.f32 %v1064_v4, 0.0  ;;  %v901_v6 = vpop.f32.mrb[56].mxu0  ;;  %v3646_v7 = vld [vmem:[#allocation4 + $0x1a0] sm:$0xff] }
 0x2e5   : > { %4403 = vrot.lane.b32.xlu1 %v4025_v30, %s15900_s30  ;;  %4401 = vrot.lane.b32.xlu0 %v12583_v48, %s15900_s30  ;;  %v1129_v30 = vmax.f32 %v1065_v24, 0.0  ;;  %v16358_v57 = vld [vmem:[#allocation45_spill] sm:$0xff]  ;;  %v2925_v62 = vsel %vm2907_vm6, %v2892_v42, %v16359_v50  ;;  %v1066_v24 = vadd.f32 %v11673_v60, %v990_v40  ;;  %v3647_v18 = vld [vmem:[#allocation4 + $0x1a8] sm:$0xff]  ;;  %v903_v4 = vpop.f32.mrb[57].mxu0 }
 0x2e6   : > { %9419 = vmatmul.mubr.msk.f32.gmra.mrb[102].mxu0 %vm3016_vm9, %v2990_v22  ;;  %9641 = vmatprep.subr.bf16.mxu1 %v16309_v3  ;;  %v2827_v59 = vsel %vm2808_vm3, %v12544_v32, %v16358_v57  ;;  %v12624_v39 = vpop.permute.xlu1 %4227  ;;  %v16360_v9 = vld [vmem:[#allocation93_spill] sm:$0xff]  ;;  %v1067_v32 = vadd.f32 %v11676_v21, %v991_v51  ;;  %v9645_v40 = vpack.c.bf16 %v3647_v18, %v3646_v7  ;;  %v16362_v57 = vld [vmem:[#allocation44_spill] sm:$0xff] }
 0x2e7   : > { %v12626_v11 = vpop.permute.xlu0 %4225  ;;  %3285 = vmatprep.mubr.f32.mxu0 %v16047_v34  ;;  %1362 = vmatmul.mubr.f32.gmra.mrb[44].mxu1 %v1126_v33  ;;  %v2860_v8 = vsel %vm2841_vm4, %v2827_v59, %v16360_v9  ;;  %v16361_v29 = vld [vmem:[#allocation225_spill] sm:$0xff]  ;;  %v992_v33 = vmul.f32 %v11670_v35, %v901_v6  ;;  %v16363_v51 = vld [vmem:[#allocation176_spill] sm:$0xff]  ;;  %v993_v50 = vmul.f32 %v11662_v12, %v903_v4 }
 0x2e8   : > { %v2958_v22 = vsel %vm2940_vm7, %v2925_v62, %v16361_v29  ;;  %9643 = vmatpush1.bf16.msra.mxu1 %v9642_v28  ;;  %1366 = vmatprep.mubr.f32.mxu1 %v1129_v30  ;;  %v2828_v28 = vsel %vm2808_vm3, %v12510_v25, %v16362_v57  ;;  %v2893_v30 = vsel %vm2874_vm5, %v2860_v8, %v16363_v51  ;;  %v4027_v59 = vld [vmem:[#allocation2 + $0x274] sm:$0xff]  ;;  %v16364_v62 = vld [vmem:[#allocation47_spill] sm:$0xff]  ;;  %v1130_v8 = vmax.f32 %v1066_v24, 0.0  ;;  %v907_v57 = vpop.f32.mrb[58].mxu0 }
 0x2e9   : > { %v2991_v42 = vsel %vm2973_vm8, %v2958_v22, %v12321_v14  ;;  %4407 = vrot.lane.b32.xlu1 %v4026_v19, %s15900_s30  ;;  %4405 = vrot.lane.b32.xlu0 %v12615_v45, %s15900_s30  ;;  %v12647_v14 = vld [vmem:[#allocation2 + $0x26c] sm:$0xff]  ;;  %v1131_v19 = vmax.f32 %v1067_v32, 0.0  ;;  %v2829_v9 = vsel %vm2808_vm3, %v2796_v63, %v16364_v62  ;;  %v16365_v29 = vld [vmem:[#allocation203_spill] sm:$0xff]  ;;  %v1068_v7 = vadd.f32 %v11673_v60, %v992_v33  ;;  %v909_v24 = vpop.f32.mrb[59].mxu0 }
 0x2ea   : > { %9420 = vmatmul.mubr.msk.f32.gmra.mrb[104].mxu0 %vm3016_vm9, %v2991_v42  ;;  %9644 = vmatprep.subr.bf16.mxu1 %v16309_v3  ;;  %v2926_v22 = vsel %vm2907_vm6, %v2893_v30, %v16365_v29  ;;  %v12655_v25 = vpop.permute.xlu1 %4231  ;;  %v16366_v32 = vld [vmem:[#allocation92_spill] sm:$0xff]  ;;  %v1069_v63 = vadd.f32 %v11676_v21, %v993_v50  ;;  %v3648_v51 = vld [vmem:[#allocation4 + $0x1b0] sm:$0xff]  ;;  %v3649_v30 = vld [vmem:[#allocation4 + $0x1b8] sm:$0xff] }
 0x2eb   : > { %v12657_v6 = vpop.permute.xlu0 %4229  ;;  %3291 = vmatprep.mubr.f32.mxu0 %v16047_v34  ;;  %1367 = vmatmul.mubr.f32.gmra.mrb[46].mxu1 %v1128_v10  ;;  %v2861_v18 = vsel %vm2841_vm4, %v2828_v28, %v16366_v32  ;;  %v16367_v42 = vld [vmem:[#allocation228_spill] sm:$0xff]  ;;  %v994_v10 = vmul.f32 %v11670_v35, %v907_v57  ;;  %v9648_v33 = vpack.c.bf16 %v3649_v30, %v3648_v51  ;;  %v16368_v28 = vld [vmem:[#allocation97_spill] sm:$0xff]  ;;  %v16370_v32 = vld [vmem:[#allocation202_spill] sm:$0xff] }
 0x2ec   : > { %v2959_v4 = vsel %vm2940_vm7, %v2926_v22, %v16367_v42  ;;  %9646 = vmatpush1.bf16.msra.mxu1 %v9645_v40  ;;  %1371 = vmatprep.mubr.f32.mxu1 %v1131_v19  ;;  %v2862_v50 = vsel %vm2841_vm4, %v2829_v9, %v16368_v28  ;;  %v16369_v40 = vld [vmem:[#allocation175_spill] sm:$0xff]  ;;  %v1133_v22 = vmax.f32 %v1069_v63, 0.0  ;;  %v1132_v9 = vmax.f32 %v1068_v7, 0.0  ;;  %v16371_v51 = vld [vmem:[#allocation178_spill] sm:$0xff] }
 0x2ed   : > { %v2992_v62 = vsel %vm2973_vm8, %v2959_v4, %v12356_v56  ;;  %4411 = vrot.lane.b32.xlu1 %v4027_v59, %s15900_s30  ;;  %4409 = vrot.lane.b32.xlu0 %v12647_v14, %s15900_s30  ;;  %v2894_v19 = vsel %vm2874_vm5, %v2861_v18, %v16369_v40  ;;  %v4028_v29 = vld [vmem:[#allocation2 + $0x104] sm:$0xff]  ;;  %v995_v56 = vmul.f32 %v11662_v12, %v909_v24  ;;  %v913_v59 = vpop.f32.mrb[60].mxu0  ;;  %s16624_s30 = smov 8  }
 0x2ee   : > { %9421 = vmatmul.mubr.msk.f32.gmra.mrb[106].mxu0 %vm3016_vm9, %v2992_v62  ;;  %9647 = vmatprep.subr.bf16.mxu1 %v16309_v3  ;;  %v2927_v42 = vsel %vm2907_vm6, %v2894_v19, %v16370_v32  ;;  %v12681_v4 = vpop.permute.xlu1 %4235  ;;  %v1070_v18 = vadd.f32 %v11673_v60, %v994_v10  ;;  %v996_v63 = vmul.f32 %v11670_v35, %v913_v59  ;;  %v16372_v62 = vld [vmem:[#allocation227_spill] sm:$0xff]  ;;  %v915_v40 = vpop.f32.mrb[61].mxu0  ;;  %v3651_v32 = vld [vmem:[#allocation4 + $0x1c8] sm:$0xff]  ;;  %v16374_v59 = vld [vmem:[#allocation46_spill] sm:$0xff] }
 0x2ef   : > { %v12683_v57 = vpop.permute.xlu0 %4233  ;;  %3297 = vmatprep.mubr.f32.mxu0 %v16047_v34  ;;  %1372 = vmatmul.mubr.f32.gmra.mrb[48].mxu1 %v1130_v8  ;;  %v2895_v30 = vsel %vm2874_vm5, %v2862_v50, %v16371_v51  ;;  %v2960_v24 = vsel %vm2940_vm7, %v2927_v42, %v16372_v62  ;;  %v1071_v28 = vadd.f32 %v11676_v21, %v995_v56  ;;  %v3650_v19 = vld [vmem:[#allocation4 + $0x1c0] sm:$0xff]  ;;  %v919_v10 = vpop.f32.mrb[62].mxu0  ;;  %v16375_v56 = vld [vmem:[#allocation205_spill] sm:$0xff] }
 0x2f0   : > { %9649 = vmatpush1.bf16.msra.mxu1 %v9648_v33  ;;  %1376 = vmatprep.mubr.f32.mxu1 %v1133_v22  ;;  %v2993_v7 = vsel %vm2973_vm8, %v2960_v24, %v12354_v2  ;;  %v997_v8 = vmul.f32 %v11662_v12, %v915_v40  ;;  %v9651_v50 = vpack.c.bf16 %v3651_v32, %v3650_v19  ;;  %v4030_v42 = vld [vmem:[#allocation2 + $0x124] sm:$0xff] }
 0x2f1   : > { %4479 = vrot.lane.b32.xlu1 %v12279_v37, %s16373_s24  ;;  %4477 = vrot.lane.b32.xlu0 %v4028_v29, %s16373_s24  ;;  %v2830_v33 = vsel %vm2808_vm3, %v12578_v54, %v16374_v59  ;;  %v2928_v22 = vsel %vm2907_vm6, %v2895_v30, %v16375_v56  ;;  %v1135_v2 = vmax.f32 %v1071_v28, 0.0  ;;  %v12706_v51 = vadd.f32 %v11673_v60, %v996_v63  ;;  %v921_v37 = vpop.f32.mrb[63].mxu0  ;;  %v16377_v28 = vld [vmem:[#allocation96_spill] sm:$0xff]  ;;  %v3653_v59 = vld [vmem:[#allocation4 + $0x1d8] sm:$0xff] }
 0x2f2   : > { %9422 = vmatmul.mubr.msk.f32.gmra.mrb[108].mxu0 %vm3016_vm9, %v2993_v7  ;;  %9650 = vmatprep.subr.bf16.mxu1 %v16309_v3  ;;  %v12709_v29 = vpop.permute.xlu1 %4239  ;;  %v1134_v54 = vmax.f32 %v1070_v18, 0.0  ;;  %v1073_v24 = vadd.f32 %v11676_v21, %v997_v8  ;;  %v998_v30 = vmul.f32 %v11670_v35, %v919_v10  ;;  %v999_v40 = vmul.f32 %v11662_v12, %v921_v37  ;;  %v12721_v32 = vpop.f32.mrb[64].mxu0  ;;  %v3652_v7 = vld [vmem:[#allocation4 + $0x1d0] sm:$0xff]  ;;  %v16379_v10 = vld [vmem:[#allocation95_spill] sm:$0xff] }
 0x2f3   : > { %16376 = vst [vmem:[#allocation62_spill] sm:$0xff] %v12709_v29  ;;  %v12711_v62 = vpop.permute.xlu0 %4237  ;;  %3303 = vmatprep.mubr.f32.mxu0 %v16047_v34  ;;  %1377 = vmatmul.mubr.f32.gmra.mrb[50].mxu1 %v1132_v9  ;;  %v2863_v63 = vsel %vm2841_vm4, %v2830_v33, %v16377_v28  ;;  %v2961_v19 = vsel %vm2940_vm7, %v2928_v22, %v11925_v23  ;;  %16378 = vst [vmem:[#allocation63_spill] sm:$0xff] %v12721_v32  ;;  %v1240_v9 = vpop.f32.mrb[65].mxu0  ;;  %v9921_v23 = vld [vmem:[#allocation2 + $0x226] sm:$0xff]  ;;  %v16380_v33 = vld [vmem:[#allocation177_spill] sm:$0xff] }
 0x2f4   : > { %9652 = vmatpush1.bf16.msra.mxu1 %v9651_v50  ;;  %1381 = vmatprep.mubr.f32.mxu1 %v1135_v2  ;;  %v2994_v18 = vsel %vm2973_vm8, %v2961_v19, %v12390_v58  ;;  %v1137_v12 = vmax.f32 %v1073_v24, 0.0  ;;  %v1075_v35 = vadd.f32 %v11676_v21, %v999_v40  ;;  %v9654_v8 = vpack.c.bf16 %v3653_v59, %v3652_v7  ;;  %v4032_v58 = vld [vmem:[#allocation2 + $0x144] sm:$0xff]  ;;  %v12734_v22 = vpop.f32.mrb[66].mxu0  ;;  %v16387_v7 = vld [vmem:[#allocation229_spill] sm:$0xff] }
 0x2f5   : > { %4483 = vrot.lane.b32.xlu1 %v12314_v17, %s16373_s24  ;;  %4481 = vrot.lane.b32.xlu0 %v4030_v42, %s16373_s24  ;;  %v2765_v50 = vsel %vm432_vm0, %v9921_v23, %v16379_v10  ;;  %v2896_v56 = vsel %vm2874_vm5, %v2863_v63, %v16380_v33  ;;  %16381 = vst [vmem:[#allocation66_spill] sm:$0xff] %v12734_v22  ;;  %v16382_v17 = vld [vmem:[#allocation139_spill] sm:$0xff]  ;;  %v16383_v21 = vld [vmem:[#allocation204_spill] sm:$0xff]  ;;  %v1136_v40 = vmax.f32 %v12706_v51, 0.0  ;;  %v16386_v63 = vld [vmem:[#allocation49_spill] sm:$0xff]  ;;  %v1245_v9 = vpop.f32.mrb[67].mxu0 }
 0x2f6   : > { %9423 = vmatmul.mubr.msk.f32.gmra.mrb[110].mxu0 %vm3016_vm9, %v2994_v18  ;;  %9653 = vmatprep.subr.bf16.mxu1 %v16309_v3  ;;  %v2798_v42 = vsel %vm2775_vm2, %v2765_v50, %v16382_v17  ;;  %v2929_v2 = vsel %vm2907_vm6, %v2896_v56, %v16383_v21  ;;  %v12741_v37 = vpop.permute.xlu1 %4243  ;;  %v1074_v28 = vadd.f32 %v11673_v60, %v998_v30  ;;  %v1139_v18 = vmax.f32 %v1075_v35, 0.0  ;;  %v3654_v23 = vld [vmem:[#allocation4 + $0x1e0] sm:$0xff]  ;;  %v3655_v10 = vld [vmem:[#allocation4 + $0x1e8] sm:$0xff]  ;;  %v16388_v50 = vld [vmem:[#allocation101_spill] sm:$0xff]  ;;  %v12759_v60 = vpop.f32.mrb[68].mxu0 }
 0x2f7   : > { %16384 = vst [vmem:[#allocation67_spill] sm:$0xff] %v12741_v37  ;;  %v12743_v24 = vpop.permute.xlu0 %4241  ;;  %3309 = vmatprep.mubr.f32.mxu0 %v16047_v34  ;;  %1382 = vmatmul.mubr.f32.gmra.mrb[52].mxu1 %v1134_v54  ;;  %v2831_v19 = vsel %vm2808_vm3, %v2798_v42, %v16386_v63  ;;  %v2962_v59 = vsel %vm2940_vm7, %v2929_v2, %v16387_v7  ;;  %16389 = vst [vmem:[#allocation69_spill] sm:$0xff] %v12759_v60  ;;  %v9922_v30 = vld [vmem:[#allocation2 + $0x22e] sm:$0xff]  ;;  %v16390_v35 = vld [vmem:[#allocation94_spill] sm:$0xff]  ;;  %v1250_v42 = vpop.f32.mrb[69].mxu0 }
 0x2f8   : > { %16385 = vst [vmem:[#allocation68_spill] sm:$0xff] %v12743_v24  ;;  %9655 = vmatpush1.bf16.msra.mxu1 %v9654_v8  ;;  %1386 = vmatprep.mubr.f32.mxu1 %v1137_v12  ;;  %v2864_v33 = vsel %vm2841_vm4, %v2831_v19, %v16388_v50  ;;  %v2995_v51 = vsel %vm2973_vm8, %v2962_v59, %v12388_v36  ;;  %v16391_v8 = vld [vmem:[#allocation181_spill] sm:$0xff]  ;;  %v4034_v17 = vld [vmem:[#allocation2 + $0x164] sm:$0xff]  ;;  %v16392_v36 = vld [vmem:[#allocation138_spill] sm:$0xff]  ;;  %v1138_v19 = vmax.f32 %v1074_v28, 0.0 }
 0x2f9   : > { %4487 = vrot.lane.b32.xlu1 %v12346_v13, %s16373_s24  ;;  %4485 = vrot.lane.b32.xlu0 %v4032_v58, %s16373_s24  ;;  %v9657_v54 = vpack.c.bf16 %v3655_v10, %v3654_v23  ;;  %v2766_v12 = vsel %vm432_vm0, %v9922_v30, %v16390_v35  ;;  %v2897_v56 = vsel %vm2874_vm5, %v2864_v33, %v16391_v8  ;;  %v16393_v58 = vld [vmem:[#allocation207_spill] sm:$0xff]  ;;  %v16396_v7 = vld [vmem:[#allocation48_spill] sm:$0xff]  ;;  %v3656_v10 = vld [vmem:[#allocation4 + $0x1f0] sm:$0xff] }
 0x2fa   : > { %9424 = vmatmul.mubr.msk.f32.gmra.mrb[112].mxu0 %vm3016_vm9, %v2995_v51  ;;  %9656 = vmatprep.subr.bf16.mxu1 %v16309_v3  ;;  %v2799_v13 = vsel %vm2775_vm2, %v2766_v12, %v16392_v36  ;;  %v2930_v21 = vsel %vm2907_vm6, %v2897_v56, %v16393_v58  ;;  %v12771_v2 = vpop.permute.xlu1 %4247  ;;  %v16397_v9 = vld [vmem:[#allocation231_spill] sm:$0xff]  ;;  %v3657_v50 = vld [vmem:[#allocation4 + $0x1f8] sm:$0xff]  ;;  %v16398_v33 = vld [vmem:[#allocation100_spill] sm:$0xff] }
 0x2fb   : > { %16394 = vst [vmem:[#allocation115_spill] sm:$0xff] %v12771_v2  ;;  %v12773_v63 = vpop.permute.xlu0 %4245  ;;  %3315 = vmatprep.mubr.f32.mxu0 %v16047_v34  ;;  %1387 = vmatmul.mubr.f32.gmra.mrb[54].mxu1 %v1136_v40  ;;  %v2832_v59 = vsel %vm2808_vm3, %v2799_v13, %v16396_v7  ;;  %v2963_v23 = vsel %vm2940_vm7, %v2930_v21, %v16397_v9  ;;  %v9923_v28 = vld [vmem:[#allocation2 + $0x246] sm:$0xff]  ;;  %v16401_v56 = vld [vmem:[#allocation141_spill] sm:$0xff]  ;;  %v16402_v42 = vld [vmem:[#allocation206_spill] sm:$0xff] }
 0x2fc   : > { %16395 = vst [vmem:[#allocation70_spill] sm:$0xff] %v12773_v63  ;;  %9658 = vmatpush1.bf16.msra.mxu1 %v9657_v54  ;;  %1391 = vmatprep.mubr.f32.mxu1 %v1139_v18  ;;  %v2865_v51 = vsel %vm2841_vm4, %v2832_v59, %v16398_v33  ;;  %v2996_v30 = vsel %vm2973_vm8, %v2963_v23, %v12424_v41  ;;  %v16399_v35 = vld [vmem:[#allocation99_spill] sm:$0xff]  ;;  %v16400_v54 = vld [vmem:[#allocation180_spill] sm:$0xff]  ;;  %v16406_v21 = vld [vmem:[#allocation230_spill] sm:$0xff] }
 0x2fd   : > { %4491 = vrot.lane.b32.xlu1 %v12379_v61, %s16373_s24  ;;  %4489 = vrot.lane.b32.xlu0 %v4034_v17, %s16373_s24  ;;  %v9660_v40 = vpack.c.bf16 %v3657_v50, %v3656_v10  ;;  %v2767_v12 = vsel %vm432_vm0, %v9923_v28, %v16399_v35  ;;  %v2898_v18 = vsel %vm2874_vm5, %v2865_v51, %v16400_v54  ;;  %v4036_v8 = vld [vmem:[#allocation2 + $0x184] sm:$0xff]  ;;  %v16407_v59 = vld [vmem:[#allocation105_spill] sm:$0xff]  ;;  %v16414_v54 = vld [vmem:[#allocation50_spill] sm:$0xff] }
 0x2fe   : > { %9425 = vmatmul.mubr.msk.f32.gmra.mrb[114].mxu0 %vm3016_vm9, %v2996_v30  ;;  %9659 = vmatprep.subr.bf16.mxu1 %v16309_v3  ;;  %v2800_v41 = vsel %vm2775_vm2, %v2767_v12, %v16401_v56  ;;  %v2931_v61 = vsel %vm2907_vm6, %v2898_v18, %v16402_v42  ;;  %v12797_v17 = vpop.permute.xlu1 %4251  ;;  %v16405_v13 = vld [vmem:[#allocation51_spill] sm:$0xff]  ;;  %v9924_v10 = vld [vmem:[#allocation2 + $0x24e] sm:$0xff] }
 0x2ff   : > { %16403 = vst [vmem:[#allocation71_spill] sm:$0xff] %v12797_v17  ;;  %v12799_v36 = vpop.permute.xlu0 %4249  ;;  %3321 = vmatprep.mubr.f32.mxu0 %v16047_v34  ;;  %1392 = vmatmul.mubr.f32.gmra.mrb[56].mxu1 %v1138_v19  ;;  %v2833_v58 = vsel %vm2808_vm3, %v2800_v41, %v16405_v13  ;;  %v2964_v7 = vsel %vm2940_vm7, %v2931_v61, %v16406_v21  ;;  %v16408_v19 = vld [vmem:[#allocation98_spill] sm:$0xff]  ;;  %v16409_v33 = vld [vmem:[#allocation184_spill] sm:$0xff]  ;;  %v16411_v28 = vld [vmem:[#allocation209_spill] sm:$0xff] }
 0x300   : > { %16404 = vst [vmem:[#allocation114_spill] sm:$0xff] %v12799_v36  ;;  %9661 = vmatpush1.bf16.msra.mxu1 %v9660_v40  ;;  %v2866_v9 = vsel %vm2841_vm4, %v2833_v58, %v16407_v59  ;;  %v2997_v23 = vsel %vm2973_vm8, %v2964_v7, %v12422_v38  ;;  %v2768_v50 = vsel %vm432_vm0, %v9924_v10, %v16408_v19  ;;  %v4038_v30 = vld [vmem:[#allocation2 + $0x1a4] sm:$0xff] }
 0x301   : > { %4495 = vrot.lane.b32.xlu1 %v12413_v49, %s16373_s24  ;;  %4493 = vrot.lane.b32.xlu0 %v4036_v8, %s16373_s24  ;;  %v2899_v51 = vsel %vm2874_vm5, %v2866_v9, %v16409_v33  ;;  %v16410_v40 = vld [vmem:[#allocation140_spill] sm:$0xff]  ;;  %v16415_v8 = vld [vmem:[#allocation233_spill] sm:$0xff]  ;;  %v16417_v58 = vld [vmem:[#allocation103_spill] sm:$0xff] }
 0x302   : > { %9426 = vmatmul.mubr.msk.f32.gmra.mrb[116].mxu0 %vm3016_vm9, %v2997_v23  ;;  %9670 = vmatprep.subr.bf16.mxu1 %v16309_v3  ;;  %v2801_v38 = vsel %vm2775_vm2, %v2768_v50, %v16410_v40  ;;  %v2932_v49 = vsel %vm2907_vm6, %v2899_v51, %v16411_v28  ;;  %v12823_v35 = vpop.permute.xlu1 %4255  ;;  %v16416_v41 = vld [vmem:[#allocation104_spill] sm:$0xff]  ;;  %v16418_v7 = vld [vmem:[#allocation183_spill] sm:$0xff]  ;;  %v16423_v33 = vld [vmem:[#allocation53_spill] sm:$0xff] }
 0x303   : > { %16412 = vst [vmem:[#allocation72_spill] sm:$0xff] %v12823_v35  ;;  %v12825_v12 = vpop.permute.xlu0 %4253  ;;  %3327 = vmatprep.mubr.f32.mxu0 %v16047_v34  ;;  %v2834_v18 = vsel %vm2808_vm3, %v2801_v38, %v16414_v54  ;;  %v2965_v56 = vsel %vm2940_vm7, %v2932_v49, %v16415_v8  ;;  %v9925_v13 = vld [vmem:[#allocation2 + $0x266] sm:$0xff]  ;;  %v16425_v38 = vld [vmem:[#allocation109_spill] sm:$0xff] }
 0x304   : > { %16413 = vst [vmem:[#allocation73_spill] sm:$0xff] %v12825_v12  ;;  %v2867_v42 = vsel %vm2841_vm4, %v2834_v18, %v16416_v41  ;;  %v2998_v61 = vsel %vm2973_vm8, %v2965_v56, %v12458_v16  ;;  %v2769_v21 = vsel %vm432_vm0, %v9925_v13, %v16417_v58  ;;  %v4040_v9 = vld [vmem:[#allocation2 + $0x1c4] sm:$0xff]  ;;  %v9926_v54 = vld [vmem:[#allocation2 + $0x26e] sm:$0xff]  ;;  %v16426_v18 = vld [vmem:[#allocation102_spill] sm:$0xff] }
 0x305   : > { %4499 = vrot.lane.b32.xlu1 %v12447_v27, %s16373_s24  ;;  %4497 = vrot.lane.b32.xlu0 %v4038_v30, %s16373_s24  ;;  %v2900_v59 = vsel %vm2874_vm5, %v2867_v42, %v16418_v7  ;;  %v16419_v23 = vld [vmem:[#allocation143_spill] sm:$0xff]  ;;  %v16420_v19 = vld [vmem:[#allocation208_spill] sm:$0xff]  ;;  %v2770_v8 = vsel %vm432_vm0, %v9926_v54, %v16426_v18  ;;  %v16427_v56 = vld [vmem:[#allocation186_spill] sm:$0xff] }
 0x306   : > { %9427 = vmatmul.mubr.msk.f32.gmra.mrb[118].mxu0 %vm3016_vm9, %v2998_v61  ;;  %v2802_v10 = vsel %vm2775_vm2, %v2769_v21, %v16419_v23  ;;  %v2933_v16 = vsel %vm2907_vm6, %v2900_v59, %v16420_v19  ;;  %v12848_v50 = vpop.permute.xlu1 %4259  ;;  %v16424_v30 = vld [vmem:[#allocation232_spill] sm:$0xff]  ;;  %v16428_v61 = vld [vmem:[#allocation142_spill] sm:$0xff]  ;;  %v16429_v58 = vld [vmem:[#allocation211_spill] sm:$0xff] }
 0x307   : > { %16421 = vst [vmem:[#allocation74_spill] sm:$0xff] %v12848_v50  ;;  %v12850_v27 = vpop.permute.xlu0 %4257  ;;  %3333 = vmatprep.mubr.f32.mxu0 %v16047_v34  ;;  %v2835_v51 = vsel %vm2808_vm3, %v2802_v10, %v16423_v33  ;;  %v2966_v40 = vsel %vm2940_vm7, %v2933_v16, %v16424_v30  ;;  %v4042_v42 = vld [vmem:[#allocation2 + $0x1e4] sm:$0xff]  ;;  %v2803_v13 = vsel %vm2775_vm2, %v2770_v8, %v16428_v61  ;;  %v16438_v18 = vld [vmem:[#allocation210_spill] sm:$0xff] }
 0x308   : > { %16422 = vst [vmem:[#allocation119_spill] sm:$0xff] %v12850_v27  ;;  %v2868_v28 = vsel %vm2841_vm4, %v2835_v51, %v16425_v38  ;;  %v2999_v49 = vsel %vm2973_vm8, %v2966_v40, %v12456_v26  ;;  %v16432_v7 = vld [vmem:[#allocation52_spill] sm:$0xff]  ;;  %v16435_v51 = vld [vmem:[#allocation107_spill] sm:$0xff]  ;;  %v16436_v40 = vld [vmem:[#allocation185_spill] sm:$0xff] }
 0x309   : > { %4503 = vrot.lane.b32.xlu1 %v12481_v44, %s16373_s24  ;;  %4501 = vrot.lane.b32.xlu0 %v4040_v9, %s16373_s24  ;;  %v2901_v41 = vsel %vm2874_vm5, %v2868_v28, %v16427_v56  ;;  %v2836_v59 = vsel %vm2808_vm3, %v2803_v13, %v16432_v7  ;;  %v16433_v9 = vld [vmem:[#allocation235_spill] sm:$0xff]  ;;  %v16434_v10 = vld [vmem:[#allocation108_spill] sm:$0xff]  ;;  %v16443_v13 = vld [vmem:[#allocation113_spill] sm:$0xff] }
 0x30a   : > { %9428 = vmatmul.mubr.msk.f32.gmra.mrb[120].mxu0 %vm3016_vm9, %v2999_v49  ;;  %v2934_v26 = vsel %vm2907_vm6, %v2901_v41, %v16429_v58  ;;  %v12873_v21 = vpop.permute.xlu1 %4263  ;;  %v2869_v19 = vsel %vm2841_vm4, %v2836_v59, %v16434_v10  ;;  %v9927_v33 = vld [vmem:[#allocation2 + $0x286] sm:$0xff]  ;;  %v16437_v49 = vld [vmem:[#allocation145_spill] sm:$0xff]  ;;  %v16444_v59 = vld [vmem:[#allocation106_spill] sm:$0xff] }
 0x30b   : > { %16430 = vst [vmem:[#allocation75_spill] sm:$0xff] %v12873_v21  ;;  %v12875_v44 = vpop.permute.xlu0 %4261  ;;  %3339 = vmatprep.mubr.f32.mxu0 %v16047_v34  ;;  %v2967_v23 = vsel %vm2940_vm7, %v2934_v26, %v16433_v9  ;;  %v2771_v30 = vsel %vm432_vm0, %v9927_v33, %v16435_v51  ;;  %v2902_v38 = vsel %vm2874_vm5, %v2869_v19, %v16436_v40  ;;  %v4044_v28 = vld [vmem:[#allocation2 + $0x204] sm:$0xff]  ;;  %v9928_v7 = vld [vmem:[#allocation2 + $0x28e] sm:$0xff]  ;;  %v16450_v40 = vld [vmem:[#allocation54_spill] sm:$0xff] }
 0x30c   : > { %16431 = vst [vmem:[#allocation78_spill] sm:$0xff] %v12875_v44  ;;  %v3000_v16 = vsel %vm2973_vm8, %v2967_v23, %v12492_v43  ;;  %v2804_v54 = vsel %vm2775_vm2, %v2771_v30, %v16437_v49  ;;  %v2935_v43 = vsel %vm2907_vm6, %v2902_v38, %v16438_v18  ;;  %v16441_v56 = vld [vmem:[#allocation55_spill] sm:$0xff]  ;;  %v2772_v9 = vsel %vm432_vm0, %v9928_v7, %v16444_v59  ;;  %v16445_v23 = vld [vmem:[#allocation188_spill] sm:$0xff]  ;;  %v16447_v51 = vld [vmem:[#allocation213_spill] sm:$0xff] }
 0x30d   : > { %4507 = vrot.lane.b32.xlu1 %v12515_v53, %s16373_s24  ;;  %4505 = vrot.lane.b32.xlu0 %v4042_v42, %s16373_s24  ;;  %v2837_v41 = vsel %vm2808_vm3, %v2804_v54, %v16441_v56  ;;  %v16442_v42 = vld [vmem:[#allocation234_spill] sm:$0xff]  ;;  %v4046_v19 = vld [vmem:[#allocation2 + $0x224] sm:$0xff]  ;;  %v4081_v21 = vld [vmem:[#allocation2 + $0x250] sm:$0xff] }
 0x30e   : > { %9429 = vmatmul.mubr.msk.f32.gmra.mrb[122].mxu0 %vm3016_vm9, %v3000_v16  ;;  %v12898_v8 = vpop.permute.xlu1 %4267  ;;  %v2968_v61 = vsel %vm2940_vm7, %v2935_v43, %v16442_v42  ;;  %v2870_v58 = vsel %vm2841_vm4, %v2837_v41, %v16443_v13  ;;  %v16446_v16 = vld [vmem:[#allocation144_spill] sm:$0xff]  ;;  %v16453_v41 = vld [vmem:[#allocation111_spill] sm:$0xff] }
 0x30f   : > { %16439 = vst [vmem:[#allocation118_spill] sm:$0xff] %v12898_v8  ;;  %v12900_v53 = vpop.permute.xlu0 %4265  ;;  %3345 = vmatprep.mubr.f32.mxu0 %v16047_v34  ;;  %v3001_v26 = vsel %vm2973_vm8, %v2968_v61, %v12490_v31  ;;  %v2903_v10 = vsel %vm2874_vm5, %v2870_v58, %v16445_v23  ;;  %v2805_v33 = vsel %vm2775_vm2, %v2772_v9, %v16446_v16  ;;  %v16452_v54 = vld [vmem:[#allocation112_spill] sm:$0xff]  ;;  %v16454_v61 = vld [vmem:[#allocation187_spill] sm:$0xff]  ;;  %v16459_v23 = vld [vmem:[#allocation57_spill] sm:$0xff] }
 0x310   : > { %16440 = vst [vmem:[#allocation79_spill] sm:$0xff] %v12900_v53  ;;  %v2936_v31 = vsel %vm2907_vm6, %v2903_v10, %v16447_v51  ;;  %v2838_v38 = vsel %vm2808_vm3, %v2805_v33, %v16450_v40  ;;  %v9929_v56 = vld [vmem:[#allocation2 + $0x2a6] sm:$0xff]  ;;  %v16461_v33 = vld [vmem:[#allocation117_spill] sm:$0xff] }
 0x311   : > { %4511 = vrot.lane.b32.xlu1 %v12549_v52, %s16373_s24  ;;  %4509 = vrot.lane.b32.xlu0 %v4044_v28, %s16373_s24  ;;  %v16451_v28 = vld [vmem:[#allocation59_spill] sm:$0xff]  ;;  %v2871_v18 = vsel %vm2841_vm4, %v2838_v38, %v16452_v54  ;;  %v2773_v42 = vsel %vm432_vm0, %v9929_v56, %v16453_v41  ;;  %v16456_v59 = vld [vmem:[#allocation212_spill] sm:$0xff]  ;;  %v16462_v38 = vld [vmem:[#allocation110_spill] sm:$0xff] }
 0x312   : > { %9430 = vmatmul.mubr.msk.f32.gmra.mrb[124].mxu0 %vm3016_vm9, %v3001_v26  ;;  %v12923_v30 = vpop.permute.xlu1 %4271  ;;  %v2969_v49 = vsel %vm2940_vm7, %v2936_v31, %v16451_v28  ;;  %v2904_v13 = vsel %vm2874_vm5, %v2871_v18, %v16454_v61  ;;  %v4048_v58 = vld [vmem:[#allocation2 + $0x244] sm:$0xff]  ;;  %v9930_v40 = vld [vmem:[#allocation2 + $0x2ae] sm:$0xff] }
 0x313   : > { %16448 = vst [vmem:[#allocation82_spill] sm:$0xff] %v12923_v30  ;;  %v12925_v52 = vpop.permute.xlu0 %4269  ;;  %3351 = vmatprep.mubr.f32.mxu0 %v16047_v34  ;;  %v3002_v43 = vsel %vm2973_vm8, %v2969_v49, %v12526_v20  ;;  %v16455_v26 = vld [vmem:[#allocation147_spill] sm:$0xff]  ;;  %v2937_v20 = vsel %vm2907_vm6, %v2904_v13, %v16456_v59  ;;  %v2774_v28 = vsel %vm432_vm0, %v9930_v40, %v16462_v38  ;;  %v16463_v49 = vld [vmem:[#allocation190_spill] sm:$0xff]  ;;  %v16468_v61 = vld [vmem:[#allocation56_spill] sm:$0xff] }
 0x314   : > { %16449 = vst [vmem:[#allocation121_spill] sm:$0xff] %v12925_v52  ;;  %v2806_v7 = vsel %vm2775_vm2, %v2773_v42, %v16455_v26  ;;  %v4050_v18 = vld [vmem:[#allocation2 + $0x264] sm:$0xff]  ;;  %v4079_v52 = vld [vmem:[#allocation2 + $0x230] sm:$0xff] }
 0x315   : > { %4515 = vrot.lane.b32.xlu1 %v12583_v48, %s16373_s24  ;;  %4513 = vrot.lane.b32.xlu0 %v4046_v19, %s16373_s24  ;;  %v2839_v10 = vsel %vm2808_vm3, %v2806_v7, %v16459_v23  ;;  %v16460_v19 = vld [vmem:[#allocation58_spill] sm:$0xff]  ;;  %v16465_v41 = vld [vmem:[#allocation215_spill] sm:$0xff]  ;;  %v16469_v26 = vld [vmem:[#allocation116_spill] sm:$0xff] }
 0x316   : > { %9431 = vmatmul.mubr.msk.f32.gmra.mrb[126].mxu0 %vm3016_vm9, %v3002_v43  ;;  %v12948_v9 = vpop.permute.xlu1 %4275  ;;  %v2970_v16 = vsel %vm2940_vm7, %v2937_v20, %v16460_v19  ;;  %v2872_v51 = vsel %vm2841_vm4, %v2839_v10, %v16461_v33  ;;  %v16464_v43 = vld [vmem:[#allocation146_spill] sm:$0xff]  ;;  %v16470_v20 = vld [vmem:[#allocation189_spill] sm:$0xff]  ;;  %v4052_v19 = vld [vmem:[#allocation2 + $0x284] sm:$0xff] }
 0x317   : > { %16457 = vst [vmem:[#allocation83_spill] sm:$0xff] %v12948_v9  ;;  %v12950_v48 = vpop.permute.xlu0 %4273  ;;  %3357 = vmatprep.mubr.f32.mxu0 %v16047_v34  ;;  %v3003_v31 = vsel %vm2973_vm8, %v2970_v16, %v12524_v46  ;;  %v2905_v54 = vsel %vm2874_vm5, %v2872_v51, %v16463_v49  ;;  %v2807_v56 = vsel %vm2775_vm2, %v2774_v28, %v16464_v43  ;;  %v4053_v10 = vld [vmem:[#allocation2 + $0x28c] sm:$0xff]  ;;  %v16471_v16 = vld [vmem:[#allocation214_spill] sm:$0xff]  ;;  %v4054_v40 = vld [vmem:[#allocation2 + $0x2a4] sm:$0xff] }
 0x318   : > { %16458 = vst [vmem:[#allocation86_spill] sm:$0xff] %v12950_v48  ;;  %v2938_v46 = vsel %vm2907_vm6, %v2905_v54, %v16465_v41  ;;  %v2840_v13 = vsel %vm2808_vm3, %v2807_v56, %v16468_v61  ;;  %v4058_v43 = vld [vmem:[#allocation2 + $0x2e4] sm:$0xff] }
 0x319   : > { %4519 = vrot.lane.b32.xlu1 %v12615_v45, %s16373_s24  ;;  %4517 = vrot.lane.b32.xlu0 %v4048_v58, %s16373_s24  ;;  %v2971_v58 = vsel %vm2940_vm7, %v2938_v46, %v12017_v0  ;;  %v2873_v7 = vsel %vm2841_vm4, %v2840_v13, %v16469_v26  ;;  %v4061_v46 = vld [vmem:[#allocation2 + $0x110] sm:$0xff]  ;;  %v4060_v61 = vld [vmem:[#allocation2 + $0x108] sm:$0xff]  ;;  %v16505_v22 = vld [vmem:[#allocation179_spill] sm:$0xff] }
 0x31a   : > { %9432 = vmatmul.mubr.msk.f32.gmra.mrb[128].mxu0 %vm3016_vm9, %v3003_v31  ;;  %v12973_v42 = vpop.permute.xlu1 %4279  ;;  %v3004_v59 = vsel %vm2973_vm8, %v2971_v58, %v12560_v1  ;;  %v2906_v23 = vsel %vm2874_vm5, %v2873_v7, %v16470_v20  ;;  %v4055_v31 = vld [vmem:[#allocation2 + $0x2ac] sm:$0xff] }
 0x31b   : > { %16466 = vst [vmem:[#allocation162_spill] sm:$0xff] %v12973_v42  ;;  %v12975_v45 = vpop.permute.xlu0 %4277  ;;  %3363 = vmatprep.mubr.f32.mxu0 %v16047_v34  ;;  %v2939_v0 = vsel %vm2907_vm6, %v2906_v23, %v16471_v16  ;;  %v4063_v26 = vld [vmem:[#allocation2 + $0x130] sm:$0xff]  ;;  %v4062_v7 = vld [vmem:[#allocation2 + $0x128] sm:$0xff] }
 0x31c   : > { %16467 = vst [vmem:[#allocation120_spill] sm:$0xff] %v12975_v45  ;;  %v2972_v1 = vsel %vm2940_vm7, %v2939_v0, %v12015_v47  ;;  %v4057_v47 = vld [vmem:[#allocation2 + $0x2cc] sm:$0xff] }
 0x31d   : > { %4523 = vrot.lane.b32.xlu1 %v12647_v14, %s16373_s24  ;;  %4521 = vrot.lane.b32.xlu0 %v4050_v18, %s16373_s24  ;;  %v3005_v14 = vsel %vm2973_vm8, %v2972_v1, %v12558_v15  ;;  %v4056_v15 = vld [vmem:[#allocation2 + $0x2c4] sm:$0xff]  ;;  %v4059_v18 = vld [vmem:[#allocation2 + $0x2ec] sm:$0xff] }
 0x31e   : > { %9433 = vmatmul.mubr.msk.f32.gmra.mrb[130].mxu0 %vm3016_vm9, %v3004_v59  ;;  %v12994_v33 = vpop.permute.xlu1 %4283  ;;  %v4065_v23 = vld [vmem:[#allocation2 + $0x150] sm:$0xff]  ;;  %v4066_v1 = vld [vmem:[#allocation2 + $0x168] sm:$0xff] }
 0x31f   : > { %16472 = vst [vmem:[#allocation87_spill] sm:$0xff] %v12994_v33  ;;  %v12996_v51 = vpop.permute.xlu0 %4281  ;;  %3369 = vmatprep.mubr.f32.mxu0 %v16047_v34  ;;  %v4067_v0 = vld [vmem:[#allocation2 + $0x170] sm:$0xff]  ;;  %v13087_v33 = vld [vmem:[#allocation2 + $0x1e8] sm:$0xff] }
 0x320   : > { %16473 = vst [vmem:[#allocation148_spill] sm:$0xff] %v12996_v51  ;;  %v4077_v45 = vld [vmem:[#allocation2 + $0x210] sm:$0xff]  ;;  %v13097_v9 = vld [vmem:[#allocation2 + $0x208] sm:$0xff] }
 0x321   : > { %4527 = vrot.lane.b32.xlu1 %v4053_v10, %s16373_s24  ;;  %4525 = vrot.lane.b32.xlu0 %v4052_v19, %s16373_s24  ;;  %v4064_v10 = vld [vmem:[#allocation2 + $0x148] sm:$0xff] }
 0x322   : > { %9434 = vmatmul.mubr.msk.f32.gmra.mrb[132].mxu0 %vm3016_vm9, %v3005_v14  ;;  %v13006_v38 = vpop.permute.xlu1 %4351  ;;  %v4078_v8 = vld [vmem:[#allocation2 + $0x228] sm:$0xff] }
 0x323   : > { %v13008_v28 = vpop.permute.xlu0 %4349  ;;  %5613 = vmatprep.mubr.f32.mxu0 %v16047_v34  ;;  %v4082_v44 = vld [vmem:[#allocation2 + $0x268] sm:$0xff] }
 0x324   : > { %v4088_v50 = vld [vmem:[#allocation2 + $0x2c8] sm:$0xff] }
 0x325   : > { %4531 = vrot.lane.b32.xlu1 %v4055_v31, %s16373_s24  ;;  %4529 = vrot.lane.b32.xlu0 %v4054_v40, %s16373_s24  ;;  %v13049_v40 = vld [vmem:[#allocation2 + $0x190] sm:$0xff] }
 0x326   : > { %v13013_v49 = vpop.permute.xlu1 %4355 }
 0x327   : > { %v13015_v54 = vpop.permute.xlu0 %4353 }
 0x329   : > { %4535 = vrot.lane.b32.xlu1 %v4057_v47, %s16373_s24  ;;  %4533 = vrot.lane.b32.xlu0 %v4056_v15, %s16373_s24  ;;  %v13051_v47 = vld [vmem:[#allocation2 + $0x188] sm:$0xff] }
 0x32a   : > { %v13019_v56 = vpop.permute.xlu1 %4359 }
 0x32b   : > { %v13021_v41 = vpop.permute.xlu0 %4357 }
 0x32d   : > { %4539 = vrot.lane.b32.xlu1 %v4059_v18, %s16373_s24  ;;  %4537 = vrot.lane.b32.xlu0 %v4058_v43, %s16373_s24  ;;  %v13061_v43 = vld [vmem:[#allocation2 + $0x1b0] sm:$0xff] }
 0x32e   : > { %v13025_v13 = vpop.permute.xlu1 %4363 }
 0x32f   : > { %v13027_v58 = vpop.permute.xlu0 %4361 }
 0x331   : > { %4607 = vrot.lane.b32.xlu1 %v4061_v46, %s16474_s13  ;;  %4605 = vrot.lane.b32.xlu0 %v4060_v61, %s16474_s13  ;;  %v13063_v46 = vld [vmem:[#allocation2 + $0x1a8] sm:$0xff] }
 0x332   : > { %v13031_v59 = vpop.permute.xlu1 %4367 }
 0x333   : > { %16475 = vst [vmem:[#allocation60_spill] sm:$0xff] %v13031_v59  ;;  %v13033_v20 = vpop.permute.xlu0 %4365 }
 0x335   : > { %4611 = vrot.lane.b32.xlu1 %v4063_v26, %s16474_s13  ;;  %4609 = vrot.lane.b32.xlu0 %v4062_v7, %s16474_s13  ;;  %v13073_v7 = vld [vmem:[#allocation2 + $0x1d0] sm:$0xff] }
 0x336   : > { %v13037_v19 = vpop.permute.xlu1 %4371 }
 0x337   : > { %16476 = vst [vmem:[#allocation90_spill] sm:$0xff] %v13037_v19  ;;  %v13039_v16 = vpop.permute.xlu0 %4369 }
 0x338   : > { %16477 = vst [vmem:[#allocation161_spill] sm:$0xff] %v13039_v16 }
 0x339   : > { %4615 = vrot.lane.b32.xlu1 %v4065_v23, %s16474_s13  ;;  %4613 = vrot.lane.b32.xlu0 %v4064_v10, %s16474_s13  ;;  %v13075_v23 = vld [vmem:[#allocation2 + $0x1c8] sm:$0xff] }
 0x33a   : > { %v13043_v14 = vpop.permute.xlu1 %4375 }
 0x33b   : > { %16478 = vst [vmem:[#allocation123_spill] sm:$0xff] %v13043_v14  ;;  %v13045_v31 = vpop.permute.xlu0 %4373 }
 0x33c   : > { %16479 = vst [vmem:[#allocation91_spill] sm:$0xff] %v13045_v31 }
 0x33d   : > { %4619 = vrot.lane.b32.xlu1 %v4067_v0, %s16474_s13  ;;  %4617 = vrot.lane.b32.xlu0 %v4066_v1, %s16474_s13  ;;  %v13085_v1 = vld [vmem:[#allocation2 + $0x1f0] sm:$0xff] }
 0x33e   : > { %v13053_v15 = vpop.permute.xlu1 %4379 }
 0x33f   : > { %16480 = vst [vmem:[#allocation150_spill] sm:$0xff] %v13053_v15  ;;  %v13055_v18 = vpop.permute.xlu0 %4377 }
 0x340   : > { %16481 = vst [vmem:[#allocation64_spill] sm:$0xff] %v13055_v18 }
 0x341   : > { %4623 = vrot.lane.b32.xlu1 %v13049_v40, %s16474_s13  ;;  %4621 = vrot.lane.b32.xlu0 %v13051_v47, %s16474_s13 }
 0x342   : > { %v13065_v61 = vpop.permute.xlu1 %4383 }
 0x343   : > { %16482 = vst [vmem:[#allocation122_spill] sm:$0xff] %v13065_v61  ;;  %v13067_v26 = vpop.permute.xlu0 %4381  ;;  %v4090_v61 = vld [vmem:[#allocation2 + $0x2e8] sm:$0xff] }
 0x344   : > { %16483 = vst [vmem:[#allocation164_spill] sm:$0xff] %v13067_v26  ;;  %v4110_v26 = vld [vmem:[#allocation2 + $0x18c] sm:$0xff] }
 0x345   : > { %4627 = vrot.lane.b32.xlu1 %v13061_v43, %s16474_s13  ;;  %4625 = vrot.lane.b32.xlu0 %v13063_v46, %s16474_s13 }
 0x346   : > { %v13077_v10 = vpop.permute.xlu1 %4387 }
 0x347   : > { %16484 = vst [vmem:[#allocation124_spill] sm:$0xff] %v13077_v10  ;;  %v13079_v0 = vpop.permute.xlu0 %4385 }
 0x348   : > { %16485 = vst [vmem:[#allocation125_spill] sm:$0xff] %v13079_v0 }
 0x349   : > { %4631 = vrot.lane.b32.xlu1 %v13073_v7, %s16474_s13  ;;  %4629 = vrot.lane.b32.xlu0 %v13075_v23, %s16474_s13 }
 0x34a   : > { %v13089_v51 = vpop.permute.xlu1 %4391 }
 0x34b   : > { %16486 = vst [vmem:[#allocation149_spill] sm:$0xff] %v13089_v51  ;;  %v13091_v42 = vpop.permute.xlu0 %4389 }
 0x34c   : > { %16487 = vst [vmem:[#allocation61_spill] sm:$0xff] %v13091_v42  ;;  %v4080_v42 = vld [vmem:[#allocation2 + $0x248] sm:$0xff] }
 0x34d   : > { %4635 = vrot.lane.b32.xlu1 %v13085_v1, %s16474_s13  ;;  %4633 = vrot.lane.b32.xlu0 %v13087_v33, %s16474_s13 }
 0x34e   : > { %v13099_v48 = vpop.permute.xlu1 %4395 }
 0x34f   : > { %16488 = vst [vmem:[#allocation126_spill] sm:$0xff] %v13099_v48  ;;  %v13101_v30 = vpop.permute.xlu0 %4393 }
 0x350   : > { %16489 = vst [vmem:[#allocation163_spill] sm:$0xff] %v13101_v30 }
 0x351   : > { %4639 = vrot.lane.b32.xlu1 %v4077_v45, %s16474_s13  ;;  %4637 = vrot.lane.b32.xlu0 %v13097_v9, %s16474_s13  ;;  %v4083_v45 = vld [vmem:[#allocation2 + $0x270] sm:$0xff] }
 0x352   : > { %v13106_v53 = vpop.permute.xlu1 %4399 }
 0x353   : > { %16490 = vst [vmem:[#allocation152_spill] sm:$0xff] %v13106_v53  ;;  %v13108_v51 = vpop.permute.xlu0 %4397 }
 0x354   : > { %16491 = vst [vmem:[#allocation191_spill] sm:$0xff] %v13108_v51 }
 0x355   : > { %4643 = vrot.lane.b32.xlu1 %v4079_v52, %s16474_s13  ;;  %4641 = vrot.lane.b32.xlu0 %v4078_v8, %s16474_s13  ;;  %v4085_v8 = vld [vmem:[#allocation2 + $0x290] sm:$0xff]  ;;  %v4084_v52 = vld [vmem:[#allocation2 + $0x288] sm:$0xff] }
 0x357   : > { %v13112_v48 = vpop.permute.xlu1 %4403  ;;  %v13114_v30 = vpop.permute.xlu0 %4401 }
 0x358   : > { %16492 = vst [vmem:[#allocation127_spill] sm:$0xff] %v13112_v48  ;;  %16493 = vst [vmem:[#allocation160_spill] sm:$0xff] %v13114_v30  ;;  %v4089_v30 = vld [vmem:[#allocation2 + $0x2d0] sm:$0xff] }
 0x359   : > { %4647 = vrot.lane.b32.xlu1 %v4081_v21, %s16474_s13  ;;  %4645 = vrot.lane.b32.xlu0 %v4080_v42, %s16474_s13  ;;  %v4087_v21 = vld [vmem:[#allocation2 + $0x2b0] sm:$0xff]  ;;  %v4086_v42 = vld [vmem:[#allocation2 + $0x2a8] sm:$0xff] }
 0x35b   : > { %v13118_v10 = vpop.permute.xlu1 %4407  ;;  %v13120_v53 = vpop.permute.xlu0 %4405 }
 0x35c   : > { %16494 = vst [vmem:[#allocation216_spill] sm:$0xff] %v13118_v10  ;;  %16495 = vst [vmem:[#allocation128_spill] sm:$0xff] %v13120_v53  ;;  %v5438_v10 = vld [vmem:[%s16498_s3 + $0x8] sm:$0xff] }
 0x35d   : > { %4651 = vrot.lane.b32.xlu1 %v4083_v45, %s16474_s13  ;;  %4649 = vrot.lane.b32.xlu0 %v4082_v44, %s16474_s13  ;;  %v5440_v44 = vld [vmem:[%s16498_s3 + $0x18] sm:$0xff] }
 0x35f   : > { %v13124_v51 = vpop.permute.xlu1 %4411  ;;  %v13126_v48 = vpop.permute.xlu0 %4409 }
 0x360   : > { %16496 = vst [vmem:[#allocation166_spill] sm:$0xff] %v13124_v51  ;;  %16497 = vst [vmem:[#allocation151_spill] sm:$0xff] %v13126_v48  ;;  %v9662_v51 = vpack.c.bf16 %v5440_v44, %v5438_v10  ;;  %v5442_v10 = vld [vmem:[%s16498_s3 + $0x28] sm:$0xff]  ;;  %v5444_v44 = vld [vmem:[%s16498_s3 + $0x38] sm:$0xff] }
 0x361   : > { %4655 = vrot.lane.b32.xlu1 %v4085_v8, %s16474_s13  ;;  %4653 = vrot.lane.b32.xlu0 %v4084_v52, %s16474_s13  ;;  %v5437_v8 = vld [vmem:[%s16498_s3] sm:$0xff]  ;;  %v5439_v52 = vld [vmem:[%s16498_s3 + $0x10] sm:$0xff] }
 0x362   : > { %v9664_v48 = vpack.c.bf16 %v5439_v52, %v5437_v8  ;;  %9663 = vmatprep.subr.bf16.mxu0 %v9662_v51  ;;  %v9666_v8 = vpack.c.bf16 %v5444_v44, %v5442_v10  ;;  %v5443_v51 = vld [vmem:[%s16498_s3 + $0x30] sm:$0xff]  ;;  %v5446_v10 = vld [vmem:[%s16498_s3 + $0x48] sm:$0xf] }
 0x363   : > { %v13136_v45 = vpop.permute.xlu1 %4479  ;;  %v13138_v53 = vpop.permute.xlu0 %4477  ;;  %v4091_v52 = vld [vmem:[#allocation2 + $0x2f0] sm:$0xff] }
 0x364   : > { %9665 = vmatpush1.bf16.msra.mxu0 %v9664_v48 }
 0x365   : > { %4659 = vrot.lane.b32.xlu1 %v4087_v21, %s16474_s13  ;;  %4657 = vrot.lane.b32.xlu0 %v4086_v42, %s16474_s13  ;;  %v5441_v21 = vld [vmem:[%s16498_s3 + $0x20] sm:$0xff] }
 0x366   : > { %v9668_v42 = vpack.c.bf16 %v5443_v51, %v5441_v21  ;;  %9667 = vmatprep.subr.bf16.mxu0 %v9666_v8  ;;  %v9931_v21 = vld [vmem:[#allocation2 + $0x10c] sm:$0xff]  ;;  %v4109_v51 = vld [vmem:[#allocation2 + $0x184] sm:$0xff] }
 0x367   : > { %v13154_v0 = vpop.permute.xlu1 %4483  ;;  %v13156_v27 = vpop.permute.xlu0 %4481 }
 0x368   : > { %9669 = vmatpush1.bf16.msra.mxu0 %v9668_v42 }
 0x369   : > { %4663 = vrot.lane.b32.xlu1 %v4089_v30, %s16474_s13  ;;  %4661 = vrot.lane.b32.xlu0 %v4088_v50, %s16474_s13  ;;  %v5445_v50 = vld [vmem:[%s16498_s3 + $0x40] sm:$0xf]  ;;  %v4092_v30 = vld [vmem:[#allocation2 + $0x114] sm:$0xff]  ;;  %s9364_s3 = sshll.u32 %s392_s2, 8 }
 0x36a   : > { %9437 = vmatprep.subr.msk.mxu0 %vm662_vm1, %v5446_v10  ;;  %v9932_v10 = vld [vmem:[#allocation2 + $0x12c] sm:$0xff] }
 0x36b   : > { %v13166_v35 = vpop.permute.xlu1 %4487  ;;  %v13168_v48 = vpop.permute.xlu0 %4485 }
 0x36c   : > { %9438 = vmatpush1.msk.msra.mxu0 %vm662_vm1, %v5445_v50  ;;  %v9436_v50 = vld [vmem:[%s15788_s8 + $0x2] sm:$0x3] }
 0x36d   : > { %4667 = vrot.lane.b32.xlu1 %v4091_v52, %s16474_s13  ;;  %4665 = vrot.lane.b32.xlu0 %v4090_v61, %s16474_s13  ;;  %v9435_v52 = vld [vmem:[%s15787_s7 + $0x2] sm:$0x3] }
 0x36e   : > { %v13206_v15 = vrot.slane %v9435_v52, %v16505_v22 }
 0x36f   : > { %v13179_v44 = vpop.permute.xlu1 %4491  ;;  %v13181_v8 = vpop.permute.xlu0 %4489 }
 0x371   : > { %4719 = vrot.lane.b32.xlu1 %v4092_v30, %s16499_s25  ;;  %4717 = vrot.lane.b32.xlu0 %v9931_v21, %s16499_s25  ;;  %v16502_v30 = vld [vmem:[#allocation182_spill] sm:$0xff] }
 0x372   : > { %v13199_v21 = vrot.slane %v9435_v52, %v16502_v30 }
 0x373   : > { %v13186_v61 = vpop.permute.xlu1 %4495  ;;  %v13188_v42 = vpop.permute.xlu0 %4493 }
 0x374   : > { %16500 = vst [vmem:[#allocation193_spill] sm:$0xff] %v13186_v61 }
 0x375   : > { %4845 = vrot.lane.b32.xlu1 %v4109_v51, %s16501_s29  ;;  %4721 = vrot.lane.b32.xlu0 %v9932_v10, %s16499_s25  ;;  %v13209_v51 = vrot.slane %v9436_v50, %v16502_v30  ;;  %v13213_v10 = vrot.slane %v9436_v50, %v16505_v22  ;;  %v4111_v50 = vld [vmem:[#allocation2 + $0x1a4] sm:$0xff] }
 0x377   : > { %v13201_v12 = vpop.permute.xlu1 %4499  ;;  %v13203_v60 = vpop.permute.xlu0 %4497 }
 0x378   : > { %16503 = vst [vmem:[#allocation65_spill] sm:$0xff] %v13201_v12  ;;  %16504 = vst [vmem:[#allocation218_spill] sm:$0xff] %v13203_v60  ;;  %v3185_v17 = vpop.f32.mrb[70].mxu0 }
 0x379   : > { %5085 = vrot.lane.b32.xlu1 %v4110_v26, %s15908_s22  ;;  %4973 = vrot.lane.b32.xlu0 %v13051_v47, %s16506_s15  ;;  %v3389_v32 = vmul.f32 %v13199_v21, %v3185_v17  ;;  %v3187_v18 = vpop.f32.mrb[71].mxu0 }
 0x37a   : > { %v3390_v36 = vmul.f32 %v13206_v15, %v3187_v18 }
 0x37b   : > { %v13219_v14 = vpop.permute.xlu1 %4503  ;;  %v13221_v52 = vpop.permute.xlu0 %4501  ;;  %v3466_v30 = vadd.f32 %v13209_v51, %v3389_v32  ;;  %v13234_v32 = vld [vmem:[#allocation2 + $0x194] sm:$0xff] }
 0x37c   : > { %16507 = vst [vmem:[#allocation129_spill] sm:$0xff] %v13219_v14  ;;  %16508 = vst [vmem:[#allocation165_spill] sm:$0xff] %v13221_v52  ;;  %v3467_v2 = vadd.f32 %v13213_v10, %v3390_v36  ;;  %v3191_v31 = vpop.f32.mrb[72].mxu0 }
 0x37d   : > { %4975 = vrot.lane.b32.xlu1 %v13049_v40, %s16506_s15  ;;  %4847 = vrot.lane.b32.xlu0 %v4110_v26, %s16501_s29  ;;  %v3391_v47 = vmul.f32 %v13199_v21, %v3191_v31  ;;  %v3193_v17 = vpop.f32.mrb[73].mxu0  ;;  %v3530_v36 = vmax.f32 %v3466_v30, 0.0  ;;  %v4112_v26 = vld [vmem:[#allocation2 + $0x1ac] sm:$0xff] }
 0x37e   : > { %v3531_v22 = vmax.f32 %v3467_v2, 0.0  ;;  %v3392_v18 = vmul.f32 %v13206_v15, %v3193_v17 }
 0x37f   : > { %v13230_v14 = vpop.permute.xlu1 %4507  ;;  %v13232_v52 = vpop.permute.xlu0 %4505  ;;  %v3468_v63 = vadd.f32 %v13209_v51, %v3391_v47 }
 0x380   : > { %16509 = vst [vmem:[#allocation154_spill] sm:$0xff] %v13230_v14  ;;  %16510 = vst [vmem:[#allocation192_spill] sm:$0xff] %v13232_v52  ;;  %v3469_v40 = vadd.f32 %v13213_v10, %v3392_v18  ;;  %v3197_v12 = vpop.f32.mrb[74].mxu0  ;;  %3722 = vmatprep.mubr.f32.mxu1 %v3531_v22 }
 0x381   : > { %4849 = vrot.lane.b32.xlu1 %v4111_v50, %s16501_s29  ;;  %v3393_v31 = vmul.f32 %v13199_v21, %v3197_v12  ;;  %v3199_v2 = vpop.f32.mrb[75].mxu0  ;;  %3723 = vmatmul.mubr.f32.vlgmr.msra.gmra.mrb[58].mxu1 %v3530_v36  ;;  %v3532_v18 = vmax.f32 %v3468_v63, 0.0 }
 0x382   : > { %5087 = vrot.lane.b32.xlu0 %v13234_v32, %s15908_s22  ;;  %v3533_v17 = vmax.f32 %v3469_v40, 0.0  ;;  %v3394_v14 = vmul.f32 %v13206_v15, %v3199_v2 }
 0x383   : > { %v13243_v30 = vpop.permute.xlu1 %4511  ;;  %v13245_v47 = vpop.permute.xlu0 %4509  ;;  %v3470_v22 = vadd.f32 %v13209_v51, %v3393_v31  ;;  %v4093_v31 = vld [vmem:[#allocation2 + $0x134] sm:$0xff] }
 0x384   : > { %16511 = vst [vmem:[#allocation77_spill] sm:$0xff] %v13243_v30  ;;  %16512 = vst [vmem:[#allocation217_spill] sm:$0xff] %v13245_v47  ;;  %v3471_v50 = vadd.f32 %v13213_v10, %v3394_v14  ;;  %v3203_v52 = vpop.f32.mrb[76].mxu0  ;;  %3727 = vmatprep.mubr.f32.mxu1 %v3533_v17 }
 0x385   : > { %5089 = vrot.lane.b32.xlu1 %v4112_v26, %s15908_s22  ;;  %v3395_v12 = vmul.f32 %v13199_v21, %v3203_v52  ;;  %v3205_v36 = vpop.f32.mrb[77].mxu0  ;;  %3728 = vmatmul.mubr.f32.gmra.mrb[60].mxu1 %v3532_v18  ;;  %v3534_v14 = vmax.f32 %v3470_v22, 0.0  ;;  %v13263_v18 = vld [vmem:[#allocation2 + $0x1b4] sm:$0xff] }
 0x386   : > { %4977 = vrot.lane.b32.xlu0 %v13063_v46, %s16506_s15  ;;  %v3535_v40 = vmax.f32 %v3471_v50, 0.0  ;;  %v3396_v2 = vmul.f32 %v13206_v15, %v3205_v36 }
 0x387   : > { %v13254_v30 = vpop.permute.xlu1 %4515  ;;  %v13256_v63 = vpop.permute.xlu0 %4513  ;;  %v3472_v17 = vadd.f32 %v13209_v51, %v3395_v12 }
 0x388   : > { %16513 = vst [vmem:[#allocation130_spill] sm:$0xff] %v13254_v30  ;;  %16514 = vst [vmem:[#allocation168_spill] sm:$0xff] %v13256_v63  ;;  %v3473_v47 = vadd.f32 %v13213_v10, %v3396_v2  ;;  %v3209_v19 = vpop.f32.mrb[78].mxu0  ;;  %3732 = vmatprep.mubr.f32.mxu1 %v3535_v40 }
 0x389   : > { %4851 = vrot.lane.b32.xlu1 %v4112_v26, %s16501_s29  ;;  %v3397_v52 = vmul.f32 %v13199_v21, %v3209_v19  ;;  %3733 = vmatmul.mubr.f32.gmra.mrb[62].mxu1 %v3534_v14  ;;  %v3211_v46 = vpop.f32.mrb[79].mxu0  ;;  %v3536_v2 = vmax.f32 %v3472_v17, 0.0 }
 0x38a   : > { %4723 = vrot.lane.b32.xlu0 %v4093_v31, %s16499_s25  ;;  %v3537_v50 = vmax.f32 %v3473_v47, 0.0  ;;  %v3398_v36 = vmul.f32 %v13206_v15, %v3211_v46  ;;  %v4113_v31 = vld [vmem:[#allocation2 + $0x1c4] sm:$0xff] }
 0x38b   : > { %v13266_v22 = vpop.permute.xlu1 %4519  ;;  %v13268_v12 = vpop.permute.xlu0 %4517  ;;  %v3474_v40 = vadd.f32 %v13209_v51, %v3397_v52 }
 0x38c   : > { %16515 = vst [vmem:[#allocation153_spill] sm:$0xff] %v13266_v22  ;;  %16516 = vst [vmem:[#allocation195_spill] sm:$0xff] %v13268_v12  ;;  %v3475_v26 = vadd.f32 %v13213_v10, %v3398_v36  ;;  %v3215_v30 = vpop.f32.mrb[80].mxu0  ;;  %3737 = vmatprep.mubr.f32.mxu1 %v3537_v50 }
 0x38d   : > { %5091 = vrot.lane.b32.xlu1 %v13263_v18, %s15908_s22  ;;  %v3399_v19 = vmul.f32 %v13199_v21, %v3215_v30  ;;  %3738 = vmatmul.mubr.f32.gmra.mrb[64].mxu1 %v3536_v2  ;;  %v3217_v47 = vpop.f32.mrb[81].mxu0  ;;  %v3538_v36 = vmax.f32 %v3474_v40, 0.0  ;;  %v9933_v30 = vld [vmem:[#allocation2 + $0x14c] sm:$0xff] }
 0x38e   : > { %4979 = vrot.lane.b32.xlu0 %v13061_v43, %s16506_s15  ;;  %v3539_v14 = vmax.f32 %v3475_v26, 0.0  ;;  %v3400_v17 = vmul.f32 %v13206_v15, %v3217_v47  ;;  %v4114_v26 = vld [vmem:[#allocation2 + $0x1cc] sm:$0xff] }
 0x38f   : > { %v13278_v46 = vpop.permute.xlu1 %4523  ;;  %v13280_v52 = vpop.permute.xlu0 %4521  ;;  %v3476_v50 = vadd.f32 %v13209_v51, %v3399_v19 }
 0x390   : > { %16517 = vst [vmem:[#allocation76_spill] sm:$0xff] %v13278_v46  ;;  %16518 = vst [vmem:[#allocation220_spill] sm:$0xff] %v13280_v52  ;;  %v3477_v22 = vadd.f32 %v13213_v10, %v3400_v17  ;;  %v3221_v12 = vpop.f32.mrb[82].mxu0  ;;  %3742 = vmatprep.mubr.f32.mxu1 %v3539_v14 }
 0x391   : > { %4853 = vrot.lane.b32.xlu1 %v4113_v31, %s16501_s29  ;;  %v3401_v43 = vmul.f32 %v13199_v21, %v3221_v12  ;;  %v3223_v2 = vpop.f32.mrb[83].mxu0  ;;  %3743 = vmatmul.mubr.f32.gmra.mrb[66].mxu1 %v3538_v36  ;;  %v3540_v17 = vmax.f32 %v3476_v50, 0.0 }
 0x392   : > { %4725 = vrot.lane.b32.xlu0 %v9933_v30, %s16499_s25  ;;  %v3541_v47 = vmax.f32 %v3477_v22, 0.0  ;;  %v3402_v46 = vmul.f32 %v13206_v15, %v3223_v2 }
 0x393   : > { %v13288_v40 = vpop.permute.xlu1 %4527  ;;  %v13290_v19 = vpop.permute.xlu0 %4525  ;;  %v3478_v14 = vadd.f32 %v13209_v51, %v3401_v43  ;;  %v4094_v43 = vld [vmem:[#allocation2 + $0x154] sm:$0xff] }
 0x394   : > { %16519 = vst [vmem:[#allocation131_spill] sm:$0xff] %v13288_v40  ;;  %16520 = vst [vmem:[#allocation167_spill] sm:$0xff] %v13290_v19  ;;  %v3479_v31 = vadd.f32 %v13213_v10, %v3402_v46  ;;  %v3227_v52 = vpop.f32.mrb[84].mxu0  ;;  %3747 = vmatprep.mubr.f32.mxu1 %v3541_v47 }
 0x395   : > { %5093 = vrot.lane.b32.xlu1 %v4114_v26, %s15908_s22  ;;  %v3403_v12 = vmul.f32 %v13199_v21, %v3227_v52  ;;  %v3229_v22 = vpop.f32.mrb[85].mxu0  ;;  %3748 = vmatmul.mubr.f32.gmra.mrb[68].mxu1 %v3540_v17  ;;  %v3542_v46 = vmax.f32 %v3478_v14, 0.0  ;;  %v13308_v17 = vld [vmem:[#allocation2 + $0x1d4] sm:$0xff] }
 0x396   : > { %4981 = vrot.lane.b32.xlu0 %v13075_v23, %s16506_s15  ;;  %v3543_v36 = vmax.f32 %v3479_v31, 0.0  ;;  %v3404_v30 = vmul.f32 %v13206_v15, %v3229_v22  ;;  %v13310_v31 = vpop.f32.mrb[0].mxu1 }
 0x397   : > { %v13299_v2 = vpop.permute.xlu1 %4531  ;;  %v13301_v50 = vpop.permute.xlu0 %4529  ;;  %v3480_v47 = vadd.f32 %v13209_v51, %v3403_v12  ;;  %16523 = vst [vmem:[#allocation81_spill] sm:$0xff] %v13310_v31 }
 0x398   : > { %16521 = vst [vmem:[#allocation156_spill] sm:$0xff] %v13299_v2  ;;  %16522 = vst [vmem:[#allocation194_spill] sm:$0xff] %v13301_v50  ;;  %v3481_v40 = vadd.f32 %v13213_v10, %v3404_v30  ;;  %v3233_v19 = vpop.f32.mrb[86].mxu0  ;;  %3752 = vmatprep.mubr.f32.mxu1 %v3543_v36  ;;  %v1255_v2 = vpop.f32.mrb[1].mxu1 }
 0x399   : > { %4855 = vrot.lane.b32.xlu1 %v4114_v26, %s16501_s29  ;;  %v3405_v23 = vmul.f32 %v13199_v21, %v3233_v19  ;;  %v3235_v52 = vpop.f32.mrb[87].mxu0  ;;  %3753 = vmatmul.mubr.f32.gmra.mrb[70].mxu1 %v3542_v46  ;;  %v3544_v36 = vmax.f32 %v3480_v47, 0.0  ;;  %v13321_v46 = vpop.f32.mrb[2].mxu1  ;;  %v4115_v47 = vld [vmem:[#allocation2 + $0x1e4] sm:$0xff] }
 0x39a   : > { %4727 = vrot.lane.b32.xlu0 %v4094_v43, %s16499_s25  ;;  %v3545_v22 = vmax.f32 %v3481_v40, 0.0  ;;  %v3406_v14 = vmul.f32 %v13206_v15, %v3235_v52  ;;  %16526 = vst [vmem:[#allocation170_spill] sm:$0xff] %v13321_v46 }
 0x39b   : > { %v13313_v12 = vpop.permute.xlu1 %4535  ;;  %v13315_v30 = vpop.permute.xlu0 %4533  ;;  %v3482_v26 = vadd.f32 %v13209_v51, %v3405_v23 }
 0x39c   : > { %16524 = vst [vmem:[#allocation219_spill] sm:$0xff] %v13313_v12  ;;  %16525 = vst [vmem:[#allocation132_spill] sm:$0xff] %v13315_v30  ;;  %v3483_v19 = vadd.f32 %v13213_v10, %v3406_v14  ;;  %v3239_v43 = vpop.f32.mrb[88].mxu0  ;;  %3757 = vmatprep.mubr.f32.mxu1 %v3545_v22  ;;  %v1260_v12 = vpop.f32.mrb[3].mxu1 }
 0x39d   : > { %5095 = vrot.lane.b32.xlu1 %v13308_v17, %s15908_s22  ;;  %v3407_v40 = vmul.f32 %v13199_v21, %v3239_v43  ;;  %v3241_v52 = vpop.f32.mrb[89].mxu0  ;;  %3758 = vmatmul.mubr.f32.gmra.mrb[72].mxu1 %v3544_v36  ;;  %v3546_v30 = vmax.f32 %v3482_v26, 0.0  ;;  %v13332_v63 = vpop.f32.mrb[4].mxu1  ;;  %v9934_v36 = vld [vmem:[#allocation2 + $0x16c] sm:$0xff] }
 0x39e   : > { %4983 = vrot.lane.b32.xlu0 %v13073_v7, %s16506_s15  ;;  %v3547_v23 = vmax.f32 %v3483_v19, 0.0  ;;  %v3408_v2 = vmul.f32 %v13206_v15, %v3241_v52  ;;  %16529 = vst [vmem:[#allocation80_spill] sm:$0xff] %v13332_v63  ;;  %v1265_v7 = vpop.f32.mrb[5].mxu1  ;;  %v4116_v52 = vld [vmem:[#allocation2 + $0x1ec] sm:$0xff] }
 0x39f   : > { %v13327_v14 = vpop.permute.xlu1 %4539  ;;  %v13329_v22 = vpop.permute.xlu0 %4537  ;;  %v3484_v50 = vadd.f32 %v13209_v51, %v3407_v40 }
 0x3a0   : > { %16527 = vst [vmem:[#allocation155_spill] sm:$0xff] %v13327_v14  ;;  %16528 = vst [vmem:[#allocation197_spill] sm:$0xff] %v13329_v22  ;;  %v3485_v43 = vadd.f32 %v13213_v10, %v3408_v2  ;;  %v3245_v46 = vpop.f32.mrb[90].mxu0  ;;  %3762 = vmatprep.mubr.f32.mxu1 %v3547_v23  ;;  %v13338_v26 = vpop.f32.mrb[6].mxu1 }
 0x3a1   : > { %4857 = vrot.lane.b32.xlu1 %v4115_v47, %s16501_s29  ;;  %v3409_v12 = vmul.f32 %v13199_v21, %v3245_v46  ;;  %v3247_v19 = vpop.f32.mrb[91].mxu0  ;;  %3763 = vmatmul.mubr.f32.gmra.mrb[74].mxu1 %v3546_v30  ;;  %16530 = vst [vmem:[#allocation222_spill] sm:$0xff] %v13338_v26  ;;  %v3548_v23 = vmax.f32 %v3484_v50, 0.0  ;;  %v1270_v7 = vpop.f32.mrb[7].mxu1 }
 0x3a2   : > { %4729 = vrot.lane.b32.xlu0 %v9934_v36, %s16499_s25  ;;  %v3549_v40 = vmax.f32 %v3485_v43, 0.0  ;;  %v3410_v14 = vmul.f32 %v13206_v15, %v3247_v19  ;;  %v13348_v30 = vpop.f32.mrb[8].mxu1 }
 0x3a3   : > { %v13341_v22 = vpop.permute.xlu1 %4607  ;;  %v13343_v2 = vpop.permute.xlu0 %4605  ;;  %v3486_v47 = vadd.f32 %v13209_v51, %v3409_v12  ;;  %16531 = vst [vmem:[#allocation133_spill] sm:$0xff] %v13348_v30 }
 0x3a4   : > { %v3487_v46 = vadd.f32 %v13213_v10, %v3410_v14  ;;  %v3251_v63 = vpop.f32.mrb[92].mxu0  ;;  %3767 = vmatprep.mubr.f32.mxu1 %v3549_v40  ;;  %v1275_v19 = vpop.f32.mrb[9].mxu1  ;;  %v4095_v40 = vld [vmem:[#allocation2 + $0x174] sm:$0xff] }
 0x3a5   : > { %5097 = vrot.lane.b32.xlu1 %v4116_v52, %s15908_s22  ;;  %v3411_v43 = vmul.f32 %v13199_v21, %v3251_v63  ;;  %v3253_v36 = vpop.f32.mrb[93].mxu0  ;;  %3768 = vmatmul.mubr.f32.gmra.mrb[76].mxu1 %v3548_v23  ;;  %v3550_v26 = vmax.f32 %v3486_v47, 0.0  ;;  %v13359_v30 = vpop.f32.mrb[10].mxu1 }
 0x3a6   : > { %4985 = vrot.lane.b32.xlu0 %v13087_v33, %s16506_s15  ;;  %v3551_v50 = vmax.f32 %v3487_v46, 0.0  ;;  %v3412_v12 = vmul.f32 %v13206_v15, %v3253_v36  ;;  %16532 = vst [vmem:[#allocation169_spill] sm:$0xff] %v13359_v30  ;;  %v1280_v33 = vpop.f32.mrb[11].mxu1  ;;  %v13365_v36 = vld [vmem:[#allocation2 + $0x1f4] sm:$0xff] }
 0x3a7   : > { %v13354_v7 = vpop.permute.xlu1 %4611  ;;  %v13356_v14 = vpop.permute.xlu0 %4609  ;;  %v3488_v31 = vadd.f32 %v13209_v51, %v3411_v43 }
 0x3a8   : > { %v3489_v63 = vadd.f32 %v13213_v10, %v3412_v12  ;;  %v3257_v37 = vpop.f32.mrb[94].mxu0  ;;  %3772 = vmatprep.mubr.f32.mxu1 %v3551_v50  ;;  %v13367_v47 = vpop.f32.mrb[12].mxu1 }
 0x3a9   : > { %4859 = vrot.lane.b32.xlu1 %v4116_v52, %s16501_s29  ;;  %v3413_v23 = vmul.f32 %v13199_v21, %v3257_v37  ;;  %v3259_v46 = vpop.f32.mrb[95].mxu0  ;;  %3773 = vmatmul.mubr.f32.gmra.mrb[78].mxu1 %v3550_v26  ;;  %16533 = vst [vmem:[#allocation158_spill] sm:$0xff] %v13367_v47  ;;  %v3552_v50 = vmax.f32 %v3488_v31, 0.0  ;;  %v1285_v33 = vpop.f32.mrb[13].mxu1  ;;  %v4117_v31 = vld [vmem:[#allocation2 + $0x204] sm:$0xff] }
 0x3aa   : > { %4731 = vrot.lane.b32.xlu0 %v4095_v40, %s16499_s25  ;;  %v3553_v43 = vmax.f32 %v3489_v63, 0.0  ;;  %v3414_v19 = vmul.f32 %v13206_v15, %v3259_v46  ;;  %v13378_v26 = vpop.f32.mrb[14].mxu1 }
 0x3ab   : > { %v13370_v30 = vpop.permute.xlu1 %4615  ;;  %v13372_v12 = vpop.permute.xlu0 %4613  ;;  %v3490_v52 = vadd.f32 %v13209_v51, %v3413_v23  ;;  %16534 = vst [vmem:[#allocation196_spill] sm:$0xff] %v13378_v26 }
 0x3ac   : > { %v3491_v37 = vadd.f32 %v13213_v10, %v3414_v19  ;;  %v3263_v40 = vpop.f32.mrb[96].mxu0  ;;  %3777 = vmatprep.mubr.f32.mxu1 %v3553_v43  ;;  %v1290_v47 = vpop.f32.mrb[15].mxu1 }
 0x3ad   : > { %5099 = vrot.lane.b32.xlu1 %v13365_v36, %s15908_s22  ;;  %v3415_v63 = vmul.f32 %v13199_v21, %v3263_v40  ;;  %v3265_v46 = vpop.f32.mrb[97].mxu0  ;;  %3778 = vmatmul.mubr.f32.gmra.mrb[80].mxu1 %v3552_v50  ;;  %v3554_v60 = vmax.f32 %v3490_v52, 0.0  ;;  %v13389_v26 = vpop.f32.mrb[16].mxu1  ;;  %v9935_v50 = vld [vmem:[#allocation2 + $0x18c] sm:$0xff] }
 0x3ae   : > { %4987 = vrot.lane.b32.xlu0 %v13085_v1, %s16506_s15  ;;  %v3555_v23 = vmax.f32 %v3491_v37, 0.0  ;;  %v3416_v33 = vmul.f32 %v13206_v15, %v3265_v46  ;;  %16535 = vst [vmem:[#allocation85_spill] sm:$0xff] %v13389_v26  ;;  %v1295_v1 = vpop.f32.mrb[17].mxu1  ;;  %v4118_v46 = vld [vmem:[#allocation2 + $0x20c] sm:$0xff] }
 0x3af   : > { %v13384_v19 = vpop.permute.xlu1 %4619  ;;  %v13386_v43 = vpop.permute.xlu0 %4617  ;;  %v3492_v16 = vadd.f32 %v13209_v51, %v3415_v63 }
 0x3b0   : > { %v3493_v40 = vadd.f32 %v13213_v10, %v3416_v33  ;;  %v3269_v24 = vpop.f32.mrb[98].mxu0  ;;  %3782 = vmatprep.mubr.f32.mxu1 %v3555_v23  ;;  %v13395_v52 = vpop.f32.mrb[18].mxu1 }
 0x3b1   : > { %4861 = vrot.lane.b32.xlu1 %v4117_v31, %s16501_s29  ;;  %v3417_v47 = vmul.f32 %v13199_v21, %v3269_v24  ;;  %v3271_v37 = vpop.f32.mrb[99].mxu0  ;;  %3783 = vmatmul.mubr.f32.gmra.mrb[82].mxu1 %v3554_v60  ;;  %16536 = vst [vmem:[#allocation221_spill] sm:$0xff] %v13395_v52  ;;  %v3556_v23 = vmax.f32 %v3492_v16, 0.0  ;;  %v1300_v1 = vpop.f32.mrb[19].mxu1 }
 0x3b2   : > { %4733 = vrot.lane.b32.xlu0 %v9935_v50, %s16499_s25  ;;  %v3557_v63 = vmax.f32 %v3493_v40, 0.0  ;;  %v3418_v26 = vmul.f32 %v13206_v15, %v3271_v37  ;;  %v13405_v60 = vpop.f32.mrb[20].mxu1 }
 0x3b3   : > { %v13398_v61 = vpop.permute.xlu1 %4623  ;;  %v13400_v33 = vpop.permute.xlu0 %4621  ;;  %v3494_v31 = vadd.f32 %v13209_v51, %v3417_v47  ;;  %16539 = vst [vmem:[#allocation157_spill] sm:$0xff] %v13405_v60 }
 0x3b4   : > { %16537 = vst [vmem:[#allocation134_spill] sm:$0xff] %v13398_v61  ;;  %16538 = vst [vmem:[#allocation172_spill] sm:$0xff] %v13400_v33  ;;  %v3495_v24 = vadd.f32 %v13213_v10, %v3418_v26  ;;  %v3275_v59 = vpop.f32.mrb[100].mxu0  ;;  %3787 = vmatprep.mubr.f32.mxu1 %v3557_v63  ;;  %v1305_v37 = vpop.f32.mrb[21].mxu1 }
 0x3b5   : > { %5101 = vrot.lane.b32.xlu1 %v4118_v46, %s15908_s22  ;;  %v3419_v40 = vmul.f32 %v13199_v21, %v3275_v59  ;;  %v3277_v50 = vpop.f32.mrb[101].mxu0  ;;  %3788 = vmatmul.mubr.f32.gmra.mrb[84].mxu1 %v3556_v23  ;;  %v3558_v63 = vmax.f32 %v3494_v31, 0.0  ;;  %v13416_v61 = vpop.f32.mrb[22].mxu1 }
 0x3b6   : > { %4989 = vrot.lane.b32.xlu0 %v13097_v9, %s16506_s15  ;;  %v3559_v16 = vmax.f32 %v3495_v24, 0.0  ;;  %v3420_v47 = vmul.f32 %v13206_v15, %v3277_v50  ;;  %16542 = vst [vmem:[#allocation224_spill] sm:$0xff] %v13416_v61  ;;  %v1310_v9 = vpop.f32.mrb[23].mxu1  ;;  %v13423_v50 = vld [vmem:[#allocation2 + $0x214] sm:$0xff] }
 0x3b7   : > { %v13411_v1 = vpop.permute.xlu1 %4627  ;;  %v13413_v26 = vpop.permute.xlu0 %4625  ;;  %v3496_v52 = vadd.f32 %v13209_v51, %v3419_v40 }
 0x3b8   : > { %16540 = vst [vmem:[#allocation199_spill] sm:$0xff] %v13411_v1  ;;  %16541 = vst [vmem:[#allocation84_spill] sm:$0xff] %v13413_v26  ;;  %v3497_v59 = vadd.f32 %v13213_v10, %v3420_v47  ;;  %3792 = vmatprep.mubr.f32.mxu1 %v3559_v16  ;;  %v13425_v31 = vpop.f32.mrb[24].mxu1 }
 0x3b9   : > { %v3281_v60 = vpop.f32.mrb[102].mxu0  ;;  %4863 = vrot.lane.b32.xlu1 %v4118_v46, %s16501_s29  ;;  %3793 = vmatmul.mubr.f32.gmra.mrb[86].mxu1 %v3558_v63  ;;  %16543 = vst [vmem:[#allocation135_spill] sm:$0xff] %v13425_v31  ;;  %v4150_v46 = vld [vmem:[#allocation2 + $0x210] sm:$0xff]  ;;  %v3560_v9 = vmax.f32 %v3496_v52, 0.0  ;;  %v1315_v61 = vpop.f32.mrb[25].mxu1  ;;  %v4119_v31 = vld [vmem:[#allocation2 + $0x224] sm:$0xff] }
 0x3ba   : > { %v3421_v23 = vmul.f32 %v13199_v21, %v3281_v60  ;;  %4735 = vrot.lane.b32.xlu0 %v13234_v32, %s16499_s25  ;;  %v3283_v24 = vpop.f32.mrb[103].mxu0  ;;  %v3561_v40 = vmax.f32 %v3497_v59, 0.0  ;;  %v13436_v63 = vpop.f32.mrb[26].mxu1 }
 0x3bb   : > { %v3422_v37 = vmul.f32 %v13206_v15, %v3283_v24  ;;  %v13428_v47 = vpop.permute.xlu1 %4631  ;;  %v13430_v16 = vpop.permute.xlu0 %4629  ;;  %16546 = vst [vmem:[#allocation198_spill] sm:$0xff] %v13436_v63 }
 0x3bc   : > { %16544 = vst [vmem:[#allocation171_spill] sm:$0xff] %v13428_v47  ;;  %16545 = vst [vmem:[#allocation159_spill] sm:$0xff] %v13430_v16  ;;  %v3498_v60 = vadd.f32 %v13209_v51, %v3421_v23  ;;  %3797 = vmatprep.mubr.f32.mxu1 %v3561_v40  ;;  %v1320_v52 = vpop.f32.mrb[27].mxu1 }
 0x3bd   : > { %v3499_v32 = vadd.f32 %v13213_v10, %v3422_v37  ;;  %v3287_v1 = vpop.f32.mrb[104].mxu0  ;;  %5103 = vrot.lane.b32.xlu1 %v13423_v50, %s15908_s22  ;;  %3798 = vmatmul.mubr.f32.gmra.mrb[88].mxu1 %v3560_v9  ;;  %v13446_v26 = vpop.f32.mrb[28].mxu1  ;;  %v4120_v52 = vld [vmem:[#allocation2 + $0x22c] sm:$0xff] }
 0x3be   : > { %v3423_v59 = vmul.f32 %v13199_v21, %v3287_v1  ;;  %4991 = vrot.lane.b32.xlu0 %v4150_v46, %s16506_s15  ;;  %v3289_v24 = vpop.f32.mrb[105].mxu0  ;;  %v3562_v40 = vmax.f32 %v3498_v60, 0.0  ;;  %16549 = vst [vmem:[#allocation136_spill] sm:$0xff] %v13446_v26  ;;  %v1325_v46 = vpop.f32.mrb[29].mxu1 }
 0x3bf   : > { %v3563_v47 = vmax.f32 %v3499_v32, 0.0  ;;  %v3424_v61 = vmul.f32 %v13206_v15, %v3289_v24  ;;  %v13441_v23 = vpop.permute.xlu1 %4635  ;;  %v13443_v37 = vpop.permute.xlu0 %4633  ;;  %v9936_v32 = vld [vmem:[#allocation2 + $0x1ac] sm:$0xff] }
 0x3c0   : > { %16547 = vst [vmem:[#allocation89_spill] sm:$0xff] %v13441_v23  ;;  %16548 = vst [vmem:[#allocation223_spill] sm:$0xff] %v13443_v37  ;;  %v3500_v16 = vadd.f32 %v13209_v51, %v3423_v59  ;;  %v13452_v60 = vpop.f32.mrb[30].mxu1 }
 0x3c1   : > { %v3501_v1 = vadd.f32 %v13213_v10, %v3424_v61  ;;  %v3293_v63 = vpop.f32.mrb[106].mxu0  ;;  %3802 = vmatprep.mubr.f32.mxu1 %v3563_v47  ;;  %4865 = vrot.lane.b32.xlu1 %v4119_v31, %s16501_s29  ;;  %16550 = vst [vmem:[#allocation174_spill] sm:$0xff] %v13452_v60  ;;  %v4151_v47 = vld [vmem:[#allocation2 + $0x228] sm:$0xff] }
 0x3c2   : > { %v3425_v9 = vmul.f32 %v13199_v21, %v3293_v63  ;;  %4737 = vrot.lane.b32.xlu0 %v9936_v32, %s16499_s25  ;;  %v3295_v24 = vpop.f32.mrb[107].mxu0  ;;  %3803 = vmatmul.mubr.f32.gmra.mrb[90].mxu1 %v3562_v40  ;;  %v3564_v31 = vmax.f32 %v3500_v16, 0.0  ;;  %v1330_v63 = vpop.f32.mrb[31].mxu1 }
 0x3c3   : > { %v3565_v59 = vmax.f32 %v3501_v1, 0.0  ;;  %v3426_v26 = vmul.f32 %v13206_v15, %v3295_v24  ;;  %v13455_v23 = vpop.permute.xlu1 %4639  ;;  %v13457_v61 = vpop.permute.xlu0 %4637 }
 0x3c4   : > { %16551 = vst [vmem:[#allocation43_spill] sm:$0xff] %v13455_v23  ;;  %16552 = vst [vmem:[#allocation201_spill] sm:$0xff] %v13457_v61  ;;  %v3502_v46 = vadd.f32 %v13209_v51, %v3425_v9  ;;  %v13462_v40 = vpop.f32.mrb[32].mxu1 }
 0x3c5   : > { %v3503_v37 = vadd.f32 %v13213_v10, %v3426_v26  ;;  %v3299_v32 = vpop.f32.mrb[108].mxu0  ;;  %3807 = vmatprep.mubr.f32.mxu1 %v3565_v59  ;;  %5105 = vrot.lane.b32.xlu1 %v4120_v52, %s15908_s22  ;;  %16553 = vst [vmem:[#allocation88_spill] sm:$0xff] %v13462_v40  ;;  %v1335_v60 = vpop.f32.mrb[33].mxu1 }
 0x3c6   : > { %v3427_v1 = vmul.f32 %v13199_v21, %v3299_v32  ;;  %4993 = vrot.lane.b32.xlu0 %v4151_v47, %s16506_s15  ;;  %v3301_v24 = vpop.f32.mrb[109].mxu0  ;;  %3808 = vmatmul.mubr.f32.gmra.mrb[92].mxu1 %v3564_v31  ;;  %v3566_v26 = vmax.f32 %v3502_v46, 0.0  ;;  %v13472_v61 = vpop.f32.mrb[34].mxu1  ;;  %v13479_v31 = vld [vmem:[#allocation2 + $0x234] sm:$0xff] }
 0x3c7   : > { %v3567_v23 = vmax.f32 %v3503_v37, 0.0  ;;  %v3428_v16 = vmul.f32 %v13206_v15, %v3301_v24  ;;  %v13467_v9 = vpop.permute.xlu1 %4643  ;;  %v13469_v63 = vpop.permute.xlu0 %4641  ;;  %16556 = vst [vmem:[#allocation173_spill] sm:$0xff] %v13472_v61 }
 0x3c8   : > { %16554 = vst [vmem:[#allocation226_spill] sm:$0xff] %v13467_v9  ;;  %16555 = vst [vmem:[#allocation137_spill] sm:$0xff] %v13469_v63  ;;  %v3504_v59 = vadd.f32 %v13209_v51, %v3427_v1  ;;  %v1340_v47 = vpop.f32.mrb[35].mxu1 }
 0x3c9   : > { %v3505_v40 = vadd.f32 %v13213_v10, %v3428_v16  ;;  %v3305_v32 = vpop.f32.mrb[110].mxu0  ;;  %3812 = vmatprep.mubr.f32.mxu1 %v3567_v23  ;;  %4867 = vrot.lane.b32.xlu1 %v4120_v52, %s16501_s29  ;;  %v13481_v46 = vpop.f32.mrb[36].mxu1  ;;  %v4152_v52 = vld [vmem:[#allocation2 + $0x230] sm:$0xff] }
 0x3ca   : > { %v3429_v37 = vmul.f32 %v13199_v21, %v3305_v32  ;;  %4739 = vrot.lane.b32.xlu0 %v13263_v18, %s16499_s25  ;;  %v3307_v60 = vpop.f32.mrb[111].mxu0  ;;  %3813 = vmatmul.mubr.f32.gmra.mrb[94].mxu1 %v3566_v26  ;;  %16557 = vst [vmem:[#allocation45_spill] sm:$0xff] %v13481_v46  ;;  %v3568_v47 = vmax.f32 %v3504_v59, 0.0  ;;  %v1345_v61 = vpop.f32.mrb[37].mxu1  ;;  %v4121_v46 = vld [vmem:[#allocation2 + $0x244] sm:$0xff] }
 0x3cb   : > { %v3569_v1 = vmax.f32 %v3505_v40, 0.0  ;;  %v3430_v24 = vmul.f32 %v13206_v15, %v3307_v60  ;;  %v13484_v16 = vpop.permute.xlu1 %4647  ;;  %v13486_v23 = vpop.permute.xlu0 %4645 }
 0x3cc   : > { %16558 = vst [vmem:[#allocation200_spill] sm:$0xff] %v13484_v16  ;;  %16559 = vst [vmem:[#allocation93_spill] sm:$0xff] %v13486_v23  ;;  %v3506_v32 = vadd.f32 %v13209_v51, %v3429_v37  ;;  %v13492_v26 = vpop.f32.mrb[38].mxu1 }
 0x3cd   : > { %v3507_v18 = vadd.f32 %v13213_v10, %v3430_v24  ;;  %v3311_v9 = vpop.f32.mrb[112].mxu0  ;;  %3817 = vmatprep.mubr.f32.mxu1 %v3569_v1  ;;  %5107 = vrot.lane.b32.xlu1 %v13479_v31, %s15908_s22  ;;  %16560 = vst [vmem:[#allocation225_spill] sm:$0xff] %v13492_v26  ;;  %v1350_v59 = vpop.f32.mrb[39].mxu1 }
 0x3ce   : > { %v3431_v40 = vmul.f32 %v13199_v21, %v3311_v9  ;;  %4995 = vrot.lane.b32.xlu0 %v4152_v52, %s16506_s15  ;;  %v3313_v60 = vpop.f32.mrb[113].mxu0  ;;  %3818 = vmatmul.mubr.f32.gmra.mrb[96].mxu1 %v3568_v47  ;;  %v3570_v1 = vmax.f32 %v3506_v32, 0.0  ;;  %v13502_v63 = vpop.f32.mrb[40].mxu1  ;;  %v4122_v59 = vld [vmem:[#allocation2 + $0x24c] sm:$0xff] }
 0x3cf   : > { %v3571_v16 = vmax.f32 %v3507_v18, 0.0  ;;  %v3432_v61 = vmul.f32 %v13206_v15, %v3313_v60  ;;  %v13497_v37 = vpop.permute.xlu1 %4651  ;;  %v13499_v24 = vpop.permute.xlu0 %4649  ;;  %16563 = vst [vmem:[#allocation47_spill] sm:$0xff] %v13502_v63  ;;  %v9937_v18 = vld [vmem:[#allocation2 + $0x1cc] sm:$0xff] }
 0x3d0   : > { %16561 = vst [vmem:[#allocation44_spill] sm:$0xff] %v13497_v37  ;;  %16562 = vst [vmem:[#allocation176_spill] sm:$0xff] %v13499_v24  ;;  %v3508_v23 = vadd.f32 %v13209_v51, %v3431_v40  ;;  %v1355_v52 = vpop.f32.mrb[41].mxu1 }
 0x3d1   : > { %v3509_v9 = vadd.f32 %v13213_v10, %v3432_v61  ;;  %v3317_v26 = vpop.f32.mrb[114].mxu0  ;;  %3822 = vmatprep.mubr.f32.mxu1 %v3571_v16  ;;  %4869 = vrot.lane.b32.xlu1 %v4121_v46, %s16501_s29  ;;  %v13508_v32 = vpop.f32.mrb[42].mxu1  ;;  %v4153_v16 = vld [vmem:[#allocation2 + $0x248] sm:$0xff] }
 0x3d2   : > { %v3433_v47 = vmul.f32 %v13199_v21, %v3317_v26  ;;  %4741 = vrot.lane.b32.xlu0 %v9937_v18, %s16499_s25  ;;  %v3319_v60 = vpop.f32.mrb[115].mxu0  ;;  %3823 = vmatmul.mubr.f32.gmra.mrb[98].mxu1 %v3570_v1  ;;  %16564 = vst [vmem:[#allocation203_spill] sm:$0xff] %v13508_v32  ;;  %v3572_v46 = vmax.f32 %v3508_v23, 0.0  ;;  %v1360_v26 = vpop.f32.mrb[43].mxu1 }
 0x3d3   : > { %v3573_v40 = vmax.f32 %v3509_v9, 0.0  ;;  %v3434_v63 = vmul.f32 %v13206_v15, %v3319_v60  ;;  %v13511_v37 = vpop.permute.xlu1 %4655  ;;  %v13513_v61 = vpop.permute.xlu0 %4653 }
 0x3d4   : > { %16565 = vst [vmem:[#allocation92_spill] sm:$0xff] %v13511_v37  ;;  %16566 = vst [vmem:[#allocation228_spill] sm:$0xff] %v13513_v61  ;;  %v3510_v52 = vadd.f32 %v13209_v51, %v3433_v47  ;;  %v13518_v1 = vpop.f32.mrb[44].mxu1 }
 0x3d5   : > { %v3511_v24 = vadd.f32 %v13213_v10, %v3434_v63  ;;  %v3323_v18 = vpop.f32.mrb[116].mxu0  ;;  %3827 = vmatprep.mubr.f32.mxu1 %v3573_v40  ;;  %5109 = vrot.lane.b32.xlu1 %v4122_v59, %s15908_s22  ;;  %16567 = vst [vmem:[#allocation97_spill] sm:$0xff] %v13518_v1  ;;  %v1365_v32 = vpop.f32.mrb[45].mxu1 }
 0x3d6   : > { %v3435_v9 = vmul.f32 %v13199_v21, %v3323_v18  ;;  %4997 = vrot.lane.b32.xlu0 %v4153_v16, %s16506_s15  ;;  %v3325_v60 = vpop.f32.mrb[117].mxu0  ;;  %3828 = vmatmul.mubr.f32.gmra.mrb[100].mxu1 %v3572_v46  ;;  %v3574_v63 = vmax.f32 %v3510_v52, 0.0  ;;  %v13528_v61 = vpop.f32.mrb[46].mxu1  ;;  %v13535_v46 = vld [vmem:[#allocation2 + $0x254] sm:$0xff] }
 0x3d7   : > { %v3575_v37 = vmax.f32 %v3511_v24, 0.0  ;;  %v3436_v23 = vmul.f32 %v13206_v15, %v3325_v60  ;;  %v13523_v47 = vpop.permute.xlu1 %4659  ;;  %v13525_v26 = vpop.permute.xlu0 %4657  ;;  %16570 = vst [vmem:[#allocation178_spill] sm:$0xff] %v13528_v61 }
 0x3d8   : > { %16568 = vst [vmem:[#allocation175_spill] sm:$0xff] %v13523_v47  ;;  %16569 = vst [vmem:[#allocation202_spill] sm:$0xff] %v13525_v26  ;;  %v3512_v40 = vadd.f32 %v13209_v51, %v3435_v9  ;;  %v1370_v16 = vpop.f32.mrb[47].mxu1 }
 0x3d9   : > { %v3513_v1 = vadd.f32 %v13213_v10, %v3436_v23  ;;  %v3329_v18 = vpop.f32.mrb[118].mxu0  ;;  %3832 = vmatprep.mubr.f32.mxu1 %v3575_v37  ;;  %4871 = vrot.lane.b32.xlu1 %v4122_v59, %s16501_s29  ;;  %v13537_v52 = vpop.f32.mrb[48].mxu1  ;;  %v4154_v59 = vld [vmem:[#allocation2 + $0x250] sm:$0xff] }
 0x3da   : > { %v3437_v24 = vmul.f32 %v13199_v21, %v3329_v18  ;;  %4743 = vrot.lane.b32.xlu0 %v13308_v17, %s16499_s25  ;;  %v3331_v32 = vpop.f32.mrb[119].mxu0  ;;  %3833 = vmatmul.mubr.f32.gmra.mrb[102].mxu1 %v3574_v63  ;;  %16571 = vst [vmem:[#allocation227_spill] sm:$0xff] %v13537_v52  ;;  %v3576_v16 = vmax.f32 %v3512_v40, 0.0  ;;  %v1375_v61 = vpop.f32.mrb[49].mxu1 }
 0x3db   : > { %v3577_v9 = vmax.f32 %v3513_v1, 0.0  ;;  %v3438_v60 = vmul.f32 %v13206_v15, %v3331_v32  ;;  %v13540_v23 = vpop.permute.xlu1 %4663  ;;  %v13542_v37 = vpop.permute.xlu0 %4661 }
 0x3dc   : > { %16572 = vst [vmem:[#allocation46_spill] sm:$0xff] %v13540_v23  ;;  %16573 = vst [vmem:[#allocation205_spill] sm:$0xff] %v13542_v37  ;;  %v3514_v18 = vadd.f32 %v13209_v51, %v3437_v24  ;;  %v13548_v63 = vpop.f32.mrb[50].mxu1  ;;  %v4123_v23 = vld [vmem:[#allocation2 + $0x264] sm:$0xff] }
 0x3dd   : > { %v3515_v17 = vadd.f32 %v13213_v10, %v3438_v60  ;;  %v3335_v47 = vpop.f32.mrb[120].mxu0  ;;  %3837 = vmatprep.mubr.f32.mxu1 %v3577_v9  ;;  %5111 = vrot.lane.b32.xlu1 %v13535_v46, %s15908_s22  ;;  %16574 = vst [vmem:[#allocation96_spill] sm:$0xff] %v13548_v63  ;;  %v1380_v40 = vpop.f32.mrb[51].mxu1 }
 0x3de   : > { %v3439_v1 = vmul.f32 %v13199_v21, %v3335_v47  ;;  %4999 = vrot.lane.b32.xlu0 %v4154_v59, %s16506_s15  ;;  %v3337_v32 = vpop.f32.mrb[121].mxu0  ;;  %3838 = vmatmul.mubr.f32.gmra.mrb[104].mxu1 %v3576_v16  ;;  %v3578_v9 = vmax.f32 %v3514_v18, 0.0  ;;  %v13558_v26 = vpop.f32.mrb[52].mxu1  ;;  %v4124_v40 = vld [vmem:[#allocation2 + $0x26c] sm:$0xff] }
 0x3df   : > { %v3579_v37 = vmax.f32 %v3515_v17, 0.0  ;;  %v3440_v61 = vmul.f32 %v13206_v15, %v3337_v32  ;;  %v13553_v24 = vpop.permute.xlu1 %4667  ;;  %v13555_v60 = vpop.permute.xlu0 %4665  ;;  %16577 = vst [vmem:[#allocation139_spill] sm:$0xff] %v13558_v26  ;;  %v9938_v17 = vld [vmem:[#allocation2 + $0x1ec] sm:$0xff] }
 0x3e0   : > { %16575 = vst [vmem:[#allocation95_spill] sm:$0xff] %v13553_v24  ;;  %16576 = vst [vmem:[#allocation177_spill] sm:$0xff] %v13555_v60  ;;  %v3516_v52 = vadd.f32 %v13209_v51, %v3439_v1  ;;  %v1385_v59 = vpop.f32.mrb[53].mxu1  ;;  %v3948_v1 = vld [vmem:[#allocation2 + $0x84] sm:$0xff] }
 0x3e1   : > { %v3517_v47 = vadd.f32 %v13213_v10, %v3440_v61  ;;  %v3341_v63 = vpop.f32.mrb[122].mxu0  ;;  %3842 = vmatprep.mubr.f32.mxu1 %v3579_v37  ;;  %4873 = vrot.lane.b32.xlu1 %v4123_v23, %s16501_s29  ;;  %v13564_v18 = vpop.f32.mrb[54].mxu1  ;;  %v4155_v26 = vld [vmem:[#allocation2 + $0x268] sm:$0xff] }
 0x3e2   : > { %v3441_v16 = vmul.f32 %v13199_v21, %v3341_v63  ;;  %4745 = vrot.lane.b32.xlu0 %v9938_v17, %s16499_s25  ;;  %v3343_v32 = vpop.f32.mrb[123].mxu0  ;;  %3843 = vmatmul.mubr.f32.gmra.mrb[106].mxu1 %v3578_v9  ;;  %16578 = vst [vmem:[#allocation204_spill] sm:$0xff] %v13564_v18  ;;  %v3580_v23 = vmax.f32 %v3516_v52, 0.0  ;;  %v1390_v63 = vpop.f32.mrb[55].mxu1 }
 0x3e3   : > { %v3581_v24 = vmax.f32 %v3517_v47, 0.0  ;;  %v3442_v60 = vmul.f32 %v13206_v15, %v3343_v32  ;;  %v13567_v61 = vpop.permute.xlu1 %4719  ;;  %v4718_v37 = vpop.permute.xlu0 %4717  ;;  %v5181_v47 = vsel %vm432_vm0, %v3948_v1, %v12594_v55 }
 0x3e4   : > { %v3518_v59 = vadd.f32 %v13209_v51, %v3441_v16  ;;  %v13572_v9 = vpop.f32.mrb[56].mxu1  ;;  %v5213_v16 = vsel %vm2775_vm2, %v5181_v47, %v13008_v28 }
 0x3e5   : > { %v3519_v29 = vadd.f32 %v13213_v10, %v3442_v60  ;;  %v3347_v17 = vpop.f32.mrb[124].mxu0  ;;  %3847 = vmatprep.mubr.f32.mxu1 %v3581_v24  ;;  %5113 = vrot.lane.b32.xlu1 %v4124_v40, %s15908_s22  ;;  %16579 = vst [vmem:[#allocation49_spill] sm:$0xff] %v13572_v9  ;;  %v1395_v52 = vpop.f32.mrb[57].mxu1  ;;  %v5245_v9 = vsel %vm2808_vm3, %v5213_v16, %v13138_v53 }
 0x3e6   : > { %v3443_v32 = vmul.f32 %v13199_v21, %v3347_v17  ;;  %5001 = vrot.lane.b32.xlu0 %v4155_v26, %s16506_s15  ;;  %v3349_v18 = vpop.f32.mrb[125].mxu0  ;;  %3848 = vmatmul.mubr.f32.gmra.mrb[108].mxu1 %v3580_v23  ;;  %v3582_v55 = vmax.f32 %v3518_v59, 0.0  ;;  %v5277_v26 = vsel %vm2841_vm4, %v5245_v9, %v13343_v2  ;;  %v4156_v52 = vld [vmem:[#allocation2 + $0x270] sm:$0xff] }
 0x3e7   : > { %v3583_v60 = vmax.f32 %v3519_v29, 0.0  ;;  %v3444_v24 = vmul.f32 %v13206_v15, %v3349_v18  ;;  %v4846_v63 = vpop.permute.xlu1 %4845  ;;  %v13581_v33 = vpop.permute.xlu0 %4721  ;;  %v5309_v29 = vsel %vm2874_vm5, %v5277_v26, %v4718_v37  ;;  %v13594_v18 = vld [vmem:[#allocation2 + $0x274] sm:$0xff] }
 0x3e8   : > { %v3520_v1 = vadd.f32 %v13209_v51, %v3443_v32  ;;  %v5341_v2 = vsel %vm2907_vm6, %v5309_v29, %v4846_v63 }
 0x3e9   : > { %v3521_v23 = vadd.f32 %v13213_v10, %v3444_v24  ;;  %v3353_v17 = vpop.f32.mrb[126].mxu0  ;;  %3852 = vmatprep.mubr.f32.mxu1 %v3583_v60  ;;  %4875 = vrot.lane.b32.xlu1 %v4124_v40, %s16501_s29  ;;  %v9939_v40 = vld [vmem:[#allocation2 + $0x8c] sm:$0xff] }
 0x3ea   : > { %v3445_v28 = vmul.f32 %v13199_v21, %v3353_v17  ;;  %4747 = vrot.lane.b32.xlu0 %v13365_v36, %s16499_s25  ;;  %v3355_v53 = vpop.f32.mrb[127].mxu0  ;;  %3853 = vmatmul.mubr.f32.gmra.mrb[110].mxu1 %v3582_v55  ;;  %v5182_v37 = vsel %vm432_vm0, %v9939_v40, %v12592_v5  ;;  %v3584_v16 = vmax.f32 %v3520_v1, 0.0  ;;  %v4125_v17 = vld [vmem:[#allocation2 + $0x284] sm:$0xff] }
 0x3eb   : > { %v3585_v59 = vmax.f32 %v3521_v23, 0.0  ;;  %v3446_v9 = vmul.f32 %v13206_v15, %v3355_v53  ;;  %v5086_v47 = vpop.permute.xlu1 %5085  ;;  %v4974_v32 = vpop.permute.xlu0 %4973  ;;  %v5214_v24 = vsel %vm2775_vm2, %v5182_v37, %v13006_v38  ;;  %v9940_v37 = vld [vmem:[#allocation2 + $0x20c] sm:$0xff] }
 0x3ec   : > { %v3522_v60 = vadd.f32 %v13209_v51, %v3445_v28  ;;  %v5373_v36 = vsel %vm2940_vm7, %v5341_v2, %v4974_v32  ;;  %v5246_v5 = vsel %vm2808_vm3, %v5214_v24, %v13136_v45  ;;  %v3950_v2 = vld [vmem:[#allocation2 + $0xa4] sm:$0xff] }
 0x3ed   : > { %v3523_v55 = vadd.f32 %v13213_v10, %v3446_v9  ;;  %v5405_v63 = vsel %vm2973_vm8, %v5373_v36, %v5086_v47  ;;  %v3359_v26 = vpop.f32.mrb[128].mxu0  ;;  %3857 = vmatprep.mubr.f32.mxu1 %v3585_v59  ;;  %5115 = vrot.lane.b32.xlu1 %v13594_v18, %s15908_s22  ;;  %v5278_v38 = vsel %vm2841_vm4, %v5246_v5, %v13341_v22 }
 0x3ee   : > { %v3447_v1 = vmul.f32 %v13199_v21, %v3359_v26  ;;  %5003 = vrot.lane.b32.xlu0 %v4156_v52, %s16506_s15  ;;  %v3361_v23 = vpop.f32.mrb[129].mxu0  ;;  %3858 = vmatmul.mubr.f32.gmra.mrb[112].mxu1 %v3584_v16  ;;  %v5310_v45 = vsel %vm2874_vm5, %v5278_v38, %v13567_v61  ;;  %v3586_v9 = vmax.f32 %v3522_v60, 0.0  ;;  %v4126_v61 = vld [vmem:[#allocation2 + $0x28c] sm:$0xff]  ;;  %v5183_v60 = vsel %vm432_vm0, %v3950_v2, %v12626_v11 }
 0x3ef   : > { %v3587_v29 = vmax.f32 %v3523_v55, 0.0  ;;  %v3448_v28 = vmul.f32 %v13206_v15, %v3361_v23  ;;  %9439 = vmatmul.mubr.msk.f32.vlgmr.msra.gmra.mrb[134].mxu0 %vm3016_vm9, %v5405_v63  ;;  %v4976_v53 = vpop.permute.xlu1 %4975  ;;  %v4848_v59 = vpop.permute.xlu0 %4847  ;;  %v4157_v63 = vld [vmem:[#allocation2 + $0x288] sm:$0xff]  ;;  %v5215_v26 = vsel %vm2775_vm2, %v5183_v60, %v13015_v54  ;;  %v4158_v60 = vld [vmem:[#allocation2 + $0x290] sm:$0xff] }
 0x3f0   : > { %v3524_v47 = vadd.f32 %v13209_v51, %v3447_v1  ;;  %5619 = vmatprep.mubr.f32.mxu0 %v16047_v34  ;;  %v5342_v22 = vsel %vm2907_vm6, %v5310_v45, %v4848_v59  ;;  %v5247_v38 = vsel %vm2808_vm3, %v5215_v26, %v13156_v27 }
 0x3f1   : > { %v3525_v32 = vadd.f32 %v13213_v10, %v3448_v28  ;;  %v3365_v52 = vpop.f32.mrb[130].mxu0  ;;  %3862 = vmatprep.mubr.f32.mxu1 %v3587_v29  ;;  %4877 = vrot.lane.b32.xlu1 %v4125_v17, %s16501_s29  ;;  %v5374_v23 = vsel %vm2940_vm7, %v5342_v22, %v4976_v53  ;;  %v5279_v54 = vsel %vm2841_vm4, %v5247_v38, %v13356_v14  ;;  %v4128_v38 = vld [vmem:[#allocation2 + $0x2ac] sm:$0xff] }
 0x3f2   : > { %v3449_v40 = vmul.f32 %v13199_v21, %v3365_v52  ;;  %4749 = vrot.lane.b32.xlu0 %v9940_v37, %s16499_s25  ;;  %v3367_v16 = vpop.f32.mrb[131].mxu0  ;;  %3863 = vmatmul.mubr.f32.gmra.mrb[114].mxu1 %v3586_v9  ;;  %v3588_v5 = vmax.f32 %v3524_v47, 0.0  ;;  %v5311_v27 = vsel %vm2874_vm5, %v5279_v54, %v13581_v33  ;;  %v13658_v37 = vld [vmem:[#allocation2 + $0x294] sm:$0xff] }
 0x3f3   : > { %v3589_v36 = vmax.f32 %v3525_v32, 0.0  ;;  %v3450_v24 = vmul.f32 %v13206_v15, %v3367_v16  ;;  %v4850_v55 = vpop.permute.xlu1 %4849 }
 0x3f4   : > { %v3526_v1 = vadd.f32 %v13209_v51, %v3449_v40  ;;  %v5088_v17 = vpop.permute.xlu0 %5087  ;;  %v5343_v32 = vsel %vm2907_vm6, %v5311_v27, %v4850_v55  ;;  %v9943_v27 = vld [vmem:[#allocation2 + $0xcc] sm:$0xff] }
 0x3f5   : > { %v3527_v29 = vadd.f32 %v13213_v10, %v3450_v24  ;;  %v5406_v11 = vsel %vm2973_vm8, %v5374_v23, %v5088_v17  ;;  %v3371_v28 = vpop.f32.mrb[132].mxu0  ;;  %3867 = vmatprep.mubr.f32.mxu1 %v3589_v36  ;;  %5117 = vrot.lane.b32.xlu1 %v4126_v61, %s15908_s22  ;;  %v3952_v24 = vld [vmem:[#allocation2 + $0xc4] sm:$0xff]  ;;  %v9942_v23 = vld [vmem:[#allocation2 + $0x22c] sm:$0xff] }
 0x3f6   : > { %v3451_v59 = vmul.f32 %v13199_v21, %v3371_v28  ;;  %5005 = vrot.lane.b32.xlu0 %v4157_v63, %s16506_s15  ;;  %v3373_v53 = vpop.f32.mrb[133].mxu0  ;;  %3868 = vmatmul.mubr.f32.gmra.mrb[116].mxu1 %v3588_v5  ;;  %v3590_v47 = vmax.f32 %v3526_v1, 0.0  ;;  %v9941_v21 = vld [vmem:[#allocation2 + $0xac] sm:$0xff] }
 0x3f7   : > { %v3591_v2 = vmax.f32 %v3527_v29, 0.0  ;;  %v3452_v45 = vmul.f32 %v13206_v15, %v3373_v53  ;;  %9440 = vmatmul.mubr.msk.f32.gmra.mrb[136].mxu0 %vm3016_vm9, %v5406_v11  ;;  %v5090_v9 = vpop.permute.xlu1 %5089  ;;  %v5184_v52 = vsel %vm432_vm0, %v9941_v21, %v12624_v39  ;;  %v6057_v21 = vld [vmem:[#allocation4 + $0x208] sm:$0xff] }
 0x3f8   : > { %v3528_v14 = vadd.f32 %v13209_v51, %v3451_v59  ;;  %v4978_v22 = vpop.permute.xlu0 %4977  ;;  %5625 = vmatprep.mubr.f32.mxu0 %v16047_v34  ;;  %v5216_v15 = vsel %vm2775_vm2, %v5184_v52, %v13013_v49 }
 0x3f9   : > { %v3529_v33 = vadd.f32 %v13213_v10, %v3452_v45  ;;  %v5375_v40 = vsel %vm2940_vm7, %v5343_v32, %v4978_v22  ;;  %3872 = vmatprep.mubr.f32.mxu1 %v3591_v2  ;;  %4879 = vrot.lane.b32.xlu1 %v4126_v61, %s16501_s29  ;;  %v5248_v39 = vsel %vm2808_vm3, %v5216_v15, %v13154_v0  ;;  %v4127_v0 = vld [vmem:[#allocation2 + $0x2a4] sm:$0xff]  ;;  %v4160_v22 = vld [vmem:[#allocation2 + $0x2b0] sm:$0xff] }
 0x3fa   : > { %4751 = vrot.lane.b32.xlu0 %v13423_v50, %s16499_s25  ;;  %3873 = vmatmul.mubr.f32.gmra.mrb[118].mxu1 %v3590_v47  ;;  %v5407_v51 = vsel %vm2973_vm8, %v5375_v40, %v5090_v9  ;;  %v5280_v61 = vsel %vm2841_vm4, %v5248_v39, %v13354_v7  ;;  %v3592_v49 = vmax.f32 %v3528_v14, 0.0  ;;  %v5185_v7 = vsel %vm432_vm0, %v3952_v24, %v12657_v6  ;;  %v4159_v6 = vld [vmem:[#allocation2 + $0x2a8] sm:$0xff]  ;;  %v13698_v47 = vld [vmem:[#allocation2 + $0x2b4] sm:$0xff]  ;;  %v6056_v32 = vld [vmem:[#allocation4 + $0x200] sm:$0xff] }
 0x3fb   : > { %v3593_v10 = vmax.f32 %v3529_v33, 0.0  ;;  %9441 = vmatmul.mubr.msk.f32.gmra.mrb[138].mxu0 %vm3016_vm9, %v5407_v51  ;;  %v4852_v16 = vpop.permute.xlu1 %4851  ;;  %v5217_v1 = vsel %vm2775_vm2, %v5185_v7, %v13021_v41  ;;  %v5186_v2 = vsel %vm432_vm0, %v9943_v27, %v12655_v25  ;;  %v3954_v33 = vld [vmem:[#allocation2 + $0xe4] sm:$0xff]  ;;  %v6058_v15 = vld [vmem:[#allocation4 + $0x210] sm:$0xff]  ;;  %v6059_v51 = vld [vmem:[#allocation4 + $0x218] sm:$0xff] }
 0x3fc   : > { %v4724_v36 = vpop.permute.xlu0 %4723  ;;  %5631 = vmatprep.mubr.f32.mxu0 %v16047_v34  ;;  %v5249_v29 = vsel %vm2808_vm3, %v5217_v1, %v13168_v48  ;;  %v4130_v24 = vld [vmem:[#allocation2 + $0x2cc] sm:$0xff] }
 0x3fd   : > { %v5312_v50 = vsel %vm2874_vm5, %v5280_v61, %v4724_v36  ;;  %3877 = vmatprep.mubr.f32.mxu1 %v3593_v10  ;;  %5119 = vrot.lane.b32.xlu1 %v13658_v37, %s15908_s22  ;;  %v5281_v28 = vsel %vm2841_vm4, %v5249_v29, %v13372_v12  ;;  %v5218_v12 = vsel %vm2775_vm2, %v5186_v2, %v13019_v56  ;;  %v9944_v36 = vld [vmem:[#allocation2 + $0x24c] sm:$0xff] }
 0x3fe   : > { %5007 = vrot.lane.b32.xlu0 %v4158_v60, %s16506_s15  ;;  %3878 = vmatmul.mubr.f32.gmra.mrb[120].mxu1 %v3592_v49  ;;  %v5344_v63 = vsel %vm2907_vm6, %v5312_v50, %v4852_v16  ;;  %v5250_v14 = vsel %vm2808_vm3, %v5218_v12, %v13166_v35  ;;  %v4129_v35 = vld [vmem:[#allocation2 + $0x2c4] sm:$0xff]  ;;  %v5187_v60 = vsel %vm432_vm0, %v3954_v33, %v12683_v57  ;;  %v4162_v2 = vld [vmem:[#allocation2 + $0x2d0] sm:$0xff] }
 0x3ff   : > { %v5092_v55 = vpop.permute.xlu1 %5091  ;;  %v5282_v52 = vsel %vm2841_vm4, %v5250_v14, %v13370_v30  ;;  %v9674_v30 = vpack.c.bf16 %v6059_v51, %v6058_v15  ;;  %v5219_v49 = vsel %vm2775_vm2, %v5187_v60, %v13027_v58  ;;  %v6067_v14 = vld [vmem:[#allocation4 + $0x258] sm:$0xff]  ;;  %v9947_v33 = vld [vmem:[#allocation2 + $0x26c] sm:$0xff]  ;;  %v6068_v15 = vld [vmem:[#allocation4 + $0x260] sm:$0xff] }
 0x400   : > { %v4980_v26 = vpop.permute.xlu0 %4979  ;;  %v6069_v51 = vld [vmem:[#allocation4 + $0x268] sm:$0xff] }
 0x401   : > { %v5376_v5 = vsel %vm2940_vm7, %v5344_v63, %v4980_v26  ;;  %4881 = vrot.lane.b32.xlu1 %v4127_v0, %s16501_s29  ;;  %v6060_v0 = vld [vmem:[#allocation4 + $0x220] sm:$0xff]  ;;  %v5251_v63 = vsel %vm2808_vm3, %v5219_v49, %v13181_v8  ;;  %v4161_v26 = vld [vmem:[#allocation2 + $0x2c8] sm:$0xff]  ;;  %v6062_v8 = vld [vmem:[#allocation4 + $0x230] sm:$0xff] }
 0x402   : > { %4753 = vrot.lane.b32.xlu0 %v9942_v23, %s16499_s25  ;;  %v5408_v17 = vsel %vm2973_vm8, %v5376_v5, %v5092_v55  ;;  %v6061_v55 = vld [vmem:[#allocation4 + $0x228] sm:$0xff]  ;;  %v5283_v58 = vsel %vm2841_vm4, %v5251_v63, %v13386_v43  ;;  %v6071_v49 = vld [vmem:[#allocation4 + $0x278] sm:$0xff] }
 0x403   : > { %9442 = vmatmul.mubr.msk.f32.gmra.mrb[140].mxu0 %vm3016_vm9, %v5408_v17  ;;  %v4854_v11 = vpop.permute.xlu1 %4853  ;;  %v9677_v7 = vpack.c.bf16 %v6061_v55, %v6060_v0  ;;  %v6063_v17 = vld [vmem:[#allocation4 + $0x238] sm:$0xff]  ;;  %v9945_v43 = vld [vmem:[#allocation2 + $0xec] sm:$0xff] }
 0x404   : > { %v4726_v54 = vpop.permute.xlu0 %4725  ;;  %5637 = vmatprep.mubr.f32.mxu0 %v16047_v34  ;;  %v9948_v55 = vld [vmem:[#allocation2 + $0x10c] sm:$0xff]  ;;  %v16581_v63 = vld [vmem:[#allocation62_spill] sm:$0xff] }
 0x405   : > { %v5313_v41 = vsel %vm2874_vm5, %v5281_v28, %v4726_v54  ;;  %5121 = vrot.lane.b32.xlu1 %v4128_v38, %s15908_s22 }
 0x406   : > { %5009 = vrot.lane.b32.xlu0 %v4159_v6, %s16506_s15  ;;  %v5345_v53 = vsel %vm2907_vm6, %v5313_v41, %v4854_v11  ;;  %v9680_v11 = vpack.c.bf16 %v6063_v17, %v6062_v8  ;;  %v5188_v6 = vsel %vm432_vm0, %v9945_v43, %v12681_v4  ;;  %v6072_v8 = vld [vmem:[#allocation4 + $0x280] sm:$0xff]  ;;  %v16584_v43 = vld [vmem:[#allocation134_spill] sm:$0xff] }
 0x407   : > { %v5094_v59 = vpop.permute.xlu1 %5093  ;;  %v5220_v54 = vsel %vm2775_vm2, %v5188_v6, %v13025_v13 }
 0x408   : > { %v4982_v48 = vpop.permute.xlu0 %4981  ;;  %v5252_v4 = vsel %vm2808_vm3, %v5220_v54, %v13179_v44  ;;  %v4131_v44 = vld [vmem:[#allocation2 + $0x2e4] sm:$0xff] }
 0x409   : > { %v5377_v45 = vsel %vm2940_vm7, %v5345_v53, %v4982_v48  ;;  %4883 = vrot.lane.b32.xlu1 %v4128_v38, %s16501_s29  ;;  %v6064_v53 = vld [vmem:[#allocation4 + $0x240] sm:$0xff]  ;;  %v6065_v48 = vld [vmem:[#allocation4 + $0x248] sm:$0xff] }
 0x40a   : > { %4755 = vrot.lane.b32.xlu0 %v13479_v31, %s16499_s25  ;;  %v5409_v9 = vsel %vm2973_vm8, %v5377_v45, %v5094_v59  ;;  %v9671_v31 = vpack.c.bf16 %v6057_v21, %v6056_v32  ;;  %v13741_v59 = vld [vmem:[#allocation2 + $0x2d4] sm:$0xff]  ;;  %v9683_v13 = vpack.c.bf16 %v6065_v48, %v6064_v53  ;;  %v9946_v21 = vld [vmem:[#allocation2 + $0x104] sm:$0xff] }
 0x40b   : > { %9443 = vmatmul.mubr.msk.f32.gmra.mrb[142].mxu0 %vm3016_vm9, %v5409_v9  ;;  %v4856_v25 = vpop.permute.xlu1 %4855  ;;  %v6066_v9 = vld [vmem:[#allocation4 + $0x250] sm:$0xff]  ;;  %v6075_v48 = vld [vmem:[#allocation4 + $0x298] sm:$0xff] }
 0x40c   : > { %v4728_v56 = vpop.permute.xlu0 %4727  ;;  %5643 = vmatprep.mubr.f32.mxu0 %v16047_v34  ;;  %9672 = vmatpush1.bf16.msra.mxu1 %v9671_v31  ;;  %v6074_v53 = vld [vmem:[#allocation4 + $0x290] sm:$0xff] }
 0x40d   : > { %v5314_v40 = vsel %vm2874_vm5, %v5282_v52, %v4728_v56  ;;  %5123 = vrot.lane.b32.xlu1 %v13698_v47, %s15908_s22  ;;  %9673 = vmatprep.subr.bf16.mxu1 %v16309_v3  ;;  %v5189_v52 = vsel %vm432_vm0, %v9946_v21, %v12711_v62  ;;  %v6077_v21 = vld [vmem:[#allocation4 + $0x2a8] sm:$0xff] }
 0x40e   : > { %5011 = vrot.lane.b32.xlu0 %v4160_v22, %s16506_s15  ;;  %v5346_v10 = vsel %vm2907_vm6, %v5314_v40, %v4856_v25  ;;  %v9686_v22 = vpack.c.bf16 %v6067_v14, %v6066_v9  ;;  %v5221_v31 = vsel %vm2775_vm2, %v5189_v52, %v13033_v20  ;;  %v16580_v20 = vld [vmem:[#allocation172_spill] sm:$0xff]  ;;  %v16586_v9 = vld [vmem:[#allocation161_spill] sm:$0xff]  ;;  %v16587_v52 = vld [vmem:[#allocation218_spill] sm:$0xff] }
 0x40f   : > { %v5096_v39 = vpop.permute.xlu1 %5095  ;;  %v9950_v14 = vld [vmem:[#allocation2 + $0x28c] sm:$0xff] }
 0x410   : > { %v4984_v16 = vpop.permute.xlu0 %4983  ;;  %9675 = vmatpush1.bf16.msra.mxu1 %v9674_v30  ;;  %v4163_v30 = vld [vmem:[#allocation2 + $0x2e8] sm:$0xff] }
 0x411   : > { %v5378_v61 = vsel %vm2940_vm7, %v5346_v10, %v4984_v16  ;;  %4885 = vrot.lane.b32.xlu1 %v4129_v35, %s16501_s29  ;;  %9676 = vmatprep.subr.bf16.mxu1 %v16309_v3  ;;  %v4132_v35 = vld [vmem:[#allocation2 + $0x2ec] sm:$0xff]  ;;  %v9689_v10 = vpack.c.bf16 %v6069_v51, %v6068_v15 }
 0x412   : > { %4757 = vrot.lane.b32.xlu0 %v9944_v36, %s16499_s25  ;;  %v5410_v50 = vsel %vm2973_vm8, %v5378_v61, %v5096_v39  ;;  %v5253_v39 = vsel %vm2808_vm3, %v5221_v31, %v13188_v42  ;;  %v6070_v42 = vld [vmem:[#allocation4 + $0x270] sm:$0xff] }
 0x413   : > { %9444 = vmatmul.mubr.msk.f32.gmra.mrb[144].mxu0 %vm3016_vm9, %v5410_v50  ;;  %v4858_v57 = vpop.permute.xlu1 %4857  ;;  %v5285_v16 = vsel %vm2841_vm4, %v5253_v39, %v16580_v20  ;;  %v9692_v50 = vpack.c.bf16 %v6071_v49, %v6070_v42  ;;  %v16589_v42 = vld [vmem:[#allocation67_spill] sm:$0xff] }
 0x414   : > { %v4730_v5 = vpop.permute.xlu0 %4729  ;;  %5649 = vmatprep.mubr.f32.mxu0 %v16047_v34  ;;  %9678 = vmatpush1.bf16.msra.mxu1 %v9677_v7  ;;  %v16582_v7 = vld [vmem:[#allocation60_spill] sm:$0xff] }
 0x415   : > { %v5315_v1 = vsel %vm2874_vm5, %v5283_v58, %v4730_v5  ;;  %5125 = vrot.lane.b32.xlu1 %v4130_v24, %s15908_s22  ;;  %9679 = vmatprep.subr.bf16.mxu1 %v16309_v3 }
 0x416   : > { %5013 = vrot.lane.b32.xlu0 %v4161_v26, %s16506_s15  ;;  %v5347_v38 = vsel %vm2907_vm6, %v5315_v1, %v4858_v57  ;;  %v5190_v57 = vsel %vm432_vm0, %v9948_v55, %v16581_v63  ;;  %v13785_v1 = vld [vmem:[#allocation2 + $0x2f4] sm:$0xff]  ;;  %v6080_v63 = vld [vmem:[#allocation4 + $0x2c0] sm:$0xff] }
 0x417   : > { %v5098_v23 = vpop.permute.xlu1 %5097  ;;  %v5222_v58 = vsel %vm2775_vm2, %v5190_v57, %v16582_v7  ;;  %v4185_v55 = vld [vmem:[#allocation2 + $0x314] sm:$0xff]  ;;  %v6081_v57 = vld [vmem:[#allocation4 + $0x2c8] sm:$0xff] }
 0x418   : > { %v4986_v29 = vpop.permute.xlu0 %4985  ;;  %9681 = vmatpush1.bf16.msra.mxu1 %v9680_v11  ;;  %v6073_v11 = vld [vmem:[#allocation4 + $0x288] sm:$0xff] }
 0x419   : > { %v5379_v28 = vsel %vm2940_vm7, %v5347_v38, %v4986_v29  ;;  %4887 = vrot.lane.b32.xlu1 %v4130_v24, %s16501_s29  ;;  %9682 = vmatprep.subr.bf16.mxu1 %v16309_v3  ;;  %v4164_v29 = vld [vmem:[#allocation2 + $0x2f0] sm:$0xff] }
 0x41a   : > { %4759 = vrot.lane.b32.xlu0 %v13535_v46, %s16499_s25  ;;  %v5411_v41 = vsel %vm2973_vm8, %v5379_v28, %v5098_v23  ;;  %v5284_v46 = vsel %vm2841_vm4, %v5252_v4, %v13384_v19  ;;  %v16583_v23 = vld [vmem:[#allocation193_spill] sm:$0xff]  ;;  %v9695_v28 = vpack.c.bf16 %v6073_v11, %v6072_v8  ;;  %v9707_v8 = vpack.c.bf16 %v6081_v57, %v6080_v63  ;;  %v4137_v63 = vld [vmem:[#allocation2 + $0x344] sm:$0xff] }
 0x41b   : > { %9445 = vmatmul.mubr.msk.f32.gmra.mrb[146].mxu0 %vm3016_vm9, %v5411_v41  ;;  %v4860_v27 = vpop.permute.xlu1 %4859  ;;  %v5254_v17 = vsel %vm2808_vm3, %v5222_v58, %v16583_v23  ;;  %v4133_v41 = vld [vmem:[#allocation2 + $0x304] sm:$0xff]  ;;  %v6082_v11 = vld [vmem:[#allocation4 + $0x2d0] sm:$0xff] }
 0x41c   : > { %v4732_v45 = vpop.permute.xlu0 %4731  ;;  %5655 = vmatprep.mubr.f32.mxu0 %v16047_v34  ;;  %9684 = vmatpush1.bf16.msra.mxu1 %v9683_v13  ;;  %v5286_v6 = vsel %vm2841_vm4, %v5254_v17, %v16584_v43  ;;  %v16592_v23 = vld [vmem:[#allocation199_spill] sm:$0xff] }
 0x41d   : > { %v5316_v12 = vsel %vm2874_vm5, %v5284_v46, %v4732_v45  ;;  %5127 = vrot.lane.b32.xlu1 %v13741_v59, %s15908_s22  ;;  %9685 = vmatprep.subr.bf16.mxu1 %v16309_v3  ;;  %v9949_v46 = vld [vmem:[#allocation2 + $0x124] sm:$0xff] }
 0x41e   : > { %5015 = vrot.lane.b32.xlu0 %v4162_v2, %s16506_s15  ;;  %v5348_v25 = vsel %vm2907_vm6, %v5316_v12, %v4860_v27  ;;  %v9698_v27 = vpack.c.bf16 %v6075_v48, %v6074_v53  ;;  %v16585_v45 = vld [vmem:[#allocation68_spill] sm:$0xff]  ;;  %v16593_v53 = vld [vmem:[#allocation70_spill] sm:$0xff] }
 0x41f   : > { %v5100_v32 = vpop.permute.xlu1 %5099  ;;  %v5191_v12 = vsel %vm432_vm0, %v9949_v46, %v16585_v45  ;;  %v4136_v45 = vld [vmem:[#allocation2 + $0x32c] sm:$0xff] }
 0x420   : > { %v4988_v19 = vpop.permute.xlu0 %4987  ;;  %9687 = vmatpush1.bf16.msra.mxu1 %v9686_v22  ;;  %v6076_v22 = vld [vmem:[#allocation4 + $0x2a0] sm:$0xff] }
 0x421   : > { %v5380_v56 = vsel %vm2940_vm7, %v5348_v25, %v4988_v19  ;;  %4889 = vrot.lane.b32.xlu1 %v4131_v44, %s16501_s29  ;;  %9688 = vmatprep.subr.bf16.mxu1 %v16309_v3  ;;  %v4134_v19 = vld [vmem:[#allocation2 + $0x30c] sm:$0xff] }
 0x422   : > { %4761 = vrot.lane.b32.xlu0 %v9947_v33, %s16499_s25  ;;  %v5412_v40 = vsel %vm2973_vm8, %v5380_v56, %v5100_v32  ;;  %v5223_v32 = vsel %vm2775_vm2, %v5191_v12, %v16586_v9  ;;  %v4165_v33 = vld [vmem:[#allocation2 + $0x308] sm:$0xff]  ;;  %v6084_v12 = vld [vmem:[#allocation4 + $0x2e0] sm:$0xff]  ;;  %v16595_v9 = vld [vmem:[#allocation165_spill] sm:$0xff] }
 0x423   : > { %9446 = vmatmul.mubr.msk.f32.gmra.mrb[148].mxu0 %vm3016_vm9, %v5412_v40  ;;  %v4862_v62 = vpop.permute.xlu1 %4861  ;;  %v5255_v56 = vsel %vm2808_vm3, %v5223_v32, %v16587_v52  ;;  %v9701_v40 = vpack.c.bf16 %v6077_v21, %v6076_v22  ;;  %v16596_v22 = vld [vmem:[#allocation159_spill] sm:$0xff] }
 0x424   : > { %v4734_v60 = vpop.permute.xlu0 %4733  ;;  %5661 = vmatprep.mubr.f32.mxu0 %v16047_v34  ;;  %9690 = vmatpush1.bf16.msra.mxu1 %v9689_v10  ;;  %v6079_v10 = vld [vmem:[#allocation4 + $0x2b8] sm:$0xff] }
 0x425   : > { %v5317_v61 = vsel %vm2874_vm5, %v5285_v16, %v4734_v60  ;;  %5129 = vrot.lane.b32.xlu1 %v4132_v35, %s15908_s22  ;;  %9691 = vmatprep.subr.bf16.mxu1 %v16309_v3 }
 0x426   : > { %5017 = vrot.lane.b32.xlu0 %v4163_v30, %s16506_s15  ;;  %v5349_v24 = vsel %vm2907_vm6, %v5317_v61, %v4862_v62  ;;  %v6078_v62 = vld [vmem:[#allocation4 + $0x2b0] sm:$0xff] }
 0x427   : > { %v5102_v36 = vpop.permute.xlu1 %5101  ;;  %v9704_v60 = vpack.c.bf16 %v6079_v10, %v6078_v62  ;;  %v9951_v61 = vld [vmem:[#allocation2 + $0x12c] sm:$0xff]  ;;  %v16597_v62 = vld [vmem:[#allocation115_spill] sm:$0xff] }
 0x428   : > { %v4990_v0 = vpop.permute.xlu0 %4989  ;;  %9693 = vmatpush1.bf16.msra.mxu1 %v9692_v50  ;;  %v5192_v49 = vsel %vm432_vm0, %v9951_v61, %v16589_v42  ;;  %v16590_v50 = vld [vmem:[#allocation90_spill] sm:$0xff]  ;;  %v16599_v42 = vld [vmem:[#allocation129_spill] sm:$0xff] }
 0x429   : > { %v5381_v26 = vsel %vm2940_vm7, %v5349_v24, %v4990_v0  ;;  %4891 = vrot.lane.b32.xlu1 %v4132_v35, %s16501_s29  ;;  %9694 = vmatprep.subr.bf16.mxu1 %v16309_v3  ;;  %v16588_v35 = vld [vmem:[#allocation84_spill] sm:$0xff]  ;;  %v5224_v24 = vsel %vm2775_vm2, %v5192_v49, %v16590_v50  ;;  %v4186_v61 = vld [vmem:[#allocation2 + $0x334] sm:$0xff] }
 0x42a   : > { %4763 = vrot.lane.b32.xlu0 %v13594_v18, %s16499_s25  ;;  %v5413_v5 = vsel %vm2973_vm8, %v5381_v26, %v5102_v36  ;;  %v5287_v15 = vsel %vm2841_vm4, %v5255_v56, %v16588_v35  ;;  %v16591_v26 = vld [vmem:[#allocation65_spill] sm:$0xff] }
 0x42b   : > { %9447 = vmatmul.mubr.msk.f32.gmra.mrb[150].mxu0 %vm3016_vm9, %v5413_v5  ;;  %v4864_v38 = vpop.permute.xlu1 %4863  ;;  %v5256_v7 = vsel %vm2808_vm3, %v5224_v24, %v16591_v26  ;;  %v4166_v5 = vld [vmem:[#allocation2 + $0x310] sm:$0xff]  ;;  %v16600_v24 = vld [vmem:[#allocation171_spill] sm:$0xff] }
 0x42c   : > { %v4736_v18 = vpop.permute.xlu0 %4735  ;;  %5667 = vmatprep.mubr.f32.mxu0 %v16047_v34  ;;  %9696 = vmatpush1.bf16.msra.mxu1 %v9695_v28  ;;  %v5288_v17 = vsel %vm2841_vm4, %v5256_v7, %v16592_v23  ;;  %v4168_v50 = vld [vmem:[#allocation2 + $0x330] sm:$0xff] }
 0x42d   : > { %v5318_v54 = vsel %vm2874_vm5, %v5286_v6, %v4736_v18  ;;  %5131 = vrot.lane.b32.xlu1 %v13785_v1, %s15908_s22  ;;  %9697 = vmatprep.subr.bf16.mxu1 %v16309_v3  ;;  %v6083_v6 = vld [vmem:[#allocation4 + $0x2d8] sm:$0xff] }
 0x42e   : > { %5019 = vrot.lane.b32.xlu0 %v4164_v29, %s16506_s15  ;;  %v5350_v2 = vsel %vm2907_vm6, %v5318_v54, %v4864_v38  ;;  %v4135_v29 = vld [vmem:[#allocation2 + $0x324] sm:$0xff]  ;;  %v9710_v54 = vpack.c.bf16 %v6083_v6, %v6082_v11  ;;  %v4138_v11 = vld [vmem:[#allocation2 + $0x34c] sm:$0xff] }
 0x42f   : > { %v5104_v4 = vpop.permute.xlu1 %5103 }
 0x430   : > { %v4992_v13 = vpop.permute.xlu0 %4991  ;;  %9699 = vmatpush1.bf16.msra.mxu1 %v9698_v27  ;;  %v16594_v27 = vld [vmem:[#allocation91_spill] sm:$0xff] }
 0x431   : > { %v5382_v44 = vsel %vm2940_vm7, %v5350_v2, %v4992_v13  ;;  %4893 = vrot.lane.b32.xlu1 %v4133_v41, %s16501_s29  ;;  %9700 = vmatprep.subr.bf16.mxu1 %v16309_v3  ;;  %v9952_v41 = vld [vmem:[#allocation2 + $0x144] sm:$0xff]  ;;  %v9953_v13 = vld [vmem:[#allocation2 + $0x2ac] sm:$0xff] }
 0x432   : > { %4765 = vrot.lane.b32.xlu0 %v9950_v14, %s16499_s25  ;;  %v5414_v25 = vsel %vm2973_vm8, %v5382_v44, %v5104_v4  ;;  %v5193_v48 = vsel %vm432_vm0, %v9952_v41, %v16593_v53  ;;  %v6085_v44 = vld [vmem:[#allocation4 + $0x2e8] sm:$0xff] }
 0x433   : > { %9448 = vmatmul.mubr.msk.f32.gmra.mrb[152].mxu0 %vm3016_vm9, %v5414_v25  ;;  %v4866_v31 = vpop.permute.xlu1 %4865  ;;  %v5225_v2 = vsel %vm2775_vm2, %v5193_v48, %v16594_v27  ;;  %v4167_v25 = vld [vmem:[#allocation2 + $0x328] sm:$0xff]  ;;  %v16605_v27 = vld [vmem:[#allocation63_spill] sm:$0xff] }
 0x434   : > { %v4738_v51 = vpop.permute.xlu0 %4737  ;;  %5673 = vmatprep.mubr.f32.mxu0 %v16047_v34  ;;  %9702 = vmatpush1.bf16.msra.mxu1 %v9701_v40  ;;  %v5257_v32 = vsel %vm2808_vm3, %v5225_v2, %v16595_v9  ;;  %v16606_v9 = vld [vmem:[#allocation71_spill] sm:$0xff] }
 0x435   : > { %v5319_v39 = vsel %vm2874_vm5, %v5287_v15, %v4738_v51  ;;  %5133 = vrot.lane.b32.xlu1 %v4134_v19, %s15908_s22  ;;  %9703 = vmatprep.subr.bf16.mxu1 %v16309_v3  ;;  %v5289_v21 = vsel %vm2841_vm4, %v5257_v32, %v16596_v22 }
 0x436   : > { %5021 = vrot.lane.b32.xlu0 %v4165_v33, %s16506_s15  ;;  %v5351_v20 = vsel %vm2907_vm6, %v5319_v39, %v4866_v31  ;;  %v6086_v31 = vld [vmem:[#allocation4 + $0x2f0] sm:$0xff]  ;;  %v6087_v33 = vld [vmem:[#allocation4 + $0x2f8] sm:$0xff] }
 0x437   : > { %v5106_v30 = vpop.permute.xlu1 %5105  ;;  %v9716_v35 = vpack.c.bf16 %v6087_v33, %v6086_v31  ;;  %v9954_v39 = vld [vmem:[#allocation2 + $0x14c] sm:$0xff]  ;;  %v4187_v33 = vld [vmem:[#allocation2 + $0x354] sm:$0xff] }
 0x438   : > { %v4994_v16 = vpop.permute.xlu0 %4993  ;;  %9705 = vmatpush1.bf16.msra.mxu1 %v9704_v60 }
 0x439   : > { %v5383_v36 = vsel %vm2940_vm7, %v5351_v20, %v4994_v16  ;;  %4895 = vrot.lane.b32.xlu1 %v4134_v19, %s16501_s29  ;;  %9706 = vmatprep.subr.bf16.mxu1 %v16309_v3  ;;  %v9713_v19 = vpack.c.bf16 %v6085_v44, %v6084_v12  ;;  %v16598_v20 = vld [vmem:[#allocation123_spill] sm:$0xff]  ;;  %v9957_v44 = vld [vmem:[#allocation2 + $0x16c] sm:$0xff] }
 0x43a   : > { %4767 = vrot.lane.b32.xlu0 %v13658_v37, %s16499_s25  ;;  %v5415_v0 = vsel %vm2973_vm8, %v5383_v36, %v5106_v30  ;;  %v5194_v30 = vsel %vm432_vm0, %v9954_v39, %v16597_v62  ;;  %v5196_v32 = vsel %vm432_vm0, %v9957_v44, %v16606_v9  ;;  %v16610_v39 = vld [vmem:[#allocation89_spill] sm:$0xff] }
 0x43b   : > { %9449 = vmatmul.mubr.msk.f32.gmra.mrb[154].mxu0 %vm3016_vm9, %v5415_v0  ;;  %v4868_v58 = vpop.permute.xlu1 %4867  ;;  %v5226_v16 = vsel %vm2775_vm2, %v5194_v30, %v16598_v20 }
 0x43c   : > { %v4740_v37 = vpop.permute.xlu0 %4739  ;;  %5679 = vmatprep.mubr.f32.mxu0 %v16047_v34  ;;  %9708 = vmatpush1.bf16.msra.mxu1 %v9707_v8  ;;  %v5258_v49 = vsel %vm2808_vm3, %v5226_v16, %v16599_v42 }
 0x43d   : > { %v5320_v38 = vsel %vm2874_vm5, %v5288_v17, %v4740_v37  ;;  %5135 = vrot.lane.b32.xlu1 %v4185_v55, %s15908_s22  ;;  %9709 = vmatprep.subr.bf16.mxu1 %v16309_v3  ;;  %v5290_v0 = vsel %vm2841_vm4, %v5258_v49, %v16600_v24  ;;  %v16602_v17 = vld [vmem:[#allocation64_spill] sm:$0xff]  ;;  %v16612_v24 = vld [vmem:[#allocation73_spill] sm:$0xff] }
 0x43e   : > { %5023 = vrot.lane.b32.xlu0 %v4166_v5, %s16506_s15  ;;  %v5352_v18 = vsel %vm2907_vm6, %v5320_v38, %v4868_v58  ;;  %v9955_v58 = vld [vmem:[#allocation2 + $0x164] sm:$0xff]  ;;  %v16601_v5 = vld [vmem:[#allocation114_spill] sm:$0xff]  ;;  %v9956_v38 = vld [vmem:[#allocation2 + $0x2cc] sm:$0xff] }
 0x43f   : > { %v5108_v43 = vpop.permute.xlu1 %5107  ;;  %v5195_v8 = vsel %vm432_vm0, %v9955_v58, %v16601_v5  ;;  %v9959_v5 = vld [vmem:[#allocation2 + $0x2ec] sm:$0xff] }
 0x440   : > { %v4996_v28 = vpop.permute.xlu0 %4995  ;;  %9711 = vmatpush1.bf16.msra.mxu1 %v9710_v54  ;;  %v5227_v37 = vsel %vm2775_vm2, %v5195_v8, %v16602_v17  ;;  %v16604_v54 = vld [vmem:[#allocation223_spill] sm:$0xff]  ;;  %v16615_v17 = vld [vmem:[#allocation217_spill] sm:$0xff] }
 0x441   : > { %v5384_v4 = vsel %vm2940_vm7, %v5352_v18, %v4996_v28  ;;  %4897 = vrot.lane.b32.xlu1 %v4135_v29, %s16501_s29  ;;  %9712 = vmatprep.subr.bf16.mxu1 %v16309_v3  ;;  %v4169_v28 = vld [vmem:[#allocation2 + $0x348] sm:$0xff] }
 0x442   : > { %4769 = vrot.lane.b32.xlu0 %v9953_v13, %s16499_s25  ;;  %v5416_v46 = vsel %vm2973_vm8, %v5384_v4, %v5108_v43  ;;  %v16603_v43 = vld [vmem:[#allocation192_spill] sm:$0xff] }
 0x443   : > { %9450 = vmatmul.mubr.msk.f32.gmra.mrb[156].mxu0 %vm3016_vm9, %v5416_v46  ;;  %v4870_v14 = vpop.permute.xlu1 %4869  ;;  %v5259_v6 = vsel %vm2808_vm3, %v5227_v37, %v16603_v43 }
 0x444   : > { %v4742_v52 = vpop.permute.xlu0 %4741  ;;  %5685 = vmatprep.mubr.f32.mxu0 %v16047_v34  ;;  %9714 = vmatpush1.bf16.msra.mxu1 %v9713_v19  ;;  %v5291_v41 = vsel %vm2841_vm4, %v5259_v6, %v16604_v54  ;;  %v16607_v19 = vld [vmem:[#allocation150_spill] sm:$0xff] }
 0x445   : > { %v5321_v56 = vsel %vm2874_vm5, %v5289_v21, %v4742_v52  ;;  %5137 = vrot.lane.b32.xlu1 %v4136_v45, %s15908_s22  ;;  %9715 = vmatprep.subr.bf16.mxu1 %v16309_v3  ;;  %v5228_v22 = vsel %vm2775_vm2, %v5196_v32, %v16607_v19  ;;  %v16608_v21 = vld [vmem:[#allocation66_spill] sm:$0xff] }
 0x446   : > { %5025 = vrot.lane.b32.xlu0 %v4167_v25, %s16506_s15  ;;  %v5353_v15 = vsel %vm2907_vm6, %v5321_v56, %v4870_v14  ;;  %v16617_v54 = vld [vmem:[#allocation170_spill] sm:$0xff] }
 0x447   : > { %v5110_v40 = vpop.permute.xlu1 %5109  ;;  %v16620_v32 = vld [vmem:[#allocation122_spill] sm:$0xff] }
 0x448   : > { %v4998_v51 = vpop.permute.xlu0 %4997  ;;  %9717 = vmatpush1.bf16.msra.mxu1 %v9716_v35 }
 0x449   : > { %v5385_v10 = vsel %vm2940_vm7, %v5353_v15, %v4998_v51  ;;  %4899 = vrot.lane.b32.xlu1 %v4136_v45, %s16501_s29  ;;  %9726 = vmatprep.subr.bf16.mxu1 %v16309_v3  ;;  %v4170_v51 = vld [vmem:[#allocation2 + $0x350] sm:$0xff] }
 0x44a   : > { %4771 = vrot.lane.b32.xlu0 %v13698_v47, %s16499_s25  ;;  %v5417_v60 = vsel %vm2973_vm8, %v5385_v10, %v5110_v40  ;;  %v16609_v40 = vld [vmem:[#allocation154_spill] sm:$0xff] }
 0x44b   : > { %9451 = vmatmul.mubr.msk.f32.gmra.mrb[158].mxu0 %vm3016_vm9, %v5417_v60  ;;  %v4872_v36 = vpop.permute.xlu1 %4871  ;;  %v5260_v35 = vsel %vm2808_vm3, %v5228_v22, %v16609_v40 }
 0x44c   : > { %v4744_v55 = vpop.permute.xlu0 %4743  ;;  %5691 = vmatprep.mubr.f32.mxu0 %v16047_v34  ;;  %v5292_v62 = vsel %vm2841_vm4, %v5260_v35, %v16610_v39  ;;  %v16623_v35 = vld [vmem:[#allocation43_spill] sm:$0xff] }
 0x44d   : > { %v5322_v47 = vsel %vm2874_vm5, %v5290_v0, %v4744_v55  ;;  %5139 = vrot.lane.b32.xlu1 %v4186_v61, %s15908_s22  ;;  %v4139_v61 = vld [vmem:[#allocation2 + $0x364] sm:$0xff] }
 0x44e   : > { %5027 = vrot.lane.b32.xlu0 %v4168_v50, %s16506_s15  ;;  %v5354_v26 = vsel %vm2907_vm6, %v5322_v47, %v4872_v36  ;;  %v9958_v50 = vld [vmem:[#allocation2 + $0x184] sm:$0xff] }
 0x44f   : > { %v5112_v57 = vpop.permute.xlu1 %5111  ;;  %v5197_v0 = vsel %vm432_vm0, %v9958_v50, %v16612_v24  ;;  %v7772_v50 = vld [vmem:[%s15784_s4 + $0x10] sm:$0xff] }
 0x450   : > { %v5000_v7 = vpop.permute.xlu0 %4999 }
 0x451   : > { %v5386_v23 = vsel %vm2940_vm7, %v5354_v26, %v5000_v7  ;;  %4901 = vrot.lane.b32.xlu1 %v4137_v63, %s16501_s29  ;;  %v16613_v63 = vld [vmem:[#allocation164_spill] sm:$0xff]  ;;  %v16614_v26 = vld [vmem:[#allocation81_spill] sm:$0xff] }
 0x452   : > { %4773 = vrot.lane.b32.xlu0 %v9956_v38, %s16499_s25  ;;  %v5418_v29 = vsel %vm2973_vm8, %v5386_v23, %v5112_v57  ;;  %v5229_v57 = vsel %vm2775_vm2, %v5197_v0, %v16613_v63  ;;  %v4140_v23 = vld [vmem:[#allocation2 + $0x36c] sm:$0xff]  ;;  %v16626_v63 = vld [vmem:[#allocation119_spill] sm:$0xff] }
 0x453   : > { %9452 = vmatmul.mubr.msk.f32.gmra.mrb[160].mxu0 %vm3016_vm9, %v5418_v29  ;;  %v4874_v18 = vpop.permute.xlu1 %4873  ;;  %v5261_v37 = vsel %vm2808_vm3, %v5229_v57, %v16615_v17  ;;  %v4171_v29 = vld [vmem:[#allocation2 + $0x368] sm:$0xff] }
 0x454   : > { %v4746_v53 = vpop.permute.xlu0 %4745  ;;  %5697 = vmatprep.mubr.f32.mxu0 %v16047_v34  ;;  %v3724_v4 = vpop.f32.mrb[58].mxu1 }
 0x455   : > { %v5323_v48 = vsel %vm2874_vm5, %v5291_v41, %v4746_v53  ;;  %5141 = vrot.lane.b32.xlu1 %v4138_v11, %s15908_s22  ;;  %v13898_v2 = vadd.f32 %v3724_v4, %v16605_v27  ;;  %v3726_v13 = vpop.f32.mrb[59].mxu1 }
 0x456   : > { %5029 = vrot.lane.b32.xlu0 %v4169_v28, %s16506_s15  ;;  %v5355_v45 = vsel %vm2907_vm6, %v5323_v48, %v4874_v18  ;;  %v6378_v48 = vld [vmem:[#allocation2 + $0x8] sm:$0xff] }
 0x457   : > { %v5114_v46 = vpop.permute.xlu1 %5113 }
 0x458   : > { %v5002_v12 = vpop.permute.xlu0 %5001  ;;  %v3729_v25 = vpop.f32.mrb[60].mxu1 }
 0x459   : > { %v5387_v14 = vsel %vm2940_vm7, %v5355_v45, %v5002_v12  ;;  %4903 = vrot.lane.b32.xlu1 %v4138_v11, %s16501_s29  ;;  %v13909_v52 = vadd.f32 %v3729_v25, %v16608_v21  ;;  %v3731_v56 = vpop.f32.mrb[61].mxu1  ;;  %v16616_v11 = vld [vmem:[#allocation201_spill] sm:$0xff]  ;;  %v16618_v45 = vld [vmem:[#allocation72_spill] sm:$0xff] }
 0x45a   : > { %4775 = vrot.lane.b32.xlu0 %v13741_v59, %s16499_s25  ;;  %v5419_v31 = vsel %vm2973_vm8, %v5387_v14, %v5114_v46  ;;  %v16611_v59 = vld [vmem:[#allocation69_spill] sm:$0xff]  ;;  %v5293_v43 = vsel %vm2841_vm4, %v5261_v37, %v16616_v11  ;;  %v16621_v25 = vld [vmem:[#allocation80_spill] sm:$0xff] }
 0x45b   : > { %9453 = vmatmul.mubr.msk.f32.gmra.mrb[162].mxu0 %vm3016_vm9, %v5419_v31  ;;  %v4876_v15 = vpop.permute.xlu1 %4875  ;;  %v9960_v46 = vld [vmem:[#allocation2 + $0x18c] sm:$0xff] }
 0x45c   : > { %v4748_v30 = vpop.permute.xlu0 %4747  ;;  %5703 = vmatprep.mubr.f32.mxu0 %v16047_v34  ;;  %v3734_v20 = vpop.f32.mrb[62].mxu1  ;;  %v5198_v12 = vsel %vm432_vm0, %v9960_v46, %v16618_v45  ;;  %v13963_v56 = vld [vmem:[#allocation2 + $0x10] sm:$0xff]  ;;  %v7775_v11 = vld [vmem:[%s15784_s4 + $0x28] sm:$0xff] }
 0x45d   : > { %v5324_v10 = vsel %vm2874_vm5, %v5292_v62, %v4748_v30  ;;  %5143 = vrot.lane.b32.xlu1 %v4187_v33, %s15908_s22  ;;  %v13923_v16 = vadd.f32 %v3734_v20, %v16611_v59  ;;  %v3736_v60 = vpop.f32.mrb[63].mxu1  ;;  %v5230_v14 = vsel %vm2775_vm2, %v5198_v12, %v16620_v32  ;;  %v16622_v31 = vld [vmem:[#allocation77_spill] sm:$0xff]  ;;  %v16625_v62 = vld [vmem:[#allocation222_spill] sm:$0xff]  ;;  %v6441_v20 = vld [vmem:[#allocation2 + $0x100] sm:$0xff] }
 0x45e   : > { %5031 = vrot.lane.b32.xlu0 %v4170_v51, %s16506_s15  ;;  %v5356_v49 = vsel %vm2907_vm6, %v5324_v10, %v4876_v15  ;;  %v5262_v33 = vsel %vm2808_vm3, %v5230_v14, %v16622_v31  ;;  %v7771_v59 = vld [vmem:[%s15784_s4 + $0x8] sm:$0xff]  ;;  %v7773_v60 = vld [vmem:[%s15784_s4 + $0x18] sm:$0xff] }
 0x45f   : > { %v5116_v42 = vpop.permute.xlu1 %5115  ;;  %v5294_v15 = vsel %vm2841_vm4, %v5262_v33, %v16623_v35  ;;  %v7779_v33 = vld [vmem:[%s15784_s4 + $0x48] sm:$0xf]  ;;  %v16633_v35 = vld [vmem:[#allocation74_spill] sm:$0xff] }
 0x460   : > { %v5004_v36 = vpop.permute.xlu0 %5003  ;;  %v3739_v47 = vpop.f32.mrb[64].mxu1 }
 0x461   : > { %v5388_v55 = vsel %vm2940_vm7, %v5356_v49, %v5004_v36  ;;  %4905 = vrot.lane.b32.xlu1 %v4139_v61, %s16501_s29  ;;  %v13934_v7 = vadd.f32 %v3739_v47, %v16614_v26  ;;  %v3741_v58 = vpop.f32.mrb[65].mxu1  ;;  %v9718_v49 = vpack.c.bf16 %v7773_v60, %v7771_v59  ;;  %v7770_v36 = vld [vmem:[%s15784_s4] sm:$0xff] }
 0x462   : > { %4777 = vrot.lane.b32.xlu0 %v9959_v5, %s16499_s25  ;;  %v5420_v8 = vsel %vm2973_vm8, %v5388_v55, %v5116_v42  ;;  %v4172_v42 = vld [vmem:[#allocation2 + $0x370] sm:$0xff]  ;;  %v9720_v55 = vpack.c.bf16 %v7772_v50, %v7770_v36  ;;  %v9961_v47 = vld [vmem:[#allocation2 + $0x1a4] sm:$0xff] }
 0x463   : > { %9454 = vmatmul.mubr.msk.f32.gmra.mrb[164].mxu0 %vm3016_vm9, %v5420_v8  ;;  %v4878_v38 = vpop.permute.xlu1 %4877  ;;  %v5199_v57 = vsel %vm432_vm0, %v9961_v47, %v16626_v63  ;;  %9719 = vmatprep.subr.bf16.mxu0 %v9718_v49  ;;  %v16627_v5 = vld [vmem:[#allocation125_spill] sm:$0xff]  ;;  %v16636_v49 = vld [vmem:[#allocation130_spill] sm:$0xff] }
 0x464   : > { %v4750_v6 = vpop.permute.xlu0 %4749  ;;  %5709 = vmatprep.mubr.f32.mxu0 %v16047_v34  ;;  %v3744_v28 = vpop.f32.mrb[66].mxu1  ;;  %v5231_v8 = vsel %vm2775_vm2, %v5199_v57, %v16627_v5  ;;  %9721 = vmatpush1.bf16.msra.mxu0 %v9720_v55  ;;  %v16638_v57 = vld [vmem:[#allocation196_spill] sm:$0xff] }
 0x465   : > { %v5325_v18 = vsel %vm2874_vm5, %v5293_v43, %v4750_v6  ;;  %5145 = vrot.lane.b32.xlu1 %v4140_v23, %s15908_s22  ;;  %v13947_v41 = vadd.f32 %v3744_v28, %v16617_v54  ;;  %v3746_v53 = vpop.f32.mrb[67].mxu1  ;;  %v7777_v43 = vld [vmem:[%s15784_s4 + $0x38] sm:$0xff]  ;;  %v16629_v6 = vld [vmem:[#allocation168_spill] sm:$0xff]  ;;  %s15677_s22 = scalar_lea.vmem [#allocation7], %s9364_s3 }
 0x466   : > { %5033 = vrot.lane.b32.xlu0 %v4171_v29, %s16506_s15  ;;  %v5357_v27 = vsel %vm2907_vm6, %v5325_v18, %v4878_v38  ;;  %v14002_v29 = vld [vmem:[#allocation2 + $0x108] sm:$0xff]  ;;  %v5263_v18 = vsel %vm2808_vm3, %v5231_v8, %v16629_v6  ;;  %v4188_v54 = vld [vmem:[#allocation2 + $0x374] sm:$0xff]  ;;  %v9722_v53 = vpack.c.bf16 %v7777_v43, %v7775_v11  ;;  %s9284_s16 = sshll.u32 %s15677_s22, 4  ;;  %s15726_s16 = int_to_ptr.vmem [resolvable:$true] %s9284_s16 }
 0x467   : > { %v5118_v4 = vpop.permute.xlu1 %5117  ;;  %v6507_v5 = vld [vmem:[#allocation2 + $0x208] sm:$0xff]  ;;  %v16639_v11 = vld [vmem:[#allocation78_spill] sm:$0xff] }
 0x468   : > { %v5006_v13 = vpop.permute.xlu0 %5005  ;;  %v3749_v9 = vpop.f32.mrb[68].mxu1  ;;  %9723 = vmatprep.subr.bf16.mxu0 %v9722_v53  ;;  %v16641_v53 = vld [vmem:[#allocation85_spill] sm:$0xff] }
 0x469   : > { %v5389_v44 = vsel %vm2940_vm7, %v5357_v27, %v5006_v13  ;;  %6602 = vrot.lane.b32.xlu1 %v6378_v48, %s16619_s26  ;;  %v13958_v19 = vadd.f32 %v3749_v9, %v16621_v25  ;;  %v3751_v22 = vpop.f32.mrb[69].mxu1  ;;  %v7774_v48 = vld [vmem:[%s15784_s4 + $0x20] sm:$0xff]  ;;  %v16630_v27 = vld [vmem:[#allocation137_spill] sm:$0xff] }
 0x46a   : > { %4779 = vrot.lane.b32.xlu0 %v13785_v1, %s16499_s25  ;;  %v5421_v21 = vsel %vm2973_vm8, %v5389_v44, %v5118_v4  ;;  %v7776_v4 = vld [vmem:[%s15784_s4 + $0x30] sm:$0xff]  ;;  %v5295_v13 = vsel %vm2841_vm4, %v5263_v18, %v16630_v27 }
 0x46b   : > { %9455 = vmatmul.mubr.msk.f32.gmra.mrb[166].mxu0 %vm3016_vm9, %v5421_v21  ;;  %v4880_v40 = vpop.permute.xlu1 %4879  ;;  %v9724_v45 = vpack.c.bf16 %v7776_v4, %v7774_v48  ;;  %v16631_v9 = vld [vmem:[#allocation169_spill] sm:$0xff] }
 0x46c   : > { %v4752_v51 = vpop.permute.xlu0 %4751  ;;  %5715 = vmatprep.mubr.f32.mxu0 %v16047_v34  ;;  %v3754_v1 = vpop.f32.mrb[70].mxu1  ;;  %v6473_v25 = vld [vmem:[#allocation2 + $0x110] sm:$0xff] }
 0x46d   : > { %v5326_v39 = vsel %vm2874_vm5, %v5294_v15, %v4752_v51  ;;  %6714 = vrot.lane.b32.xlu1 %v13963_v56, %s16624_s30  ;;  %v13975_v30 = vadd.f32 %v3754_v1, %v16625_v62  ;;  %v3756_v10 = vpop.f32.mrb[71].mxu1  ;;  %9725 = vmatpush1.bf16.msra.mxu0 %v9724_v45  ;;  %v7778_v1 = vld [vmem:[%s15784_s4 + $0x40] sm:$0xf]  ;;  %v16634_v62 = vld [vmem:[#allocation124_spill] sm:$0xff] }
 0x46e   : > { %4907 = vrot.lane.b32.xlu0 %v4140_v23, %s16501_s29  ;;  %v5358_v24 = vsel %vm2907_vm6, %v5326_v39, %v4880_v40  ;;  %v16628_v23 = vld [vmem:[#allocation133_spill] sm:$0xff]  ;;  %9473 = vmatprep.subr.msk.mxu0 %vm662_vm1, %v7779_v33 }
 0x46f   : > { %v5120_v61 = vpop.permute.xlu1 %5119  ;;  %v9962_v40 = vld [vmem:[#allocation2 + $0x1ac] sm:$0xff] }
 0x470   : > { %v5008_v0 = vpop.permute.xlu0 %5007  ;;  %v3759_v58 = vpop.f32.mrb[72].mxu1  ;;  %v5200_v15 = vsel %vm432_vm0, %v9962_v40, %v16633_v35  ;;  %v6489_v40 = vld [vmem:[#allocation2 + $0x118] sm:$0xff] }
 0x471   : > { %v5390_v26 = vsel %vm2940_vm7, %v5358_v24, %v5008_v0  ;;  %6842 = vrot.lane.b32.xlu1 %v6441_v20, %s16373_s24  ;;  %v13998_v17 = vadd.f32 %v3759_v58, %v16628_v23  ;;  %v3761_v37 = vpop.f32.mrb[73].mxu1  ;;  %v5232_v10 = vsel %vm2775_vm2, %v5200_v15, %v16634_v62  ;;  %v16635_v20 = vld [vmem:[#allocation158_spill] sm:$0xff]  ;;  %9474 = vmatpush1.msk.msra.mxu0 %vm662_vm1, %v7778_v1  ;;  %v6380_v15 = vld [vmem:[#allocation2 + $0x28] sm:$0xff]  ;;  %v16645_v62 = vld [vmem:[#allocation75_spill] sm:$0xff] }
 0x472   : > { %5035 = vrot.lane.b32.xlu0 %v4172_v42, %s16506_s15  ;;  %v5422_v38 = vsel %vm2973_vm8, %v5390_v26, %v5120_v61  ;;  %v6506_v42 = vld [vmem:[#allocation2 + $0x200] sm:$0xff]  ;;  %v5264_v36 = vsel %vm2808_vm3, %v5232_v10, %v16636_v49  ;;  %v6425_v24 = vld [vmem:[#allocation2 + $0x18] sm:$0xff]  ;;  %v9964_v1 = vld [vmem:[#allocation2 + $0x1cc] sm:$0xff] }
 0x473   : > { %9456 = vmatmul.mubr.msk.f32.gmra.mrb[168].mxu0 %vm3016_vm9, %v5422_v38  ;;  %v4882_v28 = vpop.permute.xlu1 %4881  ;;  %v16637_v0 = vld [vmem:[#allocation226_spill] sm:$0xff]  ;;  %v9963_v38 = vld [vmem:[#allocation2 + $0x1c4] sm:$0xff]  ;;  %v5202_v10 = vsel %vm432_vm0, %v9964_v1, %v16645_v62 }
 0x474   : > { %v4754_v46 = vpop.permute.xlu0 %4753  ;;  %5721 = vmatprep.mubr.f32.mxu0 %v16047_v34  ;;  %v3764_v44 = vpop.f32.mrb[74].mxu1  ;;  %v5296_v55 = vsel %vm2841_vm4, %v5264_v36, %v16637_v0  ;;  %v5201_v43 = vsel %vm432_vm0, %v9963_v38, %v16639_v11 }
 0x475   : > { %v5327_v12 = vsel %vm2874_vm5, %v5295_v13, %v4754_v46  ;;  %6954 = vrot.lane.b32.xlu1 %v14002_v29, %s16474_s13  ;;  %v14026_v32 = vadd.f32 %v3764_v44, %v16631_v9  ;;  %v3766_v14 = vpop.f32.mrb[75].mxu1  ;;  %v6538_v13 = vld [vmem:[#allocation2 + $0x210] sm:$0xff]  ;;  %v16642_v46 = vld [vmem:[#allocation195_spill] sm:$0xff] }
 0x476   : > { %5147 = vrot.lane.b32.xlu0 %v4188_v54, %s16632_s0  ;;  %v5359_v21 = vsel %vm2907_vm6, %v5327_v12, %v4882_v28  ;;  %v16640_v28 = vld [vmem:[#allocation61_spill] sm:$0xff] }
 0x477   : > { %v5122_v22 = vpop.permute.xlu1 %5121  ;;  %v5233_v54 = vsel %vm2775_vm2, %v5201_v43, %v16640_v28  ;;  %v16643_v44 = vld [vmem:[#allocation93_spill] sm:$0xff]  ;;  %v6443_v43 = vld [vmem:[#allocation2 + $0x120] sm:$0xff] }
 0x478   : > { %v5010_v31 = vpop.permute.xlu0 %5009  ;;  %v3769_v39 = vpop.f32.mrb[76].mxu1  ;;  %v5265_v45 = vsel %vm2808_vm3, %v5233_v54, %v16642_v46  ;;  %v9965_v28 = vld [vmem:[#allocation2 + $0x1e4] sm:$0xff] }
 0x479   : > { %v5391_v51 = vsel %vm2940_vm7, %v5359_v21, %v5010_v31  ;;  %7066 = vrot.lane.b32.xlu1 %v6473_v25, %s16499_s25  ;;  %v14044_v59 = vadd.f32 %v3769_v39, %v16635_v20  ;;  %v3771_v60 = vpop.f32.mrb[77].mxu1  ;;  %v5297_v9 = vsel %vm2841_vm4, %v5265_v45, %v16643_v44  ;;  %v16651_v54 = vld [vmem:[#allocation79_spill] sm:$0xff] }
 0x47a   : > { %6604 = vrot.lane.b32.xlu0 %v13963_v56, %s16619_s26  ;;  %v5423_v61 = vsel %vm2973_vm8, %v5391_v51, %v5122_v22  ;;  %v16653_v45 = vld [vmem:[#allocation135_spill] sm:$0xff] }
 0x47b   : > { %9457 = vmatmul.mubr.msk.f32.gmra.mrb[170].mxu0 %vm3016_vm9, %v5423_v61  ;;  %v4884_v50 = vpop.permute.xlu1 %4883  ;;  %v16646_v61 = vld [vmem:[#allocation149_spill] sm:$0xff] }
 0x47c   : > { %v4756_v47 = vpop.permute.xlu0 %4755  ;;  %5727 = vmatprep.mubr.f32.mxu0 %v16047_v34  ;;  %v3774_v63 = vpop.f32.mrb[78].mxu1 }
 0x47d   : > { %v5328_v56 = vsel %vm2874_vm5, %v5296_v55, %v4756_v47  ;;  %7194 = vrot.lane.b32.xlu1 %v6506_v42, %s16501_s29  ;;  %v14059_v26 = vadd.f32 %v3774_v63, %v16638_v57  ;;  %v3776_v58 = vpop.f32.mrb[79].mxu1  ;;  %v5234_v42 = vsel %vm2775_vm2, %v5202_v10, %v16646_v61  ;;  %v6410_v47 = vld [vmem:[#allocation2 + $0x30] sm:$0xff] }
 0x47e   : > { %6716 = vrot.lane.b32.xlu0 %v6425_v24, %s16624_s30  ;;  %v5360_v23 = vsel %vm2907_vm6, %v5328_v56, %v4884_v50  ;;  %v16648_v24 = vld [vmem:[#allocation153_spill] sm:$0xff]  ;;  %v16649_v56 = vld [vmem:[#allocation200_spill] sm:$0xff] }
 0x47f   : > { %v5124_v8 = vpop.permute.xlu1 %5123  ;;  %v5266_v0 = vsel %vm2808_vm3, %v5234_v42, %v16648_v24  ;;  %v6474_v10 = vld [vmem:[#allocation2 + $0x130] sm:$0xff] }
 0x480   : > { %v5012_v37 = vpop.permute.xlu0 %5011  ;;  %v3779_v18 = vpop.f32.mrb[80].mxu1  ;;  %v5298_v63 = vsel %vm2841_vm4, %v5266_v0, %v16649_v56  ;;  %v9966_v42 = vld [vmem:[#allocation2 + $0x1ec] sm:$0xff]  ;;  %v16658_v0 = vld [vmem:[#allocation126_spill] sm:$0xff] }
 0x481   : > { %v5392_v6 = vsel %vm2940_vm7, %v5360_v23, %v5012_v37  ;;  %7306 = vrot.lane.b32.xlu1 %v6507_v5, %s16506_s15  ;;  %v14070_v48 = vadd.f32 %v3779_v18, %v16641_v53  ;;  %v3781_v4 = vpop.f32.mrb[81].mxu1  ;;  %v16650_v23 = vld [vmem:[#allocation224_spill] sm:$0xff]  ;;  %v5203_v53 = vsel %vm432_vm0, %v9965_v28, %v16651_v54 }
 0x482   : > { %6844 = vrot.lane.b32.xlu0 %v14002_v29, %s16373_s24  ;;  %v5424_v27 = vsel %vm2973_vm8, %v5392_v6, %v5124_v8  ;;  %v16644_v29 = vld [vmem:[#allocation221_spill] sm:$0xff]  ;;  %v16659_v56 = vld [vmem:[#allocation136_spill] sm:$0xff] }
 0x483   : > { %9458 = vmatmul.mubr.msk.f32.gmra.mrb[172].mxu0 %vm3016_vm9, %v5424_v27  ;;  %v4886_v12 = vpop.permute.xlu1 %4885 }
 0x484   : > { %v4758_v14 = vpop.permute.xlu0 %4757  ;;  %5733 = vmatprep.mubr.f32.mxu0 %v16047_v34  ;;  %v3784_v21 = vpop.f32.mrb[82].mxu1 }
 0x485   : > { %v5329_v22 = vsel %vm2874_vm5, %v5297_v9, %v4758_v14  ;;  %7418 = vrot.lane.b32.xlu1 %v6538_v13, %s16632_s0  ;;  %v14084_v31 = vadd.f32 %v3784_v21, %v16644_v29  ;;  %v3786_v33 = vpop.f32.mrb[83].mxu1  ;;  %v6554_v14 = vld [vmem:[#allocation2 + $0x218] sm:$0xff] }
 0x486   : > { %6956 = vrot.lane.b32.xlu0 %v6473_v25, %s16474_s13  ;;  %v5361_v51 = vsel %vm2907_vm6, %v5329_v22, %v4886_v12  ;;  %v16647_v25 = vld [vmem:[#allocation157_spill] sm:$0xff]  ;;  %v16654_v22 = vld [vmem:[#allocation220_spill] sm:$0xff] }
 0x487   : > { %v5126_v35 = vpop.permute.xlu1 %5125  ;;  %v6444_v33 = vld [vmem:[#allocation2 + $0x128] sm:$0xff] }
 0x488   : > { %v5014_v39 = vpop.permute.xlu0 %5013  ;;  %v3789_v60 = vpop.f32.mrb[84].mxu1 }
 0x489   : > { %v5393_v20 = vsel %vm2940_vm7, %v5361_v51, %v5014_v39  ;;  %7068 = vrot.lane.b32.xlu1 %v6489_v40, %s16499_s25  ;;  %v14095_v49 = vadd.f32 %v3789_v60, %v16647_v25  ;;  %v3791_v36 = vpop.f32.mrb[85].mxu1  ;;  %v16656_v39 = vld [vmem:[#allocation198_spill] sm:$0xff] }
 0x48a   : > { %6606 = vrot.lane.b32.xlu0 %v6380_v15, %s16619_s26  ;;  %v5425_v50 = vsel %vm2973_vm8, %v5393_v20, %v5126_v35  ;;  %v16657_v25 = vld [vmem:[#allocation118_spill] sm:$0xff] }
 0x48b   : > { %9459 = vmatmul.mubr.msk.f32.gmra.mrb[174].mxu0 %vm3016_vm9, %v5425_v50  ;;  %v4888_v55 = vpop.permute.xlu1 %4887  ;;  %v5204_v36 = vsel %vm432_vm0, %v9966_v42, %v16657_v25  ;;  %v16667_v42 = vld [vmem:[#allocation228_spill] sm:$0xff] }
 0x48c   : > { %v4760_v57 = vpop.permute.xlu0 %4759  ;;  %5739 = vmatprep.mubr.f32.mxu0 %v16047_v34  ;;  %v3794_v8 = vpop.f32.mrb[86].mxu1 }
 0x48d   : > { %v5330_v58 = vsel %vm2874_vm5, %v5298_v63, %v4760_v57  ;;  %7196 = vrot.lane.b32.xlu1 %v6507_v5, %s16501_s29  ;;  %v14108_v37 = vadd.f32 %v3794_v8, %v16650_v23  ;;  %v3796_v38 = vpop.f32.mrb[87].mxu1  ;;  %v16652_v5 = vld [vmem:[#allocation163_spill] sm:$0xff]  ;;  %v16660_v23 = vld [vmem:[#allocation76_spill] sm:$0xff] }
 0x48e   : > { %6718 = vrot.lane.b32.xlu0 %v6410_v47, %s16624_s30  ;;  %v5362_v6 = vsel %vm2907_vm6, %v5330_v58, %v4888_v55  ;;  %v5235_v46 = vsel %vm2775_vm2, %v5203_v53, %v16652_v5  ;;  %v5236_v55 = vsel %vm2775_vm2, %v5204_v36, %v16658_v0  ;;  %v6508_v8 = vld [vmem:[#allocation2 + $0x220] sm:$0xff]  ;;  %v16662_v53 = vld [vmem:[#allocation174_spill] sm:$0xff]  ;;  %v6509_v5 = vld [vmem:[#allocation2 + $0x228] sm:$0xff] }
 0x48f   : > { %v5128_v11 = vpop.permute.xlu1 %5127  ;;  %v5267_v21 = vsel %vm2808_vm3, %v5235_v46, %v16654_v22  ;;  %v5268_v38 = vsel %vm2808_vm3, %v5236_v55, %v16660_v23 }
 0x490   : > { %v5016_v18 = vpop.permute.xlu0 %5015  ;;  %v3799_v27 = vpop.f32.mrb[88].mxu1 }
 0x491   : > { %v5394_v4 = vsel %vm2940_vm7, %v5362_v6, %v5016_v18  ;;  %7308 = vrot.lane.b32.xlu1 %v6538_v13, %s16506_s15  ;;  %v14119_v12 = vadd.f32 %v3799_v27, %v16653_v45  ;;  %v3801_v44 = vpop.f32.mrb[89].mxu1  ;;  %v16655_v13 = vld [vmem:[#allocation176_spill] sm:$0xff] }
 0x492   : > { %6846 = vrot.lane.b32.xlu0 %v6443_v43, %s16373_s24  ;;  %v5426_v9 = vsel %vm2973_vm8, %v5394_v4, %v5128_v11  ;;  %v5299_v40 = vsel %vm2841_vm4, %v5267_v21, %v16655_v13  ;;  %v6426_v43 = vld [vmem:[#allocation2 + $0x38] sm:$0xff]  ;;  %v16661_v6 = vld [vmem:[#allocation44_spill] sm:$0xff]  ;;  %v16664_v13 = vld [vmem:[#allocation191_spill] sm:$0xff] }
 0x493   : > { %9460 = vmatmul.mubr.msk.f32.gmra.mrb[176].mxu0 %vm3016_vm9, %v5426_v9  ;;  %v4890_v29 = vpop.permute.xlu1 %4889  ;;  %v5300_v18 = vsel %vm2841_vm4, %v5268_v38, %v16661_v6  ;;  %v9967_v9 = vld [vmem:[#allocation2 + $0x204] sm:$0xff]  ;;  %v9968_v38 = vld [vmem:[#allocation2 + $0x20c] sm:$0xff] }
 0x494   : > { %v4762_v35 = vpop.permute.xlu0 %4761  ;;  %5745 = vmatprep.mubr.f32.mxu0 %v16047_v34 }
 0x495   : > { %v5331_v15 = vsel %vm2874_vm5, %v5299_v40, %v4762_v35  ;;  %v3804_v51 = vpop.f32.mrb[90].mxu1  ;;  %7420 = vrot.lane.b32.xlu1 %v6554_v14, %s16632_s0  ;;  %v16663_v14 = vld [vmem:[#allocation121_spill] sm:$0xff]  ;;  %v16665_v35 = vld [vmem:[#allocation88_spill] sm:$0xff] }
 0x496   : > { %v14132_v1 = vadd.f32 %v3804_v51, %v16656_v39  ;;  %6958 = vrot.lane.b32.xlu0 %v6444_v33, %s16474_s13  ;;  %v3806_v62 = vpop.f32.mrb[91].mxu1  ;;  %v5363_v60 = vsel %vm2907_vm6, %v5331_v15, %v4890_v29  ;;  %v5205_v22 = vsel %vm432_vm0, %v9967_v9, %v16663_v14  ;;  %v6411_v9 = vld [vmem:[#allocation2 + $0x50] sm:$0xff]  ;;  %v16673_v14 = vld [vmem:[#allocation92_spill] sm:$0xff] }
 0x497   : > { %v5130_v20 = vpop.permute.xlu1 %5129  ;;  %v5237_v40 = vsel %vm2775_vm2, %v5205_v22, %v16664_v13  ;;  %v6539_v62 = vld [vmem:[#allocation2 + $0x230] sm:$0xff] }
 0x498   : > { %v5018_v61 = vpop.permute.xlu0 %5017 }
 0x499   : > { %v5395_v50 = vsel %vm2940_vm7, %v5363_v60, %v5018_v61  ;;  %v3809_v24 = vpop.f32.mrb[92].mxu1  ;;  %7070 = vrot.lane.b32.xlu1 %v6474_v10, %s16499_s25 }
 0x49a   : > { %v14143_v63 = vadd.f32 %v3809_v24, %v16659_v56  ;;  %6608 = vrot.lane.b32.xlu0 %v6410_v47, %s16619_s26  ;;  %v3811_v57 = vpop.f32.mrb[93].mxu1  ;;  %v5427_v58 = vsel %vm2973_vm8, %v5395_v50, %v5130_v20  ;;  %v16666_v20 = vld [vmem:[#allocation167_spill] sm:$0xff]  ;;  %v6490_v56 = vld [vmem:[#allocation2 + $0x138] sm:$0xff] }
 0x49b   : > { %9461 = vmatmul.mubr.msk.f32.gmra.mrb[178].mxu0 %vm3016_vm9, %v5427_v58  ;;  %v4892_v11 = vpop.permute.xlu1 %4891  ;;  %v5269_v60 = vsel %vm2808_vm3, %v5237_v40, %v16666_v20  ;;  %v6382_v58 = vld [vmem:[#allocation2 + $0x48] sm:$0xff]  ;;  %v16674_v40 = vld [vmem:[#allocation225_spill] sm:$0xff]  ;;  %v6445_v20 = vld [vmem:[#allocation2 + $0x140] sm:$0xff] }
 0x49c   : > { %v4764_v28 = vpop.permute.xlu0 %4763  ;;  %5751 = vmatprep.mubr.f32.mxu0 %v16047_v34  ;;  %v5301_v25 = vsel %vm2841_vm4, %v5269_v60, %v16667_v42  ;;  %v9969_v42 = vld [vmem:[#allocation2 + $0x224] sm:$0xff] }
 0x49d   : > { %v5332_v54 = vsel %vm2874_vm5, %v5300_v18, %v4764_v28  ;;  %v3814_v47 = vpop.f32.mrb[94].mxu1  ;;  %7198 = vrot.lane.b32.xlu1 %v6508_v8, %s16501_s29  ;;  %v16670_v28 = vld [vmem:[#allocation152_spill] sm:$0xff] }
 0x49e   : > { %v14156_v4 = vadd.f32 %v3814_v47, %v16662_v53  ;;  %6720 = vrot.lane.b32.xlu0 %v6426_v43, %s16624_s30  ;;  %v3816_v27 = vpop.f32.mrb[95].mxu1  ;;  %v5364_v45 = vsel %vm2907_vm6, %v5332_v54, %v4892_v11  ;;  %v16669_v11 = vld [vmem:[#allocation82_spill] sm:$0xff] }
 0x49f   : > { %v5132_v46 = vpop.permute.xlu1 %5131  ;;  %v5206_v43 = vsel %vm432_vm0, %v9968_v38, %v16669_v11 }
 0x4a0   : > { %v5020_v44 = vpop.permute.xlu0 %5019  ;;  %v5238_v54 = vsel %vm2775_vm2, %v5206_v43, %v16670_v28  ;;  %v6446_v43 = vld [vmem:[#allocation2 + $0x148] sm:$0xff] }
 0x4a1   : > { %v5396_v21 = vsel %vm2940_vm7, %v5364_v45, %v5020_v44  ;;  %v3819_v29 = vpop.f32.mrb[96].mxu1  ;;  %7310 = vrot.lane.b32.xlu1 %v6509_v5, %s16506_s15 }
 0x4a2   : > { %v14167_v15 = vadd.f32 %v3819_v29, %v16665_v35  ;;  %6848 = vrot.lane.b32.xlu0 %v6444_v33, %s16373_s24  ;;  %v3821_v51 = vpop.f32.mrb[97].mxu1  ;;  %v5428_v39 = vsel %vm2973_vm8, %v5396_v21, %v5132_v46  ;;  %v16668_v33 = vld [vmem:[#allocation173_spill] sm:$0xff]  ;;  %v16672_v46 = vld [vmem:[#allocation131_spill] sm:$0xff] }
 0x4a3   : > { %9462 = vmatmul.mubr.msk.f32.gmra.mrb[180].mxu0 %vm3016_vm9, %v5428_v39  ;;  %v4894_v61 = vpop.permute.xlu1 %4893  ;;  %v5270_v45 = vsel %vm2808_vm3, %v5238_v54, %v16672_v46  ;;  %v14231_v46 = vld [vmem:[#allocation2 + $0x150] sm:$0xff] }
 0x4a4   : > { %v4766_v36 = vpop.permute.xlu0 %4765  ;;  %5757 = vmatprep.mubr.f32.mxu0 %v16047_v34  ;;  %v5302_v22 = vsel %vm2841_vm4, %v5270_v45, %v16673_v14 }
 0x4a5   : > { %v5333_v50 = vsel %vm2874_vm5, %v5301_v25, %v4766_v36  ;;  %v3824_v24 = vpop.f32.mrb[98].mxu1  ;;  %7422 = vrot.lane.b32.xlu1 %v6539_v62, %s16632_s0  ;;  %v16675_v25 = vld [vmem:[#allocation86_spill] sm:$0xff] }
 0x4a6   : > { %v14180_v0 = vadd.f32 %v3824_v24, %v16668_v33  ;;  %6960 = vrot.lane.b32.xlu0 %v6474_v10, %s16474_s13  ;;  %v3826_v55 = vpop.f32.mrb[99].mxu1  ;;  %v5365_v8 = vsel %vm2907_vm6, %v5333_v50, %v4894_v61  ;;  %v16671_v10 = vld [vmem:[#allocation45_spill] sm:$0xff]  ;;  %v5207_v36 = vsel %vm432_vm0, %v9969_v42, %v16675_v25  ;;  %v6510_v25 = vld [vmem:[#allocation2 + $0x240] sm:$0xff] }
 0x4a7   : > { %v5134_v57 = vpop.permute.xlu1 %5133  ;;  %v16677_v55 = vld [vmem:[#allocation47_spill] sm:$0xff] }
 0x4a8   : > { %v5022_v23 = vpop.permute.xlu0 %5021 }
 0x4a9   : > { %v5397_v6 = vsel %vm2940_vm7, %v5365_v8, %v5022_v23  ;;  %v3829_v18 = vpop.f32.mrb[100].mxu1  ;;  %7072 = vrot.lane.b32.xlu1 %v6490_v56, %s16499_s25  ;;  %v6555_v8 = vld [vmem:[#allocation2 + $0x238] sm:$0xff] }
 0x4aa   : > { %v14191_v47 = vadd.f32 %v3829_v18, %v16671_v10  ;;  %6610 = vrot.lane.b32.xlu0 %v6382_v58, %s16619_s26  ;;  %v3831_v53 = vpop.f32.mrb[101].mxu1  ;;  %v5429_v27 = vsel %vm2973_vm8, %v5397_v6, %v5134_v57  ;;  %v16678_v23 = vld [vmem:[#allocation194_spill] sm:$0xff]  ;;  %v16680_v10 = vld [vmem:[#allocation203_spill] sm:$0xff] }
 0x4ab   : > { %9463 = vmatmul.mubr.msk.f32.gmra.mrb[182].mxu0 %vm3016_vm9, %v5429_v27  ;;  %v4896_v44 = vpop.permute.xlu1 %4895 }
 0x4ac   : > { %v4768_v21 = vpop.permute.xlu0 %4767  ;;  %5763 = vmatprep.mubr.f32.mxu0 %v16047_v34 }
 0x4ad   : > { %v5334_v29 = vsel %vm2874_vm5, %v5302_v22, %v4768_v21  ;;  %v3834_v13 = vpop.f32.mrb[102].mxu1  ;;  %7200 = vrot.lane.b32.xlu1 %v6509_v5, %s16501_s29  ;;  %v16676_v5 = vld [vmem:[#allocation160_spill] sm:$0xff]  ;;  %v16681_v21 = vld [vmem:[#allocation83_spill] sm:$0xff] }
 0x4ae   : > { %v14204_v35 = vadd.f32 %v3834_v13, %v16674_v40  ;;  %6722 = vrot.lane.b32.xlu0 %v6411_v9, %s16624_s30  ;;  %v3836_v51 = vpop.f32.mrb[103].mxu1  ;;  %v5366_v60 = vsel %vm2907_vm6, %v5334_v29, %v4896_v44  ;;  %v5239_v33 = vsel %vm2775_vm2, %v5207_v36, %v16676_v5  ;;  %v9970_v22 = vld [vmem:[#allocation2 + $0x22c] sm:$0xff]  ;;  %v6427_v5 = vld [vmem:[#allocation2 + $0x58] sm:$0xff] }
 0x4af   : > { %v5136_v39 = vpop.permute.xlu1 %5135  ;;  %v5271_v38 = vsel %vm2808_vm3, %v5239_v33, %v16678_v23  ;;  %v5208_v29 = vsel %vm432_vm0, %v9970_v22, %v16681_v21  ;;  %v16682_v51 = vld [vmem:[#allocation127_spill] sm:$0xff]  ;;  %v16684_v36 = vld [vmem:[#allocation156_spill] sm:$0xff]  ;;  %v16686_v23 = vld [vmem:[#allocation178_spill] sm:$0xff] }
 0x4b0   : > { %v5024_v61 = vpop.permute.xlu0 %5023  ;;  %v16685_v33 = vld [vmem:[#allocation175_spill] sm:$0xff]  ;;  %v16689_v22 = vld [vmem:[#allocation120_spill] sm:$0xff] }
 0x4b1   : > { %v5398_v50 = vsel %vm2940_vm7, %v5366_v60, %v5024_v61  ;;  %v3839_v24 = vpop.f32.mrb[104].mxu1  ;;  %7312 = vrot.lane.b32.xlu1 %v6539_v62, %s16506_s15  ;;  %v16679_v62 = vld [vmem:[#allocation202_spill] sm:$0xff] }
 0x4b2   : > { %v14215_v56 = vadd.f32 %v3839_v24, %v16677_v55  ;;  %6850 = vrot.lane.b32.xlu0 %v6445_v20, %s16373_s24  ;;  %v3841_v57 = vpop.f32.mrb[105].mxu1  ;;  %v5430_v58 = vsel %vm2973_vm8, %v5398_v50, %v5136_v39  ;;  %v5303_v6 = vsel %vm2841_vm4, %v5271_v38, %v16679_v62  ;;  %v5240_v39 = vsel %vm2775_vm2, %v5208_v29, %v16682_v51  ;;  %v16683_v20 = vld [vmem:[#allocation97_spill] sm:$0xff]  ;;  %v14261_v62 = vld [vmem:[#allocation2 + $0x248] sm:$0xff] }
 0x4b3   : > { %9464 = vmatmul.mubr.msk.f32.gmra.mrb[184].mxu0 %vm3016_vm9, %v5430_v58  ;;  %v4898_v11 = vpop.permute.xlu1 %4897  ;;  %v5272_v50 = vsel %vm2808_vm3, %v5240_v39, %v16684_v36  ;;  %v9471_v58 = vld [vmem:[%s15787_s7 + $0x4] sm:$0x3]  ;;  %v16690_v51 = vld [vmem:[#allocation128_spill] sm:$0xff] }
 0x4b4   : > { %v4770_v18 = vpop.permute.xlu0 %4769  ;;  %5769 = vmatprep.mubr.f32.mxu0 %v16047_v34  ;;  %v5304_v55 = vsel %vm2841_vm4, %v5272_v50, %v16685_v33 }
 0x4b5   : > { %v5335_v28 = vsel %vm2874_vm5, %v5303_v6, %v4770_v18  ;;  %v3844_v54 = vpop.f32.mrb[106].mxu1  ;;  %7424 = vrot.lane.b32.xlu1 %v6555_v8, %s16632_s0  ;;  %v9472_v6 = vld [vmem:[%s15788_s8 + $0x4] sm:$0x3] }
 0x4b6   : > { %v14228_v53 = vadd.f32 %v3844_v54, %v16680_v10  ;;  %6962 = vrot.lane.b32.xlu0 %v6446_v43, %s16474_s13  ;;  %v3846_v27 = vpop.f32.mrb[107].mxu1  ;;  %v5367_v44 = vsel %vm2907_vm6, %v5335_v28, %v4898_v11  ;;  %v16687_v28 = vld [vmem:[#allocation182_spill] sm:$0xff] }
 0x4b7   : > { %v5138_v45 = vpop.permute.xlu1 %5137  ;;  %v14267_v54 = vrot.slane %v9471_v58, %v16687_v28 }
 0x4b8   : > { %v5026_v14 = vpop.permute.xlu0 %5025 }
 0x4b9   : > { %v5399_v13 = vsel %vm2940_vm7, %v5367_v44, %v5026_v14  ;;  %v3849_v40 = vpop.f32.mrb[108].mxu1  ;;  %7074 = vrot.lane.b32.xlu1 %v14231_v46, %s16499_s25  ;;  %v9971_v14 = vld [vmem:[#allocation2 + $0x244] sm:$0xff] }
 0x4ba   : > { %v14242_v60 = vadd.f32 %v3849_v40, %v16683_v20  ;;  %6612 = vrot.lane.b32.xlu0 %v6411_v9, %s16619_s26  ;;  %v3851_v61 = vpop.f32.mrb[109].mxu1  ;;  %v5431_v42 = vsel %vm2973_vm8, %v5399_v13, %v5138_v45  ;;  %v16688_v45 = vld [vmem:[#allocation179_spill] sm:$0xff]  ;;  %v5209_v21 = vsel %vm432_vm0, %v9971_v14, %v16689_v22  ;;  %v14279_v40 = vrot.slane %v9472_v6, %v16687_v28 }
 0x4bb   : > { %9465 = vmatmul.mubr.msk.f32.gmra.mrb[186].mxu0 %vm3016_vm9, %v5431_v42  ;;  %v4900_v24 = vpop.permute.xlu1 %4899  ;;  %v14271_v44 = vrot.slane %v9471_v58, %v16688_v45  ;;  %v5241_v39 = vsel %vm2775_vm2, %v5209_v21, %v16690_v51  ;;  %v16691_v20 = vld [vmem:[#allocation227_spill] sm:$0xff]  ;;  %v14288_v36 = vrot.slane %v9472_v6, %v16688_v45  ;;  %v6491_v21 = vld [vmem:[#allocation2 + $0x158] sm:$0xff] }
 0x4bc   : > { %v4772_v57 = vpop.permute.xlu0 %4771  ;;  %5775 = vmatprep.mubr.f32.mxu0 %v16047_v34 }
 0x4bd   : > { %v5336_v9 = vsel %vm2874_vm5, %v5304_v55, %v4772_v57  ;;  %v3854_v8 = vpop.f32.mrb[110].mxu1  ;;  %7202 = vrot.lane.b32.xlu1 %v6510_v25, %s16501_s29 }
 0x4be   : > { %v14258_v38 = vadd.f32 %v3854_v8, %v16686_v23  ;;  %6724 = vrot.lane.b32.xlu0 %v6427_v5, %s16624_s30  ;;  %v3856_v11 = vpop.f32.mrb[111].mxu1  ;;  %v5368_v10 = vsel %vm2907_vm6, %v5336_v9, %v4900_v24  ;;  %v14291_v24 = vld [vmem:[#allocation2 + $0x250] sm:$0xff]  ;;  %v16692_v5 = vld [vmem:[#allocation132_spill] sm:$0xff] }
 0x4bf   : > { %v5140_v18 = vpop.permute.xlu1 %5139  ;;  %v5273_v33 = vsel %vm2808_vm3, %v5241_v39, %v16692_v5  ;;  %v16693_v9 = vld [vmem:[#allocation205_spill] sm:$0xff] }
 0x4c0   : > { %v5028_v27 = vpop.permute.xlu0 %5027 }
 0x4c1   : > { %v5400_v29 = vsel %vm2940_vm7, %v5368_v10, %v5028_v27  ;;  %v3859_v13 = vpop.f32.mrb[112].mxu1  ;;  %7314 = vrot.lane.b32.xlu1 %v14261_v62, %s16506_s15  ;;  %v16694_v27 = vld [vmem:[#allocation96_spill] sm:$0xff] }
 0x4c2   : > { %v14284_v61 = vadd.f32 %v3859_v13, %v16691_v20  ;;  %6852 = vrot.lane.b32.xlu0 %v6446_v43, %s16373_s24  ;;  %v3861_v42 = vpop.f32.mrb[113].mxu1  ;;  %v5615_v25 = vpop.f32.mrb[134].mxu0  ;;  %v5432_v50 = vsel %vm2973_vm8, %v5400_v29, %v5140_v18  ;;  %v5305_v43 = vsel %vm2841_vm4, %v5273_v33, %v16693_v9  ;;  %v6384_v13 = vld [vmem:[#allocation2 + $0x68] sm:$0xff]  ;;  %v16697_v9 = vld [vmem:[#allocation139_spill] sm:$0xff] }
 0x4c3   : > { %v5819_v55 = vmul.f32 %v14267_v54, %v5615_v25  ;;  %v5617_v57 = vpop.f32.mrb[135].mxu0  ;;  %9466 = vmatmul.mubr.msk.f32.gmra.mrb[188].mxu0 %vm3016_vm9, %v5432_v50  ;;  %v4902_v58 = vpop.permute.xlu1 %4901  ;;  %v9972_v42 = vld [vmem:[#allocation2 + $0x24c] sm:$0xff]  ;;  %v16695_v25 = vld [vmem:[#allocation162_spill] sm:$0xff] }
 0x4c4   : > { %v5820_v8 = vmul.f32 %v14271_v44, %v5617_v57  ;;  %v4774_v23 = vpop.permute.xlu0 %4773  ;;  %5781 = vmatprep.mubr.f32.mxu0 %v16047_v34  ;;  %v5210_v50 = vsel %vm432_vm0, %v9972_v42, %v16695_v25  ;;  %v16696_v57 = vld [vmem:[#allocation216_spill] sm:$0xff] }
 0x4c5   : > { %v5896_v11 = vadd.f32 %v14279_v40, %v5819_v55  ;;  %v5337_v6 = vsel %vm2874_vm5, %v5305_v43, %v4774_v23  ;;  %v3864_v18 = vpop.f32.mrb[114].mxu1  ;;  %7426 = vrot.lane.b32.xlu1 %v14291_v24, %s16632_s0 }
 0x4c6   : > { %v5897_v10 = vadd.f32 %v14288_v36, %v5820_v8  ;;  %v14307_v14 = vadd.f32 %v3864_v18, %v16694_v27  ;;  %6964 = vrot.lane.b32.xlu0 %v14231_v46, %s16474_s13  ;;  %v3866_v22 = vpop.f32.mrb[115].mxu1  ;;  %v5369_v39 = vsel %vm2907_vm6, %v5337_v6, %v4902_v58  ;;  %v5242_v46 = vsel %vm2775_vm2, %v5210_v50, %v16696_v57  ;;  %v16699_v6 = vld [vmem:[#allocation219_spill] sm:$0xff]  ;;  %v16701_v50 = vld [vmem:[#allocation204_spill] sm:$0xff] }
 0x4c7   : > { %v5142_v29 = vpop.permute.xlu1 %5141  ;;  %v5960_v5 = vmax.f32 %v5896_v11, 0.0  ;;  %v5274_v11 = vsel %vm2808_vm3, %v5242_v46, %v16699_v6  ;;  %v14327_v22 = vld [vmem:[#allocation2 + $0x70] sm:$0xff] }
 0x4c8   : > { %v5961_v51 = vmax.f32 %v5897_v10, 0.0  ;;  %v5030_v20 = vpop.permute.xlu0 %5029 }
 0x4c9   : > { %v5401_v33 = vsel %vm2940_vm7, %v5369_v39, %v5030_v20  ;;  %v3869_v55 = vpop.f32.mrb[116].mxu1  ;;  %7076 = vrot.lane.b32.xlu1 %v6491_v21, %s16499_s25  ;;  %v16700_v21 = vld [vmem:[#allocation46_spill] sm:$0xff] }
 0x4ca   : > { %v14319_v43 = vadd.f32 %v3869_v55, %v16697_v9  ;;  %v5621_v8 = vpop.f32.mrb[136].mxu0  ;;  %6614 = vrot.lane.b32.xlu0 %v6384_v13, %s16619_s26  ;;  %v3871_v58 = vpop.f32.mrb[117].mxu1  ;;  %6152 = vmatprep.mubr.f32.mxu1 %v5961_v51  ;;  %v5433_v23 = vsel %vm2973_vm8, %v5401_v33, %v5142_v29  ;;  %v5306_v39 = vsel %vm2841_vm4, %v5274_v11, %v16700_v21  ;;  %v16704_v21 = vld [vmem:[#allocation151_spill] sm:$0xff] }
 0x4cb   : > { %v5821_v18 = vmul.f32 %v14267_v54, %v5621_v8  ;;  %v5623_v10 = vpop.f32.mrb[137].mxu0  ;;  %9467 = vmatmul.mubr.msk.f32.gmra.mrb[190].mxu0 %vm3016_vm9, %v5433_v23  ;;  %6153 = vmatmul.mubr.f32.vlgmr.msra.gmra.mrb[122].mxu1 %v5960_v5  ;;  %v4904_v27 = vpop.permute.xlu1 %4903  ;;  %v6447_v8 = vld [vmem:[#allocation2 + $0x160] sm:$0xff]  ;;  %v16703_v23 = vld [vmem:[#allocation148_spill] sm:$0xff] }
 0x4cc   : > { %16698 = vst [vmem:[#allocation229_spill] sm:$0xff] %v14319_v43  ;;  %v5822_v13 = vmul.f32 %v14271_v44, %v5623_v10  ;;  %v4776_v51 = vpop.permute.xlu0 %4775  ;;  %5787 = vmatprep.mubr.f32.mxu0 %v16047_v34  ;;  %v9973_v58 = vld [vmem:[#allocation2 + $0x264] sm:$0xff] }
 0x4cd   : > { %v5898_v29 = vadd.f32 %v14279_v40, %v5821_v18  ;;  %v5338_v20 = vsel %vm2874_vm5, %v5306_v39, %v4776_v51  ;;  %v3874_v42 = vpop.f32.mrb[118].mxu1  ;;  %7204 = vrot.lane.b32.xlu1 %v14261_v62, %s16501_s29  ;;  %v5211_v6 = vsel %vm432_vm0, %v9973_v58, %v16703_v23  ;;  %v16708_v23 = vld [vmem:[#allocation177_spill] sm:$0xff] }
 0x4ce   : > { %v5899_v25 = vadd.f32 %v14288_v36, %v5822_v13  ;;  %v14339_v5 = vadd.f32 %v3874_v42, %v16701_v50  ;;  %6726 = vrot.lane.b32.xlu0 %v14327_v22, %s16624_s30  ;;  %v3876_v33 = vpop.f32.mrb[119].mxu1  ;;  %v5627_v55 = vpop.f32.mrb[138].mxu0  ;;  %v5370_v18 = vsel %vm2907_vm6, %v5338_v20, %v4904_v27  ;;  %v5243_v39 = vsel %vm2775_vm2, %v5211_v6, %v16704_v21 }
 0x4cf   : > { %v5823_v57 = vmul.f32 %v14267_v54, %v5627_v55  ;;  %v5629_v46 = vpop.f32.mrb[139].mxu0  ;;  %v5144_v9 = vpop.permute.xlu1 %5143  ;;  %v5962_v13 = vmax.f32 %v5898_v29, 0.0  ;;  %v6556_v29 = vld [vmem:[#allocation2 + $0x258] sm:$0xff] }
 0x4d0   : > { %16702 = vst [vmem:[#allocation101_spill] sm:$0xff] %v14339_v5  ;;  %v5963_v62 = vmax.f32 %v5899_v25, 0.0  ;;  %v5824_v11 = vmul.f32 %v14271_v44, %v5629_v46  ;;  %v5032_v10 = vpop.permute.xlu0 %5031  ;;  %v16705_v25 = vld [vmem:[#allocation49_spill] sm:$0xff] }
 0x4d1   : > { %v5900_v51 = vadd.f32 %v14279_v40, %v5823_v57  ;;  %v5402_v42 = vsel %vm2940_vm7, %v5370_v18, %v5032_v10  ;;  %v3879_v50 = vpop.f32.mrb[120].mxu1  ;;  %7316 = vrot.lane.b32.xlu1 %v14291_v24, %s16506_s15  ;;  %v16707_v46 = vld [vmem:[#allocation197_spill] sm:$0xff]  ;;  %v6448_v24 = vld [vmem:[#allocation2 + $0x168] sm:$0xff] }
 0x4d2   : > { %v5901_v33 = vadd.f32 %v14288_v36, %v5824_v11  ;;  %v14356_v55 = vadd.f32 %v3879_v50, %v16705_v25  ;;  %6157 = vmatprep.mubr.f32.mxu1 %v5963_v62  ;;  %6854 = vrot.lane.b32.xlu0 %v6447_v8, %s16373_s24  ;;  %v3881_v27 = vpop.f32.mrb[121].mxu1  ;;  %v5434_v20 = vsel %vm2973_vm8, %v5402_v42, %v5144_v9  ;;  %v6476_v10 = vld [vmem:[#allocation2 + $0x170] sm:$0xff] }
 0x4d3   : > { %v5275_v57 = vsel %vm2808_vm3, %v5243_v39, %v16707_v46  ;;  %6158 = vmatmul.mubr.f32.gmra.mrb[124].mxu1 %v5962_v13  ;;  %9468 = vmatmul.mubr.msk.f32.gmra.mrb[192].mxu0 %vm3016_vm9, %v5434_v20  ;;  %v4906_v58 = vpop.permute.xlu1 %4905  ;;  %v5964_v8 = vmax.f32 %v5900_v51, 0.0 }
 0x4d4   : > { %16706 = vst [vmem:[#allocation94_spill] sm:$0xff] %v14356_v55  ;;  %v5307_v6 = vsel %vm2841_vm4, %v5275_v57, %v16708_v23  ;;  %v5965_v11 = vmax.f32 %v5901_v33, 0.0  ;;  %v4778_v18 = vpop.permute.xlu0 %4777  ;;  %5793 = vmatprep.mubr.f32.mxu0 %v16047_v34  ;;  %v6428_v57 = vld [vmem:[#allocation2 + $0x78] sm:$0xff] }
 0x4d5   : > { %v5339_v62 = vsel %vm2874_vm5, %v5307_v6, %v4778_v18  ;;  %7428 = vrot.lane.b32.xlu1 %v6556_v29, %s16632_s0  ;;  %v6512_v29 = vld [vmem:[#allocation2 + $0x260] sm:$0xff] }
 0x4d6   : > { %6966 = vrot.lane.b32.xlu0 %v6448_v24, %s16474_s13  ;;  %v5633_v9 = vpop.f32.mrb[140].mxu0  ;;  %6162 = vmatprep.mubr.f32.mxu1 %v5965_v11  ;;  %v5371_v50 = vsel %vm2907_vm6, %v5339_v62, %v4906_v58 }
 0x4d7   : > { %v5825_v21 = vmul.f32 %v14267_v54, %v5633_v9  ;;  %v5635_v39 = vpop.f32.mrb[141].mxu0  ;;  %6163 = vmatmul.mubr.f32.gmra.mrb[126].mxu1 %v5964_v8  ;;  %v5146_v13 = vpop.permute.xlu1 %5145 }
 0x4d8   : > { %v5826_v42 = vmul.f32 %v14271_v44, %v5635_v39  ;;  %v5034_v33 = vpop.permute.xlu0 %5033 }
 0x4d9   : > { %v5902_v51 = vadd.f32 %v14279_v40, %v5825_v21  ;;  %v5403_v25 = vsel %vm2940_vm7, %v5371_v50, %v5034_v33  ;;  %7078 = vrot.lane.b32.xlu1 %v6476_v10, %s16499_s25 }
 0x4da   : > { %v5903_v27 = vadd.f32 %v14288_v36, %v5826_v42  ;;  %6616 = vrot.lane.b32.xlu0 %v14327_v22, %s16619_s26  ;;  %v5435_v20 = vsel %vm2973_vm8, %v5403_v25, %v5146_v13  ;;  %v6513_v22 = vld [vmem:[#allocation2 + $0x268] sm:$0xff]  ;;  %v16709_v42 = vld [vmem:[#allocation87_spill] sm:$0xff]  ;;  %v16710_v25 = vld [vmem:[#allocation166_spill] sm:$0xff] }
 0x4db   : > { %9469 = vmatmul.mubr.msk.f32.gmra.mrb[194].mxu0 %vm3016_vm9, %v5435_v20  ;;  %v14380_v46 = vpop.permute.xlu1 %6602  ;;  %v5966_v6 = vmax.f32 %v5902_v51, 0.0  ;;  %v9974_v13 = vld [vmem:[#allocation2 + $0x26c] sm:$0xff] }
 0x4dc   : > { %v5967_v58 = vmax.f32 %v5903_v27, 0.0  ;;  %v4780_v23 = vpop.permute.xlu0 %4779  ;;  %5799 = vmatprep.mubr.f32.mxu0 %v16047_v34  ;;  %v5212_v50 = vsel %vm432_vm0, %v9974_v13, %v16709_v42  ;;  %v6541_v51 = vld [vmem:[#allocation2 + $0x270] sm:$0xff]  ;;  %v6492_v13 = vld [vmem:[#allocation2 + $0x178] sm:$0xff] }
 0x4dd   : > { %7206 = vrot.lane.b32.xlu1 %v6512_v29, %s16501_s29  ;;  %v5244_v27 = vsel %vm2775_vm2, %v5212_v50, %v16710_v25  ;;  %v16711_v29 = vld [vmem:[#allocation155_spill] sm:$0xff] }
 0x4de   : > { %6728 = vrot.lane.b32.xlu0 %v6428_v57, %s16624_s30  ;;  %v5639_v11 = vpop.f32.mrb[142].mxu0  ;;  %6167 = vmatprep.mubr.f32.mxu1 %v5967_v58  ;;  %v5276_v57 = vsel %vm2808_vm3, %v5244_v27, %v16711_v29  ;;  %v6386_v27 = vld [vmem:[#allocation2 + $0x88] sm:$0xff] }
 0x4df   : > { %v5827_v18 = vmul.f32 %v14267_v54, %v5639_v11  ;;  %v5641_v8 = vpop.f32.mrb[143].mxu0  ;;  %6168 = vmatmul.mubr.f32.gmra.mrb[128].mxu1 %v5966_v6  ;;  %v6715_v62 = vpop.permute.xlu1 %6714  ;;  %v16712_v11 = vld [vmem:[#allocation95_spill] sm:$0xff] }
 0x4e0   : > { %v5828_v9 = vmul.f32 %v14271_v44, %v5641_v8  ;;  %v4908_v21 = vpop.permute.xlu0 %4907 }
 0x4e1   : > { %v5904_v39 = vadd.f32 %v14279_v40, %v5827_v18  ;;  %7318 = vrot.lane.b32.xlu1 %v6513_v22, %s16506_s15  ;;  %v5308_v18 = vsel %vm2841_vm4, %v5276_v57, %v16712_v11  ;;  %v6413_v11 = vld [vmem:[#allocation2 + $0x90] sm:$0xff] }
 0x4e2   : > { %v5905_v33 = vadd.f32 %v14288_v36, %v5828_v9  ;;  %6856 = vrot.lane.b32.xlu0 %v6448_v24, %s16373_s24  ;;  %v5340_v9 = vsel %vm2874_vm5, %v5308_v18, %v4780_v23 }
 0x4e3   : > { %v6843_v20 = vpop.permute.xlu1 %6842  ;;  %v5968_v8 = vmax.f32 %v5904_v39, 0.0  ;;  %v5372_v42 = vsel %vm2907_vm6, %v5340_v9, %v4908_v21  ;;  %v6377_v9 = vld [vmem:[#allocation2] sm:$0xff] }
 0x4e4   : > { %v5969_v58 = vmax.f32 %v5905_v33, 0.0  ;;  %v5036_v6 = vpop.permute.xlu0 %5035 }
 0x4e5   : > { %7430 = vrot.lane.b32.xlu1 %v6541_v51, %s16632_s0  ;;  %v5404_v29 = vsel %vm2940_vm7, %v5372_v42, %v5036_v6 }
 0x4e6   : > { %6968 = vrot.lane.b32.xlu0 %v6476_v10, %s16474_s13  ;;  %v5645_v24 = vpop.f32.mrb[144].mxu0  ;;  %6172 = vmatprep.mubr.f32.mxu1 %v5969_v58 }
 0x4e7   : > { %v5829_v50 = vmul.f32 %v14267_v54, %v5645_v24  ;;  %v5647_v25 = vpop.f32.mrb[145].mxu0  ;;  %6173 = vmatmul.mubr.f32.gmra.mrb[130].mxu1 %v5968_v8  ;;  %v6955_v33 = vpop.permute.xlu1 %6954 }
 0x4e8   : > { %v5830_v39 = vmul.f32 %v14271_v44, %v5647_v25  ;;  %v5148_v57 = vpop.permute.xlu0 %5147  ;;  %v6449_v25 = vld [vmem:[#allocation2 + $0x180] sm:$0xff] }
 0x4e9   : > { %v5906_v23 = vadd.f32 %v14279_v40, %v5829_v50  ;;  %v5436_v10 = vsel %vm2973_vm8, %v5404_v29, %v5148_v57  ;;  %7080 = vrot.lane.b32.xlu1 %v6492_v13, %s16499_s25 }
 0x4ea   : > { %v5907_v58 = vadd.f32 %v14288_v36, %v5830_v39  ;;  %6618 = vrot.lane.b32.xlu0 %v6386_v27, %s16619_s26  ;;  %9470 = vmatmul.mubr.msk.f32.gmra.mrb[196].mxu0 %vm3016_vm9, %v5436_v10  ;;  %v7514_v39 = vsel %vm432_vm0, %v6377_v9, %v14380_v46  ;;  %v6557_v10 = vld [vmem:[#allocation2 + $0x278] sm:$0xff] }
 0x4eb   : > { %v7067_v21 = vpop.permute.xlu1 %7066  ;;  %7946 = vmatprep.mubr.f32.mxu0 %v16047_v34  ;;  %v5970_v8 = vmax.f32 %v5906_v23, 0.0 }
 0x4ec   : > { %v5971_v6 = vmax.f32 %v5907_v58, 0.0  ;;  %v14413_v18 = vpop.permute.xlu0 %6604 }
 0x4ed   : > { %7208 = vrot.lane.b32.xlu1 %v6513_v22, %s16501_s29  ;;  %v7546_v22 = vsel %vm2775_vm2, %v7514_v39, %v6715_v62 }
 0x4ee   : > { %6730 = vrot.lane.b32.xlu0 %v6413_v11, %s16624_s30  ;;  %v5651_v24 = vpop.f32.mrb[146].mxu0  ;;  %6177 = vmatprep.mubr.f32.mxu1 %v5971_v6  ;;  %v7578_v58 = vsel %vm2808_vm3, %v7546_v22, %v6843_v20 }
 0x4ef   : > { %v5831_v13 = vmul.f32 %v14267_v54, %v5651_v24  ;;  %v5653_v42 = vpop.f32.mrb[147].mxu0  ;;  %6178 = vmatmul.mubr.f32.gmra.mrb[132].mxu1 %v5970_v8  ;;  %v7195_v50 = vpop.permute.xlu1 %7194  ;;  %v6450_v8 = vld [vmem:[#allocation2 + $0x188] sm:$0xff]  ;;  %v7610_v24 = vsel %vm2841_vm4, %v7578_v58, %v6955_v33  ;;  %v6429_v58 = vld [vmem:[#allocation2 + $0x98] sm:$0xff] }
 0x4f0   : > { %v5832_v27 = vmul.f32 %v14271_v44, %v5653_v42  ;;  %v6717_v29 = vpop.permute.xlu0 %6716  ;;  %v7642_v46 = vsel %vm2874_vm5, %v7610_v24, %v7067_v21 }
 0x4f1   : > { %v5908_v57 = vadd.f32 %v14279_v40, %v5831_v13  ;;  %7320 = vrot.lane.b32.xlu1 %v6541_v51, %s16506_s15  ;;  %v7674_v62 = vsel %vm2907_vm6, %v7642_v46, %v7195_v50  ;;  %v6477_v13 = vld [vmem:[#allocation2 + $0x190] sm:$0xff] }
 0x4f2   : > { %v5909_v23 = vadd.f32 %v14288_v36, %v5832_v27  ;;  %6858 = vrot.lane.b32.xlu0 %v6449_v25, %s16373_s24 }
 0x4f3   : > { %v7307_v6 = vpop.permute.xlu1 %7306  ;;  %v5972_v9 = vmax.f32 %v5908_v57, 0.0 }
 0x4f4   : > { %v5973_v42 = vmax.f32 %v5909_v23, 0.0  ;;  %v6845_v55 = vpop.permute.xlu0 %6844  ;;  %v7706_v20 = vsel %vm2940_vm7, %v7674_v62, %v7307_v6  ;;  %v6514_v23 = vld [vmem:[#allocation2 + $0x280] sm:$0xff] }
 0x4f5   : > { %7432 = vrot.lane.b32.xlu1 %v6557_v10, %s16632_s0 }
 0x4f6   : > { %6970 = vrot.lane.b32.xlu0 %v6450_v8, %s16474_s13  ;;  %v5657_v51 = vpop.f32.mrb[148].mxu0  ;;  %6182 = vmatprep.mubr.f32.mxu1 %v5973_v42 }
 0x4f7   : > { %v5833_v25 = vmul.f32 %v14267_v54, %v5657_v51  ;;  %v5659_v27 = vpop.f32.mrb[149].mxu0  ;;  %6183 = vmatmul.mubr.f32.gmra.mrb[134].mxu1 %v5972_v9  ;;  %v7419_v33 = vpop.permute.xlu1 %7418  ;;  %v6515_v9 = vld [vmem:[#allocation2 + $0x288] sm:$0xff] }
 0x4f8   : > { %v5834_v39 = vmul.f32 %v14271_v44, %v5659_v27  ;;  %v7738_v21 = vsel %vm2973_vm8, %v7706_v20, %v7419_v33  ;;  %v6957_v57 = vpop.permute.xlu0 %6956  ;;  %v9975_v27 = vld [vmem:[#allocation2 + $0x8] sm:$0xff] }
 0x4f9   : > { %v5910_v22 = vadd.f32 %v14279_v40, %v5833_v25  ;;  %7082 = vrot.lane.b32.xlu1 %v6477_v13, %s16499_s25  ;;  %9475 = vmatmul.mubr.msk.f32.vlgmr.msra.gmra.mrb[198].mxu0 %vm3016_vm9, %v7738_v21  ;;  %v7515_v33 = vsel %vm432_vm0, %v9975_v27, %v14413_v18 }
 0x4fa   : > { %v5911_v50 = vadd.f32 %v14288_v36, %v5834_v39  ;;  %6620 = vrot.lane.b32.xlu0 %v6413_v11, %s16619_s26  ;;  %7952 = vmatprep.mubr.f32.mxu0 %v16047_v34  ;;  %v7547_v21 = vsel %vm2775_vm2, %v7515_v33, %v6717_v29  ;;  %v6388_v33 = vld [vmem:[#allocation2 + $0xa8] sm:$0xff] }
 0x4fb   : > { %v7069_v10 = vpop.permute.xlu1 %7068  ;;  %v5974_v42 = vmax.f32 %v5910_v22, 0.0 }
 0x4fc   : > { %v5975_v6 = vmax.f32 %v5911_v50, 0.0  ;;  %v14442_v24 = vpop.permute.xlu0 %6606  ;;  %v6542_v50 = vld [vmem:[#allocation2 + $0x290] sm:$0xff] }
 0x4fd   : > { %7210 = vrot.lane.b32.xlu1 %v6514_v23, %s16501_s29  ;;  %v7579_v23 = vsel %vm2808_vm3, %v7547_v21, %v6845_v55 }
 0x4fe   : > { %6732 = vrot.lane.b32.xlu0 %v6429_v58, %s16624_s30  ;;  %v5663_v46 = vpop.f32.mrb[150].mxu0  ;;  %6187 = vmatprep.mubr.f32.mxu1 %v5975_v6  ;;  %v7611_v6 = vsel %vm2841_vm4, %v7579_v23, %v6957_v57  ;;  %v6414_v23 = vld [vmem:[#allocation2 + $0xb0] sm:$0xff] }
 0x4ff   : > { %v5835_v62 = vmul.f32 %v14267_v54, %v5663_v46  ;;  %v5665_v51 = vpop.f32.mrb[151].mxu0  ;;  %6188 = vmatmul.mubr.f32.gmra.mrb[136].mxu1 %v5974_v42  ;;  %v7197_v11 = vpop.permute.xlu1 %7196  ;;  %v7643_v18 = vsel %vm2874_vm5, %v7611_v6, %v7069_v10 }
 0x500   : > { %v5836_v20 = vmul.f32 %v14271_v44, %v5665_v51  ;;  %v6719_v25 = vpop.permute.xlu0 %6718 }
 0x501   : > { %v5912_v39 = vadd.f32 %v14279_v40, %v5835_v62  ;;  %7322 = vrot.lane.b32.xlu1 %v6515_v9, %s16506_s15  ;;  %v7675_v62 = vsel %vm2907_vm6, %v7643_v18, %v7197_v11  ;;  %v6379_v18 = vld [vmem:[#allocation2 + $0x20] sm:$0xff] }
 0x502   : > { %v5913_v22 = vadd.f32 %v14288_v36, %v5836_v20  ;;  %6860 = vrot.lane.b32.xlu0 %v6450_v8, %s16373_s24  ;;  %v6493_v8 = vld [vmem:[#allocation2 + $0x198] sm:$0xff] }
 0x503   : > { %v7309_v58 = vpop.permute.xlu1 %7308  ;;  %v5976_v51 = vmax.f32 %v5912_v39, 0.0 }
 0x504   : > { %v5977_v42 = vmax.f32 %v5913_v22, 0.0  ;;  %v6847_v46 = vpop.permute.xlu0 %6846  ;;  %v7707_v20 = vsel %vm2940_vm7, %v7675_v62, %v7309_v58 }
 0x505   : > { %7434 = vrot.lane.b32.xlu1 %v6542_v50, %s16632_s0 }
 0x506   : > { %6972 = vrot.lane.b32.xlu0 %v6477_v13, %s16474_s13  ;;  %v5669_v29 = vpop.f32.mrb[152].mxu0  ;;  %6192 = vmatprep.mubr.f32.mxu1 %v5977_v42 }
 0x507   : > { %v5837_v55 = vmul.f32 %v14267_v54, %v5669_v29  ;;  %v5671_v27 = vpop.f32.mrb[153].mxu0  ;;  %6193 = vmatmul.mubr.f32.gmra.mrb[138].mxu1 %v5976_v51  ;;  %v7421_v57 = vpop.permute.xlu1 %7420 }
 0x508   : > { %v5838_v10 = vmul.f32 %v14271_v44, %v5671_v27  ;;  %v7739_v39 = vsel %vm2973_vm8, %v7707_v20, %v7421_v57  ;;  %v6959_v21 = vpop.permute.xlu0 %6958  ;;  %v6451_v20 = vld [vmem:[#allocation2 + $0x1a0] sm:$0xff]  ;;  %v7516_v57 = vsel %vm432_vm0, %v6379_v18, %v14442_v24 }
 0x509   : > { %v5914_v11 = vadd.f32 %v14279_v40, %v5837_v55  ;;  %7084 = vrot.lane.b32.xlu1 %v6493_v8, %s16499_s25  ;;  %9476 = vmatmul.mubr.msk.f32.gmra.mrb[200].mxu0 %vm3016_vm9, %v7739_v39  ;;  %v6558_v39 = vld [vmem:[#allocation2 + $0x298] sm:$0xff] }
 0x50a   : > { %v5915_v13 = vadd.f32 %v14288_v36, %v5838_v10  ;;  %6622 = vrot.lane.b32.xlu0 %v6388_v33, %s16619_s26  ;;  %7958 = vmatprep.mubr.f32.mxu0 %v16047_v34  ;;  %v7548_v33 = vsel %vm2775_vm2, %v7516_v57, %v6719_v25  ;;  %v8389_v25 = vld [vmem:[#allocation4 + $0x300] sm:$0xff] }
 0x50b   : > { %v7071_v22 = vpop.permute.xlu1 %7070  ;;  %v5978_v42 = vmax.f32 %v5914_v11, 0.0  ;;  %v7580_v11 = vsel %vm2808_vm3, %v7548_v33, %v6847_v46 }
 0x50c   : > { %v5979_v58 = vmax.f32 %v5915_v13, 0.0  ;;  %v14471_v6 = vpop.permute.xlu0 %6608 }
 0x50d   : > { %7212 = vrot.lane.b32.xlu1 %v6515_v9, %s16501_s29 }
 0x50e   : > { %6734 = vrot.lane.b32.xlu0 %v6414_v23, %s16624_s30  ;;  %v5675_v51 = vpop.f32.mrb[154].mxu0  ;;  %6197 = vmatprep.mubr.f32.mxu1 %v5979_v58  ;;  %v14487_v58 = vld [vmem:[#allocation2 + $0x1a8] sm:$0xff] }
 0x50f   : > { %v5839_v62 = vmul.f32 %v14267_v54, %v5675_v51  ;;  %v5677_v29 = vpop.f32.mrb[155].mxu0  ;;  %6198 = vmatmul.mubr.f32.gmra.mrb[140].mxu1 %v5978_v42  ;;  %v7199_v8 = vpop.permute.xlu1 %7198  ;;  %v7612_v42 = vsel %vm2841_vm4, %v7580_v11, %v6959_v21  ;;  %v8391_v11 = vld [vmem:[#allocation4 + $0x310] sm:$0xff] }
 0x510   : > { %v5840_v55 = vmul.f32 %v14271_v44, %v5677_v29  ;;  %v14477_v27 = vpop.permute.xlu0 %6720  ;;  %v7644_v18 = vsel %vm2874_vm5, %v7612_v42, %v7071_v22  ;;  %v14497_v29 = vld [vmem:[#allocation2 + $0x1b0] sm:$0xff] }
 0x511   : > { %v5916_v9 = vadd.f32 %v14279_v40, %v5839_v62  ;;  %7324 = vrot.lane.b32.xlu1 %v6542_v50, %s16506_s15  ;;  %v7676_v62 = vsel %vm2907_vm6, %v7644_v18, %v7199_v8 }
 0x512   : > { %v5917_v10 = vadd.f32 %v14288_v36, %v5840_v55  ;;  %6862 = vrot.lane.b32.xlu0 %v6451_v20, %s16373_s24  ;;  %v8390_v20 = vld [vmem:[#allocation4 + $0x308] sm:$0xff] }
 0x513   : > { %v7311_v13 = vpop.permute.xlu1 %7310  ;;  %v5980_v50 = vmax.f32 %v5916_v9, 0.0  ;;  %v9727_v9 = vpack.c.bf16 %v8390_v20, %v8389_v25 }
 0x514   : > { %v5981_v51 = vmax.f32 %v5917_v10, 0.0  ;;  %v14490_v24 = vpop.permute.xlu0 %6848  ;;  %v7708_v21 = vsel %vm2940_vm7, %v7676_v62, %v7311_v13  ;;  %v8392_v13 = vld [vmem:[#allocation4 + $0x318] sm:$0xff] }
 0x515   : > { %7436 = vrot.lane.b32.xlu1 %v6558_v39, %s16632_s0  ;;  %9728 = vmatpush1.bf16.msra.mxu1 %v9727_v9 }
 0x516   : > { %6974 = vrot.lane.b32.xlu0 %v14487_v58, %s16474_s13  ;;  %v5681_v46 = vpop.f32.mrb[156].mxu0  ;;  %6202 = vmatprep.mubr.f32.mxu1 %v5981_v51  ;;  %v6516_v51 = vld [vmem:[#allocation2 + $0x2a0] sm:$0xff] }
 0x517   : > { %v5841_v55 = vmul.f32 %v14267_v54, %v5681_v46  ;;  %v5683_v57 = vpop.f32.mrb[157].mxu0  ;;  %6203 = vmatmul.mubr.f32.gmra.mrb[142].mxu1 %v5980_v50  ;;  %v7423_v22 = vpop.permute.xlu1 %7422  ;;  %v6430_v50 = vld [vmem:[#allocation2 + $0xb8] sm:$0xff]  ;;  %9729 = vmatprep.subr.bf16.mxu1 %v16309_v3  ;;  %v9730_v46 = vpack.c.bf16 %v8392_v13, %v8391_v11  ;;  %v9976_v11 = vld [vmem:[#allocation2 + $0x28] sm:$0xff] }
 0x518   : > { %v5842_v33 = vmul.f32 %v14271_v44, %v5683_v57  ;;  %v7740_v8 = vsel %vm2973_vm8, %v7708_v21, %v7423_v22  ;;  %v6961_v10 = vpop.permute.xlu0 %6960  ;;  %v8393_v21 = vld [vmem:[#allocation4 + $0x320] sm:$0xff]  ;;  %v8394_v57 = vld [vmem:[#allocation4 + $0x328] sm:$0xff]  ;;  %v7517_v13 = vsel %vm432_vm0, %v9976_v11, %v14471_v6 }
 0x519   : > { %v5918_v39 = vadd.f32 %v14279_v40, %v5841_v55  ;;  %7086 = vrot.lane.b32.xlu1 %v14497_v29, %s16499_s25  ;;  %9477 = vmatmul.mubr.msk.f32.gmra.mrb[202].mxu0 %vm3016_vm9, %v7740_v8 }
 0x51a   : > { %v5919_v42 = vadd.f32 %v14288_v36, %v5842_v33  ;;  %6624 = vrot.lane.b32.xlu0 %v6414_v23, %s16619_s26  ;;  %7964 = vmatprep.mubr.f32.mxu0 %v16047_v34  ;;  %v14515_v23 = vld [vmem:[#allocation2 + $0x2a8] sm:$0xff] }
 0x51b   : > { %v7073_v18 = vpop.permute.xlu1 %7072  ;;  %v5982_v20 = vmax.f32 %v5918_v39, 0.0  ;;  %9731 = vmatpush1.bf16.msra.mxu1 %v9730_v46  ;;  %v9733_v39 = vpack.c.bf16 %v8394_v57, %v8393_v21  ;;  %v14532_v46 = vld [vmem:[#allocation2 + $0x2b0] sm:$0xff] }
 0x51c   : > { %v5983_v25 = vmax.f32 %v5919_v42, 0.0  ;;  %v14510_v62 = vpop.permute.xlu0 %6610  ;;  %9732 = vmatprep.subr.bf16.mxu1 %v16309_v3 }
 0x51d   : > { %7214 = vrot.lane.b32.xlu1 %v6516_v51, %s16501_s29 }
 0x51e   : > { %6736 = vrot.lane.b32.xlu0 %v6430_v50, %s16624_s30  ;;  %v5687_v55 = vpop.f32.mrb[158].mxu0  ;;  %6207 = vmatprep.mubr.f32.mxu1 %v5983_v25  ;;  %v8395_v50 = vld [vmem:[#allocation4 + $0x330] sm:$0xff]  ;;  %v8396_v25 = vld [vmem:[#allocation4 + $0x338] sm:$0xff] }
 0x51f   : > { %v5843_v22 = vmul.f32 %v14267_v54, %v5687_v55  ;;  %v5689_v9 = vpop.f32.mrb[159].mxu0  ;;  %6208 = vmatmul.mubr.f32.gmra.mrb[144].mxu1 %v5982_v20  ;;  %v7201_v33 = vpop.permute.xlu1 %7200  ;;  %v7549_v20 = vsel %vm2775_vm2, %v7517_v13, %v14477_v27  ;;  %v9736_v11 = vpack.c.bf16 %v8396_v25, %v8395_v50  ;;  %v6390_v25 = vld [vmem:[#allocation2 + $0xc8] sm:$0xff] }
 0x520   : > { %v5844_v8 = vmul.f32 %v14271_v44, %v5689_v9  ;;  %v14519_v42 = vpop.permute.xlu0 %6722  ;;  %v7581_v6 = vsel %vm2808_vm3, %v7549_v20, %v14490_v24  ;;  %9734 = vmatpush1.bf16.msra.mxu1 %v9733_v39  ;;  %v6494_v20 = vld [vmem:[#allocation2 + $0x1b8] sm:$0xff] }
 0x521   : > { %v5920_v51 = vadd.f32 %v14279_v40, %v5843_v22  ;;  %7326 = vrot.lane.b32.xlu1 %v14515_v23, %s16506_s15  ;;  %v7613_v57 = vsel %vm2841_vm4, %v7581_v6, %v6961_v10  ;;  %9735 = vmatprep.subr.bf16.mxu1 %v16309_v3 }
 0x522   : > { %v5921_v55 = vadd.f32 %v14288_v36, %v5844_v8  ;;  %6864 = vrot.lane.b32.xlu0 %v14487_v58, %s16373_s24  ;;  %v7645_v27 = vsel %vm2874_vm5, %v7613_v57, %v7073_v18  ;;  %v8397_v58 = vld [vmem:[#allocation4 + $0x340] sm:$0xff]  ;;  %v8398_v8 = vld [vmem:[#allocation4 + $0x348] sm:$0xff] }
 0x523   : > { %v7313_v21 = vpop.permute.xlu1 %7312  ;;  %v5984_v13 = vmax.f32 %v5920_v51, 0.0  ;;  %v7677_v24 = vsel %vm2907_vm6, %v7645_v27, %v7201_v33  ;;  %v9739_v33 = vpack.c.bf16 %v8398_v8, %v8397_v58 }
 0x524   : > { %v5985_v22 = vmax.f32 %v5921_v55, 0.0  ;;  %v14537_v9 = vpop.permute.xlu0 %6850  ;;  %v7709_v39 = vsel %vm2940_vm7, %v7677_v24, %v7313_v21  ;;  %9737 = vmatpush1.bf16.msra.mxu1 %v9736_v11  ;;  %v8399_v21 = vld [vmem:[#allocation4 + $0x350] sm:$0xff] }
 0x525   : > { %7438 = vrot.lane.b32.xlu1 %v14532_v46, %s16632_s0  ;;  %v14556_v24 = vld [vmem:[#allocation2 + $0xd0] sm:$0xff]  ;;  %9738 = vmatprep.subr.bf16.mxu1 %v16309_v3 }
 0x526   : > { %6976 = vrot.lane.b32.xlu0 %v14497_v29, %s16474_s13  ;;  %v5693_v10 = vpop.f32.mrb[160].mxu0  ;;  %6212 = vmatprep.mubr.f32.mxu1 %v5985_v22  ;;  %v8400_v22 = vld [vmem:[#allocation4 + $0x358] sm:$0xff] }
 0x527   : > { %v5845_v18 = vmul.f32 %v14267_v54, %v5693_v10  ;;  %v5695_v51 = vpop.f32.mrb[161].mxu0  ;;  %6213 = vmatmul.mubr.f32.gmra.mrb[146].mxu1 %v5984_v13  ;;  %v7425_v50 = vpop.permute.xlu1 %7424  ;;  %v9742_v8 = vpack.c.bf16 %v8400_v22, %v8399_v21 }
 0x528   : > { %v5846_v55 = vmul.f32 %v14271_v44, %v5695_v51  ;;  %v7741_v6 = vsel %vm2973_vm8, %v7709_v39, %v7425_v50  ;;  %v6963_v57 = vpop.permute.xlu0 %6962  ;;  %9740 = vmatpush1.bf16.msra.mxu1 %v9739_v33  ;;  %v8402_v39 = vld [vmem:[#allocation4 + $0x368] sm:$0xff] }
 0x529   : > { %v5922_v29 = vadd.f32 %v14279_v40, %v5845_v18  ;;  %7088 = vrot.lane.b32.xlu1 %v6494_v20, %s16499_s25  ;;  %9478 = vmatmul.mubr.msk.f32.gmra.mrb[204].mxu0 %vm3016_vm9, %v7741_v6  ;;  %v8401_v20 = vld [vmem:[#allocation4 + $0x360] sm:$0xff] }
 0x52a   : > { %v5923_v27 = vadd.f32 %v14288_v36, %v5846_v55  ;;  %6626 = vrot.lane.b32.xlu0 %v6390_v25, %s16619_s26  ;;  %7970 = vmatprep.mubr.f32.mxu0 %v16047_v34  ;;  %v6381_v18 = vld [vmem:[#allocation2 + $0x40] sm:$0xff] }
 0x52b   : > { %v7075_v13 = vpop.permute.xlu1 %7074  ;;  %v5986_v10 = vmax.f32 %v5922_v29, 0.0  ;;  %9741 = vmatprep.subr.bf16.mxu1 %v16309_v3  ;;  %v6453_v6 = vld [vmem:[#allocation2 + $0x1c0] sm:$0xff]  ;;  %v7518_v21 = vsel %vm432_vm0, %v6381_v18, %v14510_v62 }
 0x52c   : > { %v5987_v11 = vmax.f32 %v5923_v27, 0.0  ;;  %v14559_v58 = vpop.permute.xlu0 %6612  ;;  %9743 = vmatpush1.bf16.msra.mxu1 %v9742_v8  ;;  %v8403_v27 = vld [vmem:[#allocation4 + $0x370] sm:$0xff]  ;;  %v6559_v8 = vld [vmem:[#allocation2 + $0x2b8] sm:$0xff] }
 0x52d   : > { %7216 = vrot.lane.b32.xlu1 %v14515_v23, %s16501_s29  ;;  %v9745_v23 = vpack.c.bf16 %v8402_v39, %v8401_v20  ;;  %9744 = vmatprep.subr.bf16.mxu1 %v16309_v3  ;;  %v14582_v39 = vld [vmem:[#allocation2 + $0x1c8] sm:$0xff] }
 0x52e   : > { %6738 = vrot.lane.b32.xlu0 %v14556_v24, %s16624_s30  ;;  %v5699_v51 = vpop.f32.mrb[162].mxu0  ;;  %6217 = vmatprep.mubr.f32.mxu1 %v5987_v11  ;;  %v8404_v11 = vld [vmem:[#allocation4 + $0x378] sm:$0xff] }
 0x52f   : > { %v5847_v50 = vmul.f32 %v14267_v54, %v5699_v51  ;;  %v5701_v25 = vpop.f32.mrb[163].mxu0  ;;  %6218 = vmatmul.mubr.f32.gmra.mrb[148].mxu1 %v5986_v10  ;;  %v7203_v55 = vpop.permute.xlu1 %7202  ;;  %v7550_v10 = vsel %vm2775_vm2, %v7518_v21, %v14519_v42 }
 0x530   : > { %v5848_v33 = vmul.f32 %v14271_v44, %v5701_v25  ;;  %v14568_v29 = vpop.permute.xlu0 %6724  ;;  %v7582_v62 = vsel %vm2808_vm3, %v7550_v10, %v14537_v9  ;;  %9746 = vmatpush1.bf16.msra.mxu1 %v9745_v23  ;;  %v9748_v25 = vpack.c.bf16 %v8404_v11, %v8403_v27  ;;  %v8406_v10 = vld [vmem:[#allocation4 + $0x388] sm:$0xff] }
 0x531   : > { %v5924_v22 = vadd.f32 %v14279_v40, %v5847_v50  ;;  %7328 = vrot.lane.b32.xlu1 %v14532_v46, %s16506_s15  ;;  %v7614_v46 = vsel %vm2841_vm4, %v7582_v62, %v6963_v57  ;;  %9747 = vmatprep.subr.bf16.mxu1 %v16309_v3  ;;  %v14593_v57 = vld [vmem:[#allocation2 + $0x1d0] sm:$0xff] }
 0x532   : > { %v5925_v51 = vadd.f32 %v14288_v36, %v5848_v33  ;;  %6866 = vrot.lane.b32.xlu0 %v6453_v6, %s16373_s24  ;;  %v7646_v42 = vsel %vm2874_vm5, %v7614_v46, %v7075_v13  ;;  %v8405_v6 = vld [vmem:[#allocation4 + $0x380] sm:$0xff]  ;;  %v8408_v46 = vld [vmem:[#allocation4 + $0x398] sm:$0xff] }
 0x533   : > { %v7315_v20 = vpop.permute.xlu1 %7314  ;;  %v5988_v21 = vmax.f32 %v5924_v22, 0.0  ;;  %v7678_v9 = vsel %vm2907_vm6, %v7646_v42, %v7203_v55  ;;  %v6518_v42 = vld [vmem:[#allocation2 + $0x2c0] sm:$0xff] }
 0x534   : > { %v5989_v18 = vmax.f32 %v5925_v51, 0.0  ;;  %v14585_v50 = vpop.permute.xlu0 %6852  ;;  %v7710_v23 = vsel %vm2940_vm7, %v7678_v9, %v7315_v20  ;;  %9749 = vmatpush1.bf16.msra.mxu1 %v9748_v25  ;;  %v8407_v20 = vld [vmem:[#allocation4 + $0x390] sm:$0xff]  ;;  %v6431_v25 = vld [vmem:[#allocation2 + $0xd8] sm:$0xff] }
 0x535   : > { %7440 = vrot.lane.b32.xlu1 %v6559_v8, %s16632_s0  ;;  %v9751_v8 = vpack.c.bf16 %v8406_v10, %v8405_v6  ;;  %9750 = vmatprep.subr.bf16.mxu1 %v16309_v3 }
 0x536   : > { %6978 = vrot.lane.b32.xlu0 %v14582_v39, %s16474_s13  ;;  %v5705_v33 = vpop.f32.mrb[164].mxu0  ;;  %6222 = vmatprep.mubr.f32.mxu1 %v5989_v18 }
 0x537   : > { %v5849_v13 = vmul.f32 %v14267_v54, %v5705_v33  ;;  %v5707_v22 = vpop.f32.mrb[165].mxu0  ;;  %6223 = vmatmul.mubr.f32.gmra.mrb[150].mxu1 %v5988_v21  ;;  %v7427_v27 = vpop.permute.xlu1 %7426  ;;  %v9754_v33 = vpack.c.bf16 %v8408_v46, %v8407_v20  ;;  %v9977_v46 = vld [vmem:[#allocation2 + $0x48] sm:$0xff] }
 0x538   : > { %v5850_v11 = vmul.f32 %v14271_v44, %v5707_v22  ;;  %v7742_v51 = vsel %vm2973_vm8, %v7710_v23, %v7427_v27  ;;  %v6965_v55 = vpop.permute.xlu0 %6964  ;;  %9752 = vmatpush1.bf16.msra.mxu1 %v9751_v8  ;;  %v8409_v23 = vld [vmem:[#allocation4 + $0x3a0] sm:$0xff]  ;;  %v14613_v22 = vld [vmem:[#allocation2 + $0x2c8] sm:$0xff] }
 0x539   : > { %v5926_v62 = vadd.f32 %v14279_v40, %v5849_v13  ;;  %7090 = vrot.lane.b32.xlu1 %v14593_v57, %s16499_s25  ;;  %9479 = vmatmul.mubr.msk.f32.gmra.mrb[206].mxu0 %vm3016_vm9, %v7742_v51  ;;  %v8410_v13 = vld [vmem:[#allocation4 + $0x3a8] sm:$0xff] }
 0x53a   : > { %v5927_v18 = vadd.f32 %v14288_v36, %v5850_v11  ;;  %6628 = vrot.lane.b32.xlu0 %v14556_v24, %s16619_s26  ;;  %7976 = vmatprep.mubr.f32.mxu0 %v16047_v34  ;;  %v9757_v20 = vpack.c.bf16 %v8410_v13, %v8409_v23 }
 0x53b   : > { %v7077_v21 = vpop.permute.xlu1 %7076  ;;  %v5990_v10 = vmax.f32 %v5926_v62, 0.0  ;;  %9753 = vmatprep.subr.bf16.mxu1 %v16309_v3 }
 0x53c   : > { %v5991_v6 = vmax.f32 %v5927_v18, 0.0  ;;  %v14608_v9 = vpop.permute.xlu0 %6614  ;;  %9755 = vmatpush1.bf16.msra.mxu1 %v9754_v33  ;;  %v7519_v18 = vsel %vm432_vm0, %v9977_v46, %v14559_v58  ;;  %v14630_v33 = vld [vmem:[#allocation2 + $0x2d0] sm:$0xff] }
 0x53d   : > { %7218 = vrot.lane.b32.xlu1 %v6518_v42, %s16501_s29  ;;  %9756 = vmatprep.subr.bf16.mxu1 %v16309_v3 }
 0x53e   : > { %6740 = vrot.lane.b32.xlu0 %v6431_v25, %s16624_s30  ;;  %v5711_v24 = vpop.f32.mrb[166].mxu0  ;;  %6227 = vmatprep.mubr.f32.mxu1 %v5991_v6  ;;  %v8411_v25 = vld [vmem:[#allocation4 + $0x3b0] sm:$0xff]  ;;  %v8412_v6 = vld [vmem:[#allocation4 + $0x3b8] sm:$0xff] }
 0x53f   : > { %v5851_v27 = vmul.f32 %v14267_v54, %v5711_v24  ;;  %v5713_v11 = vpop.f32.mrb[167].mxu0  ;;  %6228 = vmatmul.mubr.f32.gmra.mrb[152].mxu1 %v5990_v10  ;;  %v7205_v51 = vpop.permute.xlu1 %7204  ;;  %v7551_v10 = vsel %vm2775_vm2, %v7519_v18, %v14568_v29  ;;  %v9760_v46 = vpack.c.bf16 %v8412_v6, %v8411_v25  ;;  %v6392_v6 = vld [vmem:[#allocation2 + $0xe8] sm:$0xff] }
 0x540   : > { %v5852_v8 = vmul.f32 %v14271_v44, %v5713_v11  ;;  %v14617_v62 = vpop.permute.xlu0 %6726  ;;  %v7583_v58 = vsel %vm2808_vm3, %v7551_v10, %v14585_v50  ;;  %9758 = vmatpush1.bf16.msra.mxu1 %v9757_v20  ;;  %v6495_v10 = vld [vmem:[#allocation2 + $0x1d8] sm:$0xff] }
 0x541   : > { %v5928_v42 = vadd.f32 %v14279_v40, %v5851_v27  ;;  %7330 = vrot.lane.b32.xlu1 %v14613_v22, %s16506_s15  ;;  %v7615_v13 = vsel %vm2841_vm4, %v7583_v58, %v6965_v55  ;;  %9759 = vmatprep.subr.bf16.mxu1 %v16309_v3 }
 0x542   : > { %v5929_v24 = vadd.f32 %v14288_v36, %v5852_v8  ;;  %6868 = vrot.lane.b32.xlu0 %v14582_v39, %s16373_s24  ;;  %v7647_v29 = vsel %vm2874_vm5, %v7615_v13, %v7077_v21  ;;  %v8413_v39 = vld [vmem:[#allocation4 + $0x3c0] sm:$0xff]  ;;  %v8414_v8 = vld [vmem:[#allocation4 + $0x3c8] sm:$0xff] }
 0x543   : > { %v7317_v23 = vpop.permute.xlu1 %7316  ;;  %v5992_v18 = vmax.f32 %v5928_v42, 0.0  ;;  %v7679_v50 = vsel %vm2907_vm6, %v7647_v29, %v7205_v51  ;;  %v9763_v51 = vpack.c.bf16 %v8414_v8, %v8413_v39  ;;  %v8416_v29 = vld [vmem:[#allocation4 + $0x3d8] sm:$0xff] }
 0x544   : > { %v5993_v27 = vmax.f32 %v5929_v24, 0.0  ;;  %v14635_v11 = vpop.permute.xlu0 %6854  ;;  %v7711_v20 = vsel %vm2940_vm7, %v7679_v50, %v7317_v23  ;;  %9761 = vmatpush1.bf16.msra.mxu1 %v9760_v46  ;;  %v8415_v23 = vld [vmem:[#allocation4 + $0x3d0] sm:$0xff] }
 0x545   : > { %7442 = vrot.lane.b32.xlu1 %v14630_v33, %s16632_s0  ;;  %v14654_v50 = vld [vmem:[#allocation2 + $0xf0] sm:$0xff]  ;;  %9762 = vmatprep.subr.bf16.mxu1 %v16309_v3  ;;  %v9766_v8 = vpack.c.bf16 %v8416_v29, %v8415_v23 }
 0x546   : > { %6980 = vrot.lane.b32.xlu0 %v14593_v57, %s16474_s13  ;;  %v5717_v55 = vpop.f32.mrb[168].mxu0  ;;  %6232 = vmatprep.mubr.f32.mxu1 %v5993_v27  ;;  %v8419_v29 = vld [vmem:[#allocation4 + $0x3f0] sm:$0xff] }
 0x547   : > { %v5853_v21 = vmul.f32 %v14267_v54, %v5717_v55  ;;  %v5719_v42 = vpop.f32.mrb[169].mxu0  ;;  %6233 = vmatmul.mubr.f32.gmra.mrb[154].mxu1 %v5992_v18  ;;  %v7429_v25 = vpop.permute.xlu1 %7428 }
 0x548   : > { %v5854_v24 = vmul.f32 %v14271_v44, %v5719_v42  ;;  %v7743_v58 = vsel %vm2973_vm8, %v7711_v20, %v7429_v25  ;;  %v6967_v13 = vpop.permute.xlu0 %6966  ;;  %9764 = vmatpush1.bf16.msra.mxu1 %v9763_v51  ;;  %v8418_v20 = vld [vmem:[#allocation4 + $0x3e8] sm:$0xff] }
 0x549   : > { %v5930_v57 = vadd.f32 %v14279_v40, %v5853_v21  ;;  %7092 = vrot.lane.b32.xlu1 %v6495_v10, %s16499_s25  ;;  %9480 = vmatmul.mubr.msk.f32.gmra.mrb[208].mxu0 %vm3016_vm9, %v7743_v58  ;;  %v8417_v10 = vld [vmem:[#allocation4 + $0x3e0] sm:$0xff] }
 0x54a   : > { %v5931_v27 = vadd.f32 %v14288_v36, %v5854_v24  ;;  %6630 = vrot.lane.b32.xlu0 %v6392_v6, %s16619_s26  ;;  %7982 = vmatprep.mubr.f32.mxu0 %v16047_v34  ;;  %v6383_v21 = vld [vmem:[#allocation2 + $0x60] sm:$0xff] }
 0x54b   : > { %v7079_v18 = vpop.permute.xlu1 %7078  ;;  %v5994_v55 = vmax.f32 %v5930_v57, 0.0  ;;  %9765 = vmatprep.subr.bf16.mxu1 %v16309_v3  ;;  %v6455_v58 = vld [vmem:[#allocation2 + $0x1e0] sm:$0xff]  ;;  %v7520_v23 = vsel %vm432_vm0, %v6383_v21, %v14608_v9 }
 0x54c   : > { %v5995_v46 = vmax.f32 %v5931_v27, 0.0  ;;  %v14657_v39 = vpop.permute.xlu0 %6616  ;;  %9767 = vmatpush1.bf16.msra.mxu1 %v9766_v8  ;;  %v6560_v8 = vld [vmem:[#allocation2 + $0x2d8] sm:$0xff] }
 0x54d   : > { %7220 = vrot.lane.b32.xlu1 %v14613_v22, %s16501_s29  ;;  %v9769_v22 = vpack.c.bf16 %v8418_v20, %v8417_v10  ;;  %9768 = vmatprep.subr.bf16.mxu1 %v16309_v3  ;;  %v6456_v20 = vld [vmem:[#allocation2 + $0x1e8] sm:$0xff] }
 0x54e   : > { %6742 = vrot.lane.b32.xlu0 %v14654_v50, %s16624_s30  ;;  %v5723_v42 = vpop.f32.mrb[170].mxu0  ;;  %6237 = vmatprep.mubr.f32.mxu1 %v5995_v46  ;;  %v8420_v46 = vld [vmem:[#allocation4 + $0x3f8] sm:$0xff] }
 0x54f   : > { %v5855_v25 = vmul.f32 %v14267_v54, %v5723_v42  ;;  %v5725_v6 = vpop.f32.mrb[171].mxu0  ;;  %6238 = vmatmul.mubr.f32.gmra.mrb[156].mxu1 %v5994_v55  ;;  %v7207_v24 = vpop.permute.xlu1 %7206  ;;  %v7552_v55 = vsel %vm2775_vm2, %v7520_v23, %v14617_v62 }
 0x550   : > { %v5856_v51 = vmul.f32 %v14271_v44, %v5725_v6  ;;  %v14666_v57 = vpop.permute.xlu0 %6728  ;;  %v7584_v9 = vsel %vm2808_vm3, %v7552_v55, %v14635_v11  ;;  %9770 = vmatpush1.bf16.msra.mxu1 %v9769_v22  ;;  %v9772_v6 = vpack.c.bf16 %v8420_v46, %v8419_v29  ;;  %v6432_v46 = vld [vmem:[#allocation2 + $0xf8] sm:$0xff] }
 0x551   : > { %v5932_v27 = vadd.f32 %v14279_v40, %v5855_v25  ;;  %7332 = vrot.lane.b32.xlu1 %v14630_v33, %s16506_s15  ;;  %v7616_v21 = vsel %vm2841_vm4, %v7584_v9, %v6967_v13  ;;  %9771 = vmatprep.subr.bf16.mxu1 %v16309_v3 }
 0x552   : > { %v5933_v42 = vadd.f32 %v14288_v36, %v5856_v51  ;;  %6870 = vrot.lane.b32.xlu0 %v6455_v58, %s16373_s24  ;;  %v7648_v5 = vsel %vm2874_vm5, %v7616_v21, %v7079_v18  ;;  %v6480_v58 = vld [vmem:[#allocation2 + $0x1f0] sm:$0xff] }
 0x553   : > { %v7319_v10 = vpop.permute.xlu1 %7318  ;;  %v5996_v43 = vmax.f32 %v5932_v27, 0.0  ;;  %v7680_v62 = vsel %vm2907_vm6, %v7648_v5, %v7207_v24  ;;  %v6520_v24 = vld [vmem:[#allocation2 + $0x2e0] sm:$0xff] }
 0x554   : > { %v5997_v33 = vmax.f32 %v5933_v42, 0.0  ;;  %v6857_v25 = vpop.permute.xlu0 %6856  ;;  %v7712_v13 = vsel %vm2940_vm7, %v7680_v62, %v7319_v10  ;;  %9773 = vmatpush1.bf16.msra.mxu1 %v9772_v6  ;;  %v6521_v10 = vld [vmem:[#allocation2 + $0x2e8] sm:$0xff] }
 0x555   : > { %7444 = vrot.lane.b32.xlu1 %v6560_v8, %s16632_s0 }
 0x556   : > { %6982 = vrot.lane.b32.xlu0 %v6456_v20, %s16474_s13  ;;  %v5729_v11 = vpop.f32.mrb[172].mxu0  ;;  %6242 = vmatprep.mubr.f32.mxu1 %v5997_v33 }
 0x557   : > { %v5857_v51 = vmul.f32 %v14267_v54, %v5729_v11  ;;  %v5731_v22 = vpop.f32.mrb[173].mxu0  ;;  %6243 = vmatmul.mubr.f32.gmra.mrb[158].mxu1 %v5996_v43  ;;  %v7431_v23 = vpop.permute.xlu1 %7430  ;;  %v9978_v11 = vld [vmem:[#allocation2 + $0x68] sm:$0xff] }
 0x558   : > { %v5858_v18 = vmul.f32 %v14271_v44, %v5731_v22  ;;  %v7744_v27 = vsel %vm2973_vm8, %v7712_v13, %v7431_v23  ;;  %v6969_v29 = vpop.permute.xlu0 %6968  ;;  %v7521_v13 = vsel %vm432_vm0, %v9978_v11, %v14657_v39 }
 0x559   : > { %v5934_v3 = vadd.f32 %v14279_v40, %v5857_v51  ;;  %7094 = vrot.lane.b32.xlu1 %v6480_v58, %s16499_s25  ;;  %9481 = vmatmul.mubr.msk.f32.gmra.mrb[210].mxu0 %vm3016_vm9, %v7744_v27  ;;  %v7553_v22 = vsel %vm2775_vm2, %v7521_v13, %v14666_v57 }
 0x55a   : > { %v5935_v5 = vadd.f32 %v14288_v36, %v5858_v18  ;;  %6632 = vrot.lane.b32.xlu0 %v14654_v50, %s16619_s26  ;;  %7988 = vmatprep.mubr.f32.mxu0 %v16047_v34  ;;  %v6545_v18 = vld [vmem:[#allocation2 + $0x2f0] sm:$0xff]  ;;  %v7585_v27 = vsel %vm2808_vm3, %v7553_v22, %v6857_v25 }
 0x55b   : > { %v7081_v43 = vpop.permute.xlu1 %7080  ;;  %v5998_v8 = vmax.f32 %v5934_v3, 0.0 }
 0x55c   : > { %v5999_v55 = vmax.f32 %v5935_v5, 0.0  ;;  %v14697_v42 = vpop.permute.xlu0 %6618  ;;  %v7617_v5 = vsel %vm2841_vm4, %v7585_v27, %v6969_v29 }
 0x55d   : > { %7222 = vrot.lane.b32.xlu1 %v6520_v24, %s16501_s29  ;;  %v7649_v39 = vsel %vm2874_vm5, %v7617_v5, %v7081_v43 }
 0x55e   : > { %6744 = vrot.lane.b32.xlu0 %v6432_v46, %s16624_s30  ;;  %v5735_v9 = vpop.f32.mrb[174].mxu0  ;;  %6247 = vmatprep.mubr.f32.mxu1 %v5999_v55 }
 0x55f   : > { %v5859_v21 = vmul.f32 %v14267_v54, %v5735_v9  ;;  %v5737_v33 = vpop.f32.mrb[175].mxu0  ;;  %6248 = vmatmul.mubr.f32.gmra.mrb[160].mxu1 %v5998_v8  ;;  %v7209_v50 = vpop.permute.xlu1 %7208 }
 0x560   : > { %v5860_v6 = vmul.f32 %v14271_v44, %v5737_v33  ;;  %v6731_v62 = vpop.permute.xlu0 %6730  ;;  %v7681_v8 = vsel %vm2907_vm6, %v7649_v39, %v7209_v50  ;;  %v14719_v33 = vld [vmem:[#allocation2 + $0x108] sm:$0xff] }
 0x561   : > { %v5936_v51 = vadd.f32 %v14279_v40, %v5859_v21  ;;  %7334 = vrot.lane.b32.xlu1 %v6521_v10, %s16506_s15 }
 0x562   : > { %v5937_v23 = vadd.f32 %v14288_v36, %v5860_v6  ;;  %6872 = vrot.lane.b32.xlu0 %v6456_v20, %s16373_s24  ;;  %v6496_v20 = vld [vmem:[#allocation2 + $0x1f8] sm:$0xff] }
 0x563   : > { %v7321_v3 = vpop.permute.xlu1 %7320  ;;  %v6000_v55 = vmax.f32 %v5936_v51, 0.0  ;;  %v6417_v51 = vld [vmem:[#allocation2 + $0x110] sm:$0xff] }
 0x564   : > { %v6001_v24 = vmax.f32 %v5937_v23, 0.0  ;;  %v6859_v46 = vpop.permute.xlu0 %6858  ;;  %v7713_v9 = vsel %vm2940_vm7, %v7681_v8, %v7321_v3  ;;  %v6385_v3 = vld [vmem:[#allocation2 + $0x80] sm:$0xff] }
 0x565   : > { %7446 = vrot.lane.b32.xlu1 %v6545_v18, %s16632_s0  ;;  %v6457_v8 = vld [vmem:[#allocation2 + $0x200] sm:$0xff] }
 0x566   : > { %6984 = vrot.lane.b32.xlu0 %v6480_v58, %s16474_s13  ;;  %v5741_v57 = vpop.f32.mrb[176].mxu0  ;;  %6252 = vmatprep.mubr.f32.mxu1 %v6001_v24 }
 0x567   : > { %v5861_v25 = vmul.f32 %v14267_v54, %v5741_v57  ;;  %v5743_v21 = vpop.f32.mrb[177].mxu0  ;;  %6253 = vmatmul.mubr.f32.gmra.mrb[162].mxu1 %v6000_v55  ;;  %v7433_v29 = vpop.permute.xlu1 %7432 }
 0x568   : > { %v5862_v43 = vmul.f32 %v14271_v44, %v5743_v21  ;;  %v7745_v6 = vsel %vm2973_vm8, %v7713_v9, %v7433_v29  ;;  %v6971_v11 = vpop.permute.xlu0 %6970  ;;  %v7522_v9 = vsel %vm432_vm0, %v6385_v3, %v14697_v42  ;;  %v6561_v29 = vld [vmem:[#allocation2 + $0x2f8] sm:$0xff] }
 0x569   : > { %v5938_v50 = vadd.f32 %v14279_v40, %v5861_v25  ;;  %7096 = vrot.lane.b32.xlu1 %v6496_v20, %s16499_s25  ;;  %9482 = vmatmul.mubr.msk.f32.gmra.mrb[212].mxu0 %vm3016_vm9, %v7745_v6 }
 0x56a   : > { %v5939_v58 = vadd.f32 %v14288_v36, %v5862_v43  ;;  %6634 = vrot.lane.b32.xlu0 %v14719_v33, %s16619_s26  ;;  %7994 = vmatprep.mubr.f32.mxu0 %v16047_v34 }
 0x56b   : > { %v7083_v13 = vpop.permute.xlu1 %7082  ;;  %v6002_v27 = vmax.f32 %v5938_v50, 0.0  ;;  %v6458_v50 = vld [vmem:[#allocation2 + $0x208] sm:$0xff] }
 0x56c   : > { %v6003_v22 = vmax.f32 %v5939_v58, 0.0  ;;  %v14730_v23 = vpop.permute.xlu0 %6620 }
 0x56d   : > { %7224 = vrot.lane.b32.xlu1 %v6521_v10, %s16501_s29  ;;  %v7554_v10 = vsel %vm2775_vm2, %v7522_v9, %v6731_v62 }
 0x56e   : > { %6746 = vrot.lane.b32.xlu0 %v6417_v51, %s16624_s30  ;;  %v5747_v5 = vpop.f32.mrb[178].mxu0  ;;  %6257 = vmatprep.mubr.f32.mxu1 %v6003_v22  ;;  %v7586_v43 = vsel %vm2808_vm3, %v7554_v10, %v6859_v46 }
 0x56f   : > { %v5863_v24 = vmul.f32 %v14267_v54, %v5747_v5  ;;  %v5749_v39 = vpop.f32.mrb[179].mxu0  ;;  %6258 = vmatmul.mubr.f32.gmra.mrb[164].mxu1 %v6002_v27  ;;  %v7211_v55 = vpop.permute.xlu1 %7210  ;;  %v7618_v58 = vsel %vm2841_vm4, %v7586_v43, %v6971_v11  ;;  %v6481_v5 = vld [vmem:[#allocation2 + $0x210] sm:$0xff] }
 0x570   : > { %v5864_v57 = vmul.f32 %v14271_v44, %v5749_v39  ;;  %v6733_v20 = vpop.permute.xlu0 %6732  ;;  %v7650_v42 = vsel %vm2874_vm5, %v7618_v58, %v7083_v13 }
 0x571   : > { %v5940_v25 = vadd.f32 %v14279_v40, %v5863_v24  ;;  %7336 = vrot.lane.b32.xlu1 %v6545_v18, %s16506_s15  ;;  %v7682_v62 = vsel %vm2907_vm6, %v7650_v42, %v7211_v55 }
 0x572   : > { %v5941_v21 = vadd.f32 %v14288_v36, %v5864_v57  ;;  %6874 = vrot.lane.b32.xlu0 %v6457_v8, %s16373_s24 }
 0x573   : > { %v7323_v6 = vpop.permute.xlu1 %7322  ;;  %v6004_v3 = vmax.f32 %v5940_v25, 0.0  ;;  %v6522_v25 = vld [vmem:[#allocation2 + $0x300] sm:$0xff] }
 0x574   : > { %v6005_v22 = vmax.f32 %v5941_v21, 0.0  ;;  %v6861_v27 = vpop.permute.xlu0 %6860  ;;  %v7714_v46 = vsel %vm2940_vm7, %v7682_v62, %v7323_v6  ;;  %v6433_v21 = vld [vmem:[#allocation2 + $0x118] sm:$0xff] }
 0x575   : > { %7448 = vrot.lane.b32.xlu1 %v6561_v29, %s16632_s0 }
 0x576   : > { %6986 = vrot.lane.b32.xlu0 %v6458_v50, %s16474_s13  ;;  %v5753_v18 = vpop.f32.mrb[180].mxu0  ;;  %6262 = vmatprep.mubr.f32.mxu1 %v6005_v22  ;;  %v6523_v22 = vld [vmem:[#allocation2 + $0x308] sm:$0xff] }
 0x577   : > { %v5865_v24 = vmul.f32 %v14267_v54, %v5753_v18  ;;  %v5755_v39 = vpop.f32.mrb[181].mxu0  ;;  %6263 = vmatmul.mubr.f32.gmra.mrb[166].mxu1 %v6004_v3  ;;  %v7435_v11 = vpop.permute.xlu1 %7434 }
 0x578   : > { %v5866_v8 = vmul.f32 %v14271_v44, %v5755_v39  ;;  %v7746_v13 = vsel %vm2973_vm8, %v7714_v46, %v7435_v11  ;;  %v6973_v57 = vpop.permute.xlu0 %6972  ;;  %v9979_v46 = vld [vmem:[#allocation2 + $0x88] sm:$0xff] }
 0x579   : > { %v5942_v9 = vadd.f32 %v14279_v40, %v5865_v24  ;;  %7098 = vrot.lane.b32.xlu1 %v6481_v5, %s16499_s25  ;;  %9483 = vmatmul.mubr.msk.f32.gmra.mrb[214].mxu0 %vm3016_vm9, %v7746_v13  ;;  %v7523_v24 = vsel %vm432_vm0, %v9979_v46, %v14730_v23  ;;  %v6546_v13 = vld [vmem:[#allocation2 + $0x310] sm:$0xff] }
 0x57a   : > { %v5943_v55 = vadd.f32 %v14288_v36, %v5866_v8  ;;  %6636 = vrot.lane.b32.xlu0 %v6417_v51, %s16619_s26  ;;  %8000 = vmatprep.mubr.f32.mxu0 %v16047_v34  ;;  %v7555_v11 = vsel %vm2775_vm2, %v7523_v24, %v6733_v20 }
 0x57b   : > { %v7085_v10 = vpop.permute.xlu1 %7084  ;;  %v6006_v6 = vmax.f32 %v5942_v9, 0.0  ;;  %v7587_v9 = vsel %vm2808_vm3, %v7555_v11, %v6861_v27  ;;  %v6418_v11 = vld [vmem:[#allocation2 + $0x130] sm:$0xff] }
 0x57c   : > { %v6007_v29 = vmax.f32 %v5943_v55, 0.0  ;;  %v14759_v43 = vpop.permute.xlu0 %6622 }
 0x57d   : > { %7226 = vrot.lane.b32.xlu1 %v6522_v25, %s16501_s29  ;;  %v7619_v25 = vsel %vm2841_vm4, %v7587_v9, %v6973_v57 }
 0x57e   : > { %6748 = vrot.lane.b32.xlu0 %v6433_v21, %s16624_s30  ;;  %v5759_v58 = vpop.f32.mrb[182].mxu0  ;;  %6267 = vmatprep.mubr.f32.mxu1 %v6007_v29  ;;  %v7651_v23 = vsel %vm2874_vm5, %v7619_v25, %v7085_v10  ;;  %v6387_v25 = vld [vmem:[#allocation2 + $0xa0] sm:$0xff] }
 0x57f   : > { %v5867_v42 = vmul.f32 %v14267_v54, %v5759_v58  ;;  %v5761_v3 = vpop.f32.mrb[183].mxu0  ;;  %6268 = vmatmul.mubr.f32.gmra.mrb[168].mxu1 %v6006_v6  ;;  %v7213_v51 = vpop.permute.xlu1 %7212 }
 0x580   : > { %v5868_v62 = vmul.f32 %v14271_v44, %v5761_v3  ;;  %v6735_v18 = vpop.permute.xlu0 %6734  ;;  %v7683_v58 = vsel %vm2907_vm6, %v7651_v23, %v7213_v51 }
 0x581   : > { %v5944_v39 = vadd.f32 %v14279_v40, %v5867_v42  ;;  %7338 = vrot.lane.b32.xlu1 %v6523_v22, %s16506_s15 }
 0x582   : > { %v5945_v8 = vadd.f32 %v14288_v36, %v5868_v62  ;;  %6876 = vrot.lane.b32.xlu0 %v6458_v50, %s16373_s24  ;;  %v6497_v50 = vld [vmem:[#allocation2 + $0x218] sm:$0xff]  ;;  %v14780_v62 = vld [vmem:[#allocation2 + $0x128] sm:$0xff] }
 0x583   : > { %v7325_v55 = vpop.permute.xlu1 %7324  ;;  %v6008_v6 = vmax.f32 %v5944_v39, 0.0 }
 0x584   : > { %v6009_v21 = vmax.f32 %v5945_v8, 0.0  ;;  %v6863_v29 = vpop.permute.xlu0 %6862  ;;  %v7715_v42 = vsel %vm2940_vm7, %v7683_v58, %v7325_v55 }
 0x585   : > { %7450 = vrot.lane.b32.xlu1 %v6546_v13, %s16632_s0 }
 0x586   : > { %6988 = vrot.lane.b32.xlu0 %v6481_v5, %s16474_s13  ;;  %v5765_v20 = vpop.f32.mrb[184].mxu0  ;;  %6272 = vmatprep.mubr.f32.mxu1 %v6009_v21 }
 0x587   : > { %v5869_v27 = vmul.f32 %v14267_v54, %v5765_v20  ;;  %v5767_v3 = vpop.f32.mrb[185].mxu0  ;;  %6273 = vmatmul.mubr.f32.gmra.mrb[170].mxu1 %v6008_v6  ;;  %v7437_v57 = vpop.permute.xlu1 %7436  ;;  %v6459_v20 = vld [vmem:[#allocation2 + $0x220] sm:$0xff] }
 0x588   : > { %v5870_v10 = vmul.f32 %v14271_v44, %v5767_v3  ;;  %v7747_v46 = vsel %vm2973_vm8, %v7715_v42, %v7437_v57  ;;  %v6975_v24 = vpop.permute.xlu0 %6974 }
 0x589   : > { %v5946_v51 = vadd.f32 %v14279_v40, %v5869_v27  ;;  %7100 = vrot.lane.b32.xlu1 %v6497_v50, %s16499_s25  ;;  %9484 = vmatmul.mubr.msk.f32.gmra.mrb[216].mxu0 %vm3016_vm9, %v7747_v46  ;;  %v7524_v27 = vsel %vm432_vm0, %v6387_v25, %v14759_v43 }
 0x58a   : > { %v5947_v5 = vadd.f32 %v14288_v36, %v5870_v10  ;;  %6638 = vrot.lane.b32.xlu0 %v14780_v62, %s16619_s26  ;;  %8006 = vmatprep.mubr.f32.mxu0 %v16047_v34  ;;  %v7556_v3 = vsel %vm2775_vm2, %v7524_v27, %v6735_v18  ;;  %v6562_v10 = vld [vmem:[#allocation2 + $0x318] sm:$0xff] }
 0x58b   : > { %v7087_v39 = vpop.permute.xlu1 %7086  ;;  %v6010_v55 = vmax.f32 %v5946_v51, 0.0  ;;  %v7588_v46 = vsel %vm2808_vm3, %v7556_v3, %v6863_v29  ;;  %v6524_v3 = vld [vmem:[#allocation2 + $0x320] sm:$0xff] }
 0x58c   : > { %v6011_v8 = vmax.f32 %v5947_v5, 0.0  ;;  %v14791_v9 = vpop.permute.xlu0 %6624  ;;  %v6460_v5 = vld [vmem:[#allocation2 + $0x228] sm:$0xff] }
 0x58d   : > { %7228 = vrot.lane.b32.xlu1 %v6523_v22, %s16501_s29 }
 0x58e   : > { %6750 = vrot.lane.b32.xlu0 %v6418_v11, %s16624_s30  ;;  %v5771_v21 = vpop.f32.mrb[186].mxu0  ;;  %6277 = vmatprep.mubr.f32.mxu1 %v6011_v8  ;;  %v7620_v8 = vsel %vm2841_vm4, %v7588_v46, %v6975_v24 }
 0x58f   : > { %v5871_v23 = vmul.f32 %v14267_v54, %v5771_v21  ;;  %v5773_v6 = vpop.f32.mrb[187].mxu0  ;;  %6278 = vmatmul.mubr.f32.gmra.mrb[172].mxu1 %v6010_v55  ;;  %v7215_v58 = vpop.permute.xlu1 %7214  ;;  %v7652_v43 = vsel %vm2874_vm5, %v7620_v8, %v7087_v39 }
 0x590   : > { %v5872_v50 = vmul.f32 %v14271_v44, %v5773_v6  ;;  %v14797_v42 = vpop.permute.xlu0 %6736  ;;  %v7684_v18 = vsel %vm2907_vm6, %v7652_v43, %v7215_v58 }
 0x591   : > { %v5948_v22 = vadd.f32 %v14279_v40, %v5871_v23  ;;  %7340 = vrot.lane.b32.xlu1 %v6546_v13, %s16506_s15  ;;  %v6482_v23 = vld [vmem:[#allocation2 + $0x230] sm:$0xff] }
 0x592   : > { %v5949_v57 = vadd.f32 %v14288_v36, %v5872_v50  ;;  %6878 = vrot.lane.b32.xlu0 %v6459_v20, %s16373_s24 }
 0x593   : > { %v7327_v51 = vpop.permute.xlu1 %7326  ;;  %v6012_v25 = vmax.f32 %v5948_v22, 0.0 }
 0x594   : > { %v6013_v55 = vmax.f32 %v5949_v57, 0.0  ;;  %v6865_v21 = vpop.permute.xlu0 %6864  ;;  %v7716_v29 = vsel %vm2940_vm7, %v7684_v18, %v7327_v51 }
 0x595   : > { %7452 = vrot.lane.b32.xlu1 %v6562_v10, %s16632_s0  ;;  %v6434_v10 = vld [vmem:[#allocation2 + $0x138] sm:$0xff] }
 0x596   : > { %6990 = vrot.lane.b32.xlu0 %v6460_v5, %s16474_s13  ;;  %v5777_v13 = vpop.f32.mrb[188].mxu0  ;;  %6282 = vmatprep.mubr.f32.mxu1 %v6013_v55 }
 0x597   : > { %v5873_v6 = vmul.f32 %v14267_v54, %v5777_v13  ;;  %v5779_v20 = vpop.f32.mrb[189].mxu0  ;;  %6283 = vmatmul.mubr.f32.gmra.mrb[174].mxu1 %v6012_v25  ;;  %v7439_v24 = vpop.permute.xlu1 %7438  ;;  %v6525_v25 = vld [vmem:[#allocation2 + $0x328] sm:$0xff] }
 0x598   : > { %v5874_v50 = vmul.f32 %v14271_v44, %v5779_v20  ;;  %v7748_v39 = vsel %vm2973_vm8, %v7716_v29, %v7439_v24  ;;  %v6977_v27 = vpop.permute.xlu0 %6976 }
 0x599   : > { %v5950_v22 = vadd.f32 %v14279_v40, %v5873_v6  ;;  %7102 = vrot.lane.b32.xlu1 %v6482_v23, %s16499_s25  ;;  %9485 = vmatmul.mubr.msk.f32.gmra.mrb[218].mxu0 %vm3016_vm9, %v7748_v39  ;;  %v9980_v39 = vld [vmem:[#allocation2 + $0xa8] sm:$0xff] }
 0x59a   : > { %v5951_v58 = vadd.f32 %v14288_v36, %v5874_v50  ;;  %6640 = vrot.lane.b32.xlu0 %v6418_v11, %s16619_s26  ;;  %8012 = vmatprep.mubr.f32.mxu0 %v16047_v34 }
 0x59b   : > { %v7089_v57 = vpop.permute.xlu1 %7088  ;;  %v6014_v8 = vmax.f32 %v5950_v22, 0.0  ;;  %v7525_v22 = vsel %vm432_vm0, %v9980_v39, %v14791_v9 }
 0x59c   : > { %v6015_v46 = vmax.f32 %v5951_v58, 0.0  ;;  %v14822_v51 = vpop.permute.xlu0 %6626 }
 0x59d   : > { %7230 = vrot.lane.b32.xlu1 %v6524_v3, %s16501_s29  ;;  %v7557_v3 = vsel %vm2775_vm2, %v7525_v22, %v14797_v42 }
 0x59e   : > { %6752 = vrot.lane.b32.xlu0 %v6434_v10, %s16624_s30  ;;  %v5783_v55 = vpop.f32.mrb[190].mxu0  ;;  %v6154_v43 = vpop.f32.mrb[122].mxu1  ;;  %6287 = vmatprep.mubr.f32.mxu1 %v6015_v46  ;;  %v7589_v10 = vsel %vm2808_vm3, %v7557_v3, %v6865_v21 }
 0x59f   : > { %v5875_v18 = vmul.f32 %v14267_v54, %v5783_v55  ;;  %v14828_v11 = vadd.f32 %v6154_v43, %v13898_v2  ;;  %v5785_v13 = vpop.f32.mrb[191].mxu0  ;;  %v6156_v29 = vpop.f32.mrb[123].mxu1  ;;  %6288 = vmatmul.mubr.f32.gmra.mrb[176].mxu1 %v6014_v8  ;;  %v6547_v2 = vld [vmem:[#allocation2 + $0x330] sm:$0xff]  ;;  %v7621_v43 = vsel %vm2841_vm4, %v7589_v10, %v6977_v27 }
 0x5a0   : > { %v5876_v6 = vmul.f32 %v14271_v44, %v5785_v13  ;;  %v7217_v20 = vpop.permute.xlu1 %7216  ;;  %v14831_v24 = vpop.permute.xlu0 %6738  ;;  %v7653_v9 = vsel %vm2874_vm5, %v7621_v43, %v7089_v57  ;;  %v6498_v29 = vld [vmem:[#allocation2 + $0x238] sm:$0xff]  ;;  %v6419_v43 = vld [vmem:[#allocation2 + $0x150] sm:$0xff] }
 0x5a1   : > { %v5952_v50 = vadd.f32 %v14279_v40, %v5875_v18  ;;  %7342 = vrot.lane.b32.xlu1 %v6525_v25, %s16506_s15  ;;  %v7685_v42 = vsel %vm2907_vm6, %v7653_v9, %v7217_v20 }
 0x5a2   : > { %v5953_v58 = vadd.f32 %v14288_v36, %v5876_v6  ;;  %6880 = vrot.lane.b32.xlu0 %v6460_v5, %s16373_s24 }
 0x5a3   : > { %v6016_v18 = vmax.f32 %v5952_v50, 0.0  ;;  %v14851_v50 = vld [vmem:[#allocation2 + $0x148] sm:$0xff] }
 0x5a4   : > { %v6017_v46 = vmax.f32 %v5953_v58, 0.0  ;;  %v7329_v8 = vpop.permute.xlu1 %7328  ;;  %v6867_v55 = vpop.permute.xlu0 %6866 }
 0x5a5   : > { %7454 = vrot.lane.b32.xlu1 %v6547_v2, %s16632_s0  ;;  %v7717_v57 = vsel %vm2940_vm7, %v7685_v42, %v7329_v8  ;;  %v6389_v42 = vld [vmem:[#allocation2 + $0xc0] sm:$0xff] }
 0x5a6   : > { %v6159_v13 = vpop.f32.mrb[124].mxu1  ;;  %6992 = vrot.lane.b32.xlu0 %v6482_v23, %s16474_s13  ;;  %v5789_v5 = vpop.f32.mrb[192].mxu0  ;;  %6292 = vmatprep.mubr.f32.mxu1 %v6017_v46 }
 0x5a7   : > { %v14848_v21 = vadd.f32 %v6159_v13, %v13909_v52  ;;  %v5877_v6 = vmul.f32 %v14267_v54, %v5789_v5  ;;  %v6161_v39 = vpop.f32.mrb[125].mxu1  ;;  %v5791_v27 = vpop.f32.mrb[193].mxu0  ;;  %6293 = vmatmul.mubr.f32.gmra.mrb[178].mxu1 %v6016_v18 }
 0x5a8   : > { %v5878_v22 = vmul.f32 %v14271_v44, %v5791_v27  ;;  %v7441_v23 = vpop.permute.xlu1 %7440  ;;  %v6979_v58 = vpop.permute.xlu0 %6978  ;;  %v6461_v39 = vld [vmem:[#allocation2 + $0x240] sm:$0xff] }
 0x5a9   : > { %v5954_v3 = vadd.f32 %v14279_v40, %v5877_v6  ;;  %v7749_v20 = vsel %vm2973_vm8, %v7717_v57, %v7441_v23  ;;  %7104 = vrot.lane.b32.xlu1 %v6498_v29, %s16499_s25 }
 0x5aa   : > { %v5955_v52 = vadd.f32 %v14288_v36, %v5878_v22  ;;  %6642 = vrot.lane.b32.xlu0 %v14851_v50, %s16619_s26  ;;  %v6164_v10 = vpop.f32.mrb[126].mxu1  ;;  %9486 = vmatmul.mubr.msk.f32.gmra.mrb[220].mxu0 %vm3016_vm9, %v7749_v20 }
 0x5ab   : > { %v14863_v46 = vadd.f32 %v6164_v10, %v13923_v16  ;;  %v6166_v8 = vpop.f32.mrb[127].mxu1  ;;  %8018 = vmatprep.mubr.f32.mxu0 %v16047_v34  ;;  %v6018_v5 = vmax.f32 %v5954_v3, 0.0 }
 0x5ac   : > { %v6019_v18 = vmax.f32 %v5955_v52, 0.0  ;;  %v7091_v9 = vpop.permute.xlu1 %7090  ;;  %v14866_v13 = vpop.permute.xlu0 %6628  ;;  %v6563_v52 = vld [vmem:[#allocation2 + $0x338] sm:$0xff] }
 0x5ad   : > { %7232 = vrot.lane.b32.xlu1 %v6525_v25, %s16501_s29  ;;  %v7526_v25 = vsel %vm432_vm0, %v6389_v42, %v14822_v51 }
 0x5ae   : > { %6754 = vrot.lane.b32.xlu0 %v6419_v43, %s16624_s30  ;;  %v5795_v29 = vpop.f32.mrb[194].mxu0  ;;  %6297 = vmatprep.mubr.f32.mxu1 %v6019_v18  ;;  %v7558_v10 = vsel %vm2775_vm2, %v7526_v25, %v14831_v24  ;;  %v6483_v24 = vld [vmem:[#allocation2 + $0x250] sm:$0xff] }
 0x5af   : > { %v5879_v6 = vmul.f32 %v14267_v54, %v5795_v29  ;;  %v5797_v16 = vpop.f32.mrb[195].mxu0  ;;  %6298 = vmatmul.mubr.f32.gmra.mrb[180].mxu1 %v6018_v5  ;;  %v6462_v5 = vld [vmem:[#allocation2 + $0x248] sm:$0xff]  ;;  %v7590_v29 = vsel %vm2808_vm3, %v7558_v10, %v6867_v55 }
 0x5b0   : > { %v5880_v27 = vmul.f32 %v14271_v44, %v5797_v16  ;;  %v7219_v57 = vpop.permute.xlu1 %7218  ;;  %v6741_v22 = vpop.permute.xlu0 %6740  ;;  %v7622_v51 = vsel %vm2841_vm4, %v7590_v29, %v6979_v58 }
 0x5b1   : > { %v5956_v23 = vadd.f32 %v14279_v40, %v5879_v6  ;;  %7344 = vrot.lane.b32.xlu1 %v6547_v2, %s16506_s15 }
 0x5b2   : > { %v5957_v3 = vadd.f32 %v14288_v36, %v5880_v27  ;;  %6882 = vrot.lane.b32.xlu0 %v6461_v39, %s16373_s24  ;;  %v6169_v20 = vpop.f32.mrb[128].mxu1  ;;  %v7654_v39 = vsel %vm2874_vm5, %v7622_v51, %v7091_v9  ;;  %v6526_v9 = vld [vmem:[#allocation2 + $0x340] sm:$0xff] }
 0x5b3   : > { %v14881_v8 = vadd.f32 %v6169_v20, %v13934_v7  ;;  %v6171_v18 = vpop.f32.mrb[129].mxu1  ;;  %v6020_v42 = vmax.f32 %v5956_v23, 0.0  ;;  %v7686_v7 = vsel %vm2907_vm6, %v7654_v39, %v7219_v57  ;;  %v6435_v57 = vld [vmem:[#allocation2 + $0x158] sm:$0xff] }
 0x5b4   : > { %v6021_v2 = vmax.f32 %v5957_v3, 0.0  ;;  %v7331_v6 = vpop.permute.xlu1 %7330  ;;  %v6869_v16 = vpop.permute.xlu0 %6868 }
 0x5b5   : > { %7456 = vrot.lane.b32.xlu1 %v6563_v52, %s16632_s0  ;;  %v7718_v27 = vsel %vm2940_vm7, %v7686_v7, %v7331_v6  ;;  %v9981_v7 = vld [vmem:[#allocation2 + $0xc8] sm:$0xff] }
 0x5b6   : > { %6994 = vrot.lane.b32.xlu0 %v6462_v5, %s16474_s13  ;;  %6302 = vmatprep.mubr.f32.mxu1 %v6021_v2  ;;  %v6527_v2 = vld [vmem:[#allocation2 + $0x348] sm:$0xff] }
 0x5b7   : > { %6303 = vmatmul.mubr.f32.gmra.mrb[182].mxu1 %v6020_v42 }
 0x5b8   : > { %v7443_v55 = vpop.permute.xlu1 %7442  ;;  %v6981_v25 = vpop.permute.xlu0 %6980 }
 0x5b9   : > { %v7750_v3 = vsel %vm2973_vm8, %v7718_v27, %v7443_v55  ;;  %7106 = vrot.lane.b32.xlu1 %v6483_v24, %s16499_s25  ;;  %v7527_v27 = vsel %vm432_vm0, %v9981_v7, %v14866_v13  ;;  %v6548_v55 = vld [vmem:[#allocation2 + $0x350] sm:$0xff] }
 0x5ba   : > { %6644 = vrot.lane.b32.xlu0 %v6419_v43, %s16619_s26  ;;  %v6174_v58 = vpop.f32.mrb[130].mxu1  ;;  %9487 = vmatmul.mubr.msk.f32.gmra.mrb[222].mxu0 %vm3016_vm9, %v7750_v3  ;;  %v7559_v3 = vsel %vm2775_vm2, %v7527_v27, %v6741_v22  ;;  %v6499_v22 = vld [vmem:[#allocation2 + $0x258] sm:$0xff]  ;;  %v6420_v7 = vld [vmem:[#allocation2 + $0x170] sm:$0xff] }
 0x5bb   : > { %v14895_v23 = vadd.f32 %v6174_v58, %v13947_v41  ;;  %v6176_v20 = vpop.f32.mrb[131].mxu1  ;;  %8024 = vmatprep.mubr.f32.mxu0 %v16047_v34 }
 0x5bc   : > { %v7093_v52 = vpop.permute.xlu1 %7092  ;;  %v14898_v10 = vpop.permute.xlu0 %6630 }
 0x5bd   : > { %v5801_v18 = vpop.f32.mrb[196].mxu0  ;;  %7234 = vrot.lane.b32.xlu1 %v6526_v9, %s16501_s29  ;;  %v7591_v9 = vsel %vm2808_vm3, %v7559_v3, %v6869_v16  ;;  %v9507_v16 = vld [vmem:[%s15787_s7 + $0x6] sm:$0x3] }
 0x5be   : > { %v5881_v29 = vmul.f32 %v14267_v54, %v5801_v18  ;;  %6756 = vrot.lane.b32.xlu0 %v6435_v57, %s16624_s30  ;;  %v5803_v43 = vpop.f32.mrb[197].mxu0  ;;  %v7623_v18 = vsel %vm2841_vm4, %v7591_v9, %v6981_v25  ;;  %v14943_v27 = vrot.slane %v9507_v16, %v16688_v45 }
 0x5bf   : > { %v5882_v6 = vmul.f32 %v14271_v44, %v5803_v43  ;;  %v7655_v13 = vsel %vm2874_vm5, %v7623_v18, %v7093_v52 }
 0x5c0   : > { %v5958_v41 = vadd.f32 %v14279_v40, %v5881_v29  ;;  %v7221_v51 = vpop.permute.xlu1 %7220  ;;  %v14905_v42 = vpop.permute.xlu0 %6742 }
 0x5c1   : > { %v5959_v39 = vadd.f32 %v14288_v36, %v5882_v6  ;;  %7346 = vrot.lane.b32.xlu1 %v6527_v2, %s16506_s15 }
 0x5c2   : > { %6884 = vrot.lane.b32.xlu0 %v6462_v5, %s16373_s24  ;;  %v6179_v54 = vpop.f32.mrb[132].mxu1  ;;  %v6022_v36 = vmax.f32 %v5958_v41, 0.0  ;;  %v14922_v5 = vld [vmem:[#allocation2 + $0x168] sm:$0xff]  ;;  %v14937_v41 = vrot.slane %v9507_v16, %v16687_v28 }
 0x5c3   : > { %v6023_v44 = vmax.f32 %v5959_v39, 0.0  ;;  %v14914_v40 = vadd.f32 %v6179_v54, %v13958_v19  ;;  %v6181_v58 = vpop.f32.mrb[133].mxu1  ;;  %v7687_v19 = vsel %vm2907_vm6, %v7655_v13, %v7221_v51  ;;  %v6463_v13 = vld [vmem:[#allocation2 + $0x260] sm:$0xff] }
 0x5c4   : > { %v7333_v20 = vpop.permute.xlu1 %7332  ;;  %v6871_v57 = vpop.permute.xlu0 %6870 }
 0x5c5   : > { %6307 = vmatprep.mubr.f32.mxu1 %v6023_v44  ;;  %7458 = vrot.lane.b32.xlu1 %v6548_v55, %s16632_s0  ;;  %v7719_v29 = vsel %vm2940_vm7, %v7687_v19, %v7333_v20  ;;  %v6391_v20 = vld [vmem:[#allocation2 + $0xe0] sm:$0xff] }
 0x5c6   : > { %6996 = vrot.lane.b32.xlu0 %v6483_v24, %s16474_s13  ;;  %6308 = vmatmul.mubr.f32.gmra.mrb[184].mxu1 %v6022_v36  ;;  %v9508_v24 = vld [vmem:[%s15788_s8 + $0x6] sm:$0x3] }
 0x5c7   : > { %v14949_v44 = vrot.slane %v9508_v24, %v16687_v28  ;;  %v14953_v9 = vrot.slane %v9508_v24, %v16688_v45 }
 0x5c8   : > { %v7445_v25 = vpop.permute.xlu1 %7444  ;;  %v6983_v43 = vpop.permute.xlu0 %6982 }
 0x5c9   : > { %v7751_v6 = vsel %vm2973_vm8, %v7719_v29, %v7445_v25  ;;  %7108 = vrot.lane.b32.xlu1 %v6499_v22, %s16499_s25 }
 0x5ca   : > { %6646 = vrot.lane.b32.xlu0 %v14922_v5, %s16619_s26  ;;  %v6184_v52 = vpop.f32.mrb[134].mxu1  ;;  %9488 = vmatmul.mubr.msk.f32.gmra.mrb[224].mxu0 %vm3016_vm9, %v7751_v6  ;;  %v6564_v6 = vld [vmem:[#allocation2 + $0x358] sm:$0xff] }
 0x5cb   : > { %v14940_v51 = vadd.f32 %v6184_v52, %v13975_v30  ;;  %v6186_v39 = vpop.f32.mrb[135].mxu1  ;;  %8030 = vmatprep.mubr.f32.mxu0 %v16047_v34 }
 0x5cc   : > { %v7095_v54 = vpop.permute.xlu1 %7094  ;;  %v14946_v3 = vpop.permute.xlu0 %6632 }
 0x5cd   : > { %v7948_v58 = vpop.f32.mrb[198].mxu0  ;;  %7236 = vrot.lane.b32.xlu1 %v6527_v2, %s16501_s29  ;;  %v7528_v2 = vsel %vm432_vm0, %v6391_v20, %v14898_v10 }
 0x5ce   : > { %v8152_v30 = vmul.f32 %v14937_v41, %v7948_v58  ;;  %6758 = vrot.lane.b32.xlu0 %v6420_v7, %s16624_s30  ;;  %v7950_v36 = vpop.f32.mrb[199].mxu0  ;;  %v7560_v24 = vsel %vm2775_vm2, %v7528_v2, %v14905_v42  ;;  %v6484_v42 = vld [vmem:[#allocation2 + $0x270] sm:$0xff] }
 0x5cf   : > { %v8153_v18 = vmul.f32 %v14943_v27, %v7950_v36  ;;  %v7592_v36 = vsel %vm2808_vm3, %v7560_v24, %v6871_v57 }
 0x5d0   : > { %v8229_v22 = vadd.f32 %v14949_v44, %v8152_v30  ;;  %v7223_v19 = vpop.permute.xlu1 %7222  ;;  %v6745_v16 = vpop.permute.xlu0 %6744  ;;  %v6464_v30 = vld [vmem:[#allocation2 + $0x268] sm:$0xff]  ;;  %v7624_v10 = vsel %vm2841_vm4, %v7592_v36, %v6983_v43 }
 0x5d1   : > { %v8230_v29 = vadd.f32 %v14953_v9, %v8153_v18  ;;  %7348 = vrot.lane.b32.xlu1 %v6548_v55, %s16506_s15  ;;  %v7656_v20 = vsel %vm2874_vm5, %v7624_v10, %v7095_v54  ;;  %v6528_v54 = vld [vmem:[#allocation2 + $0x360] sm:$0xff]  ;;  %v6529_v36 = vld [vmem:[#allocation2 + $0x368] sm:$0xff] }
 0x5d2   : > { %6886 = vrot.lane.b32.xlu0 %v6463_v13, %s16373_s24  ;;  %v6189_v25 = vpop.f32.mrb[136].mxu1  ;;  %v8293_v18 = vmax.f32 %v8229_v22, 0.0 }
 0x5d3   : > { %v8294_v52 = vmax.f32 %v8230_v29, 0.0  ;;  %v14967_v39 = vadd.f32 %v6189_v25, %v13998_v17  ;;  %v6191_v58 = vpop.f32.mrb[137].mxu1  ;;  %v7688_v17 = vsel %vm2907_vm6, %v7656_v20, %v7223_v19 }
 0x5d4   : > { %v7335_v55 = vpop.permute.xlu1 %7334  ;;  %v6873_v45 = vpop.permute.xlu0 %6872 }
 0x5d5   : > { %8485 = vmatprep.mubr.f32.mxu1 %v8294_v52  ;;  %7460 = vrot.lane.b32.xlu1 %v6564_v6, %s16632_s0  ;;  %v7720_v13 = vsel %vm2940_vm7, %v7688_v17, %v7335_v55  ;;  %v6436_v6 = vld [vmem:[#allocation2 + $0x178] sm:$0xff]  ;;  %v9982_v17 = vld [vmem:[#allocation2 + $0xe8] sm:$0xff] }
 0x5d6   : > { %6998 = vrot.lane.b32.xlu0 %v6464_v30, %s16474_s13  ;;  %8486 = vmatmul.mubr.f32.vlgmr.msra.gmra.mrb[186].mxu1 %v8293_v18 }
 0x5d8   : > { %v7447_v29 = vpop.permute.xlu1 %7446  ;;  %v6985_v57 = vpop.permute.xlu0 %6984 }
 0x5d9   : > { %v7752_v22 = vsel %vm2973_vm8, %v7720_v13, %v7447_v29  ;;  %7110 = vrot.lane.b32.xlu1 %v6484_v42, %s16499_s25  ;;  %v7529_v13 = vsel %vm432_vm0, %v9982_v17, %v14946_v3 }
 0x5da   : > { %6648 = vrot.lane.b32.xlu0 %v6420_v7, %s16619_s26  ;;  %v6194_v43 = vpop.f32.mrb[138].mxu1  ;;  %9489 = vmatmul.mubr.msk.f32.gmra.mrb[226].mxu0 %vm3016_vm9, %v7752_v22  ;;  %v6549_v22 = vld [vmem:[#allocation2 + $0x370] sm:$0xff] }
 0x5db   : > { %v14981_v2 = vadd.f32 %v6194_v43, %v14026_v32  ;;  %v6196_v25 = vpop.f32.mrb[139].mxu1  ;;  %8036 = vmatprep.mubr.f32.mxu0 %v16047_v34  ;;  %v7561_v43 = vsel %vm2775_vm2, %v7529_v13, %v6745_v16  ;;  %v6500_v16 = vld [vmem:[#allocation2 + $0x278] sm:$0xff] }
 0x5dc   : > { %v7097_v19 = vpop.permute.xlu1 %7096  ;;  %v14984_v24 = vpop.permute.xlu0 %6634 }
 0x5dd   : > { %v7954_v52 = vpop.f32.mrb[200].mxu0  ;;  %7238 = vrot.lane.b32.xlu1 %v6528_v54, %s16501_s29 }
 0x5de   : > { %v8154_v58 = vmul.f32 %v14937_v41, %v7954_v52  ;;  %6760 = vrot.lane.b32.xlu0 %v6436_v6, %s16624_s30  ;;  %v7956_v7 = vpop.f32.mrb[201].mxu0  ;;  %v7593_v52 = vsel %vm2808_vm3, %v7561_v43, %v6873_v45 }
 0x5df   : > { %v8155_v18 = vmul.f32 %v14943_v27, %v7956_v7  ;;  %v7625_v28 = vsel %vm2841_vm4, %v7593_v52, %v6985_v57 }
 0x5e0   : > { %v8231_v32 = vadd.f32 %v14949_v44, %v8154_v58  ;;  %v7225_v55 = vpop.permute.xlu1 %7224  ;;  %v6747_v10 = vpop.permute.xlu0 %6746  ;;  %v7657_v3 = vsel %vm2874_vm5, %v7625_v28, %v7097_v19 }
 0x5e1   : > { %v8232_v20 = vadd.f32 %v14953_v9, %v8155_v18  ;;  %7350 = vrot.lane.b32.xlu1 %v6529_v36, %s16506_s15  ;;  %v7689_v45 = vsel %vm2907_vm6, %v7657_v3, %v7225_v55  ;;  %v6421_v55 = vld [vmem:[#allocation2 + $0x190] sm:$0xff] }
 0x5e2   : > { %6888 = vrot.lane.b32.xlu0 %v6464_v30, %s16373_s24  ;;  %v6199_v29 = vpop.f32.mrb[140].mxu1  ;;  %v8295_v58 = vmax.f32 %v8231_v32, 0.0  ;;  %v15009_v30 = vld [vmem:[#allocation2 + $0x188] sm:$0xff] }
 0x5e3   : > { %v8296_v54 = vmax.f32 %v8232_v20, 0.0  ;;  %v14998_v25 = vadd.f32 %v6199_v29, %v14044_v59  ;;  %v6201_v6 = vpop.f32.mrb[141].mxu1  ;;  %v8781_v59 = vld [vmem:[%s15785_s5] sm:$0xff] }
 0x5e4   : > { %v7337_v7 = vpop.permute.xlu1 %7336  ;;  %v6875_v18 = vpop.permute.xlu0 %6874  ;;  %v8783_v32 = vcombine.high %v8781_v59, %v8781_v59 }
 0x5e5   : > { %8490 = vmatprep.mubr.f32.mxu1 %v8296_v54  ;;  %7462 = vrot.lane.b32.xlu1 %v6549_v22, %s16632_s0  ;;  %v7721_v57 = vsel %vm2940_vm7, %v7689_v45, %v7337_v7  ;;  %v6465_v7 = vld [vmem:[#allocation2 + $0x280] sm:$0xff] }
 0x5e6   : > { %7000 = vrot.lane.b32.xlu0 %v6484_v42, %s16474_s13  ;;  %8491 = vmatmul.mubr.f32.gmra.mrb[188].mxu1 %v8295_v58  ;;  %v6393_v58 = vld [vmem:[#allocation2 + $0x100] sm:$0xff] }
 0x5e7   : > { %9509 = vmatprep.subr.msk.mxu0 %vm662_vm1, %v8783_v32 }
 0x5e8   : > { %v7449_v20 = vpop.permute.xlu1 %7448  ;;  %v6987_v17 = vpop.permute.xlu0 %6986  ;;  %9510 = vmatpush1.msk.msra.mxu0 %vm662_vm1, %v8781_v59 }
 0x5e9   : > { %v7753_v13 = vsel %vm2973_vm8, %v7721_v57, %v7449_v20  ;;  %7112 = vrot.lane.b32.xlu1 %v6500_v16, %s16499_s25  ;;  %v6565_v57 = vld [vmem:[#allocation2 + $0x378] sm:$0xff] }
 0x5ea   : > { %6650 = vrot.lane.b32.xlu0 %v15009_v30, %s16619_s26  ;;  %v6204_v28 = vpop.f32.mrb[142].mxu1  ;;  %9490 = vmatmul.mubr.msk.f32.gmra.mrb[228].mxu0 %vm3016_vm9, %v7753_v13 }
 0x5eb   : > { %v15019_v42 = vadd.f32 %v6204_v28, %v14059_v26  ;;  %v6206_v19 = vpop.f32.mrb[143].mxu1  ;;  %8042 = vmatprep.mubr.f32.mxu0 %v16047_v34 }
 0x5ec   : > { %v7099_v29 = vpop.permute.xlu1 %7098  ;;  %v15023_v43 = vpop.permute.xlu0 %6636 }
 0x5ed   : > { %16713 = vst [vmem:[#allocation181_spill] sm:$0xff] %v15019_v42  ;;  %v7960_v54 = vpop.f32.mrb[202].mxu0  ;;  %7240 = vrot.lane.b32.xlu1 %v6529_v36, %s16501_s29  ;;  %v7530_v36 = vsel %vm432_vm0, %v6393_v58, %v14984_v24 }
 0x5ee   : > { %v8156_v6 = vmul.f32 %v14937_v41, %v7960_v54  ;;  %6762 = vrot.lane.b32.xlu0 %v6421_v55, %s16624_s30  ;;  %v7962_v52 = vpop.f32.mrb[203].mxu0  ;;  %v7562_v20 = vsel %vm2775_vm2, %v7530_v36, %v6747_v10  ;;  %v6466_v54 = vld [vmem:[#allocation2 + $0x288] sm:$0xff]  ;;  %v6485_v10 = vld [vmem:[#allocation2 + $0x290] sm:$0xff]  ;;  %v6437_v36 = vld [vmem:[#allocation2 + $0x198] sm:$0xff] }
 0x5ef   : > { %v8157_v26 = vmul.f32 %v14943_v27, %v7962_v52 }
 0x5f0   : > { %v8233_v3 = vadd.f32 %v14949_v44, %v8156_v6  ;;  %v7227_v16 = vpop.permute.xlu1 %7226  ;;  %v6749_v45 = vpop.permute.xlu0 %6748  ;;  %v7594_v6 = vsel %vm2808_vm3, %v7562_v20, %v6875_v18 }
 0x5f1   : > { %v8234_v59 = vadd.f32 %v14953_v9, %v8157_v26  ;;  %7352 = vrot.lane.b32.xlu1 %v6549_v22, %s16506_s15  ;;  %v7626_v42 = vsel %vm2841_vm4, %v7594_v6, %v6987_v17 }
 0x5f2   : > { %6890 = vrot.lane.b32.xlu0 %v6465_v7, %s16373_s24  ;;  %v6209_v32 = vpop.f32.mrb[144].mxu1  ;;  %v8297_v52 = vmax.f32 %v8233_v3, 0.0  ;;  %v7658_v24 = vsel %vm2874_vm5, %v7626_v42, %v7099_v29  ;;  %v6530_v42 = vld [vmem:[#allocation2 + $0x380] sm:$0xff] }
 0x5f3   : > { %v8298_v13 = vmax.f32 %v8234_v59, 0.0  ;;  %v15037_v28 = vadd.f32 %v6209_v32, %v14070_v48  ;;  %v6211_v19 = vpop.f32.mrb[145].mxu1  ;;  %v7690_v48 = vsel %vm2907_vm6, %v7658_v24, %v7227_v16  ;;  %v7531_v24 = vsel %vm432_vm0, %v14719_v33, %v15023_v43  ;;  %v6501_v43 = vld [vmem:[#allocation2 + $0x298] sm:$0xff] }
 0x5f4   : > { %v7339_v26 = vpop.permute.xlu1 %7338  ;;  %v6877_v22 = vpop.permute.xlu0 %6876 }
 0x5f5   : > { %8495 = vmatprep.mubr.f32.mxu1 %v8298_v13  ;;  %7464 = vrot.lane.b32.xlu1 %v6565_v57, %s16632_s0  ;;  %v7722_v58 = vsel %vm2940_vm7, %v7690_v48, %v7339_v26  ;;  %v6531_v13 = vld [vmem:[#allocation2 + $0x388] sm:$0xff] }
 0x5f6   : > { %7002 = vrot.lane.b32.xlu0 %v6466_v54, %s16474_s13  ;;  %8496 = vmatmul.mubr.f32.gmra.mrb[190].mxu1 %v8297_v52 }
 0x5f8   : > { %v7451_v7 = vpop.permute.xlu1 %7450  ;;  %v6989_v18 = vpop.permute.xlu0 %6988 }
 0x5f9   : > { %v7754_v3 = vsel %vm2973_vm8, %v7722_v58, %v7451_v7  ;;  %7114 = vrot.lane.b32.xlu1 %v6485_v10, %s16499_s25  ;;  %v6550_v58 = vld [vmem:[#allocation2 + $0x390] sm:$0xff]  ;;  %v7563_v7 = vsel %vm2775_vm2, %v7531_v24, %v6749_v45  ;;  %v15075_v45 = vld [vmem:[#allocation2 + $0x1a8] sm:$0xff] }
 0x5fa   : > { %6652 = vrot.lane.b32.xlu0 %v6421_v55, %s16619_s26  ;;  %v6214_v17 = vpop.f32.mrb[146].mxu1  ;;  %9491 = vmatmul.mubr.msk.f32.gmra.mrb[230].mxu0 %vm3016_vm9, %v7754_v3 }
 0x5fb   : > { %v15051_v29 = vadd.f32 %v6214_v17, %v14084_v31  ;;  %v6216_v59 = vpop.f32.mrb[147].mxu1  ;;  %8048 = vmatprep.mubr.f32.mxu0 %v16047_v34 }
 0x5fc   : > { %v7101_v16 = vpop.permute.xlu1 %7100  ;;  %v6639_v32 = vpop.permute.xlu0 %6638  ;;  %v7595_v59 = vsel %vm2808_vm3, %v7563_v7, %v6877_v22 }
 0x5fd   : > { %v7966_v57 = vpop.f32.mrb[204].mxu0  ;;  %7242 = vrot.lane.b32.xlu1 %v6530_v42, %s16501_s29 }
 0x5fe   : > { %v8158_v20 = vmul.f32 %v14937_v41, %v7966_v57  ;;  %6764 = vrot.lane.b32.xlu0 %v6437_v36, %s16624_s30  ;;  %v7968_v55 = vpop.f32.mrb[205].mxu0 }
 0x5ff   : > { %v8159_v19 = vmul.f32 %v14943_v27, %v7968_v55  ;;  %v7627_v55 = vsel %vm2841_vm4, %v7595_v59, %v6989_v18 }
 0x600   : > { %v8235_v31 = vadd.f32 %v14949_v44, %v8158_v20  ;;  %v7229_v6 = vpop.permute.xlu1 %7228  ;;  %v6751_v52 = vpop.permute.xlu0 %6750  ;;  %v7659_v33 = vsel %vm2874_vm5, %v7627_v55, %v7101_v16 }
 0x601   : > { %v8236_v26 = vadd.f32 %v14953_v9, %v8159_v19  ;;  %7354 = vrot.lane.b32.xlu1 %v6531_v13, %s16506_s15 }
 0x602   : > { %6892 = vrot.lane.b32.xlu0 %v6466_v54, %s16373_s24  ;;  %v6219_v48 = vpop.f32.mrb[148].mxu1  ;;  %v8299_v36 = vmax.f32 %v8235_v31, 0.0 }
 0x603   : > { %v8300_v3 = vmax.f32 %v8236_v26, 0.0  ;;  %v15067_v17 = vadd.f32 %v6219_v48, %v14095_v49  ;;  %v6221_v42 = vpop.f32.mrb[149].mxu1  ;;  %v7691_v49 = vsel %vm2907_vm6, %v7659_v33, %v7229_v6  ;;  %v6422_v6 = vld [vmem:[#allocation2 + $0x1b0] sm:$0xff] }
 0x604   : > { %v7341_v57 = vpop.permute.xlu1 %7340  ;;  %v6879_v20 = vpop.permute.xlu0 %6878  ;;  %v6395_v42 = vld [vmem:[#allocation2 + $0x120] sm:$0xff] }
 0x605   : > { %8500 = vmatprep.mubr.f32.mxu1 %v8300_v3  ;;  %7466 = vrot.lane.b32.xlu1 %v6550_v58, %s16632_s0  ;;  %v7723_v54 = vsel %vm2940_vm7, %v7691_v49, %v7341_v57  ;;  %v6566_v49 = vld [vmem:[#allocation2 + $0x398] sm:$0xff] }
 0x606   : > { %7004 = vrot.lane.b32.xlu0 %v6485_v10, %s16474_s13  ;;  %8501 = vmatmul.mubr.f32.gmra.mrb[192].mxu1 %v8299_v36 }
 0x608   : > { %v7453_v22 = vpop.permute.xlu1 %7452  ;;  %v6991_v19 = vpop.permute.xlu0 %6990 }
 0x609   : > { %v7755_v31 = vsel %vm2973_vm8, %v7723_v54, %v7453_v22  ;;  %7116 = vrot.lane.b32.xlu1 %v6501_v43, %s16499_s25  ;;  %v7532_v43 = vsel %vm432_vm0, %v6395_v42, %v6639_v32 }
 0x60a   : > { %6654 = vrot.lane.b32.xlu0 %v15075_v45, %s16619_s26  ;;  %v6224_v18 = vpop.f32.mrb[150].mxu1  ;;  %9492 = vmatmul.mubr.msk.f32.gmra.mrb[232].mxu0 %vm3016_vm9, %v7755_v31  ;;  %v7564_v54 = vsel %vm2775_vm2, %v7532_v43, %v6751_v52  ;;  %v6486_v52 = vld [vmem:[#allocation2 + $0x2b0] sm:$0xff] }
 0x60b   : > { %v15084_v10 = vadd.f32 %v6224_v18, %v14108_v37  ;;  %v6226_v16 = vpop.f32.mrb[151].mxu1  ;;  %8054 = vmatprep.mubr.f32.mxu0 %v16047_v34  ;;  %v6467_v37 = vld [vmem:[#allocation2 + $0x2a0] sm:$0xff] }
 0x60c   : > { %v7103_v26 = vpop.permute.xlu1 %7102  ;;  %v15087_v24 = vpop.permute.xlu0 %6640  ;;  %v6468_v16 = vld [vmem:[#allocation2 + $0x2a8] sm:$0xff] }
 0x60d   : > { %v7972_v48 = vpop.f32.mrb[206].mxu0  ;;  %7244 = vrot.lane.b32.xlu1 %v6531_v13, %s16501_s29 }
 0x60e   : > { %v8160_v7 = vmul.f32 %v14937_v41, %v7972_v48  ;;  %6766 = vrot.lane.b32.xlu0 %v6422_v6, %s16624_s30  ;;  %v7974_v3 = vpop.f32.mrb[207].mxu0  ;;  %v7596_v48 = vsel %vm2808_vm3, %v7564_v54, %v6879_v20 }
 0x60f   : > { %v8161_v59 = vmul.f32 %v14943_v27, %v7974_v3 }
 0x610   : > { %v8237_v36 = vadd.f32 %v14949_v44, %v8160_v7  ;;  %v7231_v57 = vpop.permute.xlu1 %7230  ;;  %v6753_v55 = vpop.permute.xlu0 %6752 }
 0x611   : > { %v8238_v33 = vadd.f32 %v14953_v9, %v8161_v59  ;;  %7356 = vrot.lane.b32.xlu1 %v6550_v58, %s16506_s15  ;;  %v7628_v58 = vsel %vm2841_vm4, %v7596_v48, %v6991_v19 }
 0x612   : > { %6894 = vrot.lane.b32.xlu0 %v6467_v37, %s16373_s24  ;;  %v6229_v13 = vpop.f32.mrb[152].mxu1  ;;  %v8301_v7 = vmax.f32 %v8237_v36, 0.0  ;;  %v7660_v32 = vsel %vm2874_vm5, %v7628_v58, %v7103_v26  ;;  %v6532_v26 = vld [vmem:[#allocation2 + $0x3a0] sm:$0xff] }
 0x613   : > { %v8302_v22 = vmax.f32 %v8238_v33, 0.0  ;;  %v15100_v31 = vadd.f32 %v6229_v13, %v14119_v12  ;;  %v6231_v18 = vpop.f32.mrb[153].mxu1  ;;  %v7692_v12 = vsel %vm2907_vm6, %v7660_v32, %v7231_v57  ;;  %v6438_v13 = vld [vmem:[#allocation2 + $0x1b8] sm:$0xff]  ;;  %v7533_v32 = vsel %vm432_vm0, %v14780_v62, %v15087_v24 }
 0x614   : > { %v7343_v3 = vpop.permute.xlu1 %7342  ;;  %v6881_v59 = vpop.permute.xlu0 %6880  ;;  %v6533_v18 = vld [vmem:[#allocation2 + $0x3a8] sm:$0xff]  ;;  %v6502_v24 = vld [vmem:[#allocation2 + $0x2b8] sm:$0xff] }
 0x615   : > { %8505 = vmatprep.mubr.f32.mxu1 %v8302_v22  ;;  %7468 = vrot.lane.b32.xlu1 %v6566_v49, %s16632_s0  ;;  %v7724_v42 = vsel %vm2940_vm7, %v7692_v12, %v7343_v3 }
 0x616   : > { %7006 = vrot.lane.b32.xlu0 %v6468_v16, %s16474_s13  ;;  %8506 = vmatmul.mubr.f32.gmra.mrb[194].mxu1 %v8301_v7 }
 0x618   : > { %v7455_v37 = vpop.permute.xlu1 %7454  ;;  %v6993_v20 = vpop.permute.xlu0 %6992 }
 0x619   : > { %v7756_v36 = vsel %vm2973_vm8, %v7724_v42, %v7455_v37  ;;  %7118 = vrot.lane.b32.xlu1 %v6486_v52, %s16499_s25  ;;  %v6551_v42 = vld [vmem:[#allocation2 + $0x3b0] sm:$0xff]  ;;  %v7565_v37 = vsel %vm2775_vm2, %v7533_v32, %v6753_v55  ;;  %v15138_v55 = vld [vmem:[#allocation2 + $0x1c8] sm:$0xff] }
 0x61a   : > { %6656 = vrot.lane.b32.xlu0 %v6422_v6, %s16619_s26  ;;  %v6234_v19 = vpop.f32.mrb[154].mxu1  ;;  %9493 = vmatmul.mubr.msk.f32.gmra.mrb[234].mxu0 %vm3016_vm9, %v7756_v36 }
 0x61b   : > { %v15114_v33 = vadd.f32 %v6234_v19, %v14132_v1  ;;  %v6236_v43 = vpop.f32.mrb[155].mxu1  ;;  %8060 = vmatprep.mubr.f32.mxu0 %v16047_v34 }
 0x61c   : > { %v7105_v57 = vpop.permute.xlu1 %7104  ;;  %v6643_v49 = vpop.permute.xlu0 %6642  ;;  %v7597_v43 = vsel %vm2808_vm3, %v7565_v37, %v6881_v59 }
 0x61d   : > { %v7978_v54 = vpop.f32.mrb[208].mxu0  ;;  %7246 = vrot.lane.b32.xlu1 %v6532_v26, %s16501_s29 }
 0x61e   : > { %v8162_v22 = vmul.f32 %v14937_v41, %v7978_v54  ;;  %6768 = vrot.lane.b32.xlu0 %v6438_v13, %s16624_s30  ;;  %v7980_v6 = vpop.f32.mrb[209].mxu0 }
 0x61f   : > { %v8163_v48 = vmul.f32 %v14943_v27, %v7980_v6  ;;  %v7629_v6 = vsel %vm2841_vm4, %v7597_v43, %v6993_v20 }
 0x620   : > { %v8239_v1 = vadd.f32 %v14949_v44, %v8162_v22  ;;  %v7233_v7 = vpop.permute.xlu1 %7232  ;;  %v6755_v3 = vpop.permute.xlu0 %6754  ;;  %v7661_v62 = vsel %vm2874_vm5, %v7629_v6, %v7105_v57 }
 0x621   : > { %v8240_v58 = vadd.f32 %v14953_v9, %v8163_v48  ;;  %7358 = vrot.lane.b32.xlu1 %v6533_v18, %s16506_s15 }
 0x622   : > { %6896 = vrot.lane.b32.xlu0 %v6468_v16, %s16373_s24  ;;  %v6239_v12 = vpop.f32.mrb[156].mxu1  ;;  %v8303_v13 = vmax.f32 %v8239_v1, 0.0 }
 0x623   : > { %v8304_v36 = vmax.f32 %v8240_v58, 0.0  ;;  %v15130_v19 = vadd.f32 %v6239_v12, %v14143_v63  ;;  %v6241_v26 = vpop.f32.mrb[157].mxu1  ;;  %v7693_v63 = vsel %vm2907_vm6, %v7661_v62, %v7233_v7  ;;  %v6423_v7 = vld [vmem:[#allocation2 + $0x1d0] sm:$0xff] }
 0x624   : > { %v7345_v54 = vpop.permute.xlu1 %7344  ;;  %v6883_v22 = vpop.permute.xlu0 %6882  ;;  %v6397_v26 = vld [vmem:[#allocation2 + $0x140] sm:$0xff] }
 0x625   : > { %8510 = vmatprep.mubr.f32.mxu1 %v8304_v36  ;;  %7470 = vrot.lane.b32.xlu1 %v6551_v42, %s16632_s0  ;;  %v7725_v16 = vsel %vm2940_vm7, %v7693_v63, %v7345_v54  ;;  %v6567_v63 = vld [vmem:[#allocation2 + $0x3b8] sm:$0xff] }
 0x626   : > { %7008 = vrot.lane.b32.xlu0 %v6486_v52, %s16474_s13  ;;  %8511 = vmatmul.mubr.f32.gmra.mrb[196].mxu1 %v8303_v13 }
 0x628   : > { %v7457_v59 = vpop.permute.xlu1 %7456  ;;  %v6995_v48 = vpop.permute.xlu0 %6994 }
 0x629   : > { %v7757_v1 = vsel %vm2973_vm8, %v7725_v16, %v7457_v59  ;;  %7120 = vrot.lane.b32.xlu1 %v6502_v24, %s16499_s25  ;;  %v7534_v24 = vsel %vm432_vm0, %v6397_v26, %v6643_v49 }
 0x62a   : > { %6658 = vrot.lane.b32.xlu0 %v15138_v55, %s16619_s26  ;;  %v6244_v20 = vpop.f32.mrb[158].mxu1  ;;  %9494 = vmatmul.mubr.msk.f32.gmra.mrb[236].mxu0 %vm3016_vm9, %v7757_v1  ;;  %v7566_v16 = vsel %vm2775_vm2, %v7534_v24, %v6755_v3  ;;  %v6487_v3 = vld [vmem:[#allocation2 + $0x2d0] sm:$0xff] }
 0x62b   : > { %v15147_v52 = vadd.f32 %v6244_v20, %v14156_v4  ;;  %v6246_v57 = vpop.f32.mrb[159].mxu1  ;;  %8066 = vmatprep.mubr.f32.mxu0 %v16047_v34  ;;  %v6469_v4 = vld [vmem:[#allocation2 + $0x2c0] sm:$0xff] }
 0x62c   : > { %v7107_v58 = vpop.permute.xlu1 %7106  ;;  %v15150_v32 = vpop.permute.xlu0 %6644  ;;  %v6470_v57 = vld [vmem:[#allocation2 + $0x2c8] sm:$0xff] }
 0x62d   : > { %v7984_v12 = vpop.f32.mrb[210].mxu0  ;;  %7248 = vrot.lane.b32.xlu1 %v6533_v18, %s16501_s29 }
 0x62e   : > { %v8164_v37 = vmul.f32 %v14937_v41, %v7984_v12  ;;  %6770 = vrot.lane.b32.xlu0 %v6423_v7, %s16624_s30  ;;  %v7986_v36 = vpop.f32.mrb[211].mxu0  ;;  %v7598_v12 = vsel %vm2808_vm3, %v7566_v16, %v6883_v22 }
 0x62f   : > { %v8165_v43 = vmul.f32 %v14943_v27, %v7986_v36 }
 0x630   : > { %v8241_v13 = vadd.f32 %v14949_v44, %v8164_v37  ;;  %v7235_v54 = vpop.permute.xlu1 %7234  ;;  %v6757_v6 = vpop.permute.xlu0 %6756 }
 0x631   : > { %v8242_v62 = vadd.f32 %v14953_v9, %v8165_v43  ;;  %7360 = vrot.lane.b32.xlu1 %v6551_v42, %s16506_s15  ;;  %v7630_v42 = vsel %vm2841_vm4, %v7598_v12, %v6995_v48 }
 0x632   : > { %6898 = vrot.lane.b32.xlu0 %v6469_v4, %s16373_s24  ;;  %v6249_v18 = vpop.f32.mrb[160].mxu1  ;;  %v8305_v37 = vmax.f32 %v8241_v13, 0.0  ;;  %v7662_v49 = vsel %vm2874_vm5, %v7630_v42, %v7107_v58  ;;  %v6534_v58 = vld [vmem:[#allocation2 + $0x3c0] sm:$0xff] }
 0x633   : > { %v8306_v59 = vmax.f32 %v8242_v62, 0.0  ;;  %v15163_v1 = vadd.f32 %v6249_v18, %v14167_v15  ;;  %v6251_v20 = vpop.f32.mrb[161].mxu1  ;;  %v7694_v15 = vsel %vm2907_vm6, %v7662_v49, %v7235_v54  ;;  %v6439_v18 = vld [vmem:[#allocation2 + $0x1d8] sm:$0xff]  ;;  %v7535_v49 = vsel %vm432_vm0, %v14851_v50, %v15150_v32 }
 0x634   : > { %v7347_v36 = vpop.permute.xlu1 %7346  ;;  %v6885_v43 = vpop.permute.xlu0 %6884  ;;  %v6535_v20 = vld [vmem:[#allocation2 + $0x3c8] sm:$0xff]  ;;  %v6503_v32 = vld [vmem:[#allocation2 + $0x2d8] sm:$0xff] }
 0x635   : > { %8515 = vmatprep.mubr.f32.mxu1 %v8306_v59  ;;  %7472 = vrot.lane.b32.xlu1 %v6567_v63, %s16632_s0  ;;  %v7726_v26 = vsel %vm2940_vm7, %v7694_v15, %v7347_v36 }
 0x636   : > { %7010 = vrot.lane.b32.xlu0 %v6470_v57, %s16474_s13  ;;  %8516 = vmatmul.mubr.f32.gmra.mrb[198].mxu1 %v8305_v37 }
 0x638   : > { %v7459_v4 = vpop.permute.xlu1 %7458  ;;  %v6997_v22 = vpop.permute.xlu0 %6996 }
 0x639   : > { %v7758_v13 = vsel %vm2973_vm8, %v7726_v26, %v7459_v4  ;;  %7122 = vrot.lane.b32.xlu1 %v6487_v3, %s16499_s25  ;;  %v6552_v26 = vld [vmem:[#allocation2 + $0x3d0] sm:$0xff]  ;;  %v7567_v4 = vsel %vm2775_vm2, %v7535_v49, %v6757_v6  ;;  %v15203_v6 = vld [vmem:[#allocation2 + $0x1e8] sm:$0xff] }
 0x63a   : > { %6660 = vrot.lane.b32.xlu0 %v6423_v7, %s16619_s26  ;;  %v6254_v48 = vpop.f32.mrb[162].mxu1  ;;  %9495 = vmatmul.mubr.msk.f32.gmra.mrb[238].mxu0 %vm3016_vm9, %v7758_v13 }
 0x63b   : > { %v15177_v62 = vadd.f32 %v6254_v48, %v14180_v0  ;;  %v6256_v24 = vpop.f32.mrb[163].mxu1  ;;  %8072 = vmatprep.mubr.f32.mxu0 %v16047_v34 }
 0x63c   : > { %v7109_v54 = vpop.permute.xlu1 %7108  ;;  %v15180_v63 = vpop.permute.xlu0 %6646  ;;  %v7599_v24 = vsel %vm2808_vm3, %v7567_v4, %v6885_v43 }
 0x63d   : > { %v7990_v16 = vpop.f32.mrb[212].mxu0  ;;  %7250 = vrot.lane.b32.xlu1 %v6534_v58, %s16501_s29 }
 0x63e   : > { %v8166_v59 = vmul.f32 %v14937_v41, %v7990_v16  ;;  %6772 = vrot.lane.b32.xlu0 %v6439_v18, %s16624_s30  ;;  %v7992_v7 = vpop.f32.mrb[213].mxu0 }
 0x63f   : > { %v8167_v12 = vmul.f32 %v14943_v27, %v7992_v7  ;;  %v7631_v7 = vsel %vm2841_vm4, %v7599_v24, %v6997_v22 }
 0x640   : > { %v8243_v0 = vadd.f32 %v14949_v44, %v8166_v59  ;;  %v7237_v37 = vpop.permute.xlu1 %7236  ;;  %v6759_v36 = vpop.permute.xlu0 %6758  ;;  %v7663_v50 = vsel %vm2874_vm5, %v7631_v7, %v7109_v54  ;;  %v6399_v7 = vld [vmem:[#allocation2 + $0x160] sm:$0xff] }
 0x641   : > { %v8244_v42 = vadd.f32 %v14953_v9, %v8167_v12  ;;  %7362 = vrot.lane.b32.xlu1 %v6535_v20, %s16506_s15 }
 0x642   : > { %6900 = vrot.lane.b32.xlu0 %v6470_v57, %s16373_s24  ;;  %v6259_v15 = vpop.f32.mrb[164].mxu1  ;;  %v8307_v18 = vmax.f32 %v8243_v0, 0.0 }
 0x643   : > { %v8308_v13 = vmax.f32 %v8244_v42, 0.0  ;;  %v15195_v48 = vadd.f32 %v6259_v15, %v14191_v47  ;;  %v6261_v58 = vpop.f32.mrb[165].mxu1  ;;  %v7695_v47 = vsel %vm2907_vm6, %v7663_v50, %v7237_v37  ;;  %v6424_v37 = vld [vmem:[#allocation2 + $0x1f0] sm:$0xff]  ;;  %v16716_v42 = vld [vmem:[#allocation11_spill] sm:$0xff]  ;;  %v16717_v15 = vld [vmem:[#allocation12_spill] sm:$0xff] }
 0x644   : > { %v7349_v16 = vpop.permute.xlu1 %7348  ;;  %v6887_v59 = vpop.permute.xlu0 %6886  ;;  %v8711_v49 = vsel %vm432_vm0, %v16716_v42, 0.0  ;;  %v8710_v4 = vsel %vm432_vm0, %v16717_v15, 0.0 }
 0x645   : > { %16714 = vst [vmem:[#allocation138_spill] sm:$0xff] %v15195_v48  ;;  %8520 = vmatprep.mubr.f32.mxu1 %v8308_v13  ;;  %7474 = vrot.lane.b32.xlu1 %v6552_v26, %s16632_s0  ;;  %v7727_v57 = vsel %vm2940_vm7, %v7695_v47, %v7349_v16  ;;  %v8712_v16 = vadd.f32 %v8711_v49, %v8710_v4  ;;  %v16718_v47 = vld [vmem:[#allocation14_spill] sm:$0xff] }
 0x646   : > { %7012 = vrot.lane.b32.xlu0 %v6487_v3, %s16474_s13  ;;  %8521 = vmatmul.mubr.f32.gmra.mrb[200].mxu1 %v8307_v18  ;;  %v6568_v49 = vld [vmem:[#allocation2 + $0x3d8] sm:$0xff] }
 0x648   : > { %v7461_v43 = vpop.permute.xlu1 %7460  ;;  %v6999_v12 = vpop.permute.xlu0 %6998 }
 0x649   : > { %v7759_v0 = vsel %vm2973_vm8, %v7727_v57, %v7461_v43  ;;  %7124 = vrot.lane.b32.xlu1 %v6503_v32, %s16499_s25  ;;  %v6471_v32 = vld [vmem:[#allocation2 + $0x2e0] sm:$0xff]  ;;  %v8713_v57 = vsel %vm432_vm0, %v16718_v47, 0.0  ;;  %v6472_v47 = vld [vmem:[#allocation2 + $0x2e8] sm:$0xff] }
 0x64a   : > { %6662 = vrot.lane.b32.xlu0 %v15203_v6, %s16619_s26  ;;  %v6264_v22 = vpop.f32.mrb[166].mxu1  ;;  %9496 = vmatmul.mubr.msk.f32.gmra.mrb[240].mxu0 %vm3016_vm9, %v7759_v0  ;;  %v8714_v15 = vadd.f32 %v8713_v57, %v8712_v16 }
 0x64b   : > { %v15212_v3 = vadd.f32 %v6264_v22, %v14204_v35  ;;  %v6266_v54 = vpop.f32.mrb[167].mxu1  ;;  %8078 = vmatprep.mubr.f32.mxu0 %v16047_v34 }
 0x64c   : > { %v7111_v13 = vpop.permute.xlu1 %7110  ;;  %v15219_v58 = vpop.permute.xlu0 %6648  ;;  %v7536_v54 = vsel %vm432_vm0, %v6399_v7, %v15180_v63 }
 0x64d   : > { %16715 = vst [vmem:[#allocation207_spill] sm:$0xff] %v15212_v3  ;;  %v7996_v24 = vpop.f32.mrb[214].mxu0  ;;  %7252 = vrot.lane.b32.xlu1 %v6535_v20, %s16501_s29  ;;  %v7568_v4 = vsel %vm2775_vm2, %v7536_v54, %v6759_v36  ;;  %v16719_v3 = vld [vmem:[#allocation13_spill] sm:$0xff] }
 0x64e   : > { %v8168_v18 = vmul.f32 %v14937_v41, %v7996_v24  ;;  %6774 = vrot.lane.b32.xlu0 %v6424_v37, %s16624_s30  ;;  %v7998_v35 = vpop.f32.mrb[215].mxu0 }
 0x64f   : > { %v8169_v50 = vmul.f32 %v14943_v27, %v7998_v35 }
 0x650   : > { %v8245_v43 = vadd.f32 %v14949_v44, %v8168_v18  ;;  %v7239_v0 = vpop.permute.xlu1 %7238  ;;  %v15228_v22 = vpop.permute.xlu0 %6760 }
 0x651   : > { %v8246_v20 = vadd.f32 %v14953_v9, %v8169_v50  ;;  %7364 = vrot.lane.b32.xlu1 %v6552_v26, %s16506_s15  ;;  %v8715_v50 = vsel %vm432_vm0, %v16719_v3, 0.0  ;;  %v7600_v26 = vsel %vm2808_vm3, %v7568_v4, %v6887_v59  ;;  %v16720_v3 = vld [vmem:[#allocation16_spill] sm:$0xff]  ;;  %v16721_v4 = vld [vmem:[#allocation15_spill] sm:$0xff] }
 0x652   : > { %6902 = vrot.lane.b32.xlu0 %v6471_v32, %s16373_s24  ;;  %v6269_v42 = vpop.f32.mrb[168].mxu1  ;;  %v8309_v48 = vmax.f32 %v8245_v43, 0.0  ;;  %v7632_v32 = vsel %vm2841_vm4, %v7600_v26, %v6999_v12  ;;  %v8716_v16 = vadd.f32 %v8715_v50, %v8714_v15  ;;  %v8717_v59 = vsel %vm432_vm0, %v16720_v3, 0.0  ;;  %v6440_v15 = vld [vmem:[#allocation2 + $0x1f8] sm:$0xff] }
 0x653   : > { %v8310_v24 = vmax.f32 %v8246_v20, 0.0  ;;  %v15237_v18 = vadd.f32 %v6269_v42, %v14215_v56  ;;  %v6271_v35 = vpop.f32.mrb[169].mxu1  ;;  %v7664_v36 = vsel %vm2874_vm5, %v7632_v32, %v7111_v13  ;;  %v6488_v56 = vld [vmem:[#allocation2 + $0x2f0] sm:$0xff] }
 0x654   : > { %v7351_v63 = vpop.permute.xlu1 %7350  ;;  %v6889_v7 = vpop.permute.xlu0 %6888  ;;  %v7696_v57 = vsel %vm2907_vm6, %v7664_v36, %v7239_v0  ;;  %v8718_v42 = vadd.f32 %v8717_v59, %v8716_v16  ;;  %v16722_v16 = vld [vmem:[#allocation18_spill] sm:$0xff] }
 0x655   : > { %8525 = vmatprep.mubr.f32.mxu1 %v8310_v24  ;;  %7476 = vrot.lane.b32.xlu1 %v6568_v49, %s16632_s0  ;;  %v7728_v43 = vsel %vm2940_vm7, %v7696_v57, %v7351_v63  ;;  %v8719_v24 = vsel %vm432_vm0, %v16721_v4, 0.0  ;;  %v8721_v57 = vsel %vm432_vm0, %v16722_v16, 0.0  ;;  %v6504_v16 = vld [vmem:[#allocation2 + $0x2f8] sm:$0xff] }
 0x656   : > { %7014 = vrot.lane.b32.xlu0 %v6472_v47, %s16474_s13  ;;  %8526 = vmatmul.mubr.f32.gmra.mrb[202].mxu1 %v8309_v48  ;;  %v6536_v48 = vld [vmem:[#allocation2 + $0x3e0] sm:$0xff]  ;;  %v8720_v32 = vadd.f32 %v8719_v24, %v8718_v42 }
 0x658   : > { %v7463_v20 = vpop.permute.xlu1 %7462  ;;  %v7001_v54 = vpop.permute.xlu0 %7000  ;;  %v8722_v42 = vadd.f32 %v8721_v57, %v8720_v32  ;;  %v16724_v57 = vld [vmem:[#allocation20_spill] sm:$0xff] }
 0x659   : > { %v7760_v12 = vsel %vm2973_vm8, %v7728_v43, %v7463_v20  ;;  %7126 = vrot.lane.b32.xlu1 %v6488_v56, %s16499_s25 }
 0x65a   : > { %6664 = vrot.lane.b32.xlu0 %v6424_v37, %s16619_s26  ;;  %v6274_v13 = vpop.f32.mrb[170].mxu1  ;;  %9497 = vmatmul.mubr.msk.f32.gmra.mrb[242].mxu0 %vm3016_vm9, %v7760_v12  ;;  %v7537_v12 = vsel %vm432_vm0, %v14922_v5, %v15219_v58 }
 0x65b   : > { %v15255_v0 = vadd.f32 %v6274_v13, %v14228_v53  ;;  %v6276_v49 = vpop.f32.mrb[171].mxu1  ;;  %8084 = vmatprep.mubr.f32.mxu0 %v16047_v34  ;;  %v6537_v53 = vld [vmem:[#allocation2 + $0x3e8] sm:$0xff] }
 0x65c   : > { %v7113_v35 = vpop.permute.xlu1 %7112  ;;  %v15260_v50 = vpop.permute.xlu0 %6650  ;;  %v7569_v49 = vsel %vm2775_vm2, %v7537_v12, %v15228_v22 }
 0x65d   : > { %v8002_v26 = vpop.f32.mrb[216].mxu0  ;;  %7254 = vrot.lane.b32.xlu1 %v6536_v48, %s16501_s29  ;;  %v6553_v48 = vld [vmem:[#allocation2 + $0x3f0] sm:$0xff] }
 0x65e   : > { %v8170_v37 = vmul.f32 %v14937_v41, %v8002_v26  ;;  %6776 = vrot.lane.b32.xlu0 %v6440_v15, %s16624_s30  ;;  %v8004_v63 = vpop.f32.mrb[217].mxu0  ;;  %v16723_v26 = vld [vmem:[#allocation17_spill] sm:$0xff] }
 0x65f   : > { %v8171_v36 = vmul.f32 %v14943_v27, %v8004_v63  ;;  %v7601_v63 = vsel %vm2808_vm3, %v7569_v49, %v6889_v7  ;;  %v8725_v7 = vsel %vm432_vm0, %v16724_v57, 0.0  ;;  %v16725_v49 = vld [vmem:[#allocation19_spill] sm:$0xff] }
 0x660   : > { %v8247_v3 = vadd.f32 %v14949_v44, %v8170_v37  ;;  %v7241_v59 = vpop.permute.xlu1 %7240  ;;  %v6763_v43 = vpop.permute.xlu0 %6762  ;;  %v8723_v37 = vsel %vm432_vm0, %v16723_v26, 0.0 }
 0x661   : > { %v8248_v20 = vadd.f32 %v14953_v9, %v8171_v36  ;;  %7366 = vrot.lane.b32.xlu1 %v6537_v53, %s16506_s15 }
 0x662   : > { %6904 = vrot.lane.b32.xlu0 %v6472_v47, %s16373_s24  ;;  %v6279_v13 = vpop.f32.mrb[172].mxu1  ;;  %v8311_v36 = vmax.f32 %v8247_v3, 0.0  ;;  %v7633_v47 = vsel %vm2841_vm4, %v7601_v63, %v7001_v54  ;;  %s15716_s24 = scalar_lea.hbm %s15791_s11, %s9522_s12 }
 0x663   : > { %v8312_v15 = vmax.f32 %v8248_v20, 0.0  ;;  %v15278_v4 = vadd.f32 %v6279_v13, %v14242_v60  ;;  %v6281_v24 = vpop.f32.mrb[173].mxu1  ;;  %v7665_v22 = vsel %vm2874_vm5, %v7633_v47, %v7113_v35  ;;  %v8724_v60 = vadd.f32 %v8723_v37, %v8722_v42  ;;  %v16726_v47 = vld [vmem:[#allocation22_spill] sm:$0xff] }
 0x664   : > { %v7353_v5 = vpop.permute.xlu1 %7352  ;;  %v6891_v58 = vpop.permute.xlu0 %6890  ;;  %v7697_v32 = vsel %vm2907_vm6, %v7665_v22, %v7241_v59  ;;  %v8729_v22 = vsel %vm432_vm0, %v16726_v47, 0.0 }
 0x665   : > { %8530 = vmatprep.mubr.f32.mxu1 %v8312_v15  ;;  %7478 = vrot.lane.b32.xlu1 %v6553_v48, %s16632_s0  ;;  %v7729_v3 = vsel %vm2940_vm7, %v7697_v32, %v7353_v5  ;;  %v8726_v13 = vadd.f32 %v8725_v7, %v8724_v60  ;;  %v8727_v15 = vsel %vm432_vm0, %v16725_v49, 0.0  ;;  %v6401_v5 = vld [vmem:[#allocation2 + $0x180] sm:$0xff] }
 0x666   : > { %7016 = vrot.lane.b32.xlu0 %v6488_v56, %s16474_s13  ;;  %8531 = vmatmul.mubr.f32.gmra.mrb[204].mxu1 %v8311_v36  ;;  %v6569_v56 = vld [vmem:[#allocation2 + $0x3f8] sm:$0xff]  ;;  %v7538_v7 = vsel %vm432_vm0, %v6401_v5, %v15260_v50  ;;  %s15738_s13 = scalar_lea.sflag [#allocation6], %s392_s2 }
 0x667   : > { %v8728_v36 = vadd.f32 %v8727_v15, %v8726_v13  ;;  %v16727_v13 = vld [vmem:[#allocation21_spill] sm:$0xff] }
 0x668   : > { %v7465_v20 = vpop.permute.xlu1 %7464  ;;  %v7003_v12 = vpop.permute.xlu0 %7002 }
 0x669   : > { %v7761_v54 = vsel %vm2973_vm8, %v7729_v3, %v7465_v20  ;;  %7256 = vrot.lane.b32.xlu1 %v6537_v53, %s16501_s29  ;;  %v8730_v20 = vadd.f32 %v8729_v22, %v8728_v36  ;;  %s10092_s29 = smov [#allocation7]  }
 0x66a   : > { %7128 = vrot.lane.b32.xlu0 %v6504_v16, %s16499_s25  ;;  %v6284_v35 = vpop.f32.mrb[174].mxu1  ;;  %9498 = vmatmul.mubr.msk.f32.gmra.mrb[244].mxu0 %vm3016_vm9, %v7761_v54  ;;  %s10011_s25 = scalar_lea.vmem %s15726_s16, 4096 }
 0x66b   : > { %v15296_v59 = vadd.f32 %v6284_v35, %v14258_v38  ;;  %v6286_v42 = vpop.f32.mrb[175].mxu1  ;;  %8090 = vmatprep.mubr.f32.mxu0 %v16047_v34  ;;  %p10012_p6 = scmp.ne.s32.totalorder %s15726_s16, %s10011_s25 }
 0x66c   : > { %v7115_v24 = vpop.permute.xlu1 %7114  ;;  %v6653_v26 = vpop.permute.xlu0 %6652  ;;  %v8731_v42 = vsel %vm432_vm0, %v16727_v13, 0.0 }
 0x66d   : > { %v8008_v37 = vpop.f32.mrb[218].mxu0  ;;  %7480 = vrot.lane.b32.xlu1 %v6569_v56, %s16632_s0  ;;  %p10013_p10 = pnand %p10012_p6, %p16756_p9 }
 0x66e   : > { %v8172_v53 = vmul.f32 %v14937_v41, %v8008_v37  ;;  %7368 = vrot.lane.b32.xlu0 %v6553_v48, %s16506_s15  ;;  %v8010_v63 = vpop.f32.mrb[219].mxu0  ;;  %v7570_v48 = vsel %vm2775_vm2, %v7538_v7, %v6763_v43  ;;  %v8732_v43 = vadd.f32 %v8731_v42, %v8730_v20  ;;  %s10015_s15 = sshll.u32 %s10092_s29, 4  ;;  %s10016_s15 = int_to_ptr.vmem [resolvable:$false] %s10015_s15 }
 0x66f   : > { %v8173_v38 = vmul.f32 %v14943_v27, %v8010_v63  ;;  %v7602_v49 = vsel %vm2808_vm3, %v7570_v48, %v6891_v58  ;;  %p10014_p12 = pneg %p10013_p10  ;;  %s10017_s26 = scalar_lea.vmem %s10016_s15, 8192 }
 0x670   : > { %v8249_v60 = vadd.f32 %v14949_v44, %v8172_v53  ;;  %v7243_v32 = vpop.permute.xlu1 %7242  ;;  %v6765_v16 = vpop.permute.xlu0 %6764  ;;  %v7634_v63 = vsel %vm2841_vm4, %v7602_v49, %v7003_v12  ;;  %v16730_v49 = vld [vmem:[#allocation26_spill] sm:$0xff]  ;;  %p10018_p2 = scmp.lt.s32.totalorder %s15726_s16, %s10016_s15  ;;  %p10019_p3 = scmp.lt.s32.totalorder %s10017_s26, %s10011_s25 }
 0x671   : > { %v8250_v57 = vadd.f32 %v14953_v9, %v8173_v38  ;;  %v7666_v50 = vsel %vm2874_vm5, %v7634_v63, %v7115_v24 }
 0x672   : > { %v6289_v3 = vpop.f32.mrb[176].mxu1  ;;  %v8313_v15 = vmax.f32 %v8249_v60, 0.0  ;;  %v7698_v36 = vsel %vm2907_vm6, %v7666_v50, %v7243_v32  ;;  %v16729_v32 = vld [vmem:[#allocation23_spill] sm:$0xff]  ;;  %p10020_p4 = por %p10019_p3, %p10018_p2 }
 0x673   : > { %v8314_v54 = vmax.f32 %v8250_v57, 0.0  ;;  %v15313_v35 = vadd.f32 %v6289_v3, %v14284_v61  ;;  %v6291_v56 = vpop.f32.mrb[177].mxu1  ;;  %v16728_v61 = vld [vmem:[#allocation24_spill] sm:$0xff]  ;;  %v8735_v7 = vsel %vm432_vm0, %v16729_v32, 0.0 }
 0x674   : > { %v7355_v37 = vpop.permute.xlu1 %7354  ;;  %v6893_v53 = vpop.permute.xlu0 %6892  ;;  %v8733_v5 = vsel %vm432_vm0, %v16728_v61, 0.0  ;;  %p10021_p7 = pnand %p10020_p4, %p10014_p12 }
 0x675   : > { %8535 = vmatprep.mubr.f32.mxu1 %v8314_v54  ;;  %v7730_v38 = vsel %vm2940_vm7, %v7698_v36, %v7355_v37  ;;  %v8734_v12 = vadd.f32 %v8733_v5, %v8732_v43  ;;  %v7539_v43 = vsel %vm432_vm0, %v15009_v30, %v6653_v26 }
 0x676   : > { %8536 = vmatmul.mubr.f32.gmra.mrb[206].mxu1 %v8313_v15  ;;  %v8737_v15 = vsel %vm432_vm0, %v16730_v49, 0.0  ;;  %v7571_v5 = vsel %vm2775_vm2, %v7539_v43, %v6765_v16  ;;  %v16734_v43 = vld [vmem:[#allocation101_spill] sm:$0xff] }
 0x677   : > { %v8736_v13 = vadd.f32 %v8735_v7, %v8734_v12  ;;  %v16732_v12 = vld [vmem:[#allocation25_spill] sm:$0xff]  ;;  %v7603_v32 = vsel %vm2808_vm3, %v7571_v5, %v6893_v53 }
 0x678   : > { %v7467_v47 = vpop.permute.xlu1 %7466  ;;  %v7005_v22 = vpop.permute.xlu0 %7004 }
 0x679   : > { %v7762_v58 = vsel %vm2973_vm8, %v7730_v38, %v7467_v47  ;;  %v8738_v61 = vadd.f32 %v8737_v15, %v8736_v13  ;;  %v16731_v47 = vld [vmem:[#allocation229_spill] sm:$0xff]  ;;  %v16733_v13 = vld [vmem:[#allocation28_spill] sm:$0xff] }
 0x67a   : > { %v6294_v60 = vpop.f32.mrb[178].mxu1  ;;  %9499 = vmatmul.mubr.msk.f32.gmra.mrb[246].mxu0 %vm3016_vm9, %v7762_v58 }
 0x67b   : > { %v15327_v57 = vadd.f32 %v6294_v60, %v14307_v14  ;;  %v6296_v24 = vpop.f32.mrb[179].mxu1  ;;  %8096 = vmatprep.mubr.f32.mxu0 %v16047_v34 }
 0x67c   : > { %v7117_v3 = vpop.permute.xlu1 %7116  ;;  %v6655_v20 = vpop.permute.xlu0 %6654  ;;  %v8739_v24 = vsel %vm432_vm0, %v16732_v12, 0.0 }
 0x67d   : > { %v8014_v48 = vpop.f32.mrb[220].mxu0  ;;  %v8740_v26 = vadd.f32 %v8739_v24, %v8738_v61 }
 0x67e   : > { %v8174_v54 = vmul.f32 %v14937_v41, %v8014_v48  ;;  %v8016_v56 = vpop.f32.mrb[221].mxu0 }
 0x67f   : > { %v8175_v42 = vmul.f32 %v14943_v27, %v8016_v56  ;;  %v7635_v56 = vsel %vm2841_vm4, %v7603_v32, %v7005_v22  ;;  %v6403_v32 = vld [vmem:[#allocation2 + $0x1a0] sm:$0xff] }
 0x680   : > { %v8251_v14 = vadd.f32 %v14949_v44, %v8174_v54  ;;  %v7245_v37 = vpop.permute.xlu1 %7244  ;;  %v6767_v63 = vpop.permute.xlu0 %6766  ;;  %v7667_v30 = vsel %vm2874_vm5, %v7635_v56, %v7117_v3 }
 0x681   : > { %v8252_v50 = vadd.f32 %v14953_v9, %v8175_v42  ;;  %v7699_v16 = vsel %vm2907_vm6, %v7667_v30, %v7245_v37  ;;  %v8741_v42 = vsel %vm432_vm0, %v16733_v13, 0.0  ;;  %v16735_v37 = vld [vmem:[#allocation27_spill] sm:$0xff] }
 0x682   : > { %v6299_v36 = vpop.f32.mrb[180].mxu1  ;;  %v8315_v7 = vmax.f32 %v8251_v14, 0.0  ;;  %v8742_v22 = vadd.f32 %v8741_v42, %v8740_v26  ;;  %v8743_v61 = vsel %vm432_vm0, %v16735_v37, 0.0  ;;  %v7540_v42 = vsel %vm432_vm0, %v6403_v32, %v6655_v20 }
 0x683   : > { %v8316_v38 = vmax.f32 %v8252_v50, 0.0  ;;  %v15342_v58 = vadd.f32 %v6299_v36, %v16731_v47  ;;  %v6301_v60 = vpop.f32.mrb[181].mxu1 }
 0x684   : > { %v7357_v48 = vpop.permute.xlu1 %7356  ;;  %v6895_v54 = vpop.permute.xlu0 %6894  ;;  %v8744_v24 = vadd.f32 %v8743_v61, %v8742_v22 }
 0x685   : > { %8540 = vmatprep.mubr.f32.mxu1 %v8316_v38  ;;  %v7731_v49 = vsel %vm2940_vm7, %v7699_v16, %v7357_v48  ;;  %v16736_v48 = vld [vmem:[#allocation30_spill] sm:$0xff] }
 0x686   : > { %8541 = vmatmul.mubr.f32.gmra.mrb[208].mxu1 %v8315_v7  ;;  %v8745_v56 = vsel %vm432_vm0, %v16736_v48, 0.0 }
 0x688   : > { %v7469_v15 = vpop.permute.xlu1 %7468  ;;  %v7007_v50 = vpop.permute.xlu0 %7006 }
 0x689   : > { %v7763_v53 = vsel %vm2973_vm8, %v7731_v49, %v7469_v15  ;;  %v8746_v49 = vadd.f32 %v8745_v56, %v8744_v24  ;;  %v7572_v15 = vsel %vm2775_vm2, %v7540_v42, %v6767_v63  ;;  %v16738_v24 = vld [vmem:[#allocation32_spill] sm:$0xff] }
 0x68a   : > { %v6304_v14 = vpop.f32.mrb[182].mxu1  ;;  %9500 = vmatmul.mubr.msk.f32.gmra.mrb[248].mxu0 %vm3016_vm9, %v7763_v53  ;;  %v8749_v63 = vsel %vm432_vm0, %v16738_v24, 0.0 }
 0x68b   : > { %v15356_v36 = vadd.f32 %v6304_v14, %v16734_v43  ;;  %v6306_v3 = vpop.f32.mrb[183].mxu1  ;;  %8102 = vmatprep.mubr.f32.mxu0 %v16047_v34  ;;  %v16737_v14 = vld [vmem:[#allocation29_spill] sm:$0xff]  ;;  %v7604_v43 = vsel %vm2808_vm3, %v7572_v15, %v6895_v54 }
 0x68c   : > { %v7119_v5 = vpop.permute.xlu1 %7118  ;;  %v6657_v38 = vpop.permute.xlu0 %6656  ;;  %v8747_v22 = vsel %vm432_vm0, %v16737_v14, 0.0 }
 0x68d   : > { %v8020_v47 = vpop.f32.mrb[222].mxu0 }
 0x68e   : > { %v8176_v60 = vmul.f32 %v14937_v41, %v8020_v47  ;;  %v8022_v12 = vpop.f32.mrb[223].mxu0  ;;  %v7636_v47 = vsel %vm2841_vm4, %v7604_v43, %v7007_v50 }
 0x68f   : > { %v8177_v7 = vmul.f32 %v14943_v27, %v8022_v12  ;;  %v8748_v12 = vadd.f32 %v8747_v22, %v8746_v49 }
 0x690   : > { %v8253_v30 = vadd.f32 %v14949_v44, %v8176_v60  ;;  %v7247_v26 = vpop.permute.xlu1 %7246  ;;  %v6769_v16 = vpop.permute.xlu0 %6768  ;;  %v7668_v60 = vsel %vm2874_vm5, %v7636_v47, %v7119_v5 }
 0x691   : > { %v8254_v13 = vadd.f32 %v14953_v9, %v8177_v7  ;;  %v7700_v20 = vsel %vm2907_vm6, %v7668_v60, %v7247_v26  ;;  %v8750_v5 = vadd.f32 %v8749_v63, %v8748_v12  ;;  %v16740_v26 = vld [vmem:[#allocation31_spill] sm:$0xff]  ;;  %v7541_v63 = vsel %vm432_vm0, %v15075_v45, %v6657_v38  ;;  %v16743_v38 = vld [vmem:[#allocation36_spill] sm:$0xff] }
 0x692   : > { %v8317_v3 = vmax.f32 %v8253_v30, 0.0  ;;  %v16739_v30 = vld [vmem:[#allocation94_spill] sm:$0xff]  ;;  %v8751_v42 = vsel %vm432_vm0, %v16740_v26, 0.0 }
 0x693   : > { %v8318_v53 = vmax.f32 %v8254_v13, 0.0  ;;  %v8752_v43 = vadd.f32 %v8751_v42, %v8750_v5 }
 0x694   : > { %v7359_v37 = vpop.permute.xlu1 %7358  ;;  %v6897_v61 = vpop.permute.xlu0 %6896 }
 0x695   : > { %8545 = vmatprep.mubr.f32.mxu1 %v8318_v53  ;;  %v7732_v32 = vsel %vm2940_vm7, %v7700_v20, %v7359_v37  ;;  %v16741_v37 = vld [vmem:[#allocation34_spill] sm:$0xff] }
 0x696   : > { %8546 = vmatmul.mubr.f32.gmra.mrb[210].mxu1 %v8317_v3  ;;  %v8753_v47 = vsel %vm432_vm0, %v16741_v37, 0.0 }
 0x698   : > { %v7471_v7 = vpop.permute.xlu1 %7470  ;;  %v7009_v48 = vpop.permute.xlu0 %7008 }
 0x699   : > { %v7764_v54 = vsel %vm2973_vm8, %v7732_v32, %v7471_v7  ;;  %v6309_v56 = vpop.f32.mrb[184].mxu1  ;;  %v8754_v32 = vadd.f32 %v8753_v47, %v8752_v43  ;;  %v7573_v7 = vsel %vm2775_vm2, %v7541_v63, %v6769_v16  ;;  %v8757_v16 = vsel %vm432_vm0, %v16743_v38, 0.0 }
 0x69a   : > { %v15380_v13 = vadd.f32 %v6309_v56, %v16739_v30  ;;  %v6311_v50 = vpop.f32.mrb[185].mxu1  ;;  %9501 = vmatmul.mubr.msk.f32.gmra.mrb[250].mxu0 %vm3016_vm9, %v7764_v54  ;;  %v16742_v56 = vld [vmem:[#allocation33_spill] sm:$0xff] }
 0x69b   : > { %8108 = vmatprep.mubr.f32.mxu0 %v16047_v34  ;;  %v8755_v30 = vsel %vm432_vm0, %v16742_v56, 0.0  ;;  %v7605_v50 = vsel %vm2808_vm3, %v7573_v7, %v6897_v61 }
 0x69c   : > { %v7121_v49 = vpop.permute.xlu1 %7120  ;;  %v6659_v15 = vpop.permute.xlu0 %6658 }
 0x69d   : > { %v8026_v53 = vpop.f32.mrb[224].mxu0 }
 0x69e   : > { %v8178_v14 = vmul.f32 %v14937_v41, %v8026_v53  ;;  %v8028_v22 = vpop.f32.mrb[225].mxu0  ;;  %v7637_v53 = vsel %vm2841_vm4, %v7605_v50, %v7009_v48  ;;  %v6405_v50 = vld [vmem:[#allocation2 + $0x1c0] sm:$0xff] }
 0x69f   : > { %v8179_v3 = vmul.f32 %v14943_v27, %v8028_v22  ;;  %v8756_v22 = vadd.f32 %v8755_v30, %v8754_v32  ;;  %v7542_v38 = vsel %vm432_vm0, %v6405_v50, %v6659_v15 }
 0x6a0   : > { %v8255_v60 = vadd.f32 %v14949_v44, %v8178_v14  ;;  %v7249_v12 = vpop.permute.xlu1 %7248  ;;  %v6771_v20 = vpop.permute.xlu0 %6770  ;;  %v7669_v14 = vsel %vm2874_vm5, %v7637_v53, %v7121_v49 }
 0x6a1   : > { %v8256_v24 = vadd.f32 %v14953_v9, %v8179_v3  ;;  %v7701_v45 = vsel %vm2907_vm6, %v7669_v14, %v7249_v12  ;;  %v8758_v49 = vadd.f32 %v8757_v16, %v8756_v22  ;;  %v16744_v12 = vld [vmem:[#allocation35_spill] sm:$0xff] }
 0x6a2   : > { %v8319_v5 = vmax.f32 %v8255_v60, 0.0 }
 0x6a3   : > { %v8320_v54 = vmax.f32 %v8256_v24, 0.0  ;;  %v8759_v24 = vsel %vm432_vm0, %v16744_v12, 0.0 }
 0x6a4   : > { %v7361_v26 = vpop.permute.xlu1 %7360  ;;  %v6899_v42 = vpop.permute.xlu0 %6898  ;;  %v8760_v30 = vadd.f32 %v8759_v24, %v8758_v49 }
 0x6a5   : > { %8550 = vmatprep.mubr.f32.mxu1 %v8320_v54  ;;  %v7733_v43 = vsel %vm2940_vm7, %v7701_v45, %v7361_v26 }
 0x6a6   : > { %8551 = vmatmul.mubr.f32.gmra.mrb[212].mxu1 %v8319_v5  ;;  %v16745_v5 = vld [vmem:[#allocation38_spill] sm:$0xff] }
 0x6a7   : > { %v8761_v26 = vsel %vm432_vm0, %v16745_v5, 0.0 }
 0x6a8   : > { %v7473_v3 = vpop.permute.xlu1 %7472  ;;  %v7011_v37 = vpop.permute.xlu0 %7010  ;;  %v8762_v16 = vadd.f32 %v8761_v26, %v8760_v30  ;;  %v16747_v30 = vld [vmem:[#allocation39_spill] sm:$0xff] }
 0x6a9   : > { %v7765_v61 = vsel %vm2973_vm8, %v7733_v43, %v7473_v3  ;;  %v8487_v47 = vpop.f32.mrb[186].mxu1  ;;  %v7574_v43 = vsel %vm2775_vm2, %v7542_v38, %v6771_v20  ;;  %v8765_v20 = vsel %vm432_vm0, %v16747_v30, 0.0 }
 0x6aa   : > { %v15406_v60 = vadd.f32 %v8487_v47, %v14828_v11  ;;  %9502 = vmatmul.mubr.msk.f32.gmra.mrb[252].mxu0 %vm3016_vm9, %v7765_v61  ;;  %v8489_v48 = vpop.f32.mrb[187].mxu1  ;;  %v16746_v61 = vld [vmem:[#allocation37_spill] sm:$0xff] }
 0x6ab   : > { %8114 = vmatprep.mubr.f32.mxu0 %v16047_v34  ;;  %v8763_v47 = vsel %vm432_vm0, %v16746_v61, 0.0  ;;  %v7606_v48 = vsel %vm2808_vm3, %v7574_v43, %v6899_v42 }
 0x6ac   : > { %v7123_v63 = vpop.permute.xlu1 %7122  ;;  %v6661_v32 = vpop.permute.xlu0 %6660 }
 0x6ad   : > { %v8032_v7 = vpop.f32.mrb[226].mxu0 }
 0x6ae   : > { %v8180_v54 = vmul.f32 %v14937_v41, %v8032_v7  ;;  %v8034_v56 = vpop.f32.mrb[227].mxu0  ;;  %v7638_v7 = vsel %vm2841_vm4, %v7606_v48, %v7011_v37 }
 0x6af   : > { %v8181_v11 = vmul.f32 %v14943_v27, %v8034_v56  ;;  %v8764_v56 = vadd.f32 %v8763_v47, %v8762_v16 }
 0x6b0   : > { %v8257_v53 = vadd.f32 %v14949_v44, %v8180_v54  ;;  %v7251_v14 = vpop.permute.xlu1 %7250  ;;  %v6773_v22 = vpop.permute.xlu0 %6772  ;;  %v7670_v54 = vsel %vm2874_vm5, %v7638_v7, %v7123_v63 }
 0x6b1   : > { %v8258_v45 = vadd.f32 %v14953_v9, %v8181_v11  ;;  %v7702_v15 = vsel %vm2907_vm6, %v7670_v54, %v7251_v14  ;;  %v8766_v63 = vadd.f32 %v8765_v20, %v8764_v56  ;;  %v16748_v14 = vld [vmem:[#allocation40_spill] sm:$0xff] }
 0x6b2   : > { %v8321_v49 = vmax.f32 %v8257_v53, 0.0 }
 0x6b3   : > { %v8322_v3 = vmax.f32 %v8258_v45, 0.0  ;;  %v8767_v45 = vsel %vm432_vm0, %v16748_v14, 0.0 }
 0x6b4   : > { %v7363_v12 = vpop.permute.xlu1 %7362  ;;  %v6901_v24 = vpop.permute.xlu0 %6900  ;;  %v8768_v47 = vadd.f32 %v8767_v45, %v8766_v63 }
 0x6b5   : > { %8555 = vmatprep.mubr.f32.mxu1 %v8322_v3  ;;  %v7734_v50 = vsel %vm2940_vm7, %v7702_v15, %v7363_v12  ;;  %v7543_v15 = vsel %vm432_vm0, %v15138_v55, %v6661_v32 }
 0x6b6   : > { %8556 = vmatmul.mubr.f32.gmra.mrb[214].mxu1 %v8321_v49  ;;  %v7575_v20 = vsel %vm2775_vm2, %v7543_v15, %v6773_v22  ;;  %v6407_v15 = vld [vmem:[#allocation2 + $0x1e0] sm:$0xff] }
 0x6b8   : > { %v7475_v11 = vpop.permute.xlu1 %7474  ;;  %v7013_v5 = vpop.permute.xlu0 %7012 }
 0x6b9   : > { %v7766_v42 = vsel %vm2973_vm8, %v7734_v50, %v7475_v11  ;;  %v8492_v26 = vpop.f32.mrb[188].mxu1  ;;  %v16750_v11 = vld [vmem:[#allocation42_spill] sm:$0xff] }
 0x6ba   : > { %v15431_v53 = vadd.f32 %v8492_v26, %v14848_v21  ;;  %9503 = vmatmul.mubr.msk.f32.gmra.mrb[254].mxu0 %vm3016_vm9, %v7766_v42  ;;  %v8494_v37 = vpop.f32.mrb[189].mxu1  ;;  %v16749_v21 = vld [vmem:[#allocation41_spill] sm:$0xff]  ;;  %v8771_v42 = vsel %vm432_vm0, %v16750_v11, 0.0  ;;  %v7607_v26 = vsel %vm2808_vm3, %v7575_v20, %v6901_v24 }
 0x6bb   : > { %8120 = vmatprep.mubr.f32.mxu0 %v16047_v34  ;;  %v8769_v49 = vsel %vm432_vm0, %v16749_v21, 0.0  ;;  %v7639_v45 = vsel %vm2841_vm4, %v7607_v26, %v7013_v5 }
 0x6bc   : > { %v7125_v38 = vpop.permute.xlu1 %7124  ;;  %v6663_v16 = vpop.permute.xlu0 %6662  ;;  %v8770_v30 = vadd.f32 %v8769_v49, %v8768_v47 }
 0x6bd   : > { %v8038_v43 = vpop.f32.mrb[228].mxu0  ;;  %v7544_v26 = vsel %vm432_vm0, %v6407_v15, %v6663_v16 }
 0x6be   : > { %v8182_v3 = vmul.f32 %v14937_v41, %v8038_v43  ;;  %v8040_v61 = vpop.f32.mrb[229].mxu0  ;;  %v7671_v43 = vsel %vm2874_vm5, %v7639_v45, %v7125_v38  ;;  %v8772_v32 = vadd.f32 %v8771_v42, %v8770_v30 }
 0x6bf   : > { %v8183_v48 = vmul.f32 %v14943_v27, %v8040_v61 }
 0x6c0   : > { %v8259_v12 = vadd.f32 %v14949_v44, %v8182_v3  ;;  %v7253_v7 = vpop.permute.xlu1 %7252  ;;  %v6775_v54 = vpop.permute.xlu0 %6774  ;;  %v8773_v38 = vrot.slane %v8772_v32, 4 }
 0x6c1   : > { %v8260_v56 = vadd.f32 %v14953_v9, %v8183_v48  ;;  %v7703_v55 = vsel %vm2907_vm6, %v7671_v43, %v7253_v7 }
 0x6c2   : > { %v8323_v37 = vmax.f32 %v8259_v12, 0.0  ;;  %v8774_v20 = vadd.f32 %v8773_v38, %v8772_v32 }
 0x6c3   : > { %v8324_v50 = vmax.f32 %v8260_v56, 0.0 }
 0x6c4   : > { %v7365_v63 = vpop.permute.xlu1 %7364  ;;  %v6903_v14 = vpop.permute.xlu0 %6902  ;;  %v8775_v45 = vrot.slane %v8774_v20, 2 }
 0x6c5   : > { %8560 = vmatprep.mubr.f32.mxu1 %v8324_v50  ;;  %v7735_v22 = vsel %vm2940_vm7, %v7703_v55, %v7365_v63 }
 0x6c6   : > { %8561 = vmatmul.mubr.f32.gmra.mrb[216].mxu1 %v8323_v37  ;;  %v7576_v37 = vsel %vm2775_vm2, %v7544_v26, %v6775_v54 }
 0x6c7   : > { %v7608_v43 = vsel %vm2808_vm3, %v7576_v37, %v6903_v14 }
 0x6c8   : > { %v7477_v3 = vpop.permute.xlu1 %7476  ;;  %v7015_v61 = vpop.permute.xlu0 %7014 }
 0x6c9   : > { %v7767_v47 = vsel %vm2973_vm8, %v7735_v22, %v7477_v3  ;;  %v8497_v48 = vpop.f32.mrb[190].mxu1 }
 0x6ca   : > { %v15455_v24 = vadd.f32 %v8497_v48, %v14863_v46  ;;  %9504 = vmatmul.mubr.msk.f32.gmra.mrb[0].mxu0 %vm3016_vm9, %v7767_v47  ;;  %v8499_v5 = vpop.f32.mrb[191].mxu1  ;;  %v7640_v47 = vsel %vm2841_vm4, %v7608_v43, %v7015_v61 }
 0x6cb   : > { %8126 = vmatprep.mubr.f32.mxu0 %v16047_v34  ;;  %v8776_v5 = vadd.f32 %v8775_v45, %v8774_v20 }
 0x6cc   : > { %v7127_v21 = vpop.permute.xlu1 %7126  ;;  %v6665_v49 = vpop.permute.xlu0 %6664 }
 0x6cd   : > { %v8044_v12 = vpop.f32.mrb[230].mxu0  ;;  %v7672_v32 = vsel %vm2874_vm5, %v7640_v47, %v7127_v21 }
 0x6ce   : > { %v8184_v7 = vmul.f32 %v14937_v41, %v8044_v12  ;;  %v8046_v56 = vpop.f32.mrb[231].mxu0  ;;  %v7545_v12 = vsel %vm432_vm0, %v15203_v6, %v6665_v49 }
 0x6cf   : > { %v8185_v30 = vmul.f32 %v14943_v27, %v8046_v56 }
 0x6d0   : > { %v8261_v50 = vadd.f32 %v14949_v44, %v8184_v7  ;;  %v7255_v46 = vpop.permute.xlu1 %7254  ;;  %v6777_v11 = vpop.permute.xlu0 %6776 }
 0x6d1   : > { %v8262_v42 = vadd.f32 %v14953_v9, %v8185_v30  ;;  %v7704_v48 = vsel %vm2907_vm6, %v7672_v32, %v7255_v46  ;;  %v7577_v56 = vsel %vm2775_vm2, %v7545_v12, %v6777_v11  ;;  %v8777_v30 = vrot.slane %v8776_v5, 1 }
 0x6d2   : > { %v8325_v55 = vmax.f32 %v8261_v50, 0.0 }
 0x6d3   : > { %v8326_v63 = vmax.f32 %v8262_v42, 0.0  ;;  %v8778_v26 = vadd.f32 %v8777_v30, %v8776_v5 }
 0x6d4   : > { %v7367_v22 = vpop.permute.xlu1 %7366  ;;  %v6905_v3 = vpop.permute.xlu0 %6904 }
 0x6d5   : > { %8565 = vmatprep.mubr.f32.mxu1 %v8326_v63  ;;  %v7736_v16 = vsel %vm2940_vm7, %v7704_v48, %v7367_v22  ;;  %v7609_v15 = vsel %vm2808_vm3, %v7577_v56, %v6905_v3  ;;  %v8780_v32 = vmul.f32 0.00390625, %v8778_v26 }
 0x6d6   : > { %8566 = vmatmul.mubr.f32.gmra.mrb[218].mxu1 %v8325_v55 }
 0x6d8   : > { %v7479_v38 = vpop.permute.xlu1 %7478  ;;  %v7017_v54 = vpop.permute.xlu0 %7016 }
 0x6d9   : > { %v7768_v14 = vsel %vm2973_vm8, %v7736_v16, %v7479_v38  ;;  %v8502_v7 = vpop.f32.mrb[192].mxu1  ;;  %v7641_v20 = vsel %vm2841_vm4, %v7609_v15, %v7017_v54 }
 0x6da   : > { %v15475_v61 = vadd.f32 %v8502_v7, %v14881_v8  ;;  %9505 = vmatmul.mubr.msk.f32.gmra.mrb[2].mxu0 %vm3016_vm9, %v7768_v14  ;;  %v8504_v21 = vpop.f32.mrb[193].mxu1 }
 0x6db   : > { %8132 = vmatprep.mubr.f32.mxu0 %v16047_v34 }
 0x6dc   : > { %v7129_v50 = vpop.permute.xlu0 %7128  ;;  %v7257_v6 = vpop.permute.xlu1 %7256 }
 0x6dd   : > { %v7673_v49 = vsel %vm2874_vm5, %v7641_v20, %v7129_v50  ;;  %v8050_v46 = vpop.f32.mrb[232].mxu0 }
 0x6de   : > { %v8186_v11 = vmul.f32 %v14937_v41, %v8050_v46  ;;  %v8052_v42 = vpop.f32.mrb[233].mxu0  ;;  %v7705_v37 = vsel %vm2907_vm6, %v7673_v49, %v7257_v6 }
 0x6df   : > { %v8187_v8 = vmul.f32 %v14943_v27, %v8052_v42 }
 0x6e0   : > { %v8263_v63 = vadd.f32 %v14949_v44, %v8186_v11  ;;  %v7369_v45 = vpop.permute.xlu0 %7368  ;;  %v7481_v43 = vpop.permute.xlu1 %7480 }
 0x6e1   : > { %v8264_v55 = vadd.f32 %v14953_v9, %v8187_v8  ;;  %v7737_v22 = vsel %vm2940_vm7, %v7705_v37, %v7369_v45 }
 0x6e2   : > { %v7769_v3 = vsel %vm2973_vm8, %v7737_v22, %v7481_v43  ;;  %v8327_v48 = vmax.f32 %v8263_v63, 0.0 }
 0x6e3   : > { %v8328_v47 = vmax.f32 %v8264_v55, 0.0  ;;  %9506 = vmatmul.mubr.msk.f32.gmra.mrb[4].mxu0 %vm3016_vm9, %v7769_v3 }
 0x6e4   : > { %8855 = vmatprep.mubr.f32.mxu0 %v16047_v34 }
 0x6e5   : > { %8570 = vmatprep.mubr.f32.mxu1 %v8328_v47 }
 0x6e6   : > { %8571 = vmatmul.mubr.f32.gmra.mrb[220].mxu1 %v8327_v48 }
 0x6e7   : > { %9511 = vmatmul.mubr.msk.f32.vlgmr.msra.gmra.mrb[6].mxu0 %vm432_vm0, %v8780_v32 }
 0x6e9   : > { %v8507_v5 = vpop.f32.mrb[194].mxu1 }
 0x6ea   : > { %v15493_v16 = vadd.f32 %v8507_v5, %v14895_v23  ;;  %v8509_v38 = vpop.f32.mrb[195].mxu1 }
 0x6ed   : > { %v8056_v54 = vpop.f32.mrb[234].mxu0 }
 0x6ee   : > { %v8188_v12 = vmul.f32 %v14937_v41, %v8056_v54  ;;  %v8058_v14 = vpop.f32.mrb[235].mxu0 }
 0x6ef   : > { %v8189_v7 = vmul.f32 %v14943_v27, %v8058_v14 }
 0x6f0   : > { %v8265_v56 = vadd.f32 %v14949_v44, %v8188_v12 }
 0x6f1   : > { %v8266_v21 = vadd.f32 %v14953_v9, %v8189_v7 }
 0x6f2   : > { %v8329_v15 = vmax.f32 %v8265_v56, 0.0 }
 0x6f3   : > { %v8330_v34 = vmax.f32 %v8266_v21, 0.0 }
 0x6f5   : > { %8575 = vmatprep.mubr.f32.mxu1 %v8330_v34  ;;  %v8942_v34 = vld [vmem:[#allocation4 + $0x480] sm:$0xff] }
 0x6f6   : > { %8576 = vmatmul.mubr.f32.gmra.mrb[222].mxu1 %v8329_v15  ;;  %v8943_v15 = vld [vmem:[#allocation4 + $0x488] sm:$0xff] }
 0x6f9   : > { %v8512_v30 = vpop.f32.mrb[196].mxu1 }
 0x6fa   : > { %v15500_v20 = vadd.f32 %v8512_v30, %v14914_v40  ;;  %v8514_v23 = vpop.f32.mrb[197].mxu1  ;;  %v9774_v30 = vpack.c.bf16 %v8943_v15, %v8942_v34 }
 0x6fb   : > { %v8926_v23 = vld [vmem:[#allocation4 + $0x400] sm:$0xff] }
 0x6fc   : > { %9775 = vmatprep.subr.bf16.mxu0 %v9774_v30 }
 0x6fd   : > { %v8062_v50 = vpop.f32.mrb[236].mxu0 }
 0x6fe   : > { %v8190_v6 = vmul.f32 %v14937_v41, %v8062_v50  ;;  %v8064_v49 = vpop.f32.mrb[237].mxu0  ;;  %v8927_v50 = vld [vmem:[#allocation4 + $0x408] sm:$0xff] }
 0x6ff   : > { %v8191_v46 = vmul.f32 %v14943_v27, %v8064_v49  ;;  %v9776_v49 = vpack.c.bf16 %v8927_v50, %v8926_v23  ;;  %v8950_v23 = vld [vmem:[#allocation4 + $0x4c0] sm:$0xff]  ;;  %v8951_v50 = vld [vmem:[#allocation4 + $0x4c8] sm:$0xff] }
 0x700   : > { %v8267_v11 = vadd.f32 %v14949_v44, %v8190_v6 }
 0x701   : > { %v8268_v42 = vadd.f32 %v14953_v9, %v8191_v46  ;;  %9777 = vmatpush3.bf16.msra.mxu0 %v9776_v49  ;;  %v8944_v46 = vld [vmem:[#allocation4 + $0x490] sm:$0xff]  ;;  %v8934_v49 = vld [vmem:[#allocation4 + $0x440] sm:$0xff] }
 0x702   : > { %v8331_v26 = vmax.f32 %v8267_v11, 0.0  ;;  %v8945_v11 = vld [vmem:[#allocation4 + $0x498] sm:$0xff] }
 0x703   : > { %v8332_v8 = vmax.f32 %v8268_v42, 0.0  ;;  %v9778_v42 = vpack.c.bf16 %v8945_v11, %v8944_v46 }
 0x705   : > { %8580 = vmatprep.mubr.f32.mxu1 %v8332_v8  ;;  %v8928_v8 = vld [vmem:[#allocation4 + $0x410] sm:$0xff]  ;;  %9779 = vmatprep.subr.bf16.mxu0 %v9778_v42 }
 0x706   : > { %8581 = vmatmul.mubr.f32.gmra.mrb[224].mxu1 %v8331_v26  ;;  %v8929_v26 = vld [vmem:[#allocation4 + $0x418] sm:$0xff] }
 0x709   : > { %v8517_v37 = vpop.f32.mrb[198].mxu1 }
 0x70a   : > { %v15507_v63 = vadd.f32 %v8517_v37, %v14940_v51  ;;  %v8519_v40 = vpop.f32.mrb[199].mxu1  ;;  %v9780_v37 = vpack.c.bf16 %v8929_v26, %v8928_v8  ;;  %v8952_v8 = vld [vmem:[#allocation4 + $0x4d0] sm:$0xff]  ;;  %v8953_v26 = vld [vmem:[#allocation4 + $0x4d8] sm:$0xff] }
 0x70c   : > { %9781 = vmatpush3.bf16.msra.mxu0 %v9780_v37  ;;  %v9794_v37 = vpack.c.bf16 %v8953_v26, %v8952_v8 }
 0x70d   : > { %v8068_v45 = vpop.f32.mrb[238].mxu0 }
 0x70e   : > { %v8192_v43 = vmul.f32 %v14937_v41, %v8068_v45  ;;  %v8070_v55 = vpop.f32.mrb[239].mxu0  ;;  %v8946_v45 = vld [vmem:[#allocation4 + $0x4a0] sm:$0xff] }
 0x70f   : > { %v8193_v22 = vmul.f32 %v14943_v27, %v8070_v55 }
 0x710   : > { %v8269_v3 = vadd.f32 %v14949_v44, %v8192_v43  ;;  %v8947_v43 = vld [vmem:[#allocation4 + $0x4a8] sm:$0xff] }
 0x711   : > { %v8270_v47 = vadd.f32 %v14953_v9, %v8193_v22 }
 0x712   : > { %v8333_v48 = vmax.f32 %v8269_v3, 0.0  ;;  %v9782_v3 = vpack.c.bf16 %v8947_v43, %v8946_v45  ;;  %v8937_v45 = vld [vmem:[#allocation4 + $0x458] sm:$0xff] }
 0x713   : > { %v8334_v32 = vmax.f32 %v8270_v47, 0.0  ;;  %v8930_v47 = vld [vmem:[#allocation4 + $0x420] sm:$0xff] }
 0x714   : > { %9783 = vmatprep.subr.bf16.mxu0 %v9782_v3  ;;  %v8954_v3 = vld [vmem:[#allocation4 + $0x4e0] sm:$0xff] }
 0x715   : > { %8585 = vmatprep.mubr.f32.mxu1 %v8334_v32  ;;  %v8931_v32 = vld [vmem:[#allocation4 + $0x428] sm:$0xff] }
 0x716   : > { %8586 = vmatmul.mubr.f32.gmra.mrb[226].mxu1 %v8333_v48  ;;  %v9784_v48 = vpack.c.bf16 %v8931_v32, %v8930_v47  ;;  %v8955_v47 = vld [vmem:[#allocation4 + $0x4e8] sm:$0xff] }
 0x718   : > { %9785 = vmatpush3.bf16.msra.mxu0 %v9784_v48 }
 0x719   : > { %v8522_v5 = vpop.f32.mrb[200].mxu1 }
 0x71a   : > { %v15514_v38 = vadd.f32 %v8522_v5, %v14967_v39  ;;  %v8524_v51 = vpop.f32.mrb[201].mxu1 }
 0x71b   : > { %v8948_v51 = vld [vmem:[#allocation4 + $0x4b0] sm:$0xff] }
 0x71d   : > { %v8074_v54 = vpop.f32.mrb[240].mxu0 }
 0x71e   : > { %v8194_v12 = vmul.f32 %v14937_v41, %v8074_v54  ;;  %v8076_v14 = vpop.f32.mrb[241].mxu0  ;;  %v8949_v54 = vld [vmem:[#allocation4 + $0x4b8] sm:$0xff] }
 0x71f   : > { %v8195_v7 = vmul.f32 %v14943_v27, %v8076_v14 }
 0x720   : > { %v8271_v56 = vadd.f32 %v14949_v44, %v8194_v12 }
 0x721   : > { %v8272_v21 = vadd.f32 %v14953_v9, %v8195_v7  ;;  %v9786_v7 = vpack.c.bf16 %v8949_v54, %v8948_v51  ;;  %v8938_v51 = vld [vmem:[#allocation4 + $0x460] sm:$0xff]  ;;  %v8939_v54 = vld [vmem:[#allocation4 + $0x468] sm:$0xff] }
 0x722   : > { %v8335_v39 = vmax.f32 %v8271_v56, 0.0  ;;  %v8932_v56 = vld [vmem:[#allocation4 + $0x430] sm:$0xff] }
 0x723   : > { %v8336_v6 = vmax.f32 %v8272_v21, 0.0  ;;  %v8933_v21 = vld [vmem:[#allocation4 + $0x438] sm:$0xff]  ;;  %9787 = vmatprep.subr.bf16.mxu0 %v9786_v7  ;;  %v8956_v7 = vld [vmem:[#allocation4 + $0x4f0] sm:$0xff] }
 0x725   : > { %8590 = vmatprep.mubr.f32.mxu1 %v8336_v6  ;;  %v9790_v6 = vpack.c.bf16 %v8951_v50, %v8950_v23 }
 0x726   : > { %8591 = vmatmul.mubr.f32.gmra.mrb[228].mxu1 %v8335_v39  ;;  %v8935_v39 = vld [vmem:[#allocation4 + $0x448] sm:$0xff] }
 0x727   : > { %v9792_v11 = vpack.c.bf16 %v8935_v39, %v8934_v49 }
 0x729   : > { %v8527_v40 = vpop.f32.mrb[202].mxu1 }
 0x72a   : > { %v15521_v55 = vadd.f32 %v8527_v40, %v14981_v2  ;;  %v8529_v22 = vpop.f32.mrb[203].mxu1  ;;  %v9788_v2 = vpack.c.bf16 %v8933_v21, %v8932_v56  ;;  %v8936_v40 = vld [vmem:[#allocation4 + $0x450] sm:$0xff]  ;;  %v8957_v56 = vld [vmem:[#allocation4 + $0x4f8] sm:$0xff] }
 0x72b   : > { %v9796_v43 = vpack.c.bf16 %v8937_v45, %v8936_v40 }
 0x72c   : > { %9789 = vmatpush3.bf16.msra.mxu0 %v9788_v2  ;;  %v9802_v2 = vpack.c.bf16 %v8957_v56, %v8956_v7 }
 0x72d   : > { %v8080_v5 = vpop.f32.mrb[242].mxu0  ;;  %9791 = vmatprep.subr.bf16.mxu0 %v9790_v6 }
 0x72e   : > { %v8196_v12 = vmul.f32 %v14937_v41, %v8080_v5  ;;  %v8082_v14 = vpop.f32.mrb[243].mxu0  ;;  %v9798_v5 = vpack.c.bf16 %v8955_v47, %v8954_v3 }
 0x72f   : > { %v8197_v34 = vmul.f32 %v14943_v27, %v8082_v14 }
 0x730   : > { %v8273_v15 = vadd.f32 %v14949_v44, %v8196_v12  ;;  %9793 = vmatpush3.bf16.msra.mxu0 %v9792_v11  ;;  %v9800_v12 = vpack.c.bf16 %v8939_v54, %v8938_v51  ;;  %v16751_v11 = vld [vmem:[#allocation181_spill] sm:$0xff] }
 0x731   : > { %v8274_v30 = vadd.f32 %v14953_v9, %v8197_v34  ;;  %9795 = vmatprep.subr.bf16.mxu0 %v9794_v37 }
 0x732   : > { %v8337_v42 = vmax.f32 %v8273_v15, 0.0  ;;  %v8940_v15 = vld [vmem:[#allocation4 + $0x470] sm:$0xff] }
 0x733   : > { %v8338_v46 = vmax.f32 %v8274_v30, 0.0  ;;  %v8941_v30 = vld [vmem:[#allocation4 + $0x478] sm:$0xff] }
 0x734   : > { %9797 = vmatpush3.bf16.msra.mxu0 %v9796_v43 }
 0x735   : > { %8595 = vmatprep.mubr.f32.mxu1 %v8338_v46  ;;  %9799 = vmatprep.subr.bf16.mxu0 %v9798_v5 }
 0x736   : > { %8596 = vmatmul.mubr.f32.gmra.mrb[230].mxu1 %v8337_v42 }
 0x738   : > { %9801 = vmatpush3.bf16.msra.mxu0 %v9800_v12 }
 0x739   : > { %v8532_v22 = vpop.f32.mrb[204].mxu1  ;;  %9803 = vmatprep.subr.bf16.mxu0 %v9802_v2 }
 0x73a   : > { %v15528_v32 = vadd.f32 %v8532_v22, %v14998_v25  ;;  %v8534_v48 = vpop.f32.mrb[205].mxu1  ;;  %v9804_v25 = vpack.c.bf16 %v8941_v30, %v8940_v15 }
 0x73c   : > { %9805 = vmatpush3.bf16.msra.mxu0 %v9804_v25 }
 0x73d   : > { %v8086_v14 = vpop.f32.mrb[244].mxu0 }
 0x73e   : > { %v8198_v21 = vmul.f32 %v14937_v41, %v8086_v14  ;;  %v8088_v34 = vpop.f32.mrb[245].mxu0 }
 0x73f   : > { %v8199_v23 = vmul.f32 %v14943_v27, %v8088_v34 }
 0x740   : > { %v8275_v50 = vadd.f32 %v14949_v44, %v8198_v21 }
 0x741   : > { %v8276_v6 = vadd.f32 %v14953_v9, %v8199_v23 }
 0x742   : > { %v8339_v39 = vmax.f32 %v8275_v50, 0.0 }
 0x743   : > { %v8340_v49 = vmax.f32 %v8276_v6, 0.0 }
 0x745   : > { %8600 = vmatprep.mubr.f32.mxu1 %v8340_v49 }
 0x746   : > { %8601 = vmatmul.mubr.f32.gmra.mrb[232].mxu1 %v8339_v39 }
 0x749   : > { %v8537_v46 = vpop.f32.mrb[206].mxu1 }
 0x74a   : > { %v15535_v42 = vadd.f32 %v8537_v46, %v16751_v11  ;;  %v8539_v8 = vpop.f32.mrb[207].mxu1 }
 0x74d   : > { %v8092_v26 = vpop.f32.mrb[246].mxu0 }
 0x74e   : > { %v8200_v37 = vmul.f32 %v14937_v41, %v8092_v26  ;;  %v8094_v40 = vpop.f32.mrb[247].mxu0 }
 0x74f   : > { %v8201_v45 = vmul.f32 %v14943_v27, %v8094_v40 }
 0x750   : > { %v8277_v43 = vadd.f32 %v14949_v44, %v8200_v37 }
 0x751   : > { %v8278_v22 = vadd.f32 %v14953_v9, %v8201_v45 }
 0x752   : > { %v8341_v47 = vmax.f32 %v8277_v43, 0.0 }
 0x753   : > { %v8342_v3 = vmax.f32 %v8278_v22, 0.0 }
 0x755   : > { %8605 = vmatprep.mubr.f32.mxu1 %v8342_v3 }
 0x756   : > { %8606 = vmatmul.mubr.f32.gmra.mrb[234].mxu1 %v8341_v47 }
 0x759   : > { %v8542_v48 = vpop.f32.mrb[208].mxu1 }
 0x75a   : > { %v15542_v5 = vadd.f32 %v8542_v48, %v15037_v28  ;;  %v8544_v51 = vpop.f32.mrb[209].mxu1 }
 0x75d   : > { %v8098_v54 = vpop.f32.mrb[248].mxu0 }
 0x75e   : > { %v8202_v12 = vmul.f32 %v14937_v41, %v8098_v54  ;;  %v8100_v14 = vpop.f32.mrb[249].mxu0 }
 0x75f   : > { %v8203_v7 = vmul.f32 %v14943_v27, %v8100_v14 }
 0x760   : > { %v8279_v56 = vadd.f32 %v14949_v44, %v8202_v12 }
 0x761   : > { %v8280_v21 = vadd.f32 %v14953_v9, %v8203_v7 }
 0x762   : > { %v8343_v2 = vmax.f32 %v8279_v56, 0.0 }
 0x763   : > { %v8344_v34 = vmax.f32 %v8280_v21, 0.0 }
 0x765   : > { %8610 = vmatprep.mubr.f32.mxu1 %v8344_v34 }
 0x766   : > { %8611 = vmatmul.mubr.f32.gmra.mrb[236].mxu1 %v8343_v2 }
 0x769   : > { %v8547_v15 = vpop.f32.mrb[210].mxu1 }
 0x76a   : > { %v15549_v30 = vadd.f32 %v8547_v15, %v15051_v29  ;;  %v8549_v28 = vpop.f32.mrb[211].mxu1 }
 0x76d   : > { %v8104_v23 = vpop.f32.mrb[250].mxu0 }
 0x76e   : > { %v8204_v25 = vmul.f32 %v14937_v41, %v8104_v23  ;;  %v8106_v50 = vpop.f32.mrb[251].mxu0 }
 0x76f   : > { %v8205_v6 = vmul.f32 %v14943_v27, %v8106_v50 }
 0x770   : > { %v8281_v49 = vadd.f32 %v14949_v44, %v8204_v25 }
 0x771   : > { %v8282_v39 = vadd.f32 %v14953_v9, %v8205_v6 }
 0x772   : > { %v8345_v11 = vmax.f32 %v8281_v49, 0.0 }
 0x773   : > { %v8346_v46 = vmax.f32 %v8282_v39, 0.0 }
 0x775   : > { %8615 = vmatprep.mubr.f32.mxu1 %v8346_v46 }
 0x776   : > { %8616 = vmatmul.mubr.f32.gmra.mrb[238].mxu1 %v8345_v11 }
 0x779   : > { %v8552_v8 = vpop.f32.mrb[212].mxu1 }
 0x77a   : > { %v15556_v26 = vadd.f32 %v8552_v8, %v15067_v17  ;;  %v8554_v29 = vpop.f32.mrb[213].mxu1 }
 0x77d   : > { %v8110_v37 = vpop.f32.mrb[252].mxu0 }
 0x77e   : > { %v8206_v40 = vmul.f32 %v14937_v41, %v8110_v37  ;;  %v8112_v45 = vpop.f32.mrb[253].mxu0 }
 0x77f   : > { %v8207_v43 = vmul.f32 %v14943_v27, %v8112_v45 }
 0x780   : > { %v8283_v22 = vadd.f32 %v14949_v44, %v8206_v40 }
 0x781   : > { %v8284_v3 = vadd.f32 %v14953_v9, %v8207_v43 }
 0x782   : > { %v8347_v48 = vmax.f32 %v8283_v22, 0.0 }
 0x783   : > { %v8348_v47 = vmax.f32 %v8284_v3, 0.0 }
 0x785   : > { %8620 = vmatprep.mubr.f32.mxu1 %v8348_v47 }
 0x786   : > { %8621 = vmatmul.mubr.f32.gmra.mrb[240].mxu1 %v8347_v48 }
 0x789   : > { %v8557_v51 = vpop.f32.mrb[214].mxu1 }
 0x78a   : > { %v15563_v54 = vadd.f32 %v8557_v51, %v15084_v10  ;;  %v8559_v17 = vpop.f32.mrb[215].mxu1 }
 0x78b   : > { %v9512_v17 = vld [vmem:[%s15787_s7 + $0x8] sm:$0x3] }
 0x78d   : > { %v8116_v12 = vpop.f32.mrb[254].mxu0 }
 0x78e   : > { %v8208_v14 = vmul.f32 %v14937_v41, %v8116_v12  ;;  %v8118_v7 = vpop.f32.mrb[255].mxu0  ;;  %v9513_v12 = vld [vmem:[%s15788_s8 + $0x8] sm:$0x3] }
 0x78f   : > { %v8209_v56 = vmul.f32 %v14943_v27, %v8118_v7 }
 0x790   : > { %v8285_v21 = vadd.f32 %v14949_v44, %v8208_v14 }
 0x791   : > { %v8286_v34 = vadd.f32 %v14953_v9, %v8209_v56  ;;  %v16752_v56 = vld [vmem:[#allocation182_spill] sm:$0xff] }
 0x792   : > { %v8349_v15 = vmax.f32 %v8285_v21, 0.0  ;;  %v8868_v21 = vrot.slane %v9512_v17, %v16752_v56 }
 0x793   : > { %v8350_v2 = vmax.f32 %v8286_v34, 0.0 }
 0x795   : > { %8625 = vmatprep.mubr.f32.mxu1 %v8350_v2  ;;  %v16753_v2 = vld [vmem:[#allocation179_spill] sm:$0xff] }
 0x796   : > { %8626 = vmatmul.mubr.f32.gmra.mrb[242].mxu1 %v8349_v15  ;;  %v8872_v15 = vrot.slane %v9512_v17, %v16753_v2 }
 0x799   : > { %v8562_v28 = vpop.f32.mrb[216].mxu1 }
 0x79a   : > { %v15570_v23 = vadd.f32 %v8562_v28, %v15100_v31  ;;  %v8564_v10 = vpop.f32.mrb[217].mxu1 }
 0x79d   : > { %v8122_v25 = vpop.f32.mrb[0].mxu0 }
 0x79e   : > { %v8210_v50 = vmul.f32 %v14937_v41, %v8122_v25  ;;  %v8124_v6 = vpop.f32.mrb[1].mxu0  ;;  %v8883_v25 = vrot.slane %v9513_v12, %v16752_v56 }
 0x79f   : > { %v8211_v49 = vmul.f32 %v14943_v27, %v8124_v6 }
 0x7a0   : > { %v8287_v39 = vadd.f32 %v14949_v44, %v8210_v50 }
 0x7a1   : > { %v8288_v46 = vadd.f32 %v14953_v9, %v8211_v49 }
 0x7a2   : > { %v8351_v8 = vmax.f32 %v8287_v39, 0.0 }
 0x7a3   : > { %v8352_v11 = vmax.f32 %v8288_v46, 0.0 }
 0x7a5   : > { %8630 = vmatprep.mubr.f32.mxu1 %v8352_v11 }
 0x7a6   : > { %8631 = vmatmul.mubr.f32.gmra.mrb[244].mxu1 %v8351_v8 }
 0x7a9   : > { %v8567_v29 = vpop.f32.mrb[218].mxu1 }
 0x7aa   : > { %v15577_v37 = vadd.f32 %v8567_v29, %v15114_v33  ;;  %v8569_v31 = vpop.f32.mrb[219].mxu1 }
 0x7ad   : > { %v8128_v40 = vpop.f32.mrb[2].mxu0 }
 0x7ae   : > { %v8212_v45 = vmul.f32 %v14937_v41, %v8128_v40  ;;  %v8130_v43 = vpop.f32.mrb[3].mxu0 }
 0x7af   : > { %v8213_v22 = vmul.f32 %v14943_v27, %v8130_v43 }
 0x7b0   : > { %v8289_v3 = vadd.f32 %v14949_v44, %v8212_v45 }
 0x7b1   : > { %v8290_v47 = vadd.f32 %v14953_v9, %v8213_v22 }
 0x7b2   : > { %v8353_v51 = vmax.f32 %v8289_v3, 0.0 }
 0x7b3   : > { %v8354_v48 = vmax.f32 %v8290_v47, 0.0 }
 0x7b5   : > { %8635 = vmatprep.mubr.f32.mxu1 %v8354_v48 }
 0x7b6   : > { %v8134_v33 = vpop.f32.mrb[4].mxu0  ;;  %8636 = vmatmul.mubr.f32.gmra.mrb[246].mxu1 %v8353_v51 }
 0x7b7   : > { %v8214_v14 = vmul.f32 %v14937_v41, %v8134_v33  ;;  %v8136_v7 = vpop.f32.mrb[5].mxu0  ;;  %v8887_v41 = vrot.slane %v9513_v12, %v16753_v2  ;;  %v16754_v12 = vld [vmem:[#allocation138_spill] sm:$0xff] }
 0x7b8   : > { %v8215_v34 = vmul.f32 %v14943_v27, %v8136_v7 }
 0x7b9   : > { %v8291_v28 = vadd.f32 %v14949_v44, %v8214_v14  ;;  %v8572_v10 = vpop.f32.mrb[220].mxu1 }
 0x7ba   : > { %v8292_v50 = vadd.f32 %v14953_v9, %v8215_v34  ;;  %v15597_v6 = vadd.f32 %v8572_v10, %v15130_v19  ;;  %v8574_v49 = vpop.f32.mrb[221].mxu1  ;;  %v8857_v39 = vpop.f32.mrb[6].mxu0  ;;  %v16755_v34 = vld [vmem:[#allocation207_spill] sm:$0xff] }
 0x7bb   : > { %v8875_v46 = vmul.f32 %v8868_v21, %v8857_v39  ;;  %v8859_v11 = vpop.f32.mrb[7].mxu0  ;;  %v8355_v29 = vmax.f32 %v8291_v28, 0.0 }
 0x7bc   : > { %v8356_v8 = vmax.f32 %v8292_v50, 0.0  ;;  %v8876_v27 = vmul.f32 %v8872_v15, %v8859_v11 }
 0x7bd   : > { %v8890_v31 = vadd.f32 %v8883_v25, %v8875_v46 }
 0x7be   : > { %v8891_v40 = vadd.f32 %v8887_v41, %v8876_v27  ;;  %8640 = vmatprep.mubr.f32.mxu1 %v8356_v8 }
 0x7bf   : > { %8641 = vmatmul.mubr.f32.gmra.mrb[248].mxu1 %v8355_v29  ;;  %v8892_v45 = vmax.f32 %v8890_v31, 0.0 }
 0x7c0   : > { %v8893_v44 = vmax.f32 %v8891_v40, 0.0 }
 0x7c2   : > { %9022 = vmatprep.mubr.f32.mxu0 %v8893_v44 }
 0x7c3   : > { %9023 = vmatmul.mubr.f32.vlgmr.msra.gmra.mrb[8].mxu0 %v8892_v45 }
 0x7c9   : > { %v8577_v9 = vpop.f32.mrb[222].mxu1 }
 0x7ca   : > { %v15601_v19 = vadd.f32 %v8577_v9, %v15147_v52  ;;  %v8579_v43 = vpop.f32.mrb[223].mxu1 }
 0x7d9   : > { %v8582_v22 = vpop.f32.mrb[224].mxu1 }
 0x7da   : > { %v8665_v3 = vadd.f32 %v8582_v22, %v15163_v1  ;;  %v8584_v47 = vpop.f32.mrb[225].mxu1 }
 0x7e9   : > { %v8587_v48 = vpop.f32.mrb[226].mxu1 }
 0x7ea   : > { %v8666_v51 = vadd.f32 %v8587_v48, %v15177_v62  ;;  %v8589_v17 = vpop.f32.mrb[227].mxu1 }
 0x7f9   : > { %v8592_v33 = vpop.f32.mrb[228].mxu1 }
 0x7fa   : > { %v8667_v14 = vadd.f32 %v8592_v33, %v16754_v12  ;;  %v8594_v7 = vpop.f32.mrb[229].mxu1 }
 0x809   : > { %v8597_v21 = vpop.f32.mrb[230].mxu1 }
 0x80a   : > { %v8668_v2 = vadd.f32 %v8597_v21, %v16755_v34  ;;  %v8599_v15 = vpop.f32.mrb[231].mxu1 }
 0x819   : > { %v8602_v28 = vpop.f32.mrb[232].mxu1 }
 0x81a   : > { %v8669_v52 = vadd.f32 %v8602_v28, %v15237_v18  ;;  %v8604_v10 = vpop.f32.mrb[233].mxu1 }
 0x829   : > { %v8607_v25 = vpop.f32.mrb[234].mxu1 }
 0x82a   : > { %v8670_v1 = vadd.f32 %v8607_v25, %v15255_v0  ;;  %v8609_v50 = vpop.f32.mrb[235].mxu1 }
 0x839   : > { %v8612_v49 = vpop.f32.mrb[236].mxu1 }
 0x83a   : > { %v8671_v62 = vadd.f32 %v8612_v49, %v15278_v4  ;;  %v8614_v39 = vpop.f32.mrb[237].mxu1 }
 0x849   : > { %v8617_v41 = vpop.f32.mrb[238].mxu1 }
 0x84a   : > { %v8672_v46 = vadd.f32 %v8617_v41, %v15296_v59  ;;  %v8619_v11 = vpop.f32.mrb[239].mxu1 }
 0x859   : > { %v8622_v8 = vpop.f32.mrb[240].mxu1 }
 0x85a   : > { %v8673_v27 = vadd.f32 %v8622_v8, %v15313_v35  ;;  %v8624_v29 = vpop.f32.mrb[241].mxu1 }
 0x869   : > { %v8627_v31 = vpop.f32.mrb[242].mxu1 }
 0x86a   : > { %v8674_v18 = vadd.f32 %v8627_v31, %v15327_v57  ;;  %v8629_v40 = vpop.f32.mrb[243].mxu1 }
 0x879   : > { %v8632_v44 = vpop.f32.mrb[244].mxu1 }
 0x87a   : > { %v8675_v0 = vadd.f32 %v8632_v44, %v15342_v58  ;;  %v8634_v45 = vpop.f32.mrb[245].mxu1 }
 0x87b   : > { %v9515_v45 = vld [vmem:[%s15790_s10] ss:$0 sm:$0xff] }
 0x889   : > { %v8637_v9 = vpop.f32.mrb[246].mxu1 }
 0x88a   : > { %v8676_v4 = vadd.f32 %v8637_v9, %v15356_v36  ;;  %v8639_v43 = vpop.f32.mrb[247].mxu1 }
 0x892   : > { %v8642_v22 = vpop.f32.mrb[248].mxu1 }
 0x893   : > { %v8677_v59 = vadd.f32 %v8642_v22, %v15380_v13  ;;  %v8644_v47 = vpop.f32.mrb[249].mxu1 }
 0x896   : > { %v9555_v48 = vpop.f32.mrb[8].mxu0 }
 0x897   : > { %v9556_v17 = vpop.f32.mrb[9].mxu0 }
 0x898   : > { %v9557_v35 = vadd.f32 %v9556_v17, %v9555_v48 }
 0x89a   : > { %v9031_v33 = vrot.slane %v9557_v35, %v16752_v56 }
 0x89c   : > { %v9032_v57 = vadd.f32 %v9031_v33, %v15406_v60  ;;  %v9033_v12 = vadd.f32 %v9031_v33, %v15431_v53  ;;  %v9034_v58 = vadd.f32 %v9031_v33, %v15455_v24  ;;  %v9035_v7 = vadd.f32 %v9031_v33, %v15475_v61 }
 0x89d   : > { %v9036_v36 = vadd.f32 %v9031_v33, %v15493_v16  ;;  %v9037_v21 = vadd.f32 %v9031_v33, %v15500_v20  ;;  %v9038_v13 = vadd.f32 %v9031_v33, %v15507_v63  ;;  %v9039_v34 = vadd.f32 %v9031_v33, %v15514_v38 }
 0x89e   : > { %v9040_v15 = vadd.f32 %v9031_v33, %v15521_v55  ;;  %v9041_v56 = vadd.f32 %v9031_v33, %v15528_v32  ;;  %v9042_v60 = vadd.f32 %v9031_v33, %v15535_v42  ;;  %v9043_v53 = vadd.f32 %v9031_v33, %v15542_v5  ;;  %v9514_v32 = vld [vmem:[%s15789_s9] ss:$0 sm:$0xff] }
 0x89f   : > { %v9044_v24 = vadd.f32 %v9031_v33, %v15549_v30  ;;  %v9045_v61 = vadd.f32 %v9031_v33, %v15556_v26  ;;  %v9046_v16 = vadd.f32 %v9031_v33, %v15563_v54  ;;  %v9047_v20 = vadd.f32 %v9031_v33, %v15570_v23 }
 0x8a0   : > { %v9048_v63 = vadd.f32 %v9031_v33, %v15577_v37  ;;  %v9049_v38 = vadd.f32 %v9031_v33, %v15597_v6  ;;  %v9050_v55 = vadd.f32 %v9031_v33, %v15601_v19  ;;  %v9051_v28 = vadd.f32 %v9031_v33, %v8665_v3 }
 0x8a1   : > { %v9052_v42 = vadd.f32 %v9031_v33, %v8666_v51  ;;  %v9053_v5 = vadd.f32 %v9031_v33, %v8667_v14  ;;  %v9054_v30 = vadd.f32 %v9031_v33, %v8668_v2  ;;  %v9055_v10 = vadd.f32 %v9031_v33, %v8669_v52 }
 0x8a2   : > { %v9056_v26 = vadd.f32 %v9031_v33, %v8670_v1  ;;  %v9057_v25 = vadd.f32 %v9031_v33, %v8671_v62  ;;  %v9058_v54 = vadd.f32 %v9031_v33, %v8672_v46  ;;  %v9059_v50 = vadd.f32 %v9031_v33, %v8673_v27 }
 0x8a3   : > { %v9060_v23 = vadd.f32 %v9031_v33, %v8674_v18  ;;  %v9061_v49 = vadd.f32 %v9031_v33, %v8675_v0  ;;  %v9062_v37 = vadd.f32 %v9031_v33, %v8676_v4  ;;  %v9063_v39 = vadd.f32 %v9031_v33, %v8677_v59 }
 0x8a4   : > { %v9135_v6 = vmul.f32 %v9514_v32, %v9032_v57  ;;  %v9136_v41 = vmul.f32 %v9514_v32, %v9033_v12  ;;  %v9137_v19 = vmul.f32 %v9514_v32, %v9034_v58  ;;  %v9138_v3 = vmul.f32 %v9514_v32, %v9035_v7 }
 0x8a5   : > { %v9139_v11 = vmul.f32 %v9514_v32, %v9036_v36  ;;  %v9140_v8 = vmul.f32 %v9514_v32, %v9037_v21  ;;  %v9141_v29 = vmul.f32 %v9514_v32, %v9038_v13  ;;  %v9142_v31 = vmul.f32 %v9514_v32, %v9039_v34 }
 0x8a6   : > { %v9143_v51 = vmul.f32 %v9514_v32, %v9040_v15  ;;  %v9144_v14 = vmul.f32 %v9514_v32, %v9041_v56  ;;  %v9145_v2 = vmul.f32 %v9514_v32, %v9042_v60  ;;  %v9146_v52 = vmul.f32 %v9514_v32, %v9043_v53 }
 0x8a7   : > { %v9147_v1 = vmul.f32 %v9514_v32, %v9044_v24  ;;  %v9148_v62 = vmul.f32 %v9514_v32, %v9045_v61  ;;  %v9149_v46 = vmul.f32 %v9514_v32, %v9046_v16  ;;  %v9150_v27 = vmul.f32 %v9514_v32, %v9047_v20 }
 0x8a8   : > { %v9151_v18 = vmul.f32 %v9514_v32, %v9048_v63  ;;  %v9152_v40 = vmul.f32 %v9514_v32, %v9049_v38  ;;  %v9153_v44 = vmul.f32 %v9514_v32, %v9050_v55  ;;  %v9154_v0 = vmul.f32 %v9514_v32, %v9051_v28 }
 0x8a9   : > { %v9155_v9 = vmul.f32 %v9514_v32, %v9052_v42  ;;  %v9156_v4 = vmul.f32 %v9514_v32, %v9053_v5  ;;  %v9157_v43 = vmul.f32 %v9514_v32, %v9054_v30  ;;  %v9158_v22 = vmul.f32 %v9514_v32, %v9055_v10 }
 0x8aa   : > { %v9159_v59 = vmul.f32 %v9514_v32, %v9056_v26  ;;  %v9160_v47 = vmul.f32 %v9514_v32, %v9057_v25  ;;  %v9161_v48 = vmul.f32 %v9514_v32, %v9058_v54  ;;  %v9162_v17 = vmul.f32 %v9514_v32, %v9059_v50 }
 0x8ab   : > { %v9163_v35 = vmul.f32 %v9514_v32, %v9060_v23  ;;  %v9164_v33 = vmul.f32 %v9514_v32, %v9061_v49  ;;  %v9165_v57 = vmul.f32 %v9514_v32, %v9062_v37  ;;  %v9166_v12 = vmul.f32 %v9514_v32, %v9063_v39 }
 0x8ac   : > { %v9174_v58 = vadd.f32 %v9515_v45, %v9135_v6  ;;  %v9175_v7 = vadd.f32 %v9515_v45, %v9136_v41  ;;  %v9176_v36 = vadd.f32 %v9515_v45, %v9137_v19  ;;  %v9177_v21 = vadd.f32 %v9515_v45, %v9138_v3 }
 0x8ad   : > { %v9178_v13 = vadd.f32 %v9515_v45, %v9139_v11  ;;  %v9179_v34 = vadd.f32 %v9515_v45, %v9140_v8  ;;  %v9180_v15 = vadd.f32 %v9515_v45, %v9141_v29  ;;  %v9181_v56 = vadd.f32 %v9515_v45, %v9142_v31 }
 0x8ae   : > { %v9182_v60 = vadd.f32 %v9515_v45, %v9143_v51  ;;  %v9183_v53 = vadd.f32 %v9515_v45, %v9144_v14  ;;  %v9184_v24 = vadd.f32 %v9515_v45, %v9145_v2  ;;  %v9185_v61 = vadd.f32 %v9515_v45, %v9146_v52 }
 0x8af   : > { %v9186_v16 = vadd.f32 %v9515_v45, %v9147_v1  ;;  %v9187_v20 = vadd.f32 %v9515_v45, %v9148_v62  ;;  %v9188_v63 = vadd.f32 %v9515_v45, %v9149_v46  ;;  %v9189_v38 = vadd.f32 %v9515_v45, %v9150_v27 }
 0x8b0   : > { %v15645_v55 = vadd.f32 %v9515_v45, %v9151_v18  ;;  %v15647_v28 = vadd.f32 %v9515_v45, %v9152_v40  ;;  %v15649_v32 = vadd.f32 %v9515_v45, %v9153_v44  ;;  %v15651_v42 = vadd.f32 %v9515_v45, %v9154_v0 }
 0x8b1   : > { %v15653_v5 = vadd.f32 %v9515_v45, %v9155_v9  ;;  %v15655_v30 = vadd.f32 %v9515_v45, %v9156_v4  ;;  %v15657_v10 = vadd.f32 %v9515_v45, %v9157_v43  ;;  %v15659_v26 = vadd.f32 %v9515_v45, %v9158_v22 }
 0x8b2   : > { %v15661_v25 = vadd.f32 %v9515_v45, %v9159_v59  ;;  %v15663_v54 = vadd.f32 %v9515_v45, %v9160_v47  ;;  %v15665_v50 = vadd.f32 %v9515_v45, %v9161_v48  ;;  %v15667_v23 = vadd.f32 %v9515_v45, %v9162_v17 }
 0x8b3   : > { %v15669_v49 = vadd.f32 %v9515_v45, %v9163_v35  ;;  %v15671_v37 = vadd.f32 %v9515_v45, %v9164_v33  ;;  %v15673_v39 = vadd.f32 %v9515_v45, %v9165_v57  ;;  %v15675_v6 = vadd.f32 %v9515_v45, %v9166_v12 }
 0x8b4   : > { %v9206_v41 = vmax.f32 %v9174_v58, 0.0  ;;  %v9207_v19 = vmax.f32 %v9175_v7, 0.0  ;;  %v9208_v3 = vmax.f32 %v9176_v36, 0.0  ;;  %v9209_v11 = vmax.f32 %v9177_v21, 0.0 }
 0x8b5   : > { %v9210_v8 = vmax.f32 %v9178_v13, 0.0  ;;  %v9211_v29 = vmax.f32 %v9179_v34, 0.0  ;;  %v9212_v31 = vmax.f32 %v9180_v15, 0.0  ;;  %v9213_v51 = vmax.f32 %v9181_v56, 0.0 }
 0x8b6   : > { %v9214_v14 = vmax.f32 %v9182_v60, 0.0  ;;  %v9215_v2 = vmax.f32 %v9183_v53, 0.0  ;;  %v9216_v52 = vmax.f32 %v9184_v24, 0.0  ;;  %v9217_v1 = vmax.f32 %v9185_v61, 0.0  ;;  %9238 = vst [vmem:[%s15677_s22] sm:$0xff] %v9206_v41  ;;  %9239 = vst [vmem:[%s15677_s22 + $0x8] sm:$0xff] %v9207_v19 }
 0x8b7   : > { %9240 = vst [vmem:[%s15677_s22 + $0x10] sm:$0xff] %v9208_v3  ;;  %9241 = vst [vmem:[%s15677_s22 + $0x18] sm:$0xff] %v9209_v11  ;;  %v9218_v62 = vmax.f32 %v9186_v16, 0.0  ;;  %v9219_v46 = vmax.f32 %v9187_v20, 0.0  ;;  %v9220_v27 = vmax.f32 %v9188_v63, 0.0  ;;  %v9221_v18 = vmax.f32 %v9189_v38, 0.0 }
 0x8b8   : > { %9242 = vst [vmem:[%s15677_s22 + $0x20] sm:$0xff] %v9210_v8  ;;  %9243 = vst [vmem:[%s15677_s22 + $0x28] sm:$0xff] %v9211_v29  ;;  %v9222_v40 = vmax.f32 %v15645_v55, 0.0  ;;  %v9223_v44 = vmax.f32 %v15647_v28, 0.0  ;;  %v9224_v0 = vmax.f32 %v15649_v32, 0.0  ;;  %v9225_v45 = vmax.f32 %v15651_v42, 0.0 }
 0x8b9   : > { %9244 = vst [vmem:[%s15677_s22 + $0x30] sm:$0xff] %v9212_v31  ;;  %9245 = vst [vmem:[%s15677_s22 + $0x38] sm:$0xff] %v9213_v51  ;;  %v9226_v9 = vmax.f32 %v15653_v5, 0.0  ;;  %v9227_v4 = vmax.f32 %v15655_v30, 0.0  ;;  %v9228_v43 = vmax.f32 %v15657_v10, 0.0  ;;  %v9229_v22 = vmax.f32 %v15659_v26, 0.0 }
 0x8ba   : > { %9246 = vst [vmem:[%s15677_s22 + $0x40] sm:$0xff] %v9214_v14  ;;  %9247 = vst [vmem:[%s15677_s22 + $0x48] sm:$0xff] %v9215_v2  ;;  %v9230_v59 = vmax.f32 %v15661_v25, 0.0  ;;  %v9231_v47 = vmax.f32 %v15663_v54, 0.0  ;;  %v9232_v48 = vmax.f32 %v15665_v50, 0.0  ;;  %v9233_v17 = vmax.f32 %v15667_v23, 0.0 }
 0x8bb   : > { %9248 = vst [vmem:[%s15677_s22 + $0x50] sm:$0xff] %v9216_v52  ;;  %9249 = vst [vmem:[%s15677_s22 + $0x58] sm:$0xff] %v9217_v1  ;;  %v9234_v35 = vmax.f32 %v15669_v49, 0.0  ;;  %v9235_v33 = vmax.f32 %v15671_v37, 0.0  ;;  %v9236_v57 = vmax.f32 %v15673_v39, 0.0  ;;  %v9237_v12 = vmax.f32 %v15675_v6, 0.0 }
 0x8bc   : > { %9250 = vst [vmem:[%s15677_s22 + $0x60] sm:$0xff] %v9218_v62  ;;  %9251 = vst [vmem:[%s15677_s22 + $0x68] sm:$0xff] %v9219_v46 }
 0x8bd   : > { %9252 = vst [vmem:[%s15677_s22 + $0x70] sm:$0xff] %v9220_v27  ;;  %9253 = vst [vmem:[%s15677_s22 + $0x78] sm:$0xff] %v9221_v18 }
 0x8be   : > { %9254 = vst [vmem:[%s15677_s22 + $0x80] sm:$0xff] %v9222_v40  ;;  %9255 = vst [vmem:[%s15677_s22 + $0x88] sm:$0xff] %v9223_v44 }
 0x8bf   : > { %9256 = vst [vmem:[%s15677_s22 + $0x90] sm:$0xff] %v9224_v0  ;;  %9257 = vst [vmem:[%s15677_s22 + $0x98] sm:$0xff] %v9225_v45 }
 0x8c0   : > { %9258 = vst [vmem:[%s15677_s22 + $0xa0] sm:$0xff] %v9226_v9  ;;  %9259 = vst [vmem:[%s15677_s22 + $0xa8] sm:$0xff] %v9227_v4 }
 0x8c1   : > { %9260 = vst [vmem:[%s15677_s22 + $0xb0] sm:$0xff] %v9228_v43  ;;  %9261 = vst [vmem:[%s15677_s22 + $0xb8] sm:$0xff] %v9229_v22 }
 0x8c2   : > { %9262 = vst [vmem:[%s15677_s22 + $0xc0] sm:$0xff] %v9230_v59  ;;  %9263 = vst [vmem:[%s15677_s22 + $0xc8] sm:$0xff] %v9231_v47 }
 0x8c3   : > { %9264 = vst [vmem:[%s15677_s22 + $0xd0] sm:$0xff] %v9232_v48  ;;  %9265 = vst [vmem:[%s15677_s22 + $0xd8] sm:$0xff] %v9233_v17 }
 0x8c4   : > { %9266 = vst [vmem:[%s15677_s22 + $0xe0] sm:$0xff] %v9234_v35  ;;  %9267 = vst [vmem:[%s15677_s22 + $0xe8] sm:$0xff] %v9235_v33 }
 0x8c5   : > { %9268 = vst [vmem:[%s15677_s22 + $0xf0] sm:$0xff] %v9236_v57  ;;  %9269 = vst [vmem:[%s15677_s22 + $0xf8] sm:$0xff] %v9237_v12 }
 0x8c6   : > { %10024 = shalt.err (!%p10021_p7)
}
 0x8c7   : > { %s10025_s0 = scalar_lea.hbm %s15716_s24, 4096  ;;  %s10029_s3 = scalar_lea.hbm %s15791_s11, 8192 }
 0x8c8   : > { %p10026_p8 = scmp.ne.s32.totalorder %s15716_s24, %s10025_s0  ;;  %p10030_p1 = scmp.lt.u32.totalorder %s15716_s24, %s15791_s11 }
 0x8c9   : > { %p10031_p0 = scmp.lt.u32.totalorder %s10029_s3, %s10025_s0  ;;  %p10033_p6 = scmp.lt.u32.totalorder %s10025_s0, %s15716_s24 }
 0x8ca   : > { %p10027_p11 = pnand %p10026_p8, %p16756_p9 }
 0x8cb   : > { %p10032_p5 = por %p10031_p0, %p10030_p1 }
 0x8cc   : > { %p10028_p13 = pneg %p10027_p11 }
 0x8cd   : > { %p10034_p10 = por %p10033_p6, %p10032_p5 }
 0x8cf   : > { %p10035_p12 = pnand %p10034_p10, %p10028_p13 }
 0x8d1   : > { %10038 = shalt.err (!%p10035_p12)
}
 0x8d2   : > { %s10093_s21 = smov 128  }
 0x8d3   : > { %9842 = dma.vmem_to_hbm [thread:$0]  (%p16756_p9), %s15726_s16, 4096, %s15716_s24, %s15738_s13, %s10093_s21, %s10093_s21, %s16624_s30  }
 0x8d4 PF: > { %p9854_p2 = scmp.ge.s32.totalorder %s10077_s20, 2  ;;  %s9299_s14 = sand.u32 1, %s10065_s17  }
 0x8d5   : > { %p16757_p3 = scmp.ne.s32.totalorder %s15918_s28, 0  ;;  %s9300_s25 = scalar_lea.sflag [#allocation6], %s9299_s14 }
 0x8d7   : > { %p9849_p4 = pnand %p9854_p2, %p16757_p3 }
 0x8d9   : > { %10060 = dma.done.wait (!%p9849_p4), %s9300_s25, 4096  }
 0x8da   : > { %10062 = vsyncadd (!%p9849_p4), %s9300_s25, 4294963200  ;;  %s16758_s27 = sld [smem:[#allocation10_spill]]  ;;  %p22_p7 = scmp.ge.s32.totalorder %s10179_s23, 4  }
 0x8db   : > { %s16759_s17 = smov %s10069_s18  ;;  %s16760_s18 = smov %s10073_s19 }
 0x8dc   : > { %s16762_s20 = smov %s10179_s23  ;;  %24 = sbr.rel (!%p22_p7) target bundleno = 9 (0x9), region = 119 }
 0x8e0   : > { %s16761_s19 = smov %s16758_s27 }
 0x8e3   :  { %9305 = vsyncpa [#allocation5], 1 }
 0x8e4   :  { %9307 = vsyncpa [#allocation5 + $0x1], 1 }
 0x8e5   :  { %9308 = vsyncpa [#allocation6], 1 }
 0x8e6   :  { %9310 = vsyncpa [#allocation6 + $0x1], 1 }

</bundles_post_ra>
